<compile_context>
chip_gen: v5e
topology: v5e:2x2
jax: 0.10.0
libtpu: 0.0.40
codegen_flags: <defaults>
</compile_context>

<pallas_src>
import math
from functools import partial

import numpy as np
import jax
import jax.numpy as jnp
from jax.experimental import pallas as pl
from jax.experimental.pallas import tpu as pltpu

F32 = jnp.float32
BF16 = jnp.bfloat16
NORM_EPS = 1e-12      # stabilizes the compression/reconstruction norms


def _round_up(x, m):
    return ((x + m - 1) // m) * m


def _mm(a, b):
    """MXU matmul: bf16 inputs, f32 accumulation."""
    return jnp.dot(a.astype(BF16), b.astype(BF16), preferred_element_type=F32)


def _silu(x):
    return x * pl.reciprocal(1.0 + jnp.exp(-x), approx=True)


# ----------------------------------------------------------------------------
# Fully fused PaiNN kernel.  Grid = (n_interactions,), sequential ("arbitrary").
# Per grid step: filter-gen -> context net -> pair gather -> batched
# compression -> message + scatter-add -> reconstruction (k-loop, row-sums
# only) -> mixing -> in-place update of the resident (q | mu) state slab.
# ----------------------------------------------------------------------------
def _painn_kernel(
        # loop-invariant / resident inputs
        d_ref, dir_ref, gj_ref, si_ref, rbf_ref, q0_ref,
        # per-interaction (stacked, leading axis squeezed by BlockSpec)
        fw_ref, fb_ref,
        ctx1w_ref, ctx1b_ref, ctx2w_ref, ctx2b_ref,
        c1w_ref, c1b_ref, c2w_ref, c2b_ref,
        r1w_ref, r1b_ref, rW_ref, rB_ref,
        wmix_ref, m1w_ref, m1b_ref, m2w_ref, m2b_ref,
        # resident output state slab: [ q (F) | mu (3 x 2F) | pad ]
        state_ref,
        *, f, n_atoms, n_pairs, coeff, cutoff, eps, out_cols):
    F1, F2, F3 = f, 2 * f, 3 * f
    N, P = n_atoms, n_pairs
    pad = out_cols - 7 * f

    # ---- initialize resident state at the first interaction ----
    @pl.when(pl.program_id(0) == 0)
    def _init():
        zeros = jnp.zeros((N, 6 * f + pad), F32)
        state_ref[...] = jnp.concatenate([q0_ref[...], zeros], axis=-1)

    state = state_ref[...]
    q = state[:, 0:F1]                       # (N, F)
    mu = state[:, F1:F1 + 6 * f]             # (N, 6F) = [c0 | c1 | c2] x 2F

    # ---- filter generation: Gaussian RBF + cosine cutoff + Dense ----
    d = d_ref[...]                                          # (P, 1)
    phi = jnp.exp(coeff * (d - rbf_ref[...]) ** 2)          # (P, n_rbf)
    fcut = 0.5 * (jnp.cos(d * (math.pi / cutoff)) + 1.0)
    fcut = fcut * jnp.where(d < cutoff, 1.0, 0.0)           # (P, 1)
    Wij = (_mm(phi, fw_ref[...]) + fb_ref[...]) * fcut      # (P, 3F)

    # ---- interatomic context net ----
    x = _silu(_mm(q, ctx1w_ref[...]) + ctx1b_ref[...])      # (N, F)
    x = _mm(x, ctx2w_ref[...]) + ctx2b_ref[...]             # (N, 3F)

    # ---- atom -> pair gather via bf16 one-hot matmuls (resident selectors) ----
    gj = gj_ref[...]                                        # (P, N) bf16
    xj = _mm(gj, x)                                         # (P, 3F)
    muj = _mm(gj, mu)                                       # (P, 6F)

    # ---- batched equivariant compression (per-pair muj and per-atom mu) ----
    # TODO(synk): reference compresses per-pair mui; we apply it per atom on mu instead.
    v_all = jnp.concatenate([muj, mu], axis=0)              # (P+N, 6F)
    v0 = v_all[:, 0 * F2:1 * F2]
    v1 = v_all[:, 1 * F2:2 * F2]
    v2 = v_all[:, 2 * F2:3 * F2]
    s = jnp.sqrt(v0 * v0 + v1 * v1 + v2 * v2 + NORM_EPS)    # norm over spatial axis
    h = jnp.maximum(_mm(s, c1w_ref[...]) + c1b_ref[...], 0.0)      # (P+N, 32)
    z = _mm(h, c2w_ref[...]) + c2b_ref[...]                         # (P+N, F)
    z = z - jnp.max(z, axis=-1, keepdims=True)
    e = jnp.exp(z)
    w = e / jnp.sum(e, axis=-1, keepdims=True)              # exact softmax normalization
    vs0 = jnp.sum(v0, axis=-1, keepdims=True)
    vs1 = jnp.sum(v1, axis=-1, keepdims=True)
    vs2 = jnp.sum(v2, axis=-1, keepdims=True)
    wj, wi = w[:P], w[P:]
    vsj = [vs0[:P], vs1[:P], vs2[:P]]
    vsi = [vs0[P:], vs1[P:], vs2[P:]]

    # ---- message + fused scatter-add: one (N,P)@(P,4F) matmul ----
    xm = Wij * xj                                           # (P, 3F)
    dq_p = xm[:, 0:F1]
    dmuR = xm[:, F1:F2]
    dmumu = xm[:, F2:F3]
    dirp = dir_ref[...]                                     # (P, 3)
    msg = jnp.concatenate(
        [dq_p] + [dmuR * dirp[:, c:c + 1] + dmumu * (wj * vsj[c]) for c in range(3)],
        axis=-1)                                            # (P, 4F) lane-dense
    agg = _mm(si_ref[...], msg)                             # (N, 4F) scatter-add

    # ---- residual updates ----
    q1 = q + agg[:, 0:F1]
    mh = [agg[:, F1 * (c + 1):F1 * (c + 2)] + wi * vsi[c] for c in range(3)]  # 3 x (N, F)

    # ---- equivariant reconstruction (only the j-row-sums are consumed) ----
    #   jsum[c*N+n, r] = sum_k h_r[n,k] * sum_c' t[c*N+n, c'] * r2_w[k, r*F+c']
    #                  + sum_c' t[c*N+n, c'] * r2_b[r*F+c']
    # computed as a statically-unrolled 32-step k-loop over (F,F) slices of rW.
    s_r = jnp.sqrt(mh[0] ** 2 + mh[1] ** 2 + mh[2] ** 2 + NORM_EPS)   # (N, F)
    h_r = jnp.maximum(_mm(s_r, r1w_ref[...]) + r1b_ref[...], 0.0)     # (N, 32)
    ssum = mh[0] + mh[1] + mh[2]                                       # (N, F)
    t_stack = jnp.concatenate([mh[0] * ssum, mh[1] * ssum, mh[2] * ssum], axis=0)  # (3N, F)
    h_r3 = jnp.concatenate([h_r, h_r, h_r], axis=0)                    # (3N, 32)
    t_bf = t_stack.astype(BF16)
    rW_bf = rW_ref[...].astype(BF16)                                   # (32F, F)
    jsum = jnp.dot(t_bf, rB_ref[...].astype(BF16), preferred_element_type=F32)  # bias term
    for k in range(32):
        rWk = rW_bf[k * f:(k + 1) * f, :]                              # (F, F)
        jsum = jsum + h_r3[:, k:k + 1] * jnp.dot(t_bf, rWk, preferred_element_type=F32)

    # ---- PaiNN mixing ----
    mh_stack = jnp.concatenate(mh, axis=0)                  # (3N, F)
    mm_ = _mm(mh_stack, wmix_ref[...])                      # (3N, 2F)
    muV = [mm_[c * N:(c + 1) * N, 0:F1] for c in range(3)]
    muW = [mm_[c * N:(c + 1) * N, F1:F2] for c in range(3)]
    mu_Vn = jnp.sqrt(muV[0] ** 2 + muV[1] ** 2 + muV[2] ** 2 + eps)    # (N, F)
    ctx = jnp.concatenate([q1, mu_Vn], axis=-1)             # (N, 2F)
    hmx = _silu(_mm(ctx, m1w_ref[...]) + m1b_ref[...])      # (N, F)
    xx = _mm(hmx, m2w_ref[...]) + m2b_ref[...]              # (N, 3F)
    dq_i = xx[:, 0:F1]
    dmu_i = xx[:, F1:F2]
    dqmu_i = xx[:, F2:F3]
    vw = muV[0] * muW[0] + muV[1] * muW[1] + muV[2] * muW[2]
    # TODO(synk): reference concatenates [dq_intra, dqmu_intra] onto q, which doubles the
    # feature dim every iteration (shape-inconsistent); residual addition is used instead.
    q_new = q1 + dq_i + dqmu_i * vw

    # ---- store new state as one lane-dense slab ----
    # TODO(synk): reference adds mu to a wider concatenation; we keep the residual on the
    # first half and append tensor_vector so mu stays (N, 3, 2F) for the next interaction.
    cols = [q_new]
    for c in range(3):
        cols.append(mh[c] + dmu_i * muW[c])                  # first F lanes of channel c
        cols.append(q_new * jsum[c * N:(c + 1) * N, :])      # second F lanes of channel c
    if pad:
        cols.append(jnp.zeros((N, pad), F32))
    state_ref[...] = jnp.concatenate(cols, axis=-1)          # (N, out_cols)


# ----------------------------------------------------------------------------
# Parameter init (deterministic, synthetic) + kernel-ready stacked weights
# ----------------------------------------------------------------------------
def _linear_init(key, din, dout, bias=True):
    kw, kb = jax.random.split(key)
    w = (jax.random.normal(kw, (din, dout), F32) / jnp.sqrt(float(din))).astype(F32)
    b = (0.01 * jax.random.normal(kb, (1, dout), F32)).astype(F32) if bias else None
    return w, b


def init_params(key, F, n_rbf, n_interactions, cutoff):
    keys = iter(jax.random.split(key, 4 + 9 * n_interactions))
    p = {}
    # TODO(synk): reference uses nn.Embedding(100, 2F) which is incompatible with Dense(F, F);
    # we embed directly at F features so the context net applies.
    p["embedding"] = (0.5 * jax.random.normal(next(keys), (100, F), F32)).astype(F32)
    p["rbf_offsets"] = jnp.linspace(0.0, cutoff, n_rbf, dtype=F32).reshape(1, n_rbf)
    # TODO(synk): reference allocates n_interactions*6F filter columns but only the first
    # n_interactions*3F are consumed after torch.split; the dead half is not generated.
    fw, fb = _linear_init(next(keys), n_rbf, n_interactions * 3 * F)

    names = ["fw", "fb", "ctx1_w", "ctx1_b", "ctx2_w", "ctx2_b",
             "c1_w", "c1_b", "c2_w", "c2_b", "r1_w", "r1_b", "rW", "rB",
             "wmix", "m1_w", "m1_b", "m2_w", "m2_b"]
    per = {k: [] for k in names}
    for i in range(n_interactions):
        per["fw"].append(fw[:, i * 3 * F:(i + 1) * 3 * F])
        per["fb"].append(fb[:, i * 3 * F:(i + 1) * 3 * F])
        w, b = _linear_init(next(keys), F, F);      per["ctx1_w"].append(w); per["ctx1_b"].append(b)
        w, b = _linear_init(next(keys), F, 3 * F);  per["ctx2_w"].append(w); per["ctx2_b"].append(b)
        w, b = _linear_init(next(keys), 2 * F, 32); per["c1_w"].append(w);   per["c1_b"].append(b)
        w, b = _linear_init(next(keys), 32, F);     per["c2_w"].append(w);   per["c2_b"].append(b)
        w, b = _linear_init(next(keys), F, 32);     per["r1_w"].append(w);   per["r1_b"].append(b)
        r2_w, r2_b = _linear_init(next(keys), 32, F * F)
        # pre-transposed reconstruction weights: rW[k*F + c, r] = r2_w[k, r*F + c]
        per["rW"].append(jnp.transpose(r2_w.reshape(32, F, F), (0, 2, 1)).reshape(32 * F, F))
        per["rB"].append(r2_b.reshape(F, F).T)     # rB[c, r] = r2_b[r*F + c]
        w, _ = _linear_init(next(keys), F, 2 * F, bias=False); per["wmix"].append(w)
        w, b = _linear_init(next(keys), 2 * F, F);  per["m1_w"].append(w);   per["m1_b"].append(b)
        w, b = _linear_init(next(keys), F, 3 * F);  per["m2_w"].append(w);   per["m2_b"].append(b)
    p["stacked"] = {k: jnp.stack(v, axis=0) for k, v in per.items()}
    p["weight_names"] = names
    return p


# ----------------------------------------------------------------------------
# PaiNN forward: single fused pallas_call over all interactions
# ----------------------------------------------------------------------------
def painn_forward(params, Z, r_ij, idx_i, idx_j, *, F, n_interactions, cutoff,
                  n_rbf, eps=1e-8):
    N = int(Z.shape[0])
    P = int(idx_i.shape[0])
    N_pad = _round_up(max(N, 8), 8)
    P_pad = _round_up(max(P, 8), 8)
    out_cols = _round_up(7 * F, 128)

    d = jnp.sqrt(jnp.sum(r_ij * r_ij, axis=1, keepdims=True)).astype(F32)   # (P, 1)
    dir_ij = (r_ij / jnp.maximum(d, 1e-9)).astype(F32)                      # eps-guarded (P, 3)

    # pad pair axis to a sublane multiple with "dead" pairs (beyond cutoff -> zero message)
    if P_pad > P:
        pp = P_pad - P
        d = jnp.concatenate([d, jnp.full((pp, 1), 2.0 * cutoff, F32)], axis=0)
        dir_ij = jnp.concatenate([dir_ij, jnp.zeros((pp, 3), F32)], axis=0)
        idx_i = jnp.concatenate([idx_i, jnp.zeros((pp,), idx_i.dtype)], axis=0)
        idx_j = jnp.concatenate([idx_j, jnp.zeros((pp,), idx_j.dtype)], axis=0)

    width = cutoff / (n_rbf - 1)
    coeff = float(-0.5 / (width * width))

    # TODO(synk): for production N/P replace these O(N*P) one-hot selectors with
    # scalar-prefetch pair indices + a pair-axis reduction grid; bf16 keeps 0/1 exact here.
    gj = jax.nn.one_hot(idx_j, N_pad, dtype=BF16)          # (P_pad, N_pad): pair <- atom j
    si = jax.nn.one_hot(idx_i, N_pad, dtype=BF16).T        # (N_pad, P_pad): atom i <- pair

    q0 = jnp.take(params["embedding"], Z, axis=0).astype(F32)          # (N, F)
    if N_pad > N:
        q0 = jnp.concatenate([q0, jnp.zeros((N_pad - N, F), F32)], axis=0)

    res_args = [d, dir_ij, gj, si, params["rbf_offsets"], q0]
    weight_args = [params["stacked"][k] for k in params["weight_names"]]

    def resident_spec(a):
        shp = tuple(a.shape)
        return pl.BlockSpec(shp, lambda i, _n=len(shp): (0,) * _n)

    def stacked_spec(a):
        tail = tuple(a.shape[1:])
        return pl.BlockSpec((pl.Squeezed(),) + tail, lambda i: (i, 0, 0))

    in_specs = [resident_spec(a) for a in res_args] + [stacked_spec(a) for a in weight_args]
    out_spec = pl.BlockSpec((N_pad, out_cols), lambda i: (0, 0))   # resident accumulator

    def nbytes(a):
        return int(np.prod(a.shape)) * jnp.dtype(a.dtype).itemsize

    block_bytes = (sum(nbytes(a) for a in res_args)
                   + 2 * sum(nbytes(a) // n_interactions for a in weight_args)
                   + N_pad * out_cols * 4)
    vmem_limit = int(min(100 * 2 ** 20, max(32 * 2 ** 20, 6 * block_bytes)))

    flops_per = 2 * (
        P_pad * n_rbf * 3 * F + N_pad * F * F + N_pad * F * 3 * F        # filter + ctx net
        + P_pad * N_pad * 9 * F + N_pad * P_pad * 4 * F                  # gather + scatter
        + (P_pad + N_pad) * (2 * F * 32 + 32 * F)                        # batched compression
        + N_pad * F * 32 + 3 * N_pad * (32 * F * F + F * F + F * 2 * F)  # recon + wmix
        + N_pad * (2 * F * F + F * 3 * F))                               # mixing MLP
    cost = pl.CostEstimate(
        flops=int(flops_per * n_interactions),
        transcendentals=int(n_interactions * (P_pad * (n_rbf + 2 + F) + N_pad * (3 * F + 4))),
        bytes_accessed=int(sum(nbytes(a) for a in res_args)
                           + sum(nbytes(a) for a in weight_args)
                           + N_pad * out_cols * 4))

    grid_spec = pltpu.PrefetchScalarGridSpec(
        num_scalar_prefetch=0,
        grid=(n_interactions,),
        in_specs=in_specs,
        out_specs=out_spec)

    out = pl.pallas_call(
        partial(_painn_kernel, f=F, n_atoms=N_pad, n_pairs=P_pad,
                coeff=coeff, cutoff=cutoff, eps=eps, out_cols=out_cols),
        out_shape=jax.ShapeDtypeStruct((N_pad, out_cols), F32),
        grid_spec=grid_spec,
        compiler_params=pltpu.CompilerParams(
            dimension_semantics=("arbitrary",),
            vmem_limit_bytes=vmem_limit),
        cost_estimate=cost,
    )(*res_args, *weight_args)

    q = out[:N, 0:F]
    mu = out[:N, F:7 * F].reshape(N, 3, 2 * F)
    return q, mu   # scalar / vector representations


# ----------------------------------------------------------------------------
if __name__ == "__main__":
    key = jax.random.PRNGKey(0)
    k_pos, k_z, k_par = jax.random.split(key, 3)

    n_atom_basis = 32           # module arg; internal F = n_atom_basis // 2 = 16
    F = n_atom_basis // 2
    n_interactions = 2
    n_rbf = 16
    cutoff = 5.0
    N = 8                       # atoms

    # full pair list i != j
    ii, jj = np.meshgrid(np.arange(N), np.arange(N), indexing="ij")
    m = ii != jj
    idx_i = jnp.asarray(ii[m], jnp.int32)     # (56,)
    idx_j = jnp.asarray(jj[m], jnp.int32)     # (56,)

    pos = 2.0 * jax.random.normal(k_pos, (N, 3), F32)
    r_ij = jnp.take(pos, idx_j, axis=0) - jnp.take(pos, idx_i, axis=0)    # (56, 3)
    Z = jax.random.randint(k_z, (N,), 1, 100).astype(jnp.int32)

    params = init_params(k_par, F, n_rbf, n_interactions, cutoff)

    q, mu = painn_forward(params, Z, r_ij, idx_i, idx_j,
                          F=F, n_interactions=n_interactions,
                          cutoff=cutoff, n_rbf=n_rbf)
    q = jax.block_until_ready(q)
    mu = jax.block_until_ready(mu)
    assert q.shape == (N, F) and mu.shape == (N, 3, 2 * F)
    assert bool(jnp.all(jnp.isfinite(q))) and bool(jnp.all(jnp.isfinite(mu)))
    print("KERNEL_OK")
</pallas_src>

<mosaic_0001>
module attributes {stable_mosaic.version = 11 : i64} {
  func.func @_painn_kernel(%arg0: i32, %arg1: memref<56x1xf32, #tpu.memory_space<vmem>>, %arg2: memref<56x3xf32, #tpu.memory_space<vmem>>, %arg3: memref<56x8xbf16, #tpu.memory_space<vmem>>, %arg4: memref<8x56xbf16, #tpu.memory_space<vmem>>, %arg5: memref<1x16xf32, #tpu.memory_space<vmem>>, %arg6: memref<8x16xf32, #tpu.memory_space<vmem>>, %arg7: memref<1x16x48xf32, #tpu.memory_space<vmem>>, %arg8: memref<1x1x48xf32, #tpu.memory_space<vmem>>, %arg9: memref<1x16x16xf32, #tpu.memory_space<vmem>>, %arg10: memref<1x1x16xf32, #tpu.memory_space<vmem>>, %arg11: memref<1x16x48xf32, #tpu.memory_space<vmem>>, %arg12: memref<1x1x48xf32, #tpu.memory_space<vmem>>, %arg13: memref<1x32x32xf32, #tpu.memory_space<vmem>>, %arg14: memref<1x1x32xf32, #tpu.memory_space<vmem>>, %arg15: memref<1x32x16xf32, #tpu.memory_space<vmem>>, %arg16: memref<1x1x16xf32, #tpu.memory_space<vmem>>, %arg17: memref<1x16x32xf32, #tpu.memory_space<vmem>>, %arg18: memref<1x1x32xf32, #tpu.memory_space<vmem>>, %arg19: memref<1x512x16xf32, #tpu.memory_space<vmem>>, %arg20: memref<1x16x16xf32, #tpu.memory_space<vmem>>, %arg21: memref<1x16x32xf32, #tpu.memory_space<vmem>>, %arg22: memref<1x32x16xf32, #tpu.memory_space<vmem>>, %arg23: memref<1x1x16xf32, #tpu.memory_space<vmem>>, %arg24: memref<1x16x48xf32, #tpu.memory_space<vmem>>, %arg25: memref<1x1x48xf32, #tpu.memory_space<vmem>>, %arg26: memref<8x128xf32, #tpu.memory_space<vmem>>) attributes {dimension_semantics = [#tpu.dimension_semantics<arbitrary>], iteration_bounds = array<i64: 2>, scalar_prefetch = 0 : i64, scratch_operands = 0 : i64, tpu.core_type = #tpu.core_type<tc>, window_params = [{pipeline_mode = #tpu.pipeline_mode<synchronous>, transform_indices = @transform_0, window_bounds = array<i64: 56, 1>}, {pipeline_mode = #tpu.pipeline_mode<synchronous>, transform_indices = @transform_1, window_bounds = array<i64: 56, 3>}, {pipeline_mode = #tpu.pipeline_mode<synchronous>, transform_indices = @transform_2, window_bounds = array<i64: 56, 8>}, {pipeline_mode = #tpu.pipeline_mode<synchronous>, transform_indices = @transform_3, window_bounds = array<i64: 8, 56>}, {pipeline_mode = #tpu.pipeline_mode<synchronous>, transform_indices = @transform_4, window_bounds = array<i64: 1, 16>}, {pipeline_mode = #tpu.pipeline_mode<synchronous>, transform_indices = @transform_5, window_bounds = array<i64: 8, 16>}, {transform_indices = @transform_6, window_bounds = array<i64: 1, 16, 48>}, {transform_indices = @transform_7, window_bounds = array<i64: 1, 1, 48>}, {transform_indices = @transform_8, window_bounds = array<i64: 1, 16, 16>}, {transform_indices = @transform_9, window_bounds = array<i64: 1, 1, 16>}, {transform_indices = @transform_10, window_bounds = array<i64: 1, 16, 48>}, {transform_indices = @transform_11, window_bounds = array<i64: 1, 1, 48>}, {transform_indices = @transform_12, window_bounds = array<i64: 1, 32, 32>}, {transform_indices = @transform_13, window_bounds = array<i64: 1, 1, 32>}, {transform_indices = @transform_14, window_bounds = array<i64: 1, 32, 16>}, {transform_indices = @transform_15, window_bounds = array<i64: 1, 1, 16>}, {transform_indices = @transform_16, window_bounds = array<i64: 1, 16, 32>}, {transform_indices = @transform_17, window_bounds = array<i64: 1, 1, 32>}, {transform_indices = @transform_18, window_bounds = array<i64: 1, 512, 16>}, {transform_indices = @transform_19, window_bounds = array<i64: 1, 16, 16>}, {transform_indices = @transform_20, window_bounds = array<i64: 1, 16, 32>}, {transform_indices = @transform_21, window_bounds = array<i64: 1, 32, 16>}, {transform_indices = @transform_22, window_bounds = array<i64: 1, 1, 16>}, {transform_indices = @transform_23, window_bounds = array<i64: 1, 16, 48>}, {transform_indices = @transform_24, window_bounds = array<i64: 1, 1, 48>}, {pipeline_mode = #tpu.pipeline_mode<synchronous>, transform_indices = @transform_25, window_bounds = array<i64: 8, 128>}]} {
    %c0_i32 = arith.constant 0 : i32
    %0 = arith.cmpi eq, %arg0, %c0_i32 : i32
    %1 = arith.extui %0 : i1 to i32
    %c0_i32_0 = arith.constant 0 : i32
    %2 = arith.cmpi ne, %1, %c0_i32_0 : i32
    scf.if %2 {
      %cst_137 = arith.constant 0.000000e+00 : f32
      %466 = vector.broadcast %cst_137 : f32 to vector<8x112xf32>
      %c0_138 = arith.constant 0 : index
      %c0_139 = arith.constant 0 : index
      %467 = vector.load %arg6[%c0_138, %c0_139] : memref<8x16xf32, #tpu.memory_space<vmem>>, vector<8x16xf32>
      %468 = tpu.concatenate %467, %466 in 1 : vector<8x16xf32>, vector<8x112xf32> -> vector<8x128xf32>
      %c0_140 = arith.constant 0 : index
      %c0_141 = arith.constant 0 : index
      %469 = vector.load %arg26[%c0_140, %c0_141] : memref<8x128xf32, #tpu.memory_space<vmem>>, vector<8x128xf32>
      tpu.vector_store %arg26[%c0_140, %c0_141], %468 {strides = array<i32>} : memref<8x128xf32, #tpu.memory_space<vmem>>, vector<8x128xf32>,
    } else {
    }
    %c0 = arith.constant 0 : index
    %c0_1 = arith.constant 0 : index
    %3 = vector.load %arg26[%c0, %c0_1] : memref<8x128xf32, #tpu.memory_space<vmem>>, vector<8x128xf32>
    %4 = vector.extract_strided_slice %3 {offsets = [0, 0], sizes = [8, 16], strides = [1, 1]} : vector<8x128xf32> to vector<8x16xf32>
    %5 = vector.extract_strided_slice %3 {offsets = [0, 16], sizes = [8, 96], strides = [1, 1]} : vector<8x128xf32> to vector<8x96xf32>
    %c0_2 = arith.constant 0 : index
    %c0_3 = arith.constant 0 : index
    %6 = vector.load %arg1[%c0_2, %c0_3] : memref<56x1xf32, #tpu.memory_space<vmem>>, vector<56x1xf32>
    %c0_4 = arith.constant 0 : index
    %c0_5 = arith.constant 0 : index
    %7 = vector.load %arg5[%c0_4, %c0_5] : memref<1x16xf32, #tpu.memory_space<vmem>>, vector<1x16xf32>
    %8 = vector.broadcast %6 : vector<56x1xf32> to vector<56x16xf32>
    %9 = vector.broadcast %7 : vector<1x16xf32> to vector<56x16xf32>
    %10 = arith.subf %8, %9 : vector<56x16xf32>
    %11 = arith.mulf %10, %10 : vector<56x16xf32>
    %cst = arith.constant -4.500000e+00 : f32
    %12 = vector.broadcast %cst : f32 to vector<56x16xf32>
    %13 = arith.mulf %12, %11 : vector<56x16xf32>
    %14 = math.exp %13 : vector<56x16xf32>
    %cst_6 = arith.constant 0.628318548 : f32
    %15 = vector.broadcast %cst_6 : f32 to vector<56x1xf32>
    %16 = arith.mulf %6, %15 : vector<56x1xf32>
    %17 = math.cos %16 : vector<56x1xf32>
    %cst_7 = arith.constant 1.000000e+00 : f32
    %18 = vector.broadcast %cst_7 : f32 to vector<56x1xf32>
    %19 = arith.addf %17, %18 : vector<56x1xf32>
    %cst_8 = arith.constant 5.000000e-01 : f32
    %20 = vector.broadcast %cst_8 : f32 to vector<56x1xf32>
    %21 = arith.mulf %20, %19 : vector<56x1xf32>
    %cst_9 = arith.constant 5.000000e+00 : f32
    %22 = vector.broadcast %cst_9 : f32 to vector<56x1xf32>
    %23 = arith.cmpf olt, %6, %22 : vector<56x1xf32>
    %cst_10 = arith.constant 1.000000e+00 : f32
    %cst_11 = arith.constant 0.000000e+00 : f32
    %24 = vector.broadcast %cst_10 : f32 to vector<56x1xf32>
    %25 = vector.broadcast %cst_11 : f32 to vector<56x1xf32>
    %26 = arith.select %23, %24, %25 : vector<56x1xi1>, vector<56x1xf32>
    %27 = arith.mulf %21, %26 : vector<56x1xf32>
    %c0_12 = arith.constant 0 : index
    %c0_13 = arith.constant 0 : index
    %c0_14 = arith.constant 0 : index
    %28 = vector.load %arg7[%c0_12, %c0_13, %c0_14] : memref<1x16x48xf32, #tpu.memory_space<vmem>>, vector<1x16x48xf32>
    %29 = vector.shape_cast %28 : vector<1x16x48xf32> to vector<16x48xf32>
    %30 = arith.truncf %14 : vector<56x16xf32> to vector<56x16xbf16>
    %31 = arith.truncf %29 : vector<16x48xf32> to vector<16x48xbf16>
    %cst_15 = arith.constant dense<0.000000e+00> : vector<56x48xf32>
    %32 = tpu.matmul %30, %31, %cst_15 {dimension_numbers = #tpu.dot_dimension_numbers<[1], [0], [0], [1], [0, 0, 1, 1], [], []>} : vector<56x16xbf16>, vector<16x48xbf16>, vector<56x48xf32> -> vector<56x48xf32>
    %c0_16 = arith.constant 0 : index
    %c0_17 = arith.constant 0 : index
    %c0_18 = arith.constant 0 : index
    %33 = vector.load %arg8[%c0_16, %c0_17, %c0_18] : memref<1x1x48xf32, #tpu.memory_space<vmem>>, vector<1x1x48xf32>
    %34 = vector.shape_cast %33 : vector<1x1x48xf32> to vector<1x48xf32>
    %35 = vector.broadcast %34 : vector<1x48xf32> to vector<56x48xf32>
    %36 = arith.addf %32, %35 : vector<56x48xf32>
    %37 = vector.broadcast %27 : vector<56x1xf32> to vector<56x48xf32>
    %38 = arith.mulf %36, %37 : vector<56x48xf32>
    %c0_19 = arith.constant 0 : index
    %c0_20 = arith.constant 0 : index
    %c0_21 = arith.constant 0 : index
    %39 = vector.load %arg9[%c0_19, %c0_20, %c0_21] : memref<1x16x16xf32, #tpu.memory_space<vmem>>, vector<1x16x16xf32>
    %40 = vector.shape_cast %39 : vector<1x16x16xf32> to vector<16x16xf32>
    %41 = arith.truncf %4 : vector<8x16xf32> to vector<8x16xbf16>
    %42 = arith.truncf %40 : vector<16x16xf32> to vector<16x16xbf16>
    %cst_22 = arith.constant dense<0.000000e+00> : vector<8x16xf32>
    %43 = tpu.matmul %41, %42, %cst_22 {dimension_numbers = #tpu.dot_dimension_numbers<[1], [0], [0], [1], [0, 0, 1, 1], [], []>} : vector<8x16xbf16>, vector<16x16xbf16>, vector<8x16xf32> -> vector<8x16xf32>
    %c0_23 = arith.constant 0 : index
    %c0_24 = arith.constant 0 : index
    %c0_25 = arith.constant 0 : index
    %44 = vector.load %arg10[%c0_23, %c0_24, %c0_25] : memref<1x1x16xf32, #tpu.memory_space<vmem>>, vector<1x1x16xf32>
    %45 = vector.shape_cast %44 : vector<1x1x16xf32> to vector<1x16xf32>
    %46 = vector.broadcast %45 : vector<1x16xf32> to vector<8x16xf32>
    %47 = arith.addf %43, %46 : vector<8x16xf32>
    %cst_26 = arith.constant 0.000000e+00 : f32
    %48 = vector.broadcast %cst_26 : f32 to vector<8x16xf32>
    %49 = arith.subf %48, %47 : vector<8x16xf32>
    %50 = math.exp %49 : vector<8x16xf32>
    %cst_27 = arith.constant 1.000000e+00 : f32
    %51 = vector.broadcast %cst_27 : f32 to vector<8x16xf32>
    %52 = arith.addf %51, %50 : vector<8x16xf32>
    %53 = tpu.reciprocal %52 {approx = true} : vector<8x16xf32> -> vector<8x16xf32>
    %54 = arith.mulf %47, %53 : vector<8x16xf32>
    %c0_28 = arith.constant 0 : index
    %c0_29 = arith.constant 0 : index
    %c0_30 = arith.constant 0 : index
    %55 = vector.load %arg11[%c0_28, %c0_29, %c0_30] : memref<1x16x48xf32, #tpu.memory_space<vmem>>, vector<1x16x48xf32>
    %56 = vector.shape_cast %55 : vector<1x16x48xf32> to vector<16x48xf32>
    %57 = arith.truncf %54 : vector<8x16xf32> to vector<8x16xbf16>
    %58 = arith.truncf %56 : vector<16x48xf32> to vector<16x48xbf16>
    %cst_31 = arith.constant dense<0.000000e+00> : vector<8x48xf32>
    %59 = tpu.matmul %57, %58, %cst_31 {dimension_numbers = #tpu.dot_dimension_numbers<[1], [0], [0], [1], [0, 0, 1, 1], [], []>} : vector<8x16xbf16>, vector<16x48xbf16>, vector<8x48xf32> -> vector<8x48xf32>
    %c0_32 = arith.constant 0 : index
    %c0_33 = arith.constant 0 : index
    %c0_34 = arith.constant 0 : index
    %60 = vector.load %arg12[%c0_32, %c0_33, %c0_34] : memref<1x1x48xf32, #tpu.memory_space<vmem>>, vector<1x1x48xf32>
    %61 = vector.shape_cast %60 : vector<1x1x48xf32> to vector<1x48xf32>
    %62 = vector.broadcast %61 : vector<1x48xf32> to vector<8x48xf32>
    %63 = arith.addf %59, %62 : vector<8x48xf32>
    %c0_35 = arith.constant 0 : index
    %c0_36 = arith.constant 0 : index
    %64 = vector.load %arg3[%c0_35, %c0_36] : memref<56x8xbf16, #tpu.memory_space<vmem>>, vector<56x8xbf16>
    %65 = arith.truncf %63 : vector<8x48xf32> to vector<8x48xbf16>
    %cst_37 = arith.constant dense<0.000000e+00> : vector<56x48xf32>
    %66 = tpu.matmul %64, %65, %cst_37 {dimension_numbers = #tpu.dot_dimension_numbers<[1], [0], [0], [1], [0, 0, 1, 1], [], []>} : vector<56x8xbf16>, vector<8x48xbf16>, vector<56x48xf32> -> vector<56x48xf32>
    %67 = arith.truncf %5 : vector<8x96xf32> to vector<8x96xbf16>
    %cst_38 = arith.constant dense<0.000000e+00> : vector<56x96xf32>
    %68 = tpu.matmul %64, %67, %cst_38 {dimension_numbers = #tpu.dot_dimension_numbers<[1], [0], [0], [1], [0, 0, 1, 1], [], []>} : vector<56x8xbf16>, vector<8x96xbf16>, vector<56x96xf32> -> vector<56x96xf32>
    %69 = tpu.concatenate %68, %5 in 0 : vector<56x96xf32>, vector<8x96xf32> -> vector<64x96xf32>
    %70 = vector.extract_strided_slice %69 {offsets = [0, 0], sizes = [64, 32], strides = [1, 1]} : vector<64x96xf32> to vector<64x32xf32>
    %71 = vector.extract_strided_slice %69 {offsets = [0, 32], sizes = [64, 32], strides = [1, 1]} : vector<64x96xf32> to vector<64x32xf32>
    %72 = vector.extract_strided_slice %69 {offsets = [0, 64], sizes = [64, 32], strides = [1, 1]} : vector<64x96xf32> to vector<64x32xf32>
    %73 = arith.mulf %70, %70 : vector<64x32xf32>
    %74 = arith.mulf %71, %71 : vector<64x32xf32>
    %75 = arith.addf %73, %74 : vector<64x32xf32>
    %76 = arith.mulf %72, %72 : vector<64x32xf32>
    %77 = arith.addf %75, %76 : vector<64x32xf32>
    %cst_39 = arith.constant 9.99999996E-13 : f32
    %78 = vector.broadcast %cst_39 : f32 to vector<64x32xf32>
    %79 = arith.addf %77, %78 : vector<64x32xf32>
    %80 = math.sqrt %79 : vector<64x32xf32>
    %c0_40 = arith.constant 0 : index
    %c0_41 = arith.constant 0 : index
    %c0_42 = arith.constant 0 : index
    %81 = vector.load %arg13[%c0_40, %c0_41, %c0_42] : memref<1x32x32xf32, #tpu.memory_space<vmem>>, vector<1x32x32xf32>
    %82 = vector.shape_cast %81 : vector<1x32x32xf32> to vector<32x32xf32>
    %83 = arith.truncf %80 : vector<64x32xf32> to vector<64x32xbf16>
    %84 = arith.truncf %82 : vector<32x32xf32> to vector<32x32xbf16>
    %cst_43 = arith.constant dense<0.000000e+00> : vector<64x32xf32>
    %85 = tpu.matmul %83, %84, %cst_43 {dimension_numbers = #tpu.dot_dimension_numbers<[1], [0], [0], [1], [0, 0, 1, 1], [], []>} : vector<64x32xbf16>, vector<32x32xbf16>, vector<64x32xf32> -> vector<64x32xf32>
    %c0_44 = arith.constant 0 : index
    %c0_45 = arith.constant 0 : index
    %c0_46 = arith.constant 0 : index
    %86 = vector.load %arg14[%c0_44, %c0_45, %c0_46] : memref<1x1x32xf32, #tpu.memory_space<vmem>>, vector<1x1x32xf32>
    %87 = vector.shape_cast %86 : vector<1x1x32xf32> to vector<1x32xf32>
    %88 = vector.broadcast %87 : vector<1x32xf32> to vector<64x32xf32>
    %89 = arith.addf %85, %88 : vector<64x32xf32>
    %cst_47 = arith.constant 0.000000e+00 : f32
    %90 = vector.broadcast %cst_47 : f32 to vector<64x32xf32>
    %91 = arith.maximumf %89, %90 : vector<64x32xf32>
    %c0_48 = arith.constant 0 : index
    %c0_49 = arith.constant 0 : index
    %c0_50 = arith.constant 0 : index
    %92 = vector.load %arg15[%c0_48, %c0_49, %c0_50] : memref<1x32x16xf32, #tpu.memory_space<vmem>>, vector<1x32x16xf32>
    %93 = vector.shape_cast %92 : vector<1x32x16xf32> to vector<32x16xf32>
    %94 = arith.truncf %91 : vector<64x32xf32> to vector<64x32xbf16>
    %95 = arith.truncf %93 : vector<32x16xf32> to vector<32x16xbf16>
    %cst_51 = arith.constant dense<0.000000e+00> : vector<64x16xf32>
    %96 = tpu.matmul %94, %95, %cst_51 {dimension_numbers = #tpu.dot_dimension_numbers<[1], [0], [0], [1], [0, 0, 1, 1], [], []>} : vector<64x32xbf16>, vector<32x16xbf16>, vector<64x16xf32> -> vector<64x16xf32>
    %c0_52 = arith.constant 0 : index
    %c0_53 = arith.constant 0 : index
    %c0_54 = arith.constant 0 : index
    %97 = vector.load %arg16[%c0_52, %c0_53, %c0_54] : memref<1x1x16xf32, #tpu.memory_space<vmem>>, vector<1x1x16xf32>
    %98 = vector.shape_cast %97 : vector<1x1x16xf32> to vector<1x16xf32>
    %99 = vector.broadcast %98 : vector<1x16xf32> to vector<64x16xf32>
    %100 = arith.addf %96, %99 : vector<64x16xf32>
    %cst_55 = arith.constant dense<0xFF800000> : vector<64xf32>
    %101 = vector.multi_reduction <maximumf>, %100, %cst_55 [1] : vector<64x16xf32> to vector<64xf32>
    %102 = vector.shape_cast %101 : vector<64xf32> to vector<64x1xf32>
    %103 = vector.broadcast %102 : vector<64x1xf32> to vector<64x16xf32>
    %104 = arith.subf %100, %103 : vector<64x16xf32>
    %105 = math.exp %104 : vector<64x16xf32>
    %cst_56 = arith.constant dense<0.000000e+00> : vector<64xf32>
    %106 = vector.multi_reduction <add>, %105, %cst_56 [1] : vector<64x16xf32> to vector<64xf32>
    %107 = vector.shape_cast %106 : vector<64xf32> to vector<64x1xf32>
    %108 = vector.broadcast %107 : vector<64x1xf32> to vector<64x16xf32>
    %109 = arith.divf %105, %108 : vector<64x16xf32>
    %cst_57 = arith.constant dense<0.000000e+00> : vector<64xf32>
    %110 = vector.multi_reduction <add>, %70, %cst_57 [1] : vector<64x32xf32> to vector<64xf32>
    %111 = vector.shape_cast %110 : vector<64xf32> to vector<64x1xf32>
    %cst_58 = arith.constant dense<0.000000e+00> : vector<64xf32>
    %112 = vector.multi_reduction <add>, %71, %cst_58 [1] : vector<64x32xf32> to vector<64xf32>
    %113 = vector.shape_cast %112 : vector<64xf32> to vector<64x1xf32>
    %cst_59 = arith.constant dense<0.000000e+00> : vector<64xf32>
    %114 = vector.multi_reduction <add>, %72, %cst_59 [1] : vector<64x32xf32> to vector<64xf32>
    %115 = vector.shape_cast %114 : vector<64xf32> to vector<64x1xf32>
    %116 = vector.extract_strided_slice %109 {offsets = [0, 0], sizes = [56, 16], strides = [1, 1]} : vector<64x16xf32> to vector<56x16xf32>
    %117 = vector.extract_strided_slice %109 {offsets = [56, 0], sizes = [8, 16], strides = [1, 1]} : vector<64x16xf32> to vector<8x16xf32>
    %118 = vector.extract_strided_slice %111 {offsets = [0, 0], sizes = [56, 1], strides = [1, 1]} : vector<64x1xf32> to vector<56x1xf32>
    %119 = vector.extract_strided_slice %113 {offsets = [0, 0], sizes = [56, 1], strides = [1, 1]} : vector<64x1xf32> to vector<56x1xf32>
    %120 = vector.extract_strided_slice %115 {offsets = [0, 0], sizes = [56, 1], strides = [1, 1]} : vector<64x1xf32> to vector<56x1xf32>
    %121 = vector.extract_strided_slice %111 {offsets = [56, 0], sizes = [8, 1], strides = [1, 1]} : vector<64x1xf32> to vector<8x1xf32>
    %122 = vector.extract_strided_slice %113 {offsets = [56, 0], sizes = [8, 1], strides = [1, 1]} : vector<64x1xf32> to vector<8x1xf32>
    %123 = vector.extract_strided_slice %115 {offsets = [56, 0], sizes = [8, 1], strides = [1, 1]} : vector<64x1xf32> to vector<8x1xf32>
    %124 = arith.mulf %38, %66 : vector<56x48xf32>
    %125 = vector.extract_strided_slice %124 {offsets = [0, 0], sizes = [56, 16], strides = [1, 1]} : vector<56x48xf32> to vector<56x16xf32>
    %126 = vector.extract_strided_slice %124 {offsets = [0, 16], sizes = [56, 16], strides = [1, 1]} : vector<56x48xf32> to vector<56x16xf32>
    %127 = vector.extract_strided_slice %124 {offsets = [0, 32], sizes = [56, 16], strides = [1, 1]} : vector<56x48xf32> to vector<56x16xf32>
    %c0_60 = arith.constant 0 : index
    %c0_61 = arith.constant 0 : index
    %128 = vector.load %arg2[%c0_60, %c0_61] : memref<56x3xf32, #tpu.memory_space<vmem>>, vector<56x3xf32>
    %129 = vector.extract_strided_slice %128 {offsets = [0, 0], sizes = [56, 1], strides = [1, 1]} : vector<56x3xf32> to vector<56x1xf32>
    %130 = vector.broadcast %129 : vector<56x1xf32> to vector<56x16xf32>
    %131 = arith.mulf %126, %130 : vector<56x16xf32>
    %132 = vector.broadcast %118 : vector<56x1xf32> to vector<56x16xf32>
    %133 = arith.mulf %116, %132 : vector<56x16xf32>
    %134 = arith.mulf %127, %133 : vector<56x16xf32>
    %135 = arith.addf %131, %134 : vector<56x16xf32>
    %136 = vector.extract_strided_slice %128 {offsets = [0, 1], sizes = [56, 1], strides = [1, 1]} : vector<56x3xf32> to vector<56x1xf32>
    %137 = vector.broadcast %136 : vector<56x1xf32> to vector<56x16xf32>
    %138 = arith.mulf %126, %137 : vector<56x16xf32>
    %139 = vector.broadcast %119 : vector<56x1xf32> to vector<56x16xf32>
    %140 = arith.mulf %116, %139 : vector<56x16xf32>
    %141 = arith.mulf %127, %140 : vector<56x16xf32>
    %142 = arith.addf %138, %141 : vector<56x16xf32>
    %143 = vector.extract_strided_slice %128 {offsets = [0, 2], sizes = [56, 1], strides = [1, 1]} : vector<56x3xf32> to vector<56x1xf32>
    %144 = vector.broadcast %143 : vector<56x1xf32> to vector<56x16xf32>
    %145 = arith.mulf %126, %144 : vector<56x16xf32>
    %146 = vector.broadcast %120 : vector<56x1xf32> to vector<56x16xf32>
    %147 = arith.mulf %116, %146 : vector<56x16xf32>
    %148 = arith.mulf %127, %147 : vector<56x16xf32>
    %149 = arith.addf %145, %148 : vector<56x16xf32>
    %150 = tpu.concatenate %125, %135, %142, %149 in 1 : vector<56x16xf32>, vector<56x16xf32>, vector<56x16xf32>, vector<56x16xf32> -> vector<56x64xf32>
    %c0_62 = arith.constant 0 : index
    %c0_63 = arith.constant 0 : index
    %151 = vector.load %arg4[%c0_62, %c0_63] : memref<8x56xbf16, #tpu.memory_space<vmem>>, vector<8x56xbf16>
    %152 = arith.truncf %150 : vector<56x64xf32> to vector<56x64xbf16>
    %cst_64 = arith.constant dense<0.000000e+00> : vector<8x64xf32>
    %153 = tpu.matmul %151, %152, %cst_64 {dimension_numbers = #tpu.dot_dimension_numbers<[1], [0], [0], [1], [0, 0, 1, 1], [], []>} : vector<8x56xbf16>, vector<56x64xbf16>, vector<8x64xf32> -> vector<8x64xf32>
    %154 = vector.extract_strided_slice %153 {offsets = [0, 0], sizes = [8, 16], strides = [1, 1]} : vector<8x64xf32> to vector<8x16xf32>
    %155 = arith.addf %4, %154 : vector<8x16xf32>
    %156 = vector.extract_strided_slice %153 {offsets = [0, 16], sizes = [8, 16], strides = [1, 1]} : vector<8x64xf32> to vector<8x16xf32>
    %157 = vector.broadcast %121 : vector<8x1xf32> to vector<8x16xf32>
    %158 = arith.mulf %117, %157 : vector<8x16xf32>
    %159 = arith.addf %156, %158 : vector<8x16xf32>
    %160 = vector.extract_strided_slice %153 {offsets = [0, 32], sizes = [8, 16], strides = [1, 1]} : vector<8x64xf32> to vector<8x16xf32>
    %161 = vector.broadcast %122 : vector<8x1xf32> to vector<8x16xf32>
    %162 = arith.mulf %117, %161 : vector<8x16xf32>
    %163 = arith.addf %160, %162 : vector<8x16xf32>
    %164 = vector.extract_strided_slice %153 {offsets = [0, 48], sizes = [8, 16], strides = [1, 1]} : vector<8x64xf32> to vector<8x16xf32>
    %165 = vector.broadcast %123 : vector<8x1xf32> to vector<8x16xf32>
    %166 = arith.mulf %117, %165 : vector<8x16xf32>
    %167 = arith.addf %164, %166 : vector<8x16xf32>
    %168 = arith.mulf %159, %159 : vector<8x16xf32>
    %169 = arith.mulf %163, %163 : vector<8x16xf32>
    %170 = arith.addf %168, %169 : vector<8x16xf32>
    %171 = arith.mulf %167, %167 : vector<8x16xf32>
    %172 = arith.addf %170, %171 : vector<8x16xf32>
    %cst_65 = arith.constant 9.99999996E-13 : f32
    %173 = vector.broadcast %cst_65 : f32 to vector<8x16xf32>
    %174 = arith.addf %172, %173 : vector<8x16xf32>
    %175 = math.sqrt %174 : vector<8x16xf32>
    %c0_66 = arith.constant 0 : index
    %c0_67 = arith.constant 0 : index
    %c0_68 = arith.constant 0 : index
    %176 = vector.load %arg17[%c0_66, %c0_67, %c0_68] : memref<1x16x32xf32, #tpu.memory_space<vmem>>, vector<1x16x32xf32>
    %177 = vector.shape_cast %176 : vector<1x16x32xf32> to vector<16x32xf32>
    %178 = arith.truncf %175 : vector<8x16xf32> to vector<8x16xbf16>
    %179 = arith.truncf %177 : vector<16x32xf32> to vector<16x32xbf16>
    %cst_69 = arith.constant dense<0.000000e+00> : vector<8x32xf32>
    %180 = tpu.matmul %178, %179, %cst_69 {dimension_numbers = #tpu.dot_dimension_numbers<[1], [0], [0], [1], [0, 0, 1, 1], [], []>} : vector<8x16xbf16>, vector<16x32xbf16>, vector<8x32xf32> -> vector<8x32xf32>
    %c0_70 = arith.constant 0 : index
    %c0_71 = arith.constant 0 : index
    %c0_72 = arith.constant 0 : index
    %181 = vector.load %arg18[%c0_70, %c0_71, %c0_72] : memref<1x1x32xf32, #tpu.memory_space<vmem>>, vector<1x1x32xf32>
    %182 = vector.shape_cast %181 : vector<1x1x32xf32> to vector<1x32xf32>
    %183 = vector.broadcast %182 : vector<1x32xf32> to vector<8x32xf32>
    %184 = arith.addf %180, %183 : vector<8x32xf32>
    %cst_73 = arith.constant 0.000000e+00 : f32
    %185 = vector.broadcast %cst_73 : f32 to vector<8x32xf32>
    %186 = arith.maximumf %184, %185 : vector<8x32xf32>
    %187 = arith.addf %159, %163 : vector<8x16xf32>
    %188 = arith.addf %187, %167 : vector<8x16xf32>
    %189 = arith.mulf %159, %188 : vector<8x16xf32>
    %190 = arith.mulf %163, %188 : vector<8x16xf32>
    %191 = arith.mulf %167, %188 : vector<8x16xf32>
    %192 = tpu.concatenate %189, %190, %191 in 0 : vector<8x16xf32>, vector<8x16xf32>, vector<8x16xf32> -> vector<24x16xf32>
    %193 = tpu.concatenate %186, %186, %186 in 0 : vector<8x32xf32>, vector<8x32xf32>, vector<8x32xf32> -> vector<24x32xf32>
    %194 = arith.truncf %192 : vector<24x16xf32> to vector<24x16xbf16>
    %c0_74 = arith.constant 0 : index
    %c0_75 = arith.constant 0 : index
    %c0_76 = arith.constant 0 : index
    %195 = vector.load %arg19[%c0_74, %c0_75, %c0_76] : memref<1x512x16xf32, #tpu.memory_space<vmem>>, vector<1x512x16xf32>
    %196 = vector.shape_cast %195 : vector<1x512x16xf32> to vector<512x16xf32>
    %197 = arith.truncf %196 : vector<512x16xf32> to vector<512x16xbf16>
    %c0_77 = arith.constant 0 : index
    %c0_78 = arith.constant 0 : index
    %c0_79 = arith.constant 0 : index
    %198 = vector.load %arg20[%c0_77, %c0_78, %c0_79] : memref<1x16x16xf32, #tpu.memory_space<vmem>>, vector<1x16x16xf32>
    %199 = vector.shape_cast %198 : vector<1x16x16xf32> to vector<16x16xf32>
    %200 = arith.truncf %199 : vector<16x16xf32> to vector<16x16xbf16>
    %cst_80 = arith.constant dense<0.000000e+00> : vector<24x16xf32>
    %201 = tpu.matmul %194, %200, %cst_80 {dimension_numbers = #tpu.dot_dimension_numbers<[1], [0], [0], [1], [0, 0, 1, 1], [], []>} : vector<24x16xbf16>, vector<16x16xbf16>, vector<24x16xf32> -> vector<24x16xf32>
    %202 = vector.extract_strided_slice %197 {offsets = [0, 0], sizes = [16, 16], strides = [1, 1]} : vector<512x16xbf16> to vector<16x16xbf16>
    %203 = vector.extract_strided_slice %193 {offsets = [0, 0], sizes = [24, 1], strides = [1, 1]} : vector<24x32xf32> to vector<24x1xf32>
    %cst_81 = arith.constant dense<0.000000e+00> : vector<24x16xf32>
    %204 = tpu.matmul %194, %202, %cst_81 {dimension_numbers = #tpu.dot_dimension_numbers<[1], [0], [0], [1], [0, 0, 1, 1], [], []>} : vector<24x16xbf16>, vector<16x16xbf16>, vector<24x16xf32> -> vector<24x16xf32>
    %205 = vector.broadcast %203 : vector<24x1xf32> to vector<24x16xf32>
    %206 = arith.mulf %205, %204 : vector<24x16xf32>
    %207 = arith.addf %201, %206 : vector<24x16xf32>
    %208 = vector.extract_strided_slice %197 {offsets = [16, 0], sizes = [16, 16], strides = [1, 1]} : vector<512x16xbf16> to vector<16x16xbf16>
    %209 = vector.extract_strided_slice %193 {offsets = [0, 1], sizes = [24, 1], strides = [1, 1]} : vector<24x32xf32> to vector<24x1xf32>
    %cst_82 = arith.constant dense<0.000000e+00> : vector<24x16xf32>
    %210 = tpu.matmul %194, %208, %cst_82 {dimension_numbers = #tpu.dot_dimension_numbers<[1], [0], [0], [1], [0, 0, 1, 1], [], []>} : vector<24x16xbf16>, vector<16x16xbf16>, vector<24x16xf32> -> vector<24x16xf32>
    %211 = vector.broadcast %209 : vector<24x1xf32> to vector<24x16xf32>
    %212 = arith.mulf %211, %210 : vector<24x16xf32>
    %213 = arith.addf %207, %212 : vector<24x16xf32>
    %214 = vector.extract_strided_slice %197 {offsets = [32, 0], sizes = [16, 16], strides = [1, 1]} : vector<512x16xbf16> to vector<16x16xbf16>
    %215 = vector.extract_strided_slice %193 {offsets = [0, 2], sizes = [24, 1], strides = [1, 1]} : vector<24x32xf32> to vector<24x1xf32>
    %cst_83 = arith.constant dense<0.000000e+00> : vector<24x16xf32>
    %216 = tpu.matmul %194, %214, %cst_83 {dimension_numbers = #tpu.dot_dimension_numbers<[1], [0], [0], [1], [0, 0, 1, 1], [], []>} : vector<24x16xbf16>, vector<16x16xbf16>, vector<24x16xf32> -> vector<24x16xf32>
    %217 = vector.broadcast %215 : vector<24x1xf32> to vector<24x16xf32>
    %218 = arith.mulf %217, %216 : vector<24x16xf32>
    %219 = arith.addf %213, %218 : vector<24x16xf32>
    %220 = vector.extract_strided_slice %197 {offsets = [48, 0], sizes = [16, 16], strides = [1, 1]} : vector<512x16xbf16> to vector<16x16xbf16>
    %221 = vector.extract_strided_slice %193 {offsets = [0, 3], sizes = [24, 1], strides = [1, 1]} : vector<24x32xf32> to vector<24x1xf32>
    %cst_84 = arith.constant dense<0.000000e+00> : vector<24x16xf32>
    %222 = tpu.matmul %194, %220, %cst_84 {dimension_numbers = #tpu.dot_dimension_numbers<[1], [0], [0], [1], [0, 0, 1, 1], [], []>} : vector<24x16xbf16>, vector<16x16xbf16>, vector<24x16xf32> -> vector<24x16xf32>
    %223 = vector.broadcast %221 : vector<24x1xf32> to vector<24x16xf32>
    %224 = arith.mulf %223, %222 : vector<24x16xf32>
    %225 = arith.addf %219, %224 : vector<24x16xf32>
    %226 = vector.extract_strided_slice %197 {offsets = [64, 0], sizes = [16, 16], strides = [1, 1]} : vector<512x16xbf16> to vector<16x16xbf16>
    %227 = vector.extract_strided_slice %193 {offsets = [0, 4], sizes = [24, 1], strides = [1, 1]} : vector<24x32xf32> to vector<24x1xf32>
    %cst_85 = arith.constant dense<0.000000e+00> : vector<24x16xf32>
    %228 = tpu.matmul %194, %226, %cst_85 {dimension_numbers = #tpu.dot_dimension_numbers<[1], [0], [0], [1], [0, 0, 1, 1], [], []>} : vector<24x16xbf16>, vector<16x16xbf16>, vector<24x16xf32> -> vector<24x16xf32>
    %229 = vector.broadcast %227 : vector<24x1xf32> to vector<24x16xf32>
    %230 = arith.mulf %229, %228 : vector<24x16xf32>
    %231 = arith.addf %225, %230 : vector<24x16xf32>
    %232 = vector.extract_strided_slice %197 {offsets = [80, 0], sizes = [16, 16], strides = [1, 1]} : vector<512x16xbf16> to vector<16x16xbf16>
    %233 = vector.extract_strided_slice %193 {offsets = [0, 5], sizes = [24, 1], strides = [1, 1]} : vector<24x32xf32> to vector<24x1xf32>
    %cst_86 = arith.constant dense<0.000000e+00> : vector<24x16xf32>
    %234 = tpu.matmul %194, %232, %cst_86 {dimension_numbers = #tpu.dot_dimension_numbers<[1], [0], [0], [1], [0, 0, 1, 1], [], []>} : vector<24x16xbf16>, vector<16x16xbf16>, vector<24x16xf32> -> vector<24x16xf32>
    %235 = vector.broadcast %233 : vector<24x1xf32> to vector<24x16xf32>
    %236 = arith.mulf %235, %234 : vector<24x16xf32>
    %237 = arith.addf %231, %236 : vector<24x16xf32>
    %238 = vector.extract_strided_slice %197 {offsets = [96, 0], sizes = [16, 16], strides = [1, 1]} : vector<512x16xbf16> to vector<16x16xbf16>
    %239 = vector.extract_strided_slice %193 {offsets = [0, 6], sizes = [24, 1], strides = [1, 1]} : vector<24x32xf32> to vector<24x1xf32>
    %cst_87 = arith.constant dense<0.000000e+00> : vector<24x16xf32>
    %240 = tpu.matmul %194, %238, %cst_87 {dimension_numbers = #tpu.dot_dimension_numbers<[1], [0], [0], [1], [0, 0, 1, 1], [], []>} : vector<24x16xbf16>, vector<16x16xbf16>, vector<24x16xf32> -> vector<24x16xf32>
    %241 = vector.broadcast %239 : vector<24x1xf32> to vector<24x16xf32>
    %242 = arith.mulf %241, %240 : vector<24x16xf32>
    %243 = arith.addf %237, %242 : vector<24x16xf32>
    %244 = vector.extract_strided_slice %197 {offsets = [112, 0], sizes = [16, 16], strides = [1, 1]} : vector<512x16xbf16> to vector<16x16xbf16>
    %245 = vector.extract_strided_slice %193 {offsets = [0, 7], sizes = [24, 1], strides = [1, 1]} : vector<24x32xf32> to vector<24x1xf32>
    %cst_88 = arith.constant dense<0.000000e+00> : vector<24x16xf32>
    %246 = tpu.matmul %194, %244, %cst_88 {dimension_numbers = #tpu.dot_dimension_numbers<[1], [0], [0], [1], [0, 0, 1, 1], [], []>} : vector<24x16xbf16>, vector<16x16xbf16>, vector<24x16xf32> -> vector<24x16xf32>
    %247 = vector.broadcast %245 : vector<24x1xf32> to vector<24x16xf32>
    %248 = arith.mulf %247, %246 : vector<24x16xf32>
    %249 = arith.addf %243, %248 : vector<24x16xf32>
    %250 = vector.extract_strided_slice %197 {offsets = [128, 0], sizes = [16, 16], strides = [1, 1]} : vector<512x16xbf16> to vector<16x16xbf16>
    %251 = vector.extract_strided_slice %193 {offsets = [0, 8], sizes = [24, 1], strides = [1, 1]} : vector<24x32xf32> to vector<24x1xf32>
    %cst_89 = arith.constant dense<0.000000e+00> : vector<24x16xf32>
    %252 = tpu.matmul %194, %250, %cst_89 {dimension_numbers = #tpu.dot_dimension_numbers<[1], [0], [0], [1], [0, 0, 1, 1], [], []>} : vector<24x16xbf16>, vector<16x16xbf16>, vector<24x16xf32> -> vector<24x16xf32>
    %253 = vector.broadcast %251 : vector<24x1xf32> to vector<24x16xf32>
    %254 = arith.mulf %253, %252 : vector<24x16xf32>
    %255 = arith.addf %249, %254 : vector<24x16xf32>
    %256 = vector.extract_strided_slice %197 {offsets = [144, 0], sizes = [16, 16], strides = [1, 1]} : vector<512x16xbf16> to vector<16x16xbf16>
    %257 = vector.extract_strided_slice %193 {offsets = [0, 9], sizes = [24, 1], strides = [1, 1]} : vector<24x32xf32> to vector<24x1xf32>
    %cst_90 = arith.constant dense<0.000000e+00> : vector<24x16xf32>
    %258 = tpu.matmul %194, %256, %cst_90 {dimension_numbers = #tpu.dot_dimension_numbers<[1], [0], [0], [1], [0, 0, 1, 1], [], []>} : vector<24x16xbf16>, vector<16x16xbf16>, vector<24x16xf32> -> vector<24x16xf32>
    %259 = vector.broadcast %257 : vector<24x1xf32> to vector<24x16xf32>
    %260 = arith.mulf %259, %258 : vector<24x16xf32>
    %261 = arith.addf %255, %260 : vector<24x16xf32>
    %262 = vector.extract_strided_slice %197 {offsets = [160, 0], sizes = [16, 16], strides = [1, 1]} : vector<512x16xbf16> to vector<16x16xbf16>
    %263 = vector.extract_strided_slice %193 {offsets = [0, 10], sizes = [24, 1], strides = [1, 1]} : vector<24x32xf32> to vector<24x1xf32>
    %cst_91 = arith.constant dense<0.000000e+00> : vector<24x16xf32>
    %264 = tpu.matmul %194, %262, %cst_91 {dimension_numbers = #tpu.dot_dimension_numbers<[1], [0], [0], [1], [0, 0, 1, 1], [], []>} : vector<24x16xbf16>, vector<16x16xbf16>, vector<24x16xf32> -> vector<24x16xf32>
    %265 = vector.broadcast %263 : vector<24x1xf32> to vector<24x16xf32>
    %266 = arith.mulf %265, %264 : vector<24x16xf32>
    %267 = arith.addf %261, %266 : vector<24x16xf32>
    %268 = vector.extract_strided_slice %197 {offsets = [176, 0], sizes = [16, 16], strides = [1, 1]} : vector<512x16xbf16> to vector<16x16xbf16>
    %269 = vector.extract_strided_slice %193 {offsets = [0, 11], sizes = [24, 1], strides = [1, 1]} : vector<24x32xf32> to vector<24x1xf32>
    %cst_92 = arith.constant dense<0.000000e+00> : vector<24x16xf32>
    %270 = tpu.matmul %194, %268, %cst_92 {dimension_numbers = #tpu.dot_dimension_numbers<[1], [0], [0], [1], [0, 0, 1, 1], [], []>} : vector<24x16xbf16>, vector<16x16xbf16>, vector<24x16xf32> -> vector<24x16xf32>
    %271 = vector.broadcast %269 : vector<24x1xf32> to vector<24x16xf32>
    %272 = arith.mulf %271, %270 : vector<24x16xf32>
    %273 = arith.addf %267, %272 : vector<24x16xf32>
    %274 = vector.extract_strided_slice %197 {offsets = [192, 0], sizes = [16, 16], strides = [1, 1]} : vector<512x16xbf16> to vector<16x16xbf16>
    %275 = vector.extract_strided_slice %193 {offsets = [0, 12], sizes = [24, 1], strides = [1, 1]} : vector<24x32xf32> to vector<24x1xf32>
    %cst_93 = arith.constant dense<0.000000e+00> : vector<24x16xf32>
    %276 = tpu.matmul %194, %274, %cst_93 {dimension_numbers = #tpu.dot_dimension_numbers<[1], [0], [0], [1], [0, 0, 1, 1], [], []>} : vector<24x16xbf16>, vector<16x16xbf16>, vector<24x16xf32> -> vector<24x16xf32>
    %277 = vector.broadcast %275 : vector<24x1xf32> to vector<24x16xf32>
    %278 = arith.mulf %277, %276 : vector<24x16xf32>
    %279 = arith.addf %273, %278 : vector<24x16xf32>
    %280 = vector.extract_strided_slice %197 {offsets = [208, 0], sizes = [16, 16], strides = [1, 1]} : vector<512x16xbf16> to vector<16x16xbf16>
    %281 = vector.extract_strided_slice %193 {offsets = [0, 13], sizes = [24, 1], strides = [1, 1]} : vector<24x32xf32> to vector<24x1xf32>
    %cst_94 = arith.constant dense<0.000000e+00> : vector<24x16xf32>
    %282 = tpu.matmul %194, %280, %cst_94 {dimension_numbers = #tpu.dot_dimension_numbers<[1], [0], [0], [1], [0, 0, 1, 1], [], []>} : vector<24x16xbf16>, vector<16x16xbf16>, vector<24x16xf32> -> vector<24x16xf32>
    %283 = vector.broadcast %281 : vector<24x1xf32> to vector<24x16xf32>
    %284 = arith.mulf %283, %282 : vector<24x16xf32>
    %285 = arith.addf %279, %284 : vector<24x16xf32>
    %286 = vector.extract_strided_slice %197 {offsets = [224, 0], sizes = [16, 16], strides = [1, 1]} : vector<512x16xbf16> to vector<16x16xbf16>
    %287 = vector.extract_strided_slice %193 {offsets = [0, 14], sizes = [24, 1], strides = [1, 1]} : vector<24x32xf32> to vector<24x1xf32>
    %cst_95 = arith.constant dense<0.000000e+00> : vector<24x16xf32>
    %288 = tpu.matmul %194, %286, %cst_95 {dimension_numbers = #tpu.dot_dimension_numbers<[1], [0], [0], [1], [0, 0, 1, 1], [], []>} : vector<24x16xbf16>, vector<16x16xbf16>, vector<24x16xf32> -> vector<24x16xf32>
    %289 = vector.broadcast %287 : vector<24x1xf32> to vector<24x16xf32>
    %290 = arith.mulf %289, %288 : vector<24x16xf32>
    %291 = arith.addf %285, %290 : vector<24x16xf32>
    %292 = vector.extract_strided_slice %197 {offsets = [240, 0], sizes = [16, 16], strides = [1, 1]} : vector<512x16xbf16> to vector<16x16xbf16>
    %293 = vector.extract_strided_slice %193 {offsets = [0, 15], sizes = [24, 1], strides = [1, 1]} : vector<24x32xf32> to vector<24x1xf32>
    %cst_96 = arith.constant dense<0.000000e+00> : vector<24x16xf32>
    %294 = tpu.matmul %194, %292, %cst_96 {dimension_numbers = #tpu.dot_dimension_numbers<[1], [0], [0], [1], [0, 0, 1, 1], [], []>} : vector<24x16xbf16>, vector<16x16xbf16>, vector<24x16xf32> -> vector<24x16xf32>
    %295 = vector.broadcast %293 : vector<24x1xf32> to vector<24x16xf32>
    %296 = arith.mulf %295, %294 : vector<24x16xf32>
    %297 = arith.addf %291, %296 : vector<24x16xf32>
    %298 = vector.extract_strided_slice %197 {offsets = [256, 0], sizes = [16, 16], strides = [1, 1]} : vector<512x16xbf16> to vector<16x16xbf16>
    %299 = vector.extract_strided_slice %193 {offsets = [0, 16], sizes = [24, 1], strides = [1, 1]} : vector<24x32xf32> to vector<24x1xf32>
    %cst_97 = arith.constant dense<0.000000e+00> : vector<24x16xf32>
    %300 = tpu.matmul %194, %298, %cst_97 {dimension_numbers = #tpu.dot_dimension_numbers<[1], [0], [0], [1], [0, 0, 1, 1], [], []>} : vector<24x16xbf16>, vector<16x16xbf16>, vector<24x16xf32> -> vector<24x16xf32>
    %301 = vector.broadcast %299 : vector<24x1xf32> to vector<24x16xf32>
    %302 = arith.mulf %301, %300 : vector<24x16xf32>
    %303 = arith.addf %297, %302 : vector<24x16xf32>
    %304 = vector.extract_strided_slice %197 {offsets = [272, 0], sizes = [16, 16], strides = [1, 1]} : vector<512x16xbf16> to vector<16x16xbf16>
    %305 = vector.extract_strided_slice %193 {offsets = [0, 17], sizes = [24, 1], strides = [1, 1]} : vector<24x32xf32> to vector<24x1xf32>
    %cst_98 = arith.constant dense<0.000000e+00> : vector<24x16xf32>
    %306 = tpu.matmul %194, %304, %cst_98 {dimension_numbers = #tpu.dot_dimension_numbers<[1], [0], [0], [1], [0, 0, 1, 1], [], []>} : vector<24x16xbf16>, vector<16x16xbf16>, vector<24x16xf32> -> vector<24x16xf32>
    %307 = vector.broadcast %305 : vector<24x1xf32> to vector<24x16xf32>
    %308 = arith.mulf %307, %306 : vector<24x16xf32>
    %309 = arith.addf %303, %308 : vector<24x16xf32>
    %310 = vector.extract_strided_slice %197 {offsets = [288, 0], sizes = [16, 16], strides = [1, 1]} : vector<512x16xbf16> to vector<16x16xbf16>
    %311 = vector.extract_strided_slice %193 {offsets = [0, 18], sizes = [24, 1], strides = [1, 1]} : vector<24x32xf32> to vector<24x1xf32>
    %cst_99 = arith.constant dense<0.000000e+00> : vector<24x16xf32>
    %312 = tpu.matmul %194, %310, %cst_99 {dimension_numbers = #tpu.dot_dimension_numbers<[1], [0], [0], [1], [0, 0, 1, 1], [], []>} : vector<24x16xbf16>, vector<16x16xbf16>, vector<24x16xf32> -> vector<24x16xf32>
    %313 = vector.broadcast %311 : vector<24x1xf32> to vector<24x16xf32>
    %314 = arith.mulf %313, %312 : vector<24x16xf32>
    %315 = arith.addf %309, %314 : vector<24x16xf32>
    %316 = vector.extract_strided_slice %197 {offsets = [304, 0], sizes = [16, 16], strides = [1, 1]} : vector<512x16xbf16> to vector<16x16xbf16>
    %317 = vector.extract_strided_slice %193 {offsets = [0, 19], sizes = [24, 1], strides = [1, 1]} : vector<24x32xf32> to vector<24x1xf32>
    %cst_100 = arith.constant dense<0.000000e+00> : vector<24x16xf32>
    %318 = tpu.matmul %194, %316, %cst_100 {dimension_numbers = #tpu.dot_dimension_numbers<[1], [0], [0], [1], [0, 0, 1, 1], [], []>} : vector<24x16xbf16>, vector<16x16xbf16>, vector<24x16xf32> -> vector<24x16xf32>
    %319 = vector.broadcast %317 : vector<24x1xf32> to vector<24x16xf32>
    %320 = arith.mulf %319, %318 : vector<24x16xf32>
    %321 = arith.addf %315, %320 : vector<24x16xf32>
    %322 = vector.extract_strided_slice %197 {offsets = [320, 0], sizes = [16, 16], strides = [1, 1]} : vector<512x16xbf16> to vector<16x16xbf16>
    %323 = vector.extract_strided_slice %193 {offsets = [0, 20], sizes = [24, 1], strides = [1, 1]} : vector<24x32xf32> to vector<24x1xf32>
    %cst_101 = arith.constant dense<0.000000e+00> : vector<24x16xf32>
    %324 = tpu.matmul %194, %322, %cst_101 {dimension_numbers = #tpu.dot_dimension_numbers<[1], [0], [0], [1], [0, 0, 1, 1], [], []>} : vector<24x16xbf16>, vector<16x16xbf16>, vector<24x16xf32> -> vector<24x16xf32>
    %325 = vector.broadcast %323 : vector<24x1xf32> to vector<24x16xf32>
    %326 = arith.mulf %325, %324 : vector<24x16xf32>
    %327 = arith.addf %321, %326 : vector<24x16xf32>
    %328 = vector.extract_strided_slice %197 {offsets = [336, 0], sizes = [16, 16], strides = [1, 1]} : vector<512x16xbf16> to vector<16x16xbf16>
    %329 = vector.extract_strided_slice %193 {offsets = [0, 21], sizes = [24, 1], strides = [1, 1]} : vector<24x32xf32> to vector<24x1xf32>
    %cst_102 = arith.constant dense<0.000000e+00> : vector<24x16xf32>
    %330 = tpu.matmul %194, %328, %cst_102 {dimension_numbers = #tpu.dot_dimension_numbers<[1], [0], [0], [1], [0, 0, 1, 1], [], []>} : vector<24x16xbf16>, vector<16x16xbf16>, vector<24x16xf32> -> vector<24x16xf32>
    %331 = vector.broadcast %329 : vector<24x1xf32> to vector<24x16xf32>
    %332 = arith.mulf %331, %330 : vector<24x16xf32>
    %333 = arith.addf %327, %332 : vector<24x16xf32>
    %334 = vector.extract_strided_slice %197 {offsets = [352, 0], sizes = [16, 16], strides = [1, 1]} : vector<512x16xbf16> to vector<16x16xbf16>
    %335 = vector.extract_strided_slice %193 {offsets = [0, 22], sizes = [24, 1], strides = [1, 1]} : vector<24x32xf32> to vector<24x1xf32>
    %cst_103 = arith.constant dense<0.000000e+00> : vector<24x16xf32>
    %336 = tpu.matmul %194, %334, %cst_103 {dimension_numbers = #tpu.dot_dimension_numbers<[1], [0], [0], [1], [0, 0, 1, 1], [], []>} : vector<24x16xbf16>, vector<16x16xbf16>, vector<24x16xf32> -> vector<24x16xf32>
    %337 = vector.broadcast %335 : vector<24x1xf32> to vector<24x16xf32>
    %338 = arith.mulf %337, %336 : vector<24x16xf32>
    %339 = arith.addf %333, %338 : vector<24x16xf32>
    %340 = vector.extract_strided_slice %197 {offsets = [368, 0], sizes = [16, 16], strides = [1, 1]} : vector<512x16xbf16> to vector<16x16xbf16>
    %341 = vector.extract_strided_slice %193 {offsets = [0, 23], sizes = [24, 1], strides = [1, 1]} : vector<24x32xf32> to vector<24x1xf32>
    %cst_104 = arith.constant dense<0.000000e+00> : vector<24x16xf32>
    %342 = tpu.matmul %194, %340, %cst_104 {dimension_numbers = #tpu.dot_dimension_numbers<[1], [0], [0], [1], [0, 0, 1, 1], [], []>} : vector<24x16xbf16>, vector<16x16xbf16>, vector<24x16xf32> -> vector<24x16xf32>
    %343 = vector.broadcast %341 : vector<24x1xf32> to vector<24x16xf32>
    %344 = arith.mulf %343, %342 : vector<24x16xf32>
    %345 = arith.addf %339, %344 : vector<24x16xf32>
    %346 = vector.extract_strided_slice %197 {offsets = [384, 0], sizes = [16, 16], strides = [1, 1]} : vector<512x16xbf16> to vector<16x16xbf16>
    %347 = vector.extract_strided_slice %193 {offsets = [0, 24], sizes = [24, 1], strides = [1, 1]} : vector<24x32xf32> to vector<24x1xf32>
    %cst_105 = arith.constant dense<0.000000e+00> : vector<24x16xf32>
    %348 = tpu.matmul %194, %346, %cst_105 {dimension_numbers = #tpu.dot_dimension_numbers<[1], [0], [0], [1], [0, 0, 1, 1], [], []>} : vector<24x16xbf16>, vector<16x16xbf16>, vector<24x16xf32> -> vector<24x16xf32>
    %349 = vector.broadcast %347 : vector<24x1xf32> to vector<24x16xf32>
    %350 = arith.mulf %349, %348 : vector<24x16xf32>
    %351 = arith.addf %345, %350 : vector<24x16xf32>
    %352 = vector.extract_strided_slice %197 {offsets = [400, 0], sizes = [16, 16], strides = [1, 1]} : vector<512x16xbf16> to vector<16x16xbf16>
    %353 = vector.extract_strided_slice %193 {offsets = [0, 25], sizes = [24, 1], strides = [1, 1]} : vector<24x32xf32> to vector<24x1xf32>
    %cst_106 = arith.constant dense<0.000000e+00> : vector<24x16xf32>
    %354 = tpu.matmul %194, %352, %cst_106 {dimension_numbers = #tpu.dot_dimension_numbers<[1], [0], [0], [1], [0, 0, 1, 1], [], []>} : vector<24x16xbf16>, vector<16x16xbf16>, vector<24x16xf32> -> vector<24x16xf32>
    %355 = vector.broadcast %353 : vector<24x1xf32> to vector<24x16xf32>
    %356 = arith.mulf %355, %354 : vector<24x16xf32>
    %357 = arith.addf %351, %356 : vector<24x16xf32>
    %358 = vector.extract_strided_slice %197 {offsets = [416, 0], sizes = [16, 16], strides = [1, 1]} : vector<512x16xbf16> to vector<16x16xbf16>
    %359 = vector.extract_strided_slice %193 {offsets = [0, 26], sizes = [24, 1], strides = [1, 1]} : vector<24x32xf32> to vector<24x1xf32>
    %cst_107 = arith.constant dense<0.000000e+00> : vector<24x16xf32>
    %360 = tpu.matmul %194, %358, %cst_107 {dimension_numbers = #tpu.dot_dimension_numbers<[1], [0], [0], [1], [0, 0, 1, 1], [], []>} : vector<24x16xbf16>, vector<16x16xbf16>, vector<24x16xf32> -> vector<24x16xf32>
    %361 = vector.broadcast %359 : vector<24x1xf32> to vector<24x16xf32>
    %362 = arith.mulf %361, %360 : vector<24x16xf32>
    %363 = arith.addf %357, %362 : vector<24x16xf32>
    %364 = vector.extract_strided_slice %197 {offsets = [432, 0], sizes = [16, 16], strides = [1, 1]} : vector<512x16xbf16> to vector<16x16xbf16>
    %365 = vector.extract_strided_slice %193 {offsets = [0, 27], sizes = [24, 1], strides = [1, 1]} : vector<24x32xf32> to vector<24x1xf32>
    %cst_108 = arith.constant dense<0.000000e+00> : vector<24x16xf32>
    %366 = tpu.matmul %194, %364, %cst_108 {dimension_numbers = #tpu.dot_dimension_numbers<[1], [0], [0], [1], [0, 0, 1, 1], [], []>} : vector<24x16xbf16>, vector<16x16xbf16>, vector<24x16xf32> -> vector<24x16xf32>
    %367 = vector.broadcast %365 : vector<24x1xf32> to vector<24x16xf32>
    %368 = arith.mulf %367, %366 : vector<24x16xf32>
    %369 = arith.addf %363, %368 : vector<24x16xf32>
    %370 = vector.extract_strided_slice %197 {offsets = [448, 0], sizes = [16, 16], strides = [1, 1]} : vector<512x16xbf16> to vector<16x16xbf16>
    %371 = vector.extract_strided_slice %193 {offsets = [0, 28], sizes = [24, 1], strides = [1, 1]} : vector<24x32xf32> to vector<24x1xf32>
    %cst_109 = arith.constant dense<0.000000e+00> : vector<24x16xf32>
    %372 = tpu.matmul %194, %370, %cst_109 {dimension_numbers = #tpu.dot_dimension_numbers<[1], [0], [0], [1], [0, 0, 1, 1], [], []>} : vector<24x16xbf16>, vector<16x16xbf16>, vector<24x16xf32> -> vector<24x16xf32>
    %373 = vector.broadcast %371 : vector<24x1xf32> to vector<24x16xf32>
    %374 = arith.mulf %373, %372 : vector<24x16xf32>
    %375 = arith.addf %369, %374 : vector<24x16xf32>
    %376 = vector.extract_strided_slice %197 {offsets = [464, 0], sizes = [16, 16], strides = [1, 1]} : vector<512x16xbf16> to vector<16x16xbf16>
    %377 = vector.extract_strided_slice %193 {offsets = [0, 29], sizes = [24, 1], strides = [1, 1]} : vector<24x32xf32> to vector<24x1xf32>
    %cst_110 = arith.constant dense<0.000000e+00> : vector<24x16xf32>
    %378 = tpu.matmul %194, %376, %cst_110 {dimension_numbers = #tpu.dot_dimension_numbers<[1], [0], [0], [1], [0, 0, 1, 1], [], []>} : vector<24x16xbf16>, vector<16x16xbf16>, vector<24x16xf32> -> vector<24x16xf32>
    %379 = vector.broadcast %377 : vector<24x1xf32> to vector<24x16xf32>
    %380 = arith.mulf %379, %378 : vector<24x16xf32>
    %381 = arith.addf %375, %380 : vector<24x16xf32>
    %382 = vector.extract_strided_slice %197 {offsets = [480, 0], sizes = [16, 16], strides = [1, 1]} : vector<512x16xbf16> to vector<16x16xbf16>
    %383 = vector.extract_strided_slice %193 {offsets = [0, 30], sizes = [24, 1], strides = [1, 1]} : vector<24x32xf32> to vector<24x1xf32>
    %cst_111 = arith.constant dense<0.000000e+00> : vector<24x16xf32>
    %384 = tpu.matmul %194, %382, %cst_111 {dimension_numbers = #tpu.dot_dimension_numbers<[1], [0], [0], [1], [0, 0, 1, 1], [], []>} : vector<24x16xbf16>, vector<16x16xbf16>, vector<24x16xf32> -> vector<24x16xf32>
    %385 = vector.broadcast %383 : vector<24x1xf32> to vector<24x16xf32>
    %386 = arith.mulf %385, %384 : vector<24x16xf32>
    %387 = arith.addf %381, %386 : vector<24x16xf32>
    %388 = vector.extract_strided_slice %197 {offsets = [496, 0], sizes = [16, 16], strides = [1, 1]} : vector<512x16xbf16> to vector<16x16xbf16>
    %389 = vector.extract_strided_slice %193 {offsets = [0, 31], sizes = [24, 1], strides = [1, 1]} : vector<24x32xf32> to vector<24x1xf32>
    %cst_112 = arith.constant dense<0.000000e+00> : vector<24x16xf32>
    %390 = tpu.matmul %194, %388, %cst_112 {dimension_numbers = #tpu.dot_dimension_numbers<[1], [0], [0], [1], [0, 0, 1, 1], [], []>} : vector<24x16xbf16>, vector<16x16xbf16>, vector<24x16xf32> -> vector<24x16xf32>
    %391 = vector.broadcast %389 : vector<24x1xf32> to vector<24x16xf32>
    %392 = arith.mulf %391, %390 : vector<24x16xf32>
    %393 = arith.addf %387, %392 : vector<24x16xf32>
    %394 = tpu.concatenate %159, %163, %167 in 0 : vector<8x16xf32>, vector<8x16xf32>, vector<8x16xf32> -> vector<24x16xf32>
    %c0_113 = arith.constant 0 : index
    %c0_114 = arith.constant 0 : index
    %c0_115 = arith.constant 0 : index
    %395 = vector.load %arg21[%c0_113, %c0_114, %c0_115] : memref<1x16x32xf32, #tpu.memory_space<vmem>>, vector<1x16x32xf32>
    %396 = vector.shape_cast %395 : vector<1x16x32xf32> to vector<16x32xf32>
    %397 = arith.truncf %394 : vector<24x16xf32> to vector<24x16xbf16>
    %398 = arith.truncf %396 : vector<16x32xf32> to vector<16x32xbf16>
    %cst_116 = arith.constant dense<0.000000e+00> : vector<24x32xf32>
    %399 = tpu.matmul %397, %398, %cst_116 {dimension_numbers = #tpu.dot_dimension_numbers<[1], [0], [0], [1], [0, 0, 1, 1], [], []>} : vector<24x16xbf16>, vector<16x32xbf16>, vector<24x32xf32> -> vector<24x32xf32>
    %400 = vector.extract_strided_slice %399 {offsets = [0, 0], sizes = [8, 16], strides = [1, 1]} : vector<24x32xf32> to vector<8x16xf32>
    %401 = vector.extract_strided_slice %399 {offsets = [8, 0], sizes = [8, 16], strides = [1, 1]} : vector<24x32xf32> to vector<8x16xf32>
    %402 = vector.extract_strided_slice %399 {offsets = [16, 0], sizes = [8, 16], strides = [1, 1]} : vector<24x32xf32> to vector<8x16xf32>
    %403 = vector.extract_strided_slice %399 {offsets = [0, 16], sizes = [8, 16], strides = [1, 1]} : vector<24x32xf32> to vector<8x16xf32>
    %404 = vector.extract_strided_slice %399 {offsets = [8, 16], sizes = [8, 16], strides = [1, 1]} : vector<24x32xf32> to vector<8x16xf32>
    %405 = vector.extract_strided_slice %399 {offsets = [16, 16], sizes = [8, 16], strides = [1, 1]} : vector<24x32xf32> to vector<8x16xf32>
    %406 = arith.mulf %400, %400 : vector<8x16xf32>
    %407 = arith.mulf %401, %401 : vector<8x16xf32>
    %408 = arith.addf %406, %407 : vector<8x16xf32>
    %409 = arith.mulf %402, %402 : vector<8x16xf32>
    %410 = arith.addf %408, %409 : vector<8x16xf32>
    %cst_117 = arith.constant 9.99999993E-9 : f32
    %411 = vector.broadcast %cst_117 : f32 to vector<8x16xf32>
    %412 = arith.addf %410, %411 : vector<8x16xf32>
    %413 = math.sqrt %412 : vector<8x16xf32>
    %414 = tpu.concatenate %155, %413 in 1 : vector<8x16xf32>, vector<8x16xf32> -> vector<8x32xf32>
    %c0_118 = arith.constant 0 : index
    %c0_119 = arith.constant 0 : index
    %c0_120 = arith.constant 0 : index
    %415 = vector.load %arg22[%c0_118, %c0_119, %c0_120] : memref<1x32x16xf32, #tpu.memory_space<vmem>>, vector<1x32x16xf32>
    %416 = vector.shape_cast %415 : vector<1x32x16xf32> to vector<32x16xf32>
    %417 = arith.truncf %414 : vector<8x32xf32> to vector<8x32xbf16>
    %418 = arith.truncf %416 : vector<32x16xf32> to vector<32x16xbf16>
    %cst_121 = arith.constant dense<0.000000e+00> : vector<8x16xf32>
    %419 = tpu.matmul %417, %418, %cst_121 {dimension_numbers = #tpu.dot_dimension_numbers<[1], [0], [0], [1], [0, 0, 1, 1], [], []>} : vector<8x32xbf16>, vector<32x16xbf16>, vector<8x16xf32> -> vector<8x16xf32>
    %c0_122 = arith.constant 0 : index
    %c0_123 = arith.constant 0 : index
    %c0_124 = arith.constant 0 : index
    %420 = vector.load %arg23[%c0_122, %c0_123, %c0_124] : memref<1x1x16xf32, #tpu.memory_space<vmem>>, vector<1x1x16xf32>
    %421 = vector.shape_cast %420 : vector<1x1x16xf32> to vector<1x16xf32>
    %422 = vector.broadcast %421 : vector<1x16xf32> to vector<8x16xf32>
    %423 = arith.addf %419, %422 : vector<8x16xf32>
    %cst_125 = arith.constant 0.000000e+00 : f32
    %424 = vector.broadcast %cst_125 : f32 to vector<8x16xf32>
    %425 = arith.subf %424, %423 : vector<8x16xf32>
    %426 = math.exp %425 : vector<8x16xf32>
    %cst_126 = arith.constant 1.000000e+00 : f32
    %427 = vector.broadcast %cst_126 : f32 to vector<8x16xf32>
    %428 = arith.addf %427, %426 : vector<8x16xf32>
    %429 = tpu.reciprocal %428 {approx = true} : vector<8x16xf32> -> vector<8x16xf32>
    %430 = arith.mulf %423, %429 : vector<8x16xf32>
    %c0_127 = arith.constant 0 : index
    %c0_128 = arith.constant 0 : index
    %c0_129 = arith.constant 0 : index
    %431 = vector.load %arg24[%c0_127, %c0_128, %c0_129] : memref<1x16x48xf32, #tpu.memory_space<vmem>>, vector<1x16x48xf32>
    %432 = vector.shape_cast %431 : vector<1x16x48xf32> to vector<16x48xf32>
    %433 = arith.truncf %430 : vector<8x16xf32> to vector<8x16xbf16>
    %434 = arith.truncf %432 : vector<16x48xf32> to vector<16x48xbf16>
    %cst_130 = arith.constant dense<0.000000e+00> : vector<8x48xf32>
    %435 = tpu.matmul %433, %434, %cst_130 {dimension_numbers = #tpu.dot_dimension_numbers<[1], [0], [0], [1], [0, 0, 1, 1], [], []>} : vector<8x16xbf16>, vector<16x48xbf16>, vector<8x48xf32> -> vector<8x48xf32>
    %c0_131 = arith.constant 0 : index
    %c0_132 = arith.constant 0 : index
    %c0_133 = arith.constant 0 : index
    %436 = vector.load %arg25[%c0_131, %c0_132, %c0_133] : memref<1x1x48xf32, #tpu.memory_space<vmem>>, vector<1x1x48xf32>
    %437 = vector.shape_cast %436 : vector<1x1x48xf32> to vector<1x48xf32>
    %438 = vector.broadcast %437 : vector<1x48xf32> to vector<8x48xf32>
    %439 = arith.addf %435, %438 : vector<8x48xf32>
    %440 = vector.extract_strided_slice %439 {offsets = [0, 0], sizes = [8, 16], strides = [1, 1]} : vector<8x48xf32> to vector<8x16xf32>
    %441 = vector.extract_strided_slice %439 {offsets = [0, 16], sizes = [8, 16], strides = [1, 1]} : vector<8x48xf32> to vector<8x16xf32>
    %442 = vector.extract_strided_slice %439 {offsets = [0, 32], sizes = [8, 16], strides = [1, 1]} : vector<8x48xf32> to vector<8x16xf32>
    %443 = arith.mulf %400, %403 : vector<8x16xf32>
    %444 = arith.mulf %401, %404 : vector<8x16xf32>
    %445 = arith.addf %443, %444 : vector<8x16xf32>
    %446 = arith.mulf %402, %405 : vector<8x16xf32>
    %447 = arith.addf %445, %446 : vector<8x16xf32>
    %448 = arith.addf %155, %440 : vector<8x16xf32>
    %449 = arith.mulf %442, %447 : vector<8x16xf32>
    %450 = arith.addf %448, %449 : vector<8x16xf32>
    %451 = arith.mulf %441, %403 : vector<8x16xf32>
    %452 = arith.addf %159, %451 : vector<8x16xf32>
    %453 = vector.extract_strided_slice %393 {offsets = [0, 0], sizes = [8, 16], strides = [1, 1]} : vector<24x16xf32> to vector<8x16xf32>
    %454 = arith.mulf %450, %453 : vector<8x16xf32>
    %455 = arith.mulf %441, %404 : vector<8x16xf32>
    %456 = arith.addf %163, %455 : vector<8x16xf32>
    %457 = vector.extract_strided_slice %393 {offsets = [8, 0], sizes = [8, 16], strides = [1, 1]} : vector<24x16xf32> to vector<8x16xf32>
    %458 = arith.mulf %450, %457 : vector<8x16xf32>
    %459 = arith.mulf %441, %405 : vector<8x16xf32>
    %460 = arith.addf %167, %459 : vector<8x16xf32>
    %461 = vector.extract_strided_slice %393 {offsets = [16, 0], sizes = [8, 16], strides = [1, 1]} : vector<24x16xf32> to vector<8x16xf32>
    %462 = arith.mulf %450, %461 : vector<8x16xf32>
    %cst_134 = arith.constant 0.000000e+00 : f32
    %463 = vector.broadcast %cst_134 : f32 to vector<8x16xf32>
    %464 = tpu.concatenate %450, %452, %454, %456, %458, %460, %462, %463 in 1 : vector<8x16xf32>, vector<8x16xf32>, vector<8x16xf32>, vector<8x16xf32>, vector<8x16xf32>, vector<8x16xf32>, vector<8x16xf32>, vector<8x16xf32> -> vector<8x128xf32>
    %c0_135 = arith.constant 0 : index
    %c0_136 = arith.constant 0 : index
    %465 = vector.load %arg26[%c0_135, %c0_136] : memref<8x128xf32, #tpu.memory_space<vmem>>, vector<8x128xf32>
    tpu.vector_store %arg26[%c0_135, %c0_136], %464 {strides = array<i32>} : memref<8x128xf32, #tpu.memory_space<vmem>>, vector<8x128xf32>,
    return
  }
  func.func @transform_0(%arg0: i32) -> (i32, i32) {
    %c0_i32 = arith.constant 0 : i32
    %c0_i32_0 = arith.constant 0 : i32
    %c0_i32_1 = arith.constant 0 : i32
    return %c0_i32, %c0_i32_0 : i32, i32
  }
  func.func @transform_1(%arg0: i32) -> (i32, i32) {
    %c0_i32 = arith.constant 0 : i32
    %c0_i32_0 = arith.constant 0 : i32
    %c0_i32_1 = arith.constant 0 : i32
    return %c0_i32, %c0_i32_0 : i32, i32
  }
  func.func @transform_2(%arg0: i32) -> (i32, i32) {
    %c0_i32 = arith.constant 0 : i32
    %c0_i32_0 = arith.constant 0 : i32
    %c0_i32_1 = arith.constant 0 : i32
    return %c0_i32, %c0_i32_0 : i32, i32
  }
  func.func @transform_3(%arg0: i32) -> (i32, i32) {
    %c0_i32 = arith.constant 0 : i32
    %c0_i32_0 = arith.constant 0 : i32
    %c0_i32_1 = arith.constant 0 : i32
    return %c0_i32, %c0_i32_0 : i32, i32
  }
  func.func @transform_4(%arg0: i32) -> (i32, i32) {
    %c0_i32 = arith.constant 0 : i32
    %c0_i32_0 = arith.constant 0 : i32
    %c0_i32_1 = arith.constant 0 : i32
    return %c0_i32, %c0_i32_0 : i32, i32
  }
  func.func @transform_5(%arg0: i32) -> (i32, i32) {
    %c0_i32 = arith.constant 0 : i32
    %c0_i32_0 = arith.constant 0 : i32
    %c0_i32_1 = arith.constant 0 : i32
    return %c0_i32, %c0_i32_0 : i32, i32
  }
  func.func @transform_6(%arg0: i32) -> (i32, i32, i32) {
    %c0_i32 = arith.constant 0 : i32
    %c0_i32_0 = arith.constant 0 : i32
    %c0_i32_1 = arith.constant 0 : i32
    return %arg0, %c0_i32, %c0_i32_0 : i32, i32, i32
  }
  func.func @transform_7(%arg0: i32) -> (i32, i32, i32) {
    %c0_i32 = arith.constant 0 : i32
    %c0_i32_0 = arith.constant 0 : i32
    %c0_i32_1 = arith.constant 0 : i32
    return %arg0, %c0_i32, %c0_i32_0 : i32, i32, i32
  }
  func.func @transform_8(%arg0: i32) -> (i32, i32, i32) {
    %c0_i32 = arith.constant 0 : i32
    %c0_i32_0 = arith.constant 0 : i32
    %c0_i32_1 = arith.constant 0 : i32
    return %arg0, %c0_i32, %c0_i32_0 : i32, i32, i32
  }
  func.func @transform_9(%arg0: i32) -> (i32, i32, i32) {
    %c0_i32 = arith.constant 0 : i32
    %c0_i32_0 = arith.constant 0 : i32
    %c0_i32_1 = arith.constant 0 : i32
    return %arg0, %c0_i32, %c0_i32_0 : i32, i32, i32
  }
  func.func @transform_10(%arg0: i32) -> (i32, i32, i32) {
    %c0_i32 = arith.constant 0 : i32
    %c0_i32_0 = arith.constant 0 : i32
    %c0_i32_1 = arith.constant 0 : i32
    return %arg0, %c0_i32, %c0_i32_0 : i32, i32, i32
  }
  func.func @transform_11(%arg0: i32) -> (i32, i32, i32) {
    %c0_i32 = arith.constant 0 : i32
    %c0_i32_0 = arith.constant 0 : i32
    %c0_i32_1 = arith.constant 0 : i32
    return %arg0, %c0_i32, %c0_i32_0 : i32, i32, i32
  }
  func.func @transform_12(%arg0: i32) -> (i32, i32, i32) {
    %c0_i32 = arith.constant 0 : i32
    %c0_i32_0 = arith.constant 0 : i32
    %c0_i32_1 = arith.constant 0 : i32
    return %arg0, %c0_i32, %c0_i32_0 : i32, i32, i32
  }
  func.func @transform_13(%arg0: i32) -> (i32, i32, i32) {
    %c0_i32 = arith.constant 0 : i32
    %c0_i32_0 = arith.constant 0 : i32
    %c0_i32_1 = arith.constant 0 : i32
    return %arg0, %c0_i32, %c0_i32_0 : i32, i32, i32
  }
  func.func @transform_14(%arg0: i32) -> (i32, i32, i32) {
    %c0_i32 = arith.constant 0 : i32
    %c0_i32_0 = arith.constant 0 : i32
    %c0_i32_1 = arith.constant 0 : i32
    return %arg0, %c0_i32, %c0_i32_0 : i32, i32, i32
  }
  func.func @transform_15(%arg0: i32) -> (i32, i32, i32) {
    %c0_i32 = arith.constant 0 : i32
    %c0_i32_0 = arith.constant 0 : i32
    %c0_i32_1 = arith.constant 0 : i32
    return %arg0, %c0_i32, %c0_i32_0 : i32, i32, i32
  }
  func.func @transform_16(%arg0: i32) -> (i32, i32, i32) {
    %c0_i32 = arith.constant 0 : i32
    %c0_i32_0 = arith.constant 0 : i32
    %c0_i32_1 = arith.constant 0 : i32
    return %arg0, %c0_i32, %c0_i32_0 : i32, i32, i32
  }
  func.func @transform_17(%arg0: i32) -> (i32, i32, i32) {
    %c0_i32 = arith.constant 0 : i32
    %c0_i32_0 = arith.constant 0 : i32
    %c0_i32_1 = arith.constant 0 : i32
    return %arg0, %c0_i32, %c0_i32_0 : i32, i32, i32
  }
  func.func @transform_18(%arg0: i32) -> (i32, i32, i32) {
    %c0_i32 = arith.constant 0 : i32
    %c0_i32_0 = arith.constant 0 : i32
    %c0_i32_1 = arith.constant 0 : i32
    return %arg0, %c0_i32, %c0_i32_0 : i32, i32, i32
  }
  func.func @transform_19(%arg0: i32) -> (i32, i32, i32) {
    %c0_i32 = arith.constant 0 : i32
    %c0_i32_0 = arith.constant 0 : i32
    %c0_i32_1 = arith.constant 0 : i32
    return %arg0, %c0_i32, %c0_i32_0 : i32, i32, i32
  }
  func.func @transform_20(%arg0: i32) -> (i32, i32, i32) {
    %c0_i32 = arith.constant 0 : i32
    %c0_i32_0 = arith.constant 0 : i32
    %c0_i32_1 = arith.constant 0 : i32
    return %arg0, %c0_i32, %c0_i32_0 : i32, i32, i32
  }
  func.func @transform_21(%arg0: i32) -> (i32, i32, i32) {
    %c0_i32 = arith.constant 0 : i32
    %c0_i32_0 = arith.constant 0 : i32
    %c0_i32_1 = arith.constant 0 : i32
    return %arg0, %c0_i32, %c0_i32_0 : i32, i32, i32
  }
  func.func @transform_22(%arg0: i32) -> (i32, i32, i32) {
    %c0_i32 = arith.constant 0 : i32
    %c0_i32_0 = arith.constant 0 : i32
    %c0_i32_1 = arith.constant 0 : i32
    return %arg0, %c0_i32, %c0_i32_0 : i32, i32, i32
  }
  func.func @transform_23(%arg0: i32) -> (i32, i32, i32) {
    %c0_i32 = arith.constant 0 : i32
    %c0_i32_0 = arith.constant 0 : i32
    %c0_i32_1 = arith.constant 0 : i32
    return %arg0, %c0_i32, %c0_i32_0 : i32, i32, i32
  }
  func.func @transform_24(%arg0: i32) -> (i32, i32, i32) {
    %c0_i32 = arith.constant 0 : i32
    %c0_i32_0 = arith.constant 0 : i32
    %c0_i32_1 = arith.constant 0 : i32
    return %arg0, %c0_i32, %c0_i32_0 : i32, i32, i32
  }
  func.func @transform_25(%arg0: i32) -> (i32, i32) {
    %c0_i32 = arith.constant 0 : i32
    %c0_i32_0 = arith.constant 0 : i32
    %c0_i32_1 = arith.constant 0 : i32
    return %c0_i32, %c0_i32_0 : i32, i32
  }
}

</mosaic_0001>

<bundles_post_ra>
// kernel: tpu_custom_call.1
= control target key start
LH: loop header
LB: loop body
LE: loop exit
PB: predicated region body
PF: predicated region fallthrough
CT: control target
= control target key end

     0   :  { %s8759_s0 = inlined_call_operand.vmem [shape: f32[56,1], index: 0, kind: input, shape index: {}]   ;;  %s8760_s1 = inlined_call_operand.vmem [shape: f32[56,3], index: 1, kind: input, shape index: {}]   ;;  %s8761_s2 = inlined_call_operand.vmem [shape: bf16[56,8], index: 2, kind: input, shape index: {}]   ;;  %s8762_s3 = inlined_call_operand.vmem [shape: bf16[8,56], index: 3, kind: input, shape index: {}]   ;;  %s8763_s4 = inlined_call_operand.vmem [shape: f32[1,16], index: 4, kind: input, shape index: {}]   ;;  %s8764_s5 = inlined_call_operand.vmem [shape: f32[8,16], index: 5, kind: input, shape index: {}]   ;;  %s8765_s6 = inlined_call_operand.vmem [shape: f32[2,16,48], index: 6, kind: input, shape index: {}]   ;;  %s8766_s7 = inlined_call_operand.vmem [shape: f32[2,1,48], index: 7, kind: input, shape index: {}]   ;;  %s8767_s8 = inlined_call_operand.vmem [shape: f32[2,16,16], index: 8, kind: input, shape index: {}]   ;;  %s8768_s9 = inlined_call_operand.vmem [shape: f32[2,1,16], index: 9, kind: input, shape index: {}]   ;;  %s8769_s10 = inlined_call_operand.vmem [shape: f32[2,16,48], index: 10, kind: input, shape index: {}]   ;;  %s8770_s11 = inlined_call_operand.vmem [shape: f32[2,1,48], index: 11, kind: input, shape index: {}]   ;;  %s8771_s12 = inlined_call_operand.vmem [shape: f32[2,32,32], index: 12, kind: input, shape index: {}]   ;;  %s8772_s13 = inlined_call_operand.vmem [shape: f32[2,1,32], index: 13, kind: input, shape index: {}]   ;;  %s8773_s14 = inlined_call_operand.vmem [shape: f32[2,32,16], index: 14, kind: input, shape index: {}]   ;;  %s8774_s15 = inlined_call_operand.vmem [shape: f32[2,1,16], index: 15, kind: input, shape index: {}]   ;;  %s8775_s16 = inlined_call_operand.vmem [shape: f32[2,16,32], index: 16, kind: input, shape index: {}]   ;;  %s8776_s17 = inlined_call_operand.vmem [shape: f32[2,1,32], index: 17, kind: input, shape index: {}]   ;;  %s8777_s18 = inlined_call_operand.vmem [shape: f32[2,512,16], index: 18, kind: input, shape index: {}]   ;;  %s8778_s19 = inlined_call_operand.vmem [shape: f32[2,16,16], index: 19, kind: input, shape index: {}]   ;;  %s8779_s20 = inlined_call_operand.vmem [shape: f32[2,16,32], index: 20, kind: input, shape index: {}]   ;;  %s8780_s21 = inlined_call_operand.vmem [shape: f32[2,32,16], index: 21, kind: input, shape index: {}]   ;;  %s8781_s22 = inlined_call_operand.vmem [shape: f32[2,1,16], index: 22, kind: input, shape index: {}]   ;;  %s8782_s23 = inlined_call_operand.vmem [shape: f32[2,16,48], index: 23, kind: input, shape index: {}]   ;;  %s8783_s24 = inlined_call_operand.vmem [shape: f32[2,1,48], index: 24, kind: input, shape index: {}]   ;;  %s8784_s25 = inlined_call_operand.hbm [shape: f32[8,128], index: 25, kind: output, shape index: {}]  }
   0x1   :  { %8861 = sst [smem:[#allocation66_spill]] %s8759_s0 }
   0x2   :  { %8862 = sst [smem:[#allocation67_spill]] %s8760_s1 }
   0x3   :  { %8863 = sst [smem:[#allocation68_spill]] %s8761_s2 }
   0x4   :  { %8864 = sst [smem:[#allocation69_spill]] %s8762_s3 }
   0x5   :  { %8865 = sst [smem:[#allocation70_spill]] %s8763_s4 }
   0x6   :  { %8866 = sst [smem:[#allocation71_spill]] %s8764_s5 }
   0x7   :  { %8867 = sst [smem:[#allocation72_spill]] %s8765_s6 }
   0x8   :  { %8868 = sst [smem:[#allocation73_spill]] %s8766_s7 }
   0x9   :  { %8869 = sst [smem:[#allocation74_spill]] %s8767_s8 }
   0xa   :  { %8870 = sst [smem:[#allocation75_spill]] %s8768_s9 }
   0xb   :  { %8871 = sst [smem:[#allocation76_spill]] %s8769_s10 }
   0xc   :  { %8872 = sst [smem:[#allocation77_spill]] %s8771_s12 }
   0xd   :  { %8873 = sst [smem:[#allocation78_spill]] %s8773_s14 }
   0xe   :  { %8874 = sst [smem:[#allocation79_spill]] %s8775_s16 }
   0xf   :  { %8875 = sst [smem:[#allocation80_spill]] %s8776_s17 }
  0x10   :  { %8876 = sst [smem:[#allocation81_spill]] %s8777_s18 }
  0x11   :  { %8877 = sst [smem:[#allocation82_spill]] %s8778_s19 }
  0x12   :  { %8878 = sst [smem:[#allocation83_spill]] %s8779_s20 }
  0x13   :  { %8879 = sst [smem:[#allocation84_spill]] %s8780_s21 }
  0x14   :  { %8880 = sst [smem:[#allocation85_spill]] %s8781_s22 }
  0x15   :  { %8881 = sst [smem:[#allocation86_spill]] %s8782_s23 }
  0x16   :  { %8882 = sst [smem:[#allocation87_spill]] %s8783_s24 }
  0x17   :  { %8883 = sst [smem:[#allocation88_spill]] %s8784_s25 }
  0x18   :  { %30 = vsyncpa [#allocation3], 0  ;;  %s6022_s29 = smov 0  }
  0x19 LB: > { %8884 = sst [smem:[#allocation5_spill]] %s5844_s29  ;;  %s6028_s2 = sadd.s32 4294967295, %s5844_s29   ;;  %s5844_s29 = sphi %s6022_s29, %s36_s29  }
  0x1a   : > { %8885 = sst [smem:[#allocation6_spill]] %s6028_s2  ;;  %p5398_p0 = scmp.ge.s32.totalorder %s5844_s29, 1 }
  0x1b   : > { %p847_p1 = scmp.lt.s32.totalorder %s5844_s29, 3 }
  0x1d   : > { %p848_p2 = pnand %p5398_p0, %p847_p1 }
  0x1f   : > { %851 = sbr.rel (%p848_p2) target bundleno = 3322 (0xcfa), region = 120 }
  0x24   : > { %p984_p3 = scmp.lt.s32.totalorder %s6028_s2, 1  ;;  %s8887_s4 = sld [smem:[#allocation72_spill]] }
  0x25   : > { %s8888_s0 = sld [smem:[#allocation74_spill]] }
  0x26   : > { %s6034_s6 = scalar_select %p984_p3, %s6028_s2, 1 }
  0x27   : > { %s8890_s10 = sld [smem:[#allocation76_spill]] }
  0x28   : > { %s5553_s30 = sshll.u32 %s6034_s6, 4  ;;  %s5556_s8 = sshll.u32 %s6034_s6, 5 }
  0x29   : > { %s8891_s12 = sld [smem:[#allocation77_spill]]  ;;  %s5559_s5 = sshll.u32 %s6034_s6, 9 }
  0x2a   : > { %s6044_s28 = scalar_lea.vmem %s8887_s4, %s5553_s30  ;;  %s8892_s14 = sld [smem:[#allocation78_spill]] }
  0x2b   : > { %s996_s29 = scalar_lea.vmem %s8888_s0, %s5553_s30  ;;  %s8893_s16 = sld [smem:[#allocation79_spill]] }
  0x2c   : > { %s8896_s19 = sld [smem:[#allocation82_spill]] }
  0x2d   : > { %s6056_s20 = scalar_lea.vmem %s8890_s10, %s5553_s30  ;;  %s8898_s18 = sld [smem:[#allocation81_spill]] }
  0x2e   : > { %s8899_s26 = sld [smem:[#allocation83_spill]] }
  0x2f   : > { %s6066_s9 = scalar_lea.vmem %s8891_s12, %s5556_s8  ;;  %s8900_s27 = sld [smem:[#allocation84_spill]] }
  0x30   : > { %s6075_s21 = scalar_lea.vmem %s8892_s14, %s5556_s8  ;;  %s8901_s24 = sld [smem:[#allocation85_spill]] }
  0x31   : > { %s6084_s23 = scalar_lea.vmem %s8893_s16, %s5553_s30  ;;  %s8904_s22 = sld [smem:[#allocation6_spill]] }
  0x32   : > { %8894 = sst [smem:[#allocation7_spill]] %s6084_s23  ;;  %s6094_s2 = scalar_lea.vmem %s8896_s19, %s5553_s30 }
  0x33   : > { %8897 = sst [smem:[#allocation8_spill]] %s6094_s2  ;;  %s6099_s1 = scalar_lea.vmem %s8898_s18, %s5559_s5 }
  0x34   : > { %s6104_s3 = scalar_lea.vmem %s8899_s26, %s5553_s30  ;;  %s8902_s2 = sld [smem:[#allocation86_spill]] }
  0x35   : > { %s6109_s4 = scalar_lea.vmem %s8900_s27, %s5556_s8  ;;  %s8903_s18 = sld [smem:[#allocation87_spill]] }
  0x36   : > { %s1054_s25 = scalar_lea.vmem %s8901_s24, %s6034_s6 }
  0x37   : > { %p5421_p4 = scmp.ne.s32.totalorder %s8904_s22, 0 }
  0x38   : > { %s8905_s16 = sld [smem:[#allocation71_spill]] (!%p5421_p4) }
  0x39   : > { %1067 = sbr.rel (%p5421_p4) target bundleno = 65 (0x41), region = 124 }
  0x3a   : > { %s6118_s12 = scalar_lea.vmem %s8902_s2, %s5553_s30 }
  0x3b   : > { %s1062_s7 = scalar_lea.vmem %s8903_s18, %s6034_s6 }
  0x3e   : > { %v1068_v0 = vld [vmem:[%s8905_s16] sm:$0xff]  ;;  %vm1069_vm0 = vcmask 130048  }
  0x3f   : > { %v1070_v1 = vsel %vm1069_vm0, %v1068_v0, 0.0 }
  0x40   : > { %1071 = vst [vmem:[#allocation2] sm:$0xff] %v1070_v1 }
  0x41 PF: > { %v2368_v3 = vld [vmem:[%s996_s29] sm:$0xff]  ;;  %v2369_v4 = vld [vmem:[%s996_s29 + $0x8] sm:$0xff]  ;;  %vm8837_vm1 = vcmask 130048   ;;  %s5846_s10 = smov 112   ;;  %vm8839_vm2 = vcmask 1043456   ;;  %s8906_s19 = sld [smem:[#allocation68_spill]] }
  0x42   : > { %v2371_v6 = vpack.c.bf16 %v2369_v4, %v2368_v3  ;;  %vm8838_vm3 = vcmask 64512   ;;  %s8907_s2 = sld [smem:[#allocation75_spill]]  ;;  %v2398_v13 = vld [vmem:[%s6056_s20] sm:$0xff]  ;;  %v2399_v14 = vld [vmem:[%s6056_s20 + $0x8] sm:$0xff]  ;;  %s5847_s16 = smov 96   ;;  %v8793_v55 = vmov 0  }
  0x43   : > { %v2401_v15 = vpack.c.bf16 %v2399_v14, %v2398_v13  ;;  %s8910_s14 = sld [smem:[#allocation66_spill]]  ;;  %v8809_v40 = vmov 920167782   ;;  %v8803_v42 = vmov 1326507024   ;;  %5628 = vset.pattern.permute.xlu1 %v8793_v55  ;;  %5629 = vset.pattern.permute.xlu2 %v8793_v55  ;;  %s5854_s17 = smov 64  }
  0x44   : > { %2386 = vmatpush.bf16.msra.mxu1 %v2371_v6  ;;  %v8797_v47 = vmov 2475754826   ;;  %v8795_v49 = vmov 2131351028   ;;  %v8807_v53 = vmov 2102212464   ;;  %5627 = vset.pattern.permute.xlu0 %v8793_v55  ;;  %s8976_s30 = scalar_lea.vmem %s8770_s11, %s6034_s6  ;;  %s9018_s5 = scalar_lea.vmem %s8772_s13, %s6034_s6 }
  0x45   : > { %2416 = vmatpush.bf16.msra.mxu2 %v2401_v15  ;;  %v8800_v3 = vmov 683565275   ;;  %s9005_s29 = sld [smem:[#allocation67_spill]]  ;;  %s5860_s24 = smov 16  }
  0x46   : > { %s9021_s18 = sld [smem:[#allocation73_spill]]  ;;  %s5861_s0 = smov 48  }
  0x47   : > { %v6128_v2 = vld [vmem:[#allocation2] sm:$0xff]  ;;  %v5565_v10 = vld [vmem:[%s8906_s19 + $0x8] sm:$0xff]  ;;  %v5566_v20 = vld [vmem:[%s8906_s19 + $0x10] sm:$0xff]  ;;  %s9093_s22 = sld [smem:[#allocation8_spill]] }
  0x48   : > { %v2370_v5 = vpack.c.bf16 %v6128_v2, %v6128_v2  ;;  %v5564_v9 = vld [vmem:[%s8906_s19] sm:$0xff]  ;;  %s8908_s27 = scalar_lea.vmem %s8907_s2, %s6034_s6  ;;  %v2428_v23 = vld [vmem:[%s8906_s19 + $0x18] sm:$0xf]  ;;  %s9027_s2 = scalar_lea.vmem %s8774_s15, %s6034_s6 }
  0x49   : > { %v5706_v11 = vld [vmem:[%s8908_s27] ss:$0 sm:$0xff]  ;;  %v2443_v25 = vunpack.c.l.b16 %v2428_v23  ;;  %v6165_v29 = vld [vmem:[%s8910_s14 + $0x30] sm:$0xff]  ;;  %s9007_s27 = sld [smem:[#allocation70_spill]] }
  0x4a   : > { %2494 = vrot.lane.b32.xlu0 %v2370_v5, %s5846_s10  ;;  %5447 = vmatmul.msk.bf16.vlgmr.msra.gmra.mxu1 %vm8837_vm1, %v2370_v5  ;;  %v6168_v30 = vmul.f32 0.62831855, %v6165_v29  ;;  %s9105_s20 = sld [smem:[#allocation7_spill]] }
  0x4b   : > { %v6157_v28 = vpack.c.b16 %v2443_v25, %v2443_v25 }
  0x4c   : > { %v2088_v31 = vand.u32 2139095040, %v6168_v30  ;;  %v8802_v44 = vand.u32 2147483647, %v6168_v30  ;;  %s9022_s23 = scalar_lea.vmem %s9021_s18, %s6034_s6 }
  0x4d   : > { %8909 = vst [vmem:[#allocation9_spill] sm:$0xff] %v6157_v28 }
  0x4e   : > { %v2089_v32 = vshrl.u32 %v2088_v31, 23  ;;  %v2092_v57 = vand.u32 8388607, %v8802_v44 }
  0x50   : > { %v5440_v33 = vadd.s32 4294967169, %v2089_v32  ;;  %v2093_v63 = vor.u32 8388608, %v2092_v57 }
  0x52   : > { %v2095_v34 = vadd.s32 1, %v5440_v33 }
  0x54   : > { %vm2096_vm4 = vcmp.gt.s32.totalorder %v2095_v34, 0 }
  0x55   : > { %v2097_v35 = vsel %vm2096_vm4, %v2095_v34, 0 }
  0x56   : > { %v2099_v36 = vand.u32 31, %v2097_v35  ;;  %v6185_v45 = vshrl.u32 %v2097_v35, 5 }
  0x58   : > { %v6177_v39 = vsub.s32 32, %v2099_v36  ;;  %v2114_v41 = vshll.u32 %v8809_v40, %v2099_v36  ;;  %v2105_v48 = vshll.u32 %v8797_v47, %v2099_v36  ;;  %v2108_v52 = vshll.u32 %v8795_v49, %v2099_v36 }
  0x59   : > { %v2111_v58 = vshll.u32 %v8807_v53, %v2099_v36  ;;  %vm2120_vm5 = vcmp.lt.s32.totalorder %v6185_v45, 4  ;;  %vm2117_vm6 = vcmp.lt.s32.totalorder %v6185_v45, 1  ;;  %vm2119_vm7 = vcmp.lt.s32.totalorder %v6185_v45, 3 }
  0x5a   : > { %v2115_v43 = vshrl.u32 %v8803_v42, %v6177_v39  ;;  %v2106_v50 = vshrl.u32 %v8795_v49, %v6177_v39  ;;  %v2109_v54 = vshrl.u32 %v8807_v53, %v6177_v39  ;;  %v2112_v59 = vshrl.u32 %v8809_v40, %v6177_v39 }
  0x5b   : > { %v2102_v4 = vshll.u32 %v8800_v3, %v2099_v36  ;;  %v2103_v5 = vshrl.u32 %v8797_v47, %v6177_v39  ;;  %vm2118_vm8 = vcmp.lt.s32.totalorder %v6185_v45, 2 }
  0x5c   : > { %v2116_v56 = vor.u32 %v2115_v43, %v2114_v41  ;;  %v6212_v60 = vor.u32 %v2106_v50, %v2105_v48  ;;  %v6214_v61 = vor.u32 %v2109_v54, %v2108_v52  ;;  %v2113_v0 = vor.u32 %v2112_v59, %v2111_v58 }
  0x5e   : > { %v2130_v62 = vsel %vm2120_vm5, %v2116_v56, 1326507024 }
  0xbc   : > { %v2495_v7 = vpop.permute.xlu0 %2494 }
  0xbd   : > { %v2497_v8 = vsel %vm8839_vm2, %v2495_v7, 0  ;;  %v2129_v7 = vsel %vm2117_vm6, %v6212_v60, %v6214_v61 }
  0xbe   : > { %2506 = vmatpush.bf16.msrb.mxu1 %v2497_v8  ;;  %v2131_v8 = vsel %vm2119_vm7, %v2113_v0, %v2130_v62 }
  0xc1   : > { %5465 = vmatmul.msk.bf16.vlgmr.msrb.gmra.mxu1 %vm8838_vm3, %v5564_v9  ;;  %v6240_v9 = vshll.u32 %v2093_v63, 8 }
  0xc3   : > { %v2134_v13 = vand.u32 65535, %v6240_v9 }
  0xc7   : > { %v2388_v12 = vpop.f32.mrf.mxu1 }
  0xc8   : > { %v2389_v16 = vadd.f32 %v5706_v11, %v2388_v12  ;;  %v2132_v11 = vsel %vm2118_vm8, %v2129_v7, %v2131_v8  ;;  %v6251_v12 = vld [vmem:[%s8910_s14 + $0x18] sm:$0xff]  ;;  %v6307_v8 = vld [vmem:[%s8910_s14 + $0x28] sm:$0xff] }
  0xc9   : > { %v2137_v14 = vshrl.u32 %v2132_v11, 16 }
  0xca   : > { %v2392_v17 = vsub.f32 0.0, %v2389_v16 }
  0xcb   : > { %v2139_v23 = vmul.u32 %v2137_v14, %v2134_v13 }
  0xcc   : > { %v2393_v18 = vmul.f32 1.442695, %v2392_v17 }
  0xce   : > { %5715 = vpow2.f32 %v2393_v18 }
  0xcf   : > { %v2390_v19 = vpop.f32.mrf.mxu1 }
  0xd1   : > { %5466 = vmatmul.msk.bf16.gmra.mxu1 %vm8838_vm3, %v5565_v10  ;;  %v6244_v10 = vor.u32 %v2103_v5, %v2102_v4 }
  0xd3   : > { %v2125_v17 = vsel %vm2117_vm6, %v6244_v10, %v6212_v60 }
  0xd4   : > { %v5716_v21 = vpop.eup %5715 }
  0xd5   : > { %v2395_v22 = vadd.f32 1.0, %v5716_v21  ;;  %v2135_v21 = vshrl.u32 %v6240_v9, 16 }
  0xd7   : > { %5717 = vrcp.f32 %v2395_v22  ;;  %v2136_v22 = vand.u32 65535, %v2132_v11  ;;  %v2141_v50 = vmul.u32 %v2137_v14, %v2135_v21  ;;  %v2143_v11 = vshrl.u32 %v2139_v23, 16 }
  0xd9   : > { %v2140_v31 = vmul.u32 %v2136_v22, %v2135_v21 }
  0xdb   : > { %v2144_v43 = vshll.u32 %v2140_v31, 16 }
  0xdd   : > { %v5718_v24 = vpop.eup %5717 }
  0xde   : > { %v2397_v26 = vmul.f32 %v5718_v24, %v2389_v16  ;;  %v6259_v16 = vmul.f32 0.62831855, %v6251_v12 }
  0xe0   : > { %v2400_v27 = vpack.c.bf16 %v2397_v26, %v2397_v26  ;;  %8918 = vst [vmem:[#allocation17_spill] sm:$0xff] %v6259_v16  ;;  %v1626_v24 = vand.u32 2139095040, %v6259_v16  ;;  %v2138_v26 = vmul.u32 %v2136_v22, %v2134_v13 }
  0xe1   : > { %5467 = vmatmul.msk.bf16.gmra.mxu1 %vm8838_vm3, %v5566_v20 }
  0xe2   : > { %5448 = vmatmul.msk.bf16.vlgmr.msra.gmra.mxu2 %vm8837_vm1, %v2400_v27  ;;  %v2142_v27 = vshll.u32 %v2139_v23, 16  ;;  %v1627_v33 = vshrl.u32 %v1626_v24, 23  ;;  %v2145_v24 = vshrl.u32 %v2140_v31, 16  ;;  %vm2259_vm1 = vcmp.lt.f32.partialorder %v6165_v29, 5.0 }
  0xe4   : > { %vm2146_vm9 = vc.u32 %v2138_v26, %v2142_v27  ;;  %v2148_v41 = vadd.s32 %v2142_v27, %v2138_v26  ;;  %v5431_v48 = vadd.s32 4294967169, %v1627_v33 }
  0xe5   : > { %v2147_v52 = vsel %vm2146_vm9, 1, %v8793_v55 }
  0xe6   : > { %vm2150_vm10 = vc.u32 %v2148_v41, %v2144_v43  ;;  %v1633_v58 = vadd.s32 1, %v5431_v48  ;;  %v2149_v63 = vadd.s32 %v2147_v52, %v2141_v50 }
  0xe8   : > { %vm1634_vm12 = vcmp.gt.s32.totalorder %v1633_v58, 0 }
  0xe9   : > { %v1635_v14 = vsel %vm1634_vm12, %v1633_v58, 0 }
  0xea   : > { %v1637_v26 = vand.u32 31, %v1635_v14 }
  0xec   : > { %v6348_v52 = vsub.s32 32, %v1637_v26  ;;  %v1652_v45 = vshll.u32 %v8809_v40, %v1637_v26 }
  0xf1   : > { %5468 = vmatmul.msk.bf16.gmra.mxu1 %vm8838_vm3, %v6157_v28 }
 0x13e   : > { %v6171_v37 = vpop.f32.mrf.mxu1 }
 0x13f   : > { %8911 = vst [vmem:[#allocation10_spill] sm:$0xff] %v6171_v37  ;;  %v6175_v38 = vmul.f32 %v6171_v37, %v6171_v37 }
 0x141   : > { %8912 = vst [vmem:[#allocation11_spill] sm:$0xff] %v6175_v38  ;;  %2547 = vrot.lane.b32.xlu0 %v6175_v38, %s5847_s16 }
 0x146   : > { %v6187_v46 = vpop.f32.mrf.mxu1 }
 0x147   : > { %8913 = vst [vmem:[#allocation12_spill] sm:$0xff] %v6187_v46  ;;  %v6194_v51 = vmul.f32 %v6187_v46, %v6187_v46 }
 0x149   : > { %8914 = vst [vmem:[#allocation13_spill] sm:$0xff] %v6194_v51  ;;  %2581 = vrot.lane.b32.xlu2 %v6194_v51, %s5854_s17  ;;  %2549 = vrot.lane.b32.xlu1 %v6194_v51, %s5847_s16 }
 0x14e   : > { %v6220_v1 = vpop.f32.mrf.mxu1 }
 0x14f   : > { %8915 = vst [vmem:[#allocation14_spill] sm:$0xff] %v6220_v1  ;;  %v6227_v6 = vmul.f32 %v6220_v1, %v6220_v1 }
 0x151   : > { %8916 = vst [vmem:[#allocation15_spill] sm:$0xff] %v6227_v6  ;;  %2528 = vrot.lane.b32.xlu2 %v6128_v2, %s5846_s10  ;;  %2579 = vrot.lane.b32.xlu1 %v6175_v38, %s5854_s17  ;;  %v2126_v2 = vsel %vm2120_vm5, %v2113_v0, 920167782  ;;  %v2151_v0 = vsel %vm2150_vm10, 1, %v8793_v55 }
 0x152   : > { %2551 = vrot.lane.b32.xlu0 %v6227_v6, %s5847_s16  ;;  %v2127_v18 = vsel %vm2119_vm7, %v6214_v61, %v2126_v2  ;;  %v2153_v2 = vadd.s32 %v2151_v0, %v2149_v63 }
 0x153   : > { %v2128_v20 = vsel %vm2118_vm8, %v2125_v17, %v2127_v18  ;;  %v2101_v17 = vshrl.u32 %v8800_v3, %v6177_v39  ;;  %v6313_v18 = vmul.f32 0.62831855, %v6307_v8  ;;  %v6327_v39 = vld [vmem:[%s8910_s14 + $0x10] sm:$0xff] }
 0x154   : > { %v2159_v25 = vshrl.u32 %v2128_v20, 16  ;;  %v2158_v35 = vand.u32 65535, %v2128_v20  ;;  %v6346_v50 = vmul.f32 0.62831855, %v6327_v39 }
 0x155   : > { %8923 = vst [vmem:[#allocation22_spill] sm:$0xff] %v6313_v18 }
 0x156   : > { %v6256_v15 = vpop.f32.mrf.mxu1  ;;  %v2161_v36 = vmul.u32 %v2159_v25, %v2134_v13  ;;  %v2160_v54 = vmul.u32 %v2158_v35, %v2134_v13  ;;  %v2162_v59 = vmul.u32 %v2158_v35, %v2135_v21  ;;  %v2163_v4 = vmul.u32 %v2159_v25, %v2135_v21  ;;  %8925 = vst [vmem:[#allocation24_spill] sm:$0xff] %v6346_v50 }
 0x157   : > { %8917 = vst [vmem:[#allocation16_spill] sm:$0xff] %v6256_v15  ;;  %v6270_v19 = vmul.f32 %v6256_v15, %v6256_v15  ;;  %v2122_v21 = vsel %vm2120_vm5, %v6214_v61, 2102212464  ;;  %v2154_v25 = vadd.s32 %v2153_v2, %v2143_v11  ;;  %v2121_v61 = vsel %vm2117_vm6, %v2101_v17, %v6244_v10 }
 0x158   : > { %v2164_v56 = vshll.u32 %v2161_v36, 16  ;;  %v2166_v5 = vshll.u32 %v2162_v59, 16  ;;  %v2165_v27 = vshrl.u32 %v2161_v36, 16  ;;  %v2123_v31 = vsel %vm2119_vm7, %v6212_v60, %v2122_v21 }
 0x159   : > { %8919 = vst [vmem:[#allocation18_spill] sm:$0xff] %v6270_v19  ;;  %2553 = vrot.lane.b32.xlu1 %v6270_v19, %s5847_s16  ;;  %2583 = vrot.lane.b32.xlu2 %v6227_v6, %s5854_s17  ;;  %v1934_v35 = vand.u32 2139095040, %v6313_v18  ;;  %v2167_v36 = vshrl.u32 %v2162_v59, 16  ;;  %v6341_v43 = vadd.s32 %v2154_v25, %v2145_v24  ;;  %v2124_v10 = vsel %vm2118_vm8, %v2121_v61, %v2123_v31 }
 0x15a   : > { %2585 = vrot.lane.b32.xlu0 %v6270_v19, %s5854_s17  ;;  %vm2168_vm11 = vc.u32 %v2160_v54, %v2164_v56  ;;  %v2170_v7 = vadd.s32 %v2164_v56, %v2160_v54  ;;  %v1074_v56 = vld [vmem:[%s8910_s14 + $0x8] sm:$0xff]  ;;  %v2178_v63 = vmul.u32 %v6240_v9, %v2124_v10  ;;  %v1472_v0 = vand.u32 2139095040, %v6346_v50 }
 0x15b   : > { %v2169_v13 = vsel %vm2168_vm11, 1, %v8793_v55  ;;  %v1935_v60 = vshrl.u32 %v1934_v35, 23  ;;  %v6363_v11 = vshrl.u32 %v1635_v14, 5  ;;  %v1649_v2 = vshll.u32 %v8807_v53, %v1637_v26 }
 0x15c   : > { %v2171_v22 = vadd.s32 %v2169_v13, %v2163_v4  ;;  %vm2172_vm13 = vc.u32 %v2170_v7, %v2166_v5  ;;  %v6343_v48 = vadd.s32 %v2170_v7, %v2166_v5  ;;  %v8792_v4 = vand.u32 2147483647, %v6259_v16 }
 0x15d   : > { %v2173_v33 = vsel %vm2172_vm13, 1, %v8793_v55  ;;  %v1653_v5 = vshrl.u32 %v8803_v42, %v6348_v52  ;;  %v1650_v9 = vshrl.u32 %v8809_v40, %v6348_v52  ;;  %v5437_v13 = vadd.s32 4294967169, %v1935_v60 }
 0x15e   : > { %v6282_v32 = vpop.f32.mrf.mxu1  ;;  %v2175_v41 = vadd.s32 %v2173_v33, %v2171_v22  ;;  %vm2180_vm14 = vc.u32 %v6341_v43, %v6343_v48  ;;  %v1640_v17 = vshll.u32 %v8800_v3, %v1637_v26  ;;  %v1641_v21 = vshrl.u32 %v8797_v47, %v6348_v52 }
 0x15f   : > { %8920 = vst [vmem:[#allocation19_spill] sm:$0xff] %v6282_v32  ;;  %v6286_v34 = vmul.f32 %v6282_v32, %v6282_v32  ;;  %v1643_v22 = vshll.u32 %v8797_v47, %v1637_v26  ;;  %v1644_v25 = vshrl.u32 %v8795_v49, %v6348_v52  ;;  %v1646_v14 = vshll.u32 %v8795_v49, %v1637_v26 }
 0x160   : > { %v2176_v54 = vadd.s32 %v2175_v41, %v2165_v27  ;;  %v1647_v27 = vshrl.u32 %v8807_v53, %v6348_v52  ;;  %v1654_v31 = vor.u32 %v1653_v5, %v1652_v45  ;;  %v1473_v33 = vshrl.u32 %v1472_v0, 23 }
 0x161   : > { %8921 = vst [vmem:[#allocation20_spill] sm:$0xff] %v6286_v34  ;;  %2555 = vrot.lane.b32.xlu1 %v6286_v34, %s5847_s16  ;;  %v1630_v35 = vand.u32 8388607, %v8792_v4  ;;  %vm1658_vm15 = vcmp.lt.s32.totalorder %v6363_v11, 4  ;;  %v1941_v41 = vadd.s32 1, %v5437_v13  ;;  %v1651_v10 = vor.u32 %v1650_v9, %v1649_v2 }
 0x162   : > { %2587 = vrot.lane.b32.xlu0 %v6286_v34, %s5854_s17  ;;  %v2177_v58 = vadd.s32 %v2176_v54, %v2167_v36  ;;  %v6380_v54 = vor.u32 %v1641_v21, %v1640_v17  ;;  %v6382_v60 = vor.u32 %v1644_v25, %v1643_v22  ;;  %vm1655_vm0 = vcmp.lt.s32.totalorder %v6363_v11, 1 }
 0x163   : > { %vm1657_vm4 = vcmp.lt.s32.totalorder %v6363_v11, 3  ;;  %v1631_v0 = vor.u32 8388608, %v1630_v35  ;;  %vm1942_vm5 = vcmp.gt.s32.totalorder %v1941_v41, 0  ;;  %v1664_v5 = vsel %vm1658_vm15, %v1651_v10, 920167782 }
 0x164   : > { %v2181_v7 = vadd.s32 1, %v2177_v58  ;;  %vm1656_vm6 = vcmp.lt.s32.totalorder %v6363_v11, 2  ;;  %v1943_v17 = vsel %vm1942_vm5, %v1941_v41, 0  ;;  %v6412_v25 = vmul.f32 0.62831855, %v1074_v56 }
 0x165   : > { %v6410_v22 = vshll.u32 %v1631_v0, 8  ;;  %v8805_v0 = vand.u32 2147483647, %v6346_v50  ;;  %v8936_v34 = vmov 2131351028   ;;  %v6821_v11 = vpop.f32.mrf.mxu2 }
 0x166   : > { %v6293_v57 = vpop.f32.mrf.mxu1  ;;  %v2182_v24 = vsel %vm2180_vm14, %v2181_v7, %v2177_v58  ;;  %v6384_v58 = vor.u32 %v1647_v27, %v1646_v14  ;;  %8927 = vst [vmem:[#allocation26_spill] sm:$0xff] %v6412_v25  ;;  %vm2087_vm14 = vcmp.lt.s32.totalorder %v6168_v30, 0 }
 0x167   : > { %v6297_v62 = vmul.f32 %v6293_v57, %v6293_v57  ;;  %v2183_v61 = vadd.s32 %v2182_v24, %v2178_v63  ;;  %v5428_v63 = vadd.s32 4294967169, %v1473_v33  ;;  %8926 = vst [vmem:[#allocation25_spill] sm:$0xff] %v6410_v22  ;;  %v6425_v35 = vand.u32 65535, %v6410_v22 }
 0x168   : > { %v1667_v7 = vsel %vm1655_vm0, %v6382_v60, %v6384_v58  ;;  %v1665_v21 = vsel %vm1657_vm4, %v6384_v58, %v1664_v5 }
 0x169   : > { %8922 = vst [vmem:[#allocation21_spill] sm:$0xff] %v6297_v62  ;;  %2589 = vrot.lane.b32.xlu1 %v6297_v62, %s5854_s17  ;;  %2557 = vrot.lane.b32.xlu2 %v6297_v62, %s5847_s16  ;;  %v2184_v36 = vadd.s32 536870912, %v2183_v61  ;;  %v1479_v13 = vadd.s32 1, %v5428_v63 }
 0x16b   : > { %v6386_v26 = vshrl.u32 %v2184_v36, 30  ;;  %vm1480_vm8 = vcmp.gt.s32.totalorder %v1479_v13, 0 }
 0x16c   : > { %v1481_v5 = vsel %vm1480_vm8, %v1479_v13, 0 }
 0x16d   : > { %v2186_v45 = vshll.u32 %v6386_v26, 30  ;;  %v2209_v38 = vsub.s32 4, %v6386_v26 }
 0x16e   : > { %v6315_v20 = vpop.f32.mrf.mxu1 }
 0x16f   : > { %v6322_v23 = vmul.f32 %v6315_v20, %v6315_v20  ;;  %v2187_v9 = vsub.s32 %v2183_v61, %v2186_v45  ;;  %v6418_v61 = vand.u32 31, %v1943_v17  ;;  %v2179_v45 = vadd.s32 %v6343_v48, %v6341_v43 }
 0x171   : > { %8924 = vst [vmem:[#allocation23_spill] sm:$0xff] %v6322_v23  ;;  %2591 = vrot.lane.b32.xlu1 %v6322_v23, %s5854_s17  ;;  %2559 = vrot.lane.b32.xlu2 %v6322_v23, %s5847_s16  ;;  %vm2188_vm7 = vcmp.lt.s32.totalorder %v2187_v9, 0  ;;  %v2189_v24 = vsub.s32 0, %v2187_v9  ;;  %v6431_v41 = vsub.s32 32, %v6418_v61 }
 0x173   : > { %v2190_v27 = vsel %vm2188_vm7, %v2189_v24, %v2187_v9  ;;  %v1955_v24 = vshrl.u32 %v8807_v53, %v6431_v41 }
 0x174   : > { %v2191_v33 = vclz %v2190_v27  ;;  %v6448_v27 = vshrl.u32 %v6410_v22, 16 }
 0x176   : > { %v2525_v59 = vpop.f32.mrf.mxu1  ;;  %v5441_v63 = vadd.s32 4294967294, %v2191_v33 }
 0x177   : > { %v1668_v59 = vsel %vm1658_vm15, %v1654_v31, 1326507024 }
 0x178   : > { %v1669_v2 = vsel %vm1657_vm4, %v1651_v10, %v1668_v59  ;;  %vm5442_vm9 = vcmp.lt.s32.totalorder %v5441_v63, 0  ;;  %v6458_v59 = vshrl.u32 %v1943_v17, 5  ;;  %v1958_v17 = vshrl.u32 %v8809_v40, %v6431_v41 }
 0x179   : > { %1088 = vperm.xlu1 %5628, %v1074_v56   ;;  %v6416_v14 = vsel %vm1656_vm6, %v1667_v7, %v1669_v2  ;;  %v8806_v7 = vand.u32 2147483647, %v6313_v18  ;;  %v1951_v2 = vshll.u32 %v8797_v47, %v6418_v61  ;;  %v2194_v13 = vsel %vm5442_vm9, 0, %v5441_v63 }
 0x17a   : > { %v8799_v36 = vand.u32 65535, %v6416_v14  ;;  %v1675_v56 = vshrl.u32 %v6416_v14, 16  ;;  %v2195_v33 = vsub.s32 32, %v2194_v13  ;;  %v2196_v4 = vshll.u32 %v2187_v9, %v2194_v13 }
 0x17b   : > { %v2199_v10 = vsub.s32 4294967266, %v2194_v13  ;;  %v1483_v47 = vand.u32 31, %v1481_v5  ;;  %v1957_v9 = vshll.u32 %v8807_v53, %v6418_v61  ;;  %v8928_v13 = vmov 1326507024  }
 0x17c   : > { %v6453_v43 = vmul.u32 %v8799_v36, %v6425_v35  ;;  %v6456_v48 = vmul.u32 %v1675_v56, %v6425_v35  ;;  %v6461_v55 = vmul.u32 %v1675_v56, %v6448_v27  ;;  %v1938_v36 = vand.u32 8388607, %v8806_v7 }
 0x17d   : > { %v2197_v3 = vshrl.u32 %v2179_v45, %v2195_v33  ;;  %v2200_v44 = vadd.s32 127, %v2199_v10  ;;  %v1960_v56 = vshll.u32 %v8809_v40, %v6418_v61  ;;  %v1961_v45 = vshrl.u32 %v8928_v13, %v6431_v41 }
 0x17e   : > { %vm1963_vm10 = vcmp.lt.s32.totalorder %v6458_v59, 1  ;;  %vm1966_vm11 = vcmp.lt.s32.totalorder %v6458_v59, 4  ;;  %vm1965_vm12 = vcmp.lt.s32.totalorder %v6458_v59, 3  ;;  %v1959_v53 = vor.u32 %v1958_v17, %v1957_v9 }
 0x17f   : > { %v2198_v10 = vor.u32 %v2197_v3, %v2196_v4  ;;  %v6485_v40 = vsub.s32 32, %v1483_v47  ;;  %vm1964_vm13 = vcmp.lt.s32.totalorder %v6458_v59, 2  ;;  %v8929_v9 = vand.u32 2147483647, %v6168_v30 }
 0x180   : > { %v8933_v33 = vmov 2102212464   ;;  %v1492_v19 = vshll.u32 %v8936_v34, %v1483_v47 }
 0x181   : > { %1098 = vperm.xlu1 %5628, %v6251_v12   ;;  %v1663_v12 = vsel %vm1655_vm0, %v6380_v54, %v6382_v60  ;;  %v2205_v7 = vcvt.s32.f32 %v2198_v10  ;;  %vm6500_vm5 = vcmp.le.f32.partialorder %v8929_v9, 0.7853982  ;;  %v8934_v9 = vmov 2475754826  }
 0x182   : > { %v6422_v31 = vsel %vm1656_vm6, %v1663_v12, %v1665_v21  ;;  %v1952_v12 = vshrl.u32 %v8795_v49, %v6431_v41  ;;  %v1954_v21 = vshll.u32 %v8795_v49, %v6418_v61  ;;  %v1476_v49 = vand.u32 8388607, %v8805_v0 }
 0x183   : > { %v1489_v28 = vshll.u32 %v8934_v9, %v1483_v47  ;;  %v1490_v62 = vshrl.u32 %v8936_v34, %v6485_v40  ;;  %v1493_v51 = vshrl.u32 %v8933_v33, %v6485_v40 }
 0x184   : > { %v6467_v42 = vor.u32 %v1952_v12, %v1951_v2  ;;  %v6469_v63 = vor.u32 %v1955_v24, %v1954_v21  ;;  %v2201_v2 = vshll.u32 %v2200_v44, 23  ;;  %v1477_v12 = vor.u32 8388608, %v1476_v49 }
 0x185   : > { %v1939_v21 = vor.u32 8388608, %v1938_v36  ;;  %v1962_v24 = vor.u32 %v1961_v45, %v1960_v56  ;;  %v6504_v56 = vshrl.u32 %v1481_v5, 5  ;;  %v1487_v5 = vshrl.u32 %v8934_v9, %v6485_v40 }
 0x186   : > { %v2202_v0 = vor.u32 4788187, %v2201_v2  ;;  %v1975_v44 = vsel %vm1963_vm10, %v6467_v42, %v6469_v63  ;;  %v6506_v45 = vshll.u32 %v1477_v12, 8  ;;  %v8935_v12 = vmov 920167782  }
 0x187   : > { %v1976_v49 = vsel %vm1966_vm11, %v1962_v24, 1326507024  ;;  %v6508_v10 = vshll.u32 %v1939_v21, 8  ;;  %v8932_v24 = vmov 683565275   ;;  %v1496_v23 = vshrl.u32 %v8935_v12, %v6485_v40 }
 0x188   : > { %v2203_v4 = vand.u32 2147483647, %v2202_v0  ;;  %v1977_v36 = vsel %vm1965_vm12, %v1959_v53, %v1976_v49  ;;  %v1486_v3 = vshll.u32 %v8932_v24, %v1483_v47  ;;  %v1495_v0 = vshll.u32 %v8933_v33, %v1483_v47 }
 0x189   : > { %1113 = vperm.xlu1 %5628, %v6165_v29   ;;  %v6514_v49 = vsel %vm1964_vm13, %v1975_v44, %v1977_v36  ;;  %v1949_v21 = vshrl.u32 %v8934_v9, %v6431_v41  ;;  %v1498_v44 = vshll.u32 %v8935_v12, %v1483_v47  ;;  %v1499_v36 = vshrl.u32 %v8928_v13, %v6485_v40 }
 0x18a   : > { %v2206_v2 = vmul.f32 %v2205_v7, %v2203_v4  ;;  %v1948_v7 = vshll.u32 %v8932_v24, %v6418_v61  ;;  %v6534_v16 = vand.u32 65535, %v6508_v10  ;;  %v1983_v61 = vshrl.u32 %v6514_v49, 16 }
 0x18b   : > { %vm1501_vm7 = vcmp.lt.s32.totalorder %v6504_v56, 1  ;;  %v1488_v47 = vor.u32 %v1487_v5, %v1486_v3  ;;  %vm1504_vm8 = vcmp.lt.s32.totalorder %v6504_v56, 4  ;;  %v6555_v33 = vor.u32 %v1490_v62, %v1489_v28 }
 0x18c   : > { %v2207_v4 = vxor.u32 2147483648, %v2206_v2  ;;  %v6548_v37 = vor.u32 %v1949_v21, %v1948_v7  ;;  %v6558_v9 = vshrl.u32 %v6508_v10, 16  ;;  %v2210_v3 = vsel %vm2087_vm14, %v2209_v38, %v6386_v26 }
 0x18d   : > { %vm1503_vm9 = vcmp.lt.s32.totalorder %v6504_v56, 3  ;;  %v1494_v28 = vor.u32 %v1493_v51, %v1492_v19  ;;  %v8937_v26 = vshrl.u32 %v6422_v31, 16  ;;  %v1509_v17 = vsel %vm1501_vm7, %v1488_v47, %v6555_v33 }
 0x18e   : > { %v2208_v6 = vsel %vm2087_vm14, %v2207_v4, %v2206_v2  ;;  %v1500_v2 = vor.u32 %v1499_v36, %v1498_v44  ;;  %v1972_v4 = vsel %vm1966_vm11, %v1959_v53, 920167782  ;;  %v1971_v62 = vsel %vm1963_vm10, %v6548_v37, %v6467_v42 }
 0x18f   : > { %v6546_v50 = vsel %vm6500_vm5, %v6168_v30, %v2208_v6  ;;  %v1982_v6 = vand.u32 65535, %v6514_v49  ;;  %v1973_v38 = vsel %vm1965_vm12, %v6469_v63, %v1972_v4  ;;  %v6582_v49 = vmul.u32 %v8937_v26, %v6425_v35 }
 0x190   : > { %v2213_v34 = vmul.f32 %v6546_v50, %v6546_v50  ;;  %v1514_v51 = vsel %vm1504_vm8, %v1500_v2, 1326507024  ;;  %v2212_v44 = vsel %vm6500_vm5, 0, %v2210_v3  ;;  %v1974_v2 = vsel %vm1964_vm13, %v1971_v62, %v1973_v38 }
 0x191   : > { %3065 = vrot.lane.b32.xlu1 %v6282_v32, %s5847_s16  ;;  %v1497_v32 = vor.u32 %v1496_v23, %v1495_v0  ;;  %v6562_v23 = vmul.u32 %v1983_v61, %v6534_v16  ;;  %v1984_v36 = vmul.u32 %v1982_v6, %v6534_v16  ;;  %v6592_v18 = vmul.u32 %v1982_v6, %v6558_v9 }
 0x192   : > { %v2214_v0 = vmul.f32 -0.001358992, %v2213_v34  ;;  %v2221_v5 = vmul.f32 -0.00019511016, %v2213_v34  ;;  %vm1502_vm14 = vcmp.lt.s32.totalorder %v6504_v56, 2  ;;  %v1513_v3 = vsel %vm1501_vm7, %v6555_v33, %v1494_v28 }
 0x193   : > { %v1510_v53 = vsel %vm1504_vm8, %v1497_v32, 920167782  ;;  %v1988_v4 = vshll.u32 %v6562_v23, 16  ;;  %v1990_v62 = vshll.u32 %v6592_v18, 16  ;;  %v2005_v15 = vshrl.u32 %v1974_v2, 16 }
 0x194   : > { %v2215_v7 = vadd.f32 0.041655596, %v2214_v0  ;;  %v2222_v21 = vadd.f32 0.008332121, %v2221_v5  ;;  %v1485_v0 = vshrl.u32 %v8932_v24, %v6485_v40  ;;  %v1511_v6 = vsel %vm1503_vm9, %v1494_v28, %v1510_v53 }
 0x195   : > { %v1515_v40 = vsel %vm1503_vm9, %v1497_v32, %v1514_v51  ;;  %vm6611_vm5 = vc.u32 %v1984_v36, %v1988_v4  ;;  %v8941_v53 = vshll.u32 %v6456_v48, 16  ;;  %v6629_v32 = vsel %vm1504_vm8, %v1494_v28, 2102212464 }
 0x196   : > { %v2216_v13 = vmul.f32 %v2215_v7, %v2213_v34  ;;  %v2223_v26 = vmul.f32 %v2222_v21, %v2213_v34  ;;  %v2229_v21 = vand.u32 3, %v2212_v44  ;;  %v6622_v44 = vsel %vm1501_vm7, %v1485_v0, %v1488_v47 }
 0x197   : > { %v6618_v12 = vadd.s32 %v8941_v53, %v6453_v43  ;;  %v6633_v51 = vsel %vm1502_vm14, %v1513_v3, %v1515_v40  ;;  %v8942_v0 = vmov 0   ;;  %v1968_v53 = vsel %vm1966_vm11, %v6469_v63, 2102212464 }
 0x198   : > { %v2217_v5 = vadd.f32 -0.4999988, %v2216_v13  ;;  %v2224_v7 = vadd.f32 -0.16666654, %v2223_v26  ;;  %v6641_v26 = vsel %vm1502_vm14, %v1509_v17, %v1511_v6  ;;  %v1993_v28 = vsel %vm6611_vm5, 1, %v8942_v0 }
 0x199   : > { %3115 = vrot.lane.b32.xlu1 %v6293_v57, %s5854_s17  ;;  %vm2234_vm7 = vcmp.eq.s32.totalorder %v2229_v21, 2  ;;  %v1521_v40 = vshrl.u32 %v6633_v51, 16  ;;  %vm2228_vm5 = vweird.f32 %v6168_v30  ;;  %vm2231_vm3 = vcmp.eq.s32.totalorder %v2229_v21, 0 }
 0x19a   : > { %v2218_v22 = vmul.f32 %v2217_v5, %v2213_v34  ;;  %v2225_v13 = vmul.f32 %v2224_v7, %v2213_v34  ;;  %v1987_v34 = vmul.u32 %v1983_v61, %v6558_v9  ;;  %v2004_v7 = vand.u32 65535, %v1974_v2 }
 0x19b   : > { %v6653_v61 = vmul.u32 %v2005_v15, %v6534_v16  ;;  %vm2230_vm2 = vcmp.lt.s32.totalorder %v2229_v21, 2 }
 0x19c   : > { %v2219_v47 = vadd.f32 1.0, %v2218_v22 }
 0x19e   : > { %v2235_v6 = vxor.u32 2147483648, %v2219_v47 }
 0x1a1   : > { %3109 = vrot.lane.b32.xlu1 %v6220_v1, %s5854_s17 }
 0x1a3   : > { %v6586_v19 = vpop.permute.xlu2 %2581 }
 0x1a4   : > { %8938 = vst [vmem:[#allocation27_spill] sm:$0xff] %v6586_v19  ;;  %v1994_v19 = vadd.s32 %v1988_v4, %v1984_v36  ;;  %v6636_v36 = vand.u32 65535, %v6506_v45  ;;  %v2226_v4 = vadd.f32 1.0, %v2225_v13  ;;  %v2008_v13 = vmul.u32 %v2004_v7, %v6558_v9 }
 0x1a6   : > { %vm6648_vm8 = vc.u32 %v1994_v19, %v1990_v62  ;;  %v2227_v17 = vmul.f32 %v2226_v4, %v6546_v50  ;;  %v1947_v19 = vshrl.u32 %v8932_v24, %v6431_v41  ;;  %v1995_v62 = vadd.s32 %v1993_v28, %v1987_v34 }
 0x1a7   : > { %v1997_v38 = vsel %vm6648_vm8, 1, %v8942_v0  ;;  %v2006_v41 = vmul.u32 %v2004_v7, %v6534_v16  ;;  %v2010_v34 = vshll.u32 %v6653_v61, 16  ;;  %v1520_v28 = vand.u32 65535, %v6633_v51 }
 0x1a8   : > { %v2232_v2 = vxor.u32 2147483648, %v2227_v17  ;;  %v2236_v50 = vsel %vm2234_vm7, %v2235_v6, %v2227_v17  ;;  %v6680_v21 = vmul.u32 %v1521_v40, %v6636_v36  ;;  %v1543_v17 = vshrl.u32 %v6641_v26, 16 }
 0x1a9   : > { %3059 = vrot.lane.b32.xlu1 %v6187_v46, %s5847_s16  ;;  %v1989_v6 = vshrl.u32 %v6562_v23, 16  ;;  %v1967_v16 = vsel %vm1963_vm10, %v1947_v19, %v6548_v37  ;;  %v1969_v51 = vsel %vm1965_vm12, %v6467_v42, %v1968_v53  ;;  %v2012_v23 = vshll.u32 %v2008_v13, 16 }
 0x1aa   : > { %v2233_v4 = vsel %vm2231_vm3, %v2219_v47, %v2232_v2  ;;  %v2009_v47 = vmul.u32 %v2005_v15, %v6558_v9  ;;  %v1073_v2 = vld [vmem:[%s8910_s14] sm:$0xff]  ;;  %v2016_v30 = vadd.s32 %v2010_v34, %v2006_v41  ;;  %v1519_v42 = vshrl.u32 %v6506_v45, 16 }
 0x1ab   : > { %v6646_v5 = vpop.permute.xlu2 %2528  ;;  %v2237_v3 = vsel %vm2230_vm2, %v2233_v4, %v2236_v50  ;;  %vm6696_vm2 = vc.u32 %v2006_v41, %v2010_v34  ;;  %v5856_v50 = vmov 0.0   ;;  %v1522_v15 = vmul.u32 %v1520_v28, %v6636_v36 }
 0x1ac   : > { %8943 = vst [vmem:[#allocation28_spill] sm:$0xff] %v6646_v5  ;;  %v6657_v22 = vmul.f32 %v6646_v5, %v6646_v5  ;;  %v1999_v5 = vadd.s32 %v1997_v38, %v1995_v62  ;;  %v2238_v63 = vsel %vm2228_vm5, nan, %v2237_v3  ;;  %v2266_v37 = vsel %vm2259_vm1, 1.0, %v5856_v50 }
 0x1ad   : > { %v2245_v7 = vadd.f32 1.0, %v2238_v63  ;;  %v1526_v9 = vshll.u32 %v6680_v21, 16  ;;  %v1542_v38 = vand.u32 65535, %v6641_v26  ;;  %v1991_v53 = vshrl.u32 %v6592_v18, 16 }
 0x1ae   : > { %8946 = vst [vmem:[#allocation29_spill] sm:$0xff] %v6657_v22  ;;  %2561 = vrot.lane.b32.xlu0 %v6657_v22, %s5847_s16  ;;  %2593 = vrot.lane.b32.xlu2 %v6657_v22, %s5854_s17  ;;  %v2000_v4 = vadd.s32 %v1999_v5, %v1989_v6  ;;  %v1525_v3 = vmul.u32 %v1521_v40, %v1519_v42  ;;  %v2015_v34 = vsel %vm6696_vm2, 1, %v8942_v0  ;;  %v8949_v63 = vshll.u32 %v6456_v48, 16 }
 0x1af   : > { %v2252_v19 = vmul.f32 0.5, %v2245_v7  ;;  %v1545_v41 = vmul.u32 %v1543_v17, %v6636_v36  ;;  %v1970_v29 = vsel %vm1964_vm13, %v1967_v16, %v1969_v51  ;;  %v2011_v5 = vshrl.u32 %v6653_v61, 16 }
 0x1b0   : > { %vm6718_vm1 = vc.u32 %v6453_v43, %v8949_v63  ;;  %v2017_v40 = vadd.s32 %v2015_v34, %v2009_v47  ;;  %vm2018_vm3 = vc.u32 %v2016_v30, %v2012_v23  ;;  %vm1530_vm10 = vc.u32 %v1522_v15, %v1526_v9 }
 0x1b1   : > { %v2273_v18 = vmul.f32 %v2266_v37, %v2252_v19  ;;  %v2019_v59 = vsel %vm2018_vm3, 1, %v8942_v0  ;;  %v1524_v6 = vmul.u32 %v1520_v28, %v1519_v42  ;;  %v6724_v16 = vadd.s32 %v2000_v4, %v1991_v53 }
 0x1b2   : > { %v2013_v51 = vshrl.u32 %v2008_v13, 16  ;;  %v6726_v7 = vadd.s32 %v2016_v30, %v2012_v23  ;;  %v2021_v43 = vadd.s32 %v2019_v59, %v2017_v40  ;;  %v1547_v61 = vmul.u32 %v1543_v17, %v1519_v42 }
 0x1b3   : > { %2358 = vperm.xlu1 %5628, %v2273_v18   ;;  %v2024_v47 = vmul.u32 %v6508_v10, %v1970_v29  ;;  %v1528_v62 = vshll.u32 %v1524_v6, 16  ;;  %v1544_v28 = vmul.u32 %v1542_v38, %v6636_v36  ;;  %v1527_v13 = vshrl.u32 %v6680_v21, 16 }
 0x1b4   : > { %v2022_v37 = vadd.s32 %v2021_v43, %v2011_v5  ;;  %v1548_v30 = vshll.u32 %v1545_v41, 16  ;;  %vm2026_vm12 = vc.u32 %v6724_v16, %v6726_v7  ;;  %v8952_v36 = vand.u32 65535, %v6416_v14 }
 0x1b5   : > { %v1529_v53 = vshrl.u32 %v1524_v6, 16  ;;  %v1549_v29 = vshrl.u32 %v1545_v41, 16  ;;  %v1685_v40 = vsel %vm6718_vm1, 1, %v8942_v0  ;;  %v1702_v43 = vshll.u32 %v6582_v49, 16 }
 0x1b6   : > { %1083 = vperm.xlu0 %5627, %v1073_v2   ;;  %1093 = vperm.xlu2 %5629, %v6327_v39   ;;  %v1532_v39 = vadd.s32 %v1526_v9, %v1522_v15  ;;  %v1507_v2 = vsel %vm1503_vm9, %v6555_v33, %v6629_v32  ;;  %v1531_v15 = vsel %vm1530_vm10, 1, %v8942_v0  ;;  %v1546_v9 = vmul.u32 %v1542_v38, %v1519_v42 }
 0x1b7   : > { %v1533_v23 = vadd.s32 %v1531_v15, %v1525_v3  ;;  %v2023_v19 = vadd.s32 %v2022_v37, %v2013_v51  ;;  %vm1552_vm13 = vc.u32 %v1544_v28, %v1548_v30  ;;  %v1554_v17 = vadd.s32 %v1548_v30, %v1544_v28 }
 0x1b8   : > { %vm1534_vm11 = vc.u32 %v1532_v39, %v1528_v62  ;;  %v1550_v32 = vshll.u32 %v1546_v9, 16  ;;  %v6743_v42 = vmul.u32 %v8952_v36, %v6448_v27  ;;  %v1508_v21 = vsel %vm1502_vm14, %v6622_v44, %v1507_v2 }
 0x1b9   : > { %v1535_v33 = vsel %vm1534_vm11, 1, %v8942_v0  ;;  %v2027_v38 = vadd.s32 1, %v2023_v19  ;;  %v1553_v4 = vsel %vm1552_vm13, 1, %v8942_v0  ;;  %v1551_v63 = vshrl.u32 %v1546_v9, 16 }
 0x1ba   : > { %v1537_v10 = vadd.s32 %v1535_v33, %v1533_v23  ;;  %v1555_v34 = vadd.s32 %v1553_v4, %v1547_v61  ;;  %vm1556_vm9 = vc.u32 %v1554_v17, %v1550_v32  ;;  %v1682_v18 = vshll.u32 %v6743_v42, 16 }
 0x1bb   : > { %v1557_v14 = vsel %vm1556_vm9, 1, %v8942_v0  ;;  %v6754_v56 = vadd.s32 %v1554_v17, %v1550_v32  ;;  %v8953_v39 = vand.u32 65535, %v6422_v31  ;;  %v8955_v2 = vand.u32 2139095040, %v6412_v25 }
 0x1bc   : > { %v1538_v3 = vadd.s32 %v1537_v10, %v1527_v13  ;;  %v1559_v44 = vadd.s32 %v1557_v14, %v1555_v34  ;;  %vm1688_vm14 = vc.u32 %v6618_v12, %v1682_v18  ;;  %v8956_v26 = vshrl.u32 %v6422_v31, 16 }
 0x1bd   : > { %v1698_v59 = vmul.u32 %v8953_v39, %v6425_v35  ;;  %v8954_v6 = vmov %v8953_v39  ;;  %v1319_v61 = vshrl.u32 %v8955_v2, 23  ;;  %v1562_v15 = vmul.u32 %v6506_v45, %v1508_v21 }
 0x1be   : > { %1108 = vperm.xlu0 %5627, %v6307_v8   ;;  %v2028_v8 = vsel %vm2026_vm12, %v2027_v38, %v2023_v19  ;;  %v6759_v41 = vadd.s32 %v1538_v3, %v1529_v53  ;;  %v1700_v51 = vmul.u32 %v8954_v6, %v6448_v27  ;;  %v1560_v62 = vadd.s32 %v1559_v44, %v1549_v29 }
 0x1bf   : > { %v2029_v5 = vadd.s32 %v2028_v8, %v2024_v47  ;;  %v1701_v37 = vmul.u32 %v8956_v26, %v6448_v27  ;;  %v1687_v13 = vadd.s32 %v1685_v40, %v6461_v55  ;;  %vm1706_vm7 = vc.u32 %v1698_v59, %v1702_v43 }
 0x1c0   : > { %v1704_v35 = vshll.u32 %v1700_v51, 16  ;;  %v1561_v9 = vadd.s32 %v1560_v62, %v1551_v63  ;;  %vm1564_vm8 = vc.u32 %v6759_v41, %v6754_v56  ;;  %v1689_v12 = vsel %vm1688_vm14, 1, %v8942_v0 }
 0x1c1   : > { %v2030_v47 = vadd.s32 536870912, %v2029_v5  ;;  %v1707_v31 = vsel %vm1706_vm7, 1, %v8942_v0  ;;  %v1708_v27 = vadd.s32 %v1702_v43, %v1698_v59  ;;  %v5425_v23 = vadd.s32 4294967169, %v1319_v61 }
 0x1c2   : > { %v1565_v30 = vadd.s32 1, %v1561_v9  ;;  %v1681_v19 = vshrl.u32 %v6456_v48, 16  ;;  %v1709_v33 = vadd.s32 %v1707_v31, %v1701_v37  ;;  %v1691_v55 = vadd.s32 %v1689_v12, %v1687_v13 }
 0x1c3   : > { %v6775_v28 = vshrl.u32 %v2030_v47, 30  ;;  %vm1710_vm5 = vc.u32 %v1708_v27, %v1704_v35  ;;  %v1703_v17 = vshrl.u32 %v6582_v49, 16  ;;  %v1639_v36 = vshrl.u32 %v8932_v24, %v6348_v52 }
 0x1c4   : > { %v1566_v10 = vsel %vm1564_vm8, %v1565_v30, %v1561_v9  ;;  %v1711_v38 = vsel %vm1710_vm5, 1, %v8942_v0  ;;  %v1325_v53 = vadd.s32 1, %v5425_v23  ;;  %v1660_v48 = vsel %vm1658_vm15, %v6384_v58, 2102212464 }
 0x1c5   : > { %v2032_v45 = vshll.u32 %v6775_v28, 30  ;;  %v1567_v21 = vadd.s32 %v1566_v10, %v1562_v15  ;;  %v1713_v3 = vadd.s32 %v1711_v38, %v1709_v33  ;;  %v1705_v34 = vshrl.u32 %v1700_v51, 16 }
 0x1c6   : > { %3117 = vrot.lane.b32.xlu0 %v6315_v20, %s5854_s17  ;;  %v1683_v63 = vshrl.u32 %v6743_v42, 16  ;;  %v1692_v49 = vadd.s32 %v1691_v55, %v1681_v19  ;;  %vm1326_vm1 = vcmp.gt.s32.totalorder %v1325_v53, 0  ;;  %v1661_v58 = vsel %vm1657_vm4, %v6382_v60, %v1660_v48 }
 0x1c7   : > { %v2033_v32 = vsub.s32 %v2029_v5, %v2032_v45  ;;  %v1568_v29 = vadd.s32 536870912, %v1567_v21  ;;  %v1714_v14 = vadd.s32 %v1713_v3, %v1703_v17  ;;  %v1659_v5 = vsel %vm1655_vm0, %v1639_v36, %v6380_v54 }
 0x1c8   : > { %v6805_v39 = vadd.s32 %v1692_v49, %v1683_v63  ;;  %v6807_v59 = vadd.s32 %v1708_v27, %v1704_v35  ;;  %v2025_v6 = vadd.s32 %v6726_v7, %v6724_v16  ;;  %v1327_v43 = vsel %vm1326_vm1, %v1325_v53, 0  ;;  %v8957_v35 = vld [vmem:[#allocation25_spill] sm:$0xff]  ;;  %v8959_v53 = vld [vmem:[#allocation16_spill] sm:$0xff] }
 0x1c9   : > { %vm2034_vm2 = vcmp.lt.s32.totalorder %v2033_v32, 0  ;;  %v2035_v4 = vsub.s32 0, %v2033_v32  ;;  %v6796_v18 = vshrl.u32 %v1568_v29, 30  ;;  %v1715_v40 = vadd.s32 %v1714_v14, %v1705_v34  ;;  %v8961_v14 = vld [vmem:[#allocation22_spill] sm:$0xff] }
 0x1ca   : > { %v1662_v54 = vsel %vm1656_vm6, %v1659_v5, %v1661_v58  ;;  %vm1718_vm4 = vc.u32 %v6805_v39, %v6807_v59  ;;  %v1329_v16 = vand.u32 31, %v1327_v43  ;;  %v8843_v15 = vand.u32 2147483647, %v6412_v25 }
 0x1cb   : > { %v2036_v8 = vsel %vm2034_vm2, %v2035_v4, %v2033_v32  ;;  %v1570_v42 = vshll.u32 %v6796_v18, 30  ;;  %v1719_v62 = vadd.s32 1, %v1715_v40  ;;  %v1716_v9 = vmul.u32 %v8957_v35, %v1662_v54 }
 0x1cc   : > { %v2037_v52 = vclz %v2036_v8  ;;  %v6826_v45 = vsub.s32 32, %v1329_v16  ;;  %v1563_v17 = vadd.s32 %v6754_v56, %v6759_v41  ;;  %v8958_v36 = vmov 920167782   ;;  %v2420_v8 = vpop.f32.mrf.mxu2  ;;  %v1077_v56 = vld [vmem:[%s8910_s14 + $0x20] sm:$0xff] }
 0x1cd   : > { %v6811_v51 = vsub.s32 %v1567_v21, %v1570_v42  ;;  %v1720_v23 = vsel %vm1718_vm4, %v1719_v62, %v1715_v40  ;;  %v1344_v21 = vshll.u32 %v8958_v36, %v1329_v16  ;;  %v8960_v4 = vmov 1326507024   ;;  %1103 = vperm.xlu2 %5629, %v1077_v56  }
 0x1ce   : > { %3067 = vrot.lane.b32.xlu0 %v6293_v57, %s5847_s16  ;;  %v5438_v44 = vadd.s32 4294967294, %v2037_v52  ;;  %v6830_v10 = vadd.s32 %v1720_v23, %v1716_v9  ;;  %v1345_v3 = vshrl.u32 %v8960_v4, %v6826_v45  ;;  %v6839_v49 = vshrl.u32 %v1327_v43, 5 }
 0x1cf   : > { %vm1572_vm0 = vcmp.lt.s32.totalorder %v6811_v51, 0  ;;  %v1573_v26 = vsub.s32 0, %v6811_v51  ;;  %vm1933_vm3 = vcmp.lt.s32.totalorder %v8961_v14, 0  ;;  %v8962_v52 = vand.u32 2147483647, %v8961_v14 }
 0x1d0   : > { %vm5439_vm15 = vcmp.lt.s32.totalorder %v5438_v44, 0  ;;  %v1722_v41 = vadd.s32 536870912, %v6830_v10  ;;  %v1332_v40 = vshll.u32 %v8932_v24, %v1329_v16  ;;  %v8966_v54 = vmov 2131351028  }
 0x1d1   : > { %v2040_v2 = vsel %vm5439_vm15, 0, %v5438_v44  ;;  %v1574_v13 = vsel %vm1572_vm0, %v1573_v26, %v6811_v51  ;;  %vm6848_vm10 = vcmp.le.f32.partialorder %v8962_v52, 0.7853982  ;;  %v1346_v26 = vor.u32 %v1345_v3, %v1344_v21 }
 0x1d2   : > { %v2041_v60 = vsub.s32 32, %v2040_v2  ;;  %v2042_v61 = vshll.u32 %v2033_v32, %v2040_v2  ;;  %v2045_v47 = vsub.s32 4294967266, %v2040_v2  ;;  %v1575_v27 = vclz %v1574_v13 }
 0x1d3   : > { %v1322_v32 = vand.u32 8388607, %v8843_v15  ;;  %v1338_v2 = vshll.u32 %v8966_v54, %v1329_v16  ;;  %v6866_v9 = vshrl.u32 %v1722_v41, 30  ;;  %vm1350_vm11 = vcmp.lt.s32.totalorder %v6839_v49, 4 }
 0x1d4   : > { %v2043_v7 = vshrl.u32 %v2025_v6, %v2041_v60  ;;  %v2046_v37 = vadd.s32 127, %v2045_v47  ;;  %v5429_v33 = vadd.s32 4294967294, %v1575_v27  ;;  %v8965_v6 = vmov 2475754826  }
 0x1d5   : > { %v1323_v63 = vor.u32 8388608, %v1322_v32  ;;  %v1335_v43 = vshll.u32 %v8965_v6, %v1329_v16  ;;  %v8967_v47 = vmov 2102212464   ;;  %v1333_v27 = vshrl.u32 %v8965_v6, %v6826_v45  ;;  %3069 = vrot.lane.b32.xlu2 %v6315_v20, %s5847_s16 }
 0x1d6   : > { %3061 = vrot.lane.b32.xlu0 %v6220_v1, %s5847_s16  ;;  %v2044_v12 = vor.u32 %v2043_v7, %v2042_v61  ;;  %v2047_v31 = vshll.u32 %v2046_v37, 23  ;;  %vm5430_vm6 = vcmp.lt.s32.totalorder %v5429_v33, 0  ;;  %v1336_v61 = vshrl.u32 %v8966_v54, %v6826_v45 }
 0x1d7   : > { %v1578_v38 = vsel %vm5430_vm6, 0, %v5429_v33  ;;  %v1339_v62 = vshrl.u32 %v8967_v47, %v6826_v45  ;;  %v1341_v13 = vshll.u32 %v8967_v47, %v1329_v16  ;;  %v1342_v23 = vshrl.u32 %v8958_v36, %v6826_v45 }
 0x1d8   : > { %v2048_v30 = vor.u32 4788187, %v2047_v31  ;;  %v2051_v19 = vcvt.s32.f32 %v2044_v12  ;;  %v1579_v29 = vsub.s32 32, %v1578_v38  ;;  %v1583_v34 = vsub.s32 4294967266, %v1578_v38 }
 0x1d9   : > { %v1580_v44 = vshll.u32 %v6811_v51, %v1578_v38  ;;  %v2055_v51 = vsub.s32 4, %v6775_v28  ;;  %vm1347_vm12 = vcmp.lt.s32.totalorder %v6839_v49, 1  ;;  %v1337_v33 = vor.u32 %v1336_v61, %v1335_v43 }
 0x1da   : > { %v2049_v55 = vand.u32 2147483647, %v2048_v30  ;;  %v1581_v42 = vshrl.u32 %v1563_v17, %v1579_v29  ;;  %v1584_v60 = vadd.s32 127, %v1583_v34  ;;  %vm1349_vm13 = vcmp.lt.s32.totalorder %v6839_v49, 3 }
 0x1db   : > { %v1360_v17 = vsel %vm1350_vm11, %v1346_v26, 1326507024  ;;  %v2056_v21 = vsel %vm1933_vm3, %v2055_v51, %v6775_v28  ;;  %v1724_v38 = vshll.u32 %v6866_v9, 30  ;;  %v1343_v8 = vor.u32 %v1342_v23, %v1341_v13 }
 0x1dc   : > { %v2052_v48 = vmul.f32 %v2051_v19, %v2049_v55  ;;  %v1585_v35 = vshll.u32 %v1584_v60, 23  ;;  %v1582_v31 = vor.u32 %v1581_v42, %v1580_v44  ;;  %v8968_v19 = vld [vmem:[#allocation10_spill] sm:$0xff]  ;;  %v1340_v55 = vor.u32 %v1339_v62, %v1338_v2 }
 0x1dd   : > { %v6886_v41 = vshll.u32 %v1323_v63, 8  ;;  %v1331_v52 = vshrl.u32 %v8932_v24, %v6826_v45  ;;  %v1334_v42 = vor.u32 %v1333_v27, %v1332_v40  ;;  %vm1348_vm9 = vcmp.lt.s32.totalorder %v6839_v49, 2  ;;  %v5707_v49 = vld [vmem:[%s8976_s30] ss:$0 sm:$0xff]  ;;  %s9006_s30 = smov %s9005_s29 }
 0x1de   : > { %3111 = vrot.lane.b32.xlu0 %v8959_v53, %s5854_s17  ;;  %v2053_v58 = vxor.u32 2147483648, %v2052_v48  ;;  %v1586_v30 = vor.u32 4788187, %v1585_v35  ;;  %v1589_v34 = vcvt.s32.f32 %v1582_v31  ;;  %v1359_v43 = vsel %vm1347_vm12, %v1337_v33, %v1340_v55  ;;  %v2550_v31 = vpop.permute.xlu1 %2549 }
 0x1df   : > { %v1361_v2 = vsel %vm1349_vm13, %v1343_v8, %v1360_v17  ;;  %v6898_v62 = vsub.s32 %v6830_v10, %v1724_v38  ;;  %v6900_v5 = vmul.f32 0.62831855, %v1077_v56  ;;  %v1351_v40 = vsel %vm1347_vm12, %v1331_v52, %v1334_v42 }
 0x1e0   : > { %v2054_v7 = vsel %vm1933_vm3, %v2053_v58, %v2052_v48  ;;  %v1587_v29 = vand.u32 2147483647, %v1586_v30  ;;  %v2058_v58 = vsel %vm6848_vm10, 0, %v2056_v21  ;;  %v6905_v26 = vand.u32 65535, %v6886_v41 }
 0x1e1   : > { %v2057_v37 = vsel %vm6848_vm10, %v8961_v14, %v2054_v7  ;;  %v2075_v45 = vand.u32 3, %v2058_v58  ;;  %8969 = vst [vmem:[#allocation25_spill] sm:$0xff] %v6900_v5  ;;  %v1352_v35 = vsel %vm1350_vm11, %v1340_v55, 2102212464  ;;  %v1355_v13 = vsel %vm1347_vm12, %v1334_v42, %v1337_v33 }
 0x1e2   : > { %v2059_v12 = vmul.f32 %v2057_v37, %v2057_v37  ;;  %v1590_v61 = vmul.f32 %v1589_v34, %v1587_v29  ;;  %v1356_v10 = vsel %vm1350_vm11, %v1343_v8, 920167782  ;;  %v6915_v56 = vsel %vm1348_vm9, %v1359_v43, %v1361_v2  ;;  %v2548_v2 = vpop.permute.xlu0 %2547 }
 0x1e3   : > { %vm2080_vm7 = vcmp.eq.s32.totalorder %v2075_v45, 2  ;;  %v1780_v17 = vand.u32 2139095040, %v6900_v5  ;;  %vm1726_vm8 = vcmp.lt.s32.totalorder %v6898_v62, 0  ;;  %v1357_v21 = vsel %vm1349_vm13, %v1340_v55, %v1356_v10  ;;  %v2716_v10 = vld [vmem:[%s6066_s9 + $0x8] sm:$0xff] }
 0x1e4   : > { %v2060_v16 = vmul.f32 -0.001358992, %v2059_v12  ;;  %v2067_v32 = vmul.f32 -0.00019511016, %v2059_v12  ;;  %v1591_v30 = vxor.u32 2147483648, %v1590_v61  ;;  %v1367_v38 = vshrl.u32 %v6915_v56, 16 }
 0x1e5   : > { %v1353_v29 = vsel %vm1349_vm13, %v1337_v33, %v1352_v35  ;;  %vm2076_vm5 = vcmp.lt.s32.totalorder %v2075_v45, 2  ;;  %vm2077_vm2 = vcmp.eq.s32.totalorder %v2075_v45, 0  ;;  %v8844_v33 = vand.u32 65535, %v6915_v56 }
 0x1e6   : > { %3105 = vrot.lane.b32.xlu0 %v8968_v19, %s5854_s17  ;;  %v2061_v3 = vadd.f32 0.041655596, %v2060_v16  ;;  %v2068_v48 = vadd.f32 0.008332121, %v2067_v32  ;;  %v1727_v16 = vsub.s32 0, %v6898_v62  ;;  %v8971_v32 = vld [vmem:[#allocation24_spill] sm:$0xff]  ;;  %vm2074_vm15 = vweird.f32 %v8961_v14 }
 0x1e7   : > { %vm1471_vm14 = vcmp.lt.s32.totalorder %v8971_v32, 0  ;;  %v8972_v34 = vand.u32 2147483647, %v8971_v32  ;;  %v6944_v42 = vshrl.u32 %v6886_v41, 16  ;;  %v6947_v43 = vmul.u32 %v1367_v38, %v6905_v26 }
 0x1e8   : > { %v2062_v44 = vmul.f32 %v2061_v3, %v2059_v12  ;;  %v2069_v28 = vmul.f32 %v2068_v48, %v2059_v12  ;;  %v1592_v55 = vsel %vm1471_vm14, %v1591_v30, %v1590_v61  ;;  %v1593_v30 = vsub.s32 4, %v6796_v18 }
 0x1e9   : > { %vm6930_vm1 = vcmp.le.f32.partialorder %v8972_v34, 0.7853982  ;;  %vm2729_vm6 = vcmask 261120   ;;  %vm8980_vm11 = vcmask 1043456  }
 0x1ea   : > { %v2063_v60 = vadd.f32 -0.4999988, %v2062_v44  ;;  %v2070_v63 = vadd.f32 -0.16666654, %v2069_v28  ;;  %v1728_v44 = vsel %vm1726_vm8, %v1727_v16, %v6898_v62  ;;  %v1781_v28 = vshrl.u32 %v1780_v17, 23  ;;  %v2580_v16 = vpop.permute.xlu1 %2579  ;;  %v8977_v17 = vld [vmem:[#allocation11_spill] sm:$0xff] }
 0x1eb   : > { %v6957_v14 = vsel %vm6930_vm1, %v8971_v32, %v1592_v55  ;;  %v1729_v35 = vclz %v1728_v44  ;;  %v7016_v8 = vsel %vm2729_vm6, %v8968_v19, 0.0 }
 0x1ec   : > { %v2064_v7 = vmul.f32 %v2063_v60, %v2059_v12  ;;  %v2071_v51 = vmul.f32 %v2070_v63, %v2059_v12  ;;  %v8970_v12 = vld [vmem:[#allocation19_spill] sm:$0xff]  ;;  %v8975_v63 = vld [vmem:[#allocation13_spill] sm:$0xff]  ;;  %v1597_v34 = vmul.f32 %v6957_v14, %v6957_v14 }
 0x1ed   : > { %3113 = vrot.lane.b32.xlu2 %v8970_v12, %s5854_s17  ;;  %v2572_v61 = vadd.f32 %v2550_v31, %v8975_v63  ;;  %v5432_v44 = vadd.s32 4294967294, %v1729_v35 }
 0x1ee   : > { %v2065_v27 = vadd.f32 1.0, %v2064_v7  ;;  %v2072_v23 = vadd.f32 1.0, %v2071_v51  ;;  %v5789_v51 = vld [vmem:[%s8910_s14 + $0x28] sm:$0xff]  ;;  %v1605_v63 = vmul.f32 -0.00019511016, %v1597_v34 }
 0x1ef   : > { %vm2258_vm0 = vcmp.lt.f32.partialorder %v5789_v51, 5.0  ;;  %v2419_v51 = vadd.f32 %v5707_v49, %v6821_v11  ;;  %v1717_v11 = vadd.s32 %v6807_v59, %v6805_v39  ;;  %vm5433_vm4 = vcmp.lt.s32.totalorder %v5432_v44, 0 }
 0x1f0   : > { %v2073_v3 = vmul.f32 %v2072_v23, %v2057_v37  ;;  %v2081_v48 = vxor.u32 2147483648, %v2065_v27  ;;  %v6939_v37 = vsel %vm1348_vm9, %v1355_v13, %v1357_v21  ;;  %v6961_v13 = vsel %vm1348_vm9, %v1351_v40, %v1353_v29 }
 0x1f1   : > { %v1389_v45 = vshrl.u32 %v6939_v37, 16  ;;  %v5434_v40 = vadd.s32 4294967169, %v1781_v28  ;;  %v2571_v21 = vadd.f32 %v2548_v2, %v8977_v17 }
 0x1f2   : > { %v2078_v52 = vxor.u32 2147483648, %v2073_v3  ;;  %v2082_v58 = vsel %vm2080_vm7, %v2081_v48, %v2073_v3  ;;  %v2265_v3 = vsel %vm2258_vm0, 1.0, %v5856_v50  ;;  %v8978_v48 = vld [vmem:[#allocation27_spill] sm:$0xff]  ;;  %vm8985_vm7 = vcmask 64512  }
 0x1f3   : > { %v2604_v29 = vadd.f32 %v8978_v48, %v2572_v61  ;;  %v6988_v28 = vmul.u32 %v1389_v45, %v6905_v26  ;;  %v2603_v2 = vadd.f32 %v2580_v16, %v2571_v21  ;;  %v1787_v61 = vadd.s32 1, %v5434_v40  ;;  %v2552_v48 = vpop.permute.xlu0 %2551  ;;  %v8979_v21 = vld [vmem:[#allocation15_spill] sm:$0xff] }
 0x1f4   : > { %v2079_v60 = vsel %vm2077_vm2, %v2065_v27, %v2078_v52  ;;  %v6970_v27 = vmul.u32 %v8844_v33, %v6905_v26  ;;  %v6984_v52 = vmul.u32 %v1367_v38, %v6944_v42  ;;  %v6995_v38 = vmul.u32 %v1389_v45, %v6944_v42 }
 0x1f5   : > { %v2083_v7 = vsel %vm2076_vm5, %v2079_v60, %v2082_v58  ;;  %3063 = vrot.lane.b32.xlu2 %v8959_v53, %s5847_s16  ;;  %v8845_v58 = vshll.u32 %v6947_v43, 16  ;;  %v1598_v60 = vmul.f32 -0.001358992, %v1597_v34  ;;  %v6997_v17 = vadd.f32 1e-12, %v2604_v29 }
 0x1f6   : > { %v2084_v31 = vsel %vm2074_vm15, nan, %v2083_v7  ;;  %v7008_v40 = vadd.f32 1e-12, %v2603_v2  ;;  %vm1788_vm3 = vcmp.gt.s32.totalorder %v1787_v61, 0  ;;  %v1732_v29 = vsel %vm5433_vm4, 0, %v5432_v44  ;;  %v5790_v44 = vld [vmem:[%s8910_s14 + $0x10] sm:$0xff]  ;;  %vm8989_vm4 = vmmov %vm8985_vm7 }
 0x1f7   : > { %v2244_v23 = vadd.f32 1.0, %v2084_v31  ;;  %v1594_v31 = vsel %vm1471_vm14, %v1593_v30, %v6796_v18  ;;  %v1599_v35 = vadd.f32 0.041655596, %v1598_v60  ;;  %v7002_v16 = vadd.s32 %v8845_v58, %v6970_v27 }
 0x1f8   : > { %v1596_v18 = vsel %vm6930_vm1, 0, %v1594_v31  ;;  %v2429_v30 = vpack.c.bf16 %v2419_v51, %v2419_v51  ;;  %5719 = vrsqrt.f32 %v6997_v17  ;;  %v1733_v60 = vsub.s32 32, %v1732_v29 }
 0x1f9   : > { %v2251_v55 = vmul.f32 0.5, %v2244_v23  ;;  %v1606_v23 = vadd.f32 0.008332121, %v1605_v63  ;;  %v1600_v45 = vmul.f32 %v1599_v35, %v1597_v34  ;;  %v1734_v63 = vshll.u32 %v6898_v62, %v1732_v29 }
 0x1fa   : > { %v1737_v2 = vsub.s32 4294967266, %v1732_v29  ;;  %v1789_v31 = vsel %vm1788_vm3, %v1787_v61, 0  ;;  %5721 = vrsqrt.f32 %v7008_v40  ;;  %vm2255_vm10 = vcmp.lt.f32.partialorder %v5790_v44, 5.0 }
 0x1fb   : > { %v2272_v7 = vmul.f32 %v2265_v3, %v2251_v55  ;;  %v1607_v49 = vmul.f32 %v1606_v23, %v1597_v34  ;;  %v2573_v3 = vadd.f32 %v2552_v48, %v8979_v21  ;;  %v1601_v39 = vadd.f32 -0.4999988, %v1600_v45  ;;  %v8981_v45 = vld [vmem:[#allocation17_spill] sm:$0xff] }
 0x1fc   : > { %v1613_v55 = vand.u32 3, %v1596_v18  ;;  %v1735_v48 = vshrl.u32 %v1717_v11, %v1733_v60  ;;  %v2463_v18 = vsel %vm8980_vm11, %v2429_v30, 0  ;;  %vm1625_vm12 = vcmp.lt.s32.totalorder %v8981_v45, 0 }
 0x1fd   : > { %2353 = vperm.xlu1 %5628, %v2272_v7   ;;  %3057 = vrot.lane.b32.xlu2 %v8968_v19, %s5847_s16  ;;  %v1608_v59 = vadd.f32 -0.16666654, %v1607_v49  ;;  %v2584_v7 = vpop.permute.xlu2 %2583  ;;  %v1602_v51 = vmul.f32 %v1601_v39, %v1597_v34  ;;  %v1738_v19 = vadd.s32 127, %v1737_v2  ;;  %v8842_v62 = vand.u32 2147483647, %v6900_v5 }
 0x1fe   : > { %v2605_v23 = vadd.f32 %v2584_v7, %v2573_v3  ;;  %2472 = vmatpush.bf16.msra.mxu3 %v2463_v18  ;;  %v7030_v21 = vand.u32 31, %v1789_v31  ;;  %vm1618_vm13 = vcmp.eq.s32.totalorder %v1613_v55, 2  ;;  %v1736_v29 = vor.u32 %v1735_v48, %v1734_v63  ;;  %v7032_v11 = vpop.eup %5719 }
 0x1ff   : > { %v1609_v35 = vmul.f32 %v1608_v59, %v1597_v34  ;;  %v1603_v49 = vadd.f32 1.0, %v1602_v51  ;;  %v7028_v34 = vsel %vm2729_vm6, %v8970_v12, 0.0  ;;  %v1739_v3 = vshll.u32 %v1738_v19, 23 }
 0x200   : > { %v8982_v59 = vand.u32 2147483647, %v8981_v45  ;;  %v7045_v12 = vsel %vm2729_vm6, %v6293_v57, 0.0  ;;  %vm1615_vm14 = vcmp.eq.s32.totalorder %v1613_v55, 0  ;;  %v7047_v63 = vadd.f32 1e-12, %v2605_v23  ;;  %v5722_v51 = vpop.eup %5721 }
 0x201   : > { %v1610_v61 = vadd.f32 1.0, %v1609_v35  ;;  %v1619_v39 = vxor.u32 2147483648, %v1603_v49  ;;  %v1740_v2 = vor.u32 4788187, %v1739_v3  ;;  %v1743_v7 = vcvt.s32.f32 %v1736_v29 }
 0x202   : > { %vm7037_vm9 = vcmp.le.f32.partialorder %v8982_v59, 0.7853982  ;;  %v7055_v35 = vand.u32 8388607, %v8842_v62  ;;  %vm1614_vm8 = vcmp.lt.s32.totalorder %v1613_v55, 2  ;;  %v7058_v23 = vshrl.u32 %v1789_v31, 5 }
 0x203   : > { %v1611_v30 = vmul.f32 %v1610_v61, %v6957_v14  ;;  %v5791_v14 = vld [vmem:[%s8906_s19] sm:$0xff]  ;;  %v7061_v19 = vsub.s32 32, %v7030_v21  ;;  %vm1612_vm5 = vweird.f32 %v8971_v32  ;;  %v1741_v18 = vand.u32 2147483647, %v1740_v2  ;;  %v2554_v2 = vpop.permute.xlu1 %2553  ;;  %v2718_v62 = vld [vmem:[%s6066_s9 + $0x18] sm:$0xff] }
 0x204   : > { %5461 = vmatmul.msk.bf16.vlgmr.msra.gmra.mxu3 %vm8985_vm7, %v5791_v14  ;;  %v7066_v61 = vshll.u32 %v8932_v24, %v7030_v21  ;;  %v7070_v29 = vshll.u32 %v8965_v6, %v7030_v21  ;;  %v7074_v3 = vshll.u32 %v8966_v54, %v7030_v21  ;;  %5723 = vrsqrt.f32 %v7047_v63  ;;  %v2717_v14 = vld [vmem:[%s6066_s9 + $0x10] sm:$0xff] }
 0x205   : > { %3107 = vrot.lane.b32.xlu2 %v6187_v46, %s5854_s17  ;;  %v1616_v48 = vxor.u32 2147483648, %v1611_v30  ;;  %v1620_v57 = vsel %vm1618_vm13, %v1619_v39, %v1611_v30  ;;  %v1744_v32 = vmul.f32 %v1743_v7, %v1741_v18  ;;  %v1747_v39 = vsub.s32 4, %v6866_v9  ;;  %v2558_v25 = vpop.permute.xlu2 %2557 }
 0x206   : > { %v2620_v15 = vmul.f32 %v5722_v51, %v7008_v40  ;;  %v2632_v33 = vmul.f32 %v7032_v11, %v6997_v17  ;;  %v3044_v55 = vsel %vm2729_vm6, %v6315_v20, 0.0  ;;  %v2262_v58 = vsel %vm2255_vm10, 1.0, %v5856_v50 }
 0x207   : > { %v1617_v31 = vsel %vm1615_vm14, %v1603_v49, %v1616_v48  ;;  %v7088_v49 = vshll.u32 %v8967_v47, %v7030_v21  ;;  %v1745_v7 = vxor.u32 2147483648, %v1744_v32  ;;  %v2724_v46 = vpack.c.bf16 %v2718_v62, %v2717_v14 }
 0x208   : > { %v1621_v30 = vsel %vm1614_vm8, %v1617_v31, %v1620_v57  ;;  %v8986_v57 = vld [vmem:[#allocation18_spill] sm:$0xff]  ;;  %v2586_v31 = vpop.permute.xlu0 %2585  ;;  %v2621_v5 = vmul.f32 %v5722_v51, %v2620_v15  ;;  %v2633_v22 = vmul.f32 %v7032_v11, %v2632_v33  ;;  %v7110_v14 = vshrl.u32 %v8966_v54, %v7061_v19 }
 0x209   : > { %v1622_v59 = vsel %vm1612_vm5, nan, %v1621_v30  ;;  %v2574_v18 = vadd.f32 %v2554_v2, %v8986_v57  ;;  %v2715_v30 = vld [vmem:[%s6066_s9] sm:$0xff]  ;;  %v1746_v1 = vsel %vm1625_vm12, %v1745_v7, %v1744_v32  ;;  %2748 = vmatpush.bf16.msrb.mxu2 %v2724_v46  ;;  %vm2638_vm2 = vcmp.eq.f32.partialorder %v6997_v17, inf }
 0x20a   : > { %v2241_v48 = vadd.f32 1.0, %v1622_v59  ;;  %v1748_v59 = vsel %vm1625_vm12, %v1747_v39, %v6866_v9  ;;  %v2723_v44 = vpack.c.bf16 %v2716_v10, %v2715_v30  ;;  %v2622_v15 = vmul.f32 0.5, %v2621_v5  ;;  %v7106_v33 = vpop.eup %5723  ;;  %v8988_v30 = vld [vmem:[#allocation20_spill] sm:$0xff] }
 0x20b   : > { %v2606_v2 = vadd.f32 %v2586_v31, %v2574_v18  ;;  %v2634_v62 = vmul.f32 0.5, %v2633_v22  ;;  %v1750_v46 = vsel %vm7037_vm9, 0, %v1748_v59  ;;  %vm2640_vm1 = vcmp.eq.f32.partialorder %v6997_v17, 0.0 }
 0x20c   : > { %v2248_v20 = vmul.f32 0.5, %v2241_v48  ;;  %v8987_v48 = vld [vmem:[#allocation21_spill] sm:$0xff]  ;;  %vm2626_vm15 = vcmp.eq.f32.partialorder %v7008_v40, inf  ;;  %vm2628_vm3 = vcmp.eq.f32.partialorder %v7008_v40, 0.0  ;;  %vm1812_vm14 = vcmp.lt.s32.totalorder %v7058_v23, 4 }
 0x20d   : > { %v7114_v39 = vadd.f32 1e-12, %v2606_v2  ;;  %v2576_v7 = vadd.f32 %v2558_v25, %v8987_v48  ;;  %v2635_v5 = vsub.f32 1.5, %v2634_v62  ;;  %2749 = vmatpush.bf16.msrb.mxu2 %v2723_v44  ;;  %v2644_v25 = vmul.f32 %v7106_v33, %v7047_v63  ;;  %v5792_v44 = vld [vmem:[%s8910_s14 + $0x18] sm:$0xff] }
 0x20e   : > { %v2269_v32 = vmul.f32 %v2262_v58, %v2248_v20  ;;  %v2556_v58 = vpop.permute.xlu1 %2555  ;;  %v2641_v2 = vand.u32 2147483648, %v6997_v17  ;;  %vm2256_vm0 = vcmp.lt.f32.partialorder %v5792_v44, 5.0  ;;  %vm2650_vm7 = vcmp.eq.f32.partialorder %v7047_v63, inf }
 0x20f   : > { %5725 = vrsqrt.f32 %v7114_v39  ;;  %v2636_v18 = vmul.f32 %v7032_v11, %v2635_v5  ;;  %v2575_v20 = vadd.f32 %v2556_v58, %v8988_v30  ;;  %vm2662_vm8 = vcmp.eq.f32.partialorder %v7114_v39, inf }
 0x210   : > { %3045 = vadd.xlane.f32.xlu0 %v3044_v55  ;;  %v7104_v55 = vsel %vm7037_vm9, %v8981_v45, %v1746_v1  ;;  %v2623_v1 = vsub.f32 1.5, %v2622_v15  ;;  %2338 = vperm.xlu1 %5628, %v2269_v32   ;;  %v2588_v59 = vpop.permute.xlu0 %2587  ;;  %vm1766_vm9 = vweird.f32 %v8981_v45  ;;  %vm2664_vm5 = vcmp.eq.f32.partialorder %v7114_v39, 0.0 }
 0x211   : > { %v1751_v9 = vmul.f32 %v7104_v55, %v7104_v55  ;;  %v2637_v11 = vmul.f32 %v2636_v18, %v6997_v17  ;;  %v2607_v48 = vadd.f32 %v2588_v59, %v2575_v20 }
 0x212   : > { %v2624_v57 = vmul.f32 %v5722_v51, %v2623_v1  ;;  %v2645_v51 = vmul.f32 %v7106_v33, %v2644_v25  ;;  %v2629_v1 = vand.u32 2147483648, %v7008_v40 }
 0x213   : > { %v1752_v22 = vmul.f32 -0.001358992, %v1751_v9  ;;  %v1759_v10 = vmul.f32 -0.00019511016, %v1751_v9  ;;  %v7145_v25 = vadd.f32 1e-12, %v2607_v48 }
 0x214   : > { %v2625_v15 = vmul.f32 %v2624_v57, %v7008_v40 }
 0x215   : > { %v1753_v60 = vadd.f32 0.041655596, %v1752_v22  ;;  %v1760_v31 = vadd.f32 0.008332121, %v1759_v10  ;;  %v2639_v22 = vsel %vm2638_vm2, %v6997_v17, %v2637_v11  ;;  %v2646_v10 = vmul.f32 0.5, %v2645_v51  ;;  %v5726_v58 = vpop.eup %5725 }
 0x216   : > { %v2627_v5 = vsel %vm2626_vm15, %v7008_v40, %v2625_v15  ;;  %v2642_v30 = vsel %vm2640_vm1, %v2641_v2, %v2639_v22  ;;  %v2656_v59 = vmul.f32 %v5726_v58, %v7114_v39  ;;  %5727 = vrsqrt.f32 %v7145_v25  ;;  %v2590_v17 = vpop.permute.xlu1 %2589  ;;  %vm8996_vm1 = vmmov %vm8989_vm4 }
 0x217   : > { %v1754_v62 = vmul.f32 %v1753_v60, %v1751_v9  ;;  %v1761_v32 = vmul.f32 %v1760_v31, %v1751_v9  ;;  %v2630_v60 = vsel %vm2628_vm3, %v2629_v1, %v2627_v5  ;;  %v1767_v31 = vand.u32 3, %v1750_v46 }
 0x218   : > { %3042 = vadd.xlane.f32.xlu0 %v7045_v12  ;;  %v5793_v12 = vld [vmem:[%s8906_s19 + $0x8] sm:$0xff]  ;;  %v2647_v20 = vsub.f32 1.5, %v2646_v10  ;;  %v7153_v11 = vshrl.u32 %v8965_v6, %v7061_v19  ;;  %v1801_v51 = vshrl.u32 %v8967_v47, %v7061_v19  ;;  %v7159_v46 = vshll.u32 %v8958_v36, %v7030_v21 }
 0x219   : > { %5462 = vmatmul.msk.bf16.gmra.mxu3 %vm8989_vm4, %v5793_v12  ;;  %v1755_v57 = vadd.f32 -0.4999988, %v1754_v62  ;;  %v1762_v18 = vadd.f32 -0.16666654, %v1761_v32  ;;  %v2719_v12 = vpack.c.bf16 %v2642_v30, %v2630_v60  ;;  %v2657_v2 = vmul.f32 %v5726_v58, %v2656_v59 }
 0x21a   : > { %v2608_v48 = vadd.f32 %v2590_v17, %v2576_v7  ;;  %v8990_v1 = vshll.u32 %v6947_v43, 16  ;;  %v1804_v21 = vshrl.u32 %v8958_v36, %v7061_v19  ;;  %v7175_v22 = vshrl.u32 %v8960_v4, %v7061_v19 }
 0x21b   : > { %v1756_v15 = vmul.f32 %v1755_v57, %v1751_v9  ;;  %v1763_v40 = vmul.f32 %v1762_v18, %v1751_v9  ;;  %5469 = vmatmul.msk.bf16.vlgmr.msrb.gmra.mxu2 %vm2729_vm6, %v2719_v12  ;;  %v2648_v9 = vmul.f32 %v7106_v33, %v2647_v20  ;;  %vm1772_vm11 = vcmp.eq.s32.totalorder %v1767_v31, 2 }
 0x21c   : > { %vm7167_vm10 = vc.u32 %v6970_v27, %v8990_v1  ;;  %v2658_v7 = vmul.f32 0.5, %v2657_v2  ;;  %v7179_v33 = vor.u32 %v7110_v14, %v7070_v29  ;;  %v7182_v27 = vadd.f32 1e-12, %v2608_v48  ;;  %v7187_v60 = vpop.eup %5727 }
 0x21d   : > { %v1757_v62 = vadd.f32 1.0, %v1756_v15  ;;  %v1764_v32 = vadd.f32 1.0, %v1763_v40  ;;  %v7185_v57 = vor.u32 %v1801_v51, %v7074_v3  ;;  %vm1768_vm12 = vcmp.lt.s32.totalorder %v1767_v31, 2 }
 0x21e   : > { %vm1769_vm13 = vcmp.eq.s32.totalorder %v1767_v31, 0  ;;  %v2659_v18 = vsub.f32 1.5, %v2658_v7  ;;  %5729 = vrsqrt.f32 %v7182_v27  ;;  %v2649_v29 = vmul.f32 %v2648_v9, %v7047_v63 }
 0x21f   : > { %v1773_v10 = vxor.u32 2147483648, %v1757_v62  ;;  %v2263_v3 = vsel %vm2256_vm0, 1.0, %v5856_v50  ;;  %v2665_v12 = vand.u32 2147483648, %v7114_v39  ;;  %v2668_v45 = vmul.f32 %v7187_v60, %v7145_v25 }
 0x220   : > { %3027 = vadd.xlane.f32.xlu0 %v7016_v8  ;;  %v1765_v8 = vmul.f32 %v1764_v32, %v7104_v55  ;;  %v1808_v55 = vor.u32 %v7175_v22, %v7159_v46  ;;  %v2660_v14 = vmul.f32 %v5726_v58, %v2659_v18  ;;  %v2651_v58 = vsel %vm2650_vm7, %v7047_v63, %v2649_v29 }
 0x221   : > { %v8993_v51 = vand.u32 65535, %v6939_v37  ;;  %v2669_v32 = vmul.f32 %v7187_v60, %v2668_v45  ;;  %v8995_v48 = vand.u32 65535, %v6915_v56  ;;  %vm1809_vm2 = vcmp.lt.s32.totalorder %v7058_v23, 1 }
 0x222   : > { %v1770_v30 = vxor.u32 2147483648, %v1765_v8  ;;  %v1774_v20 = vsel %vm1772_vm11, %v1773_v10, %v1765_v8  ;;  %v2661_v40 = vmul.f32 %v2660_v14, %v7114_v39  ;;  %v2653_v22 = vand.u32 2147483648, %v7047_v63  ;;  %v5794_v8 = vld [vmem:[%s8906_s19 + $0x10] sm:$0xff] }
 0x223   : > { %v1390_v46 = vmul.u32 %v8993_v51, %v6905_v26  ;;  %v8994_v17 = vmov %v8993_v51  ;;  %v1370_v9 = vmul.u32 %v8995_v48, %v6944_v42  ;;  %v1394_v37 = vshll.u32 %v6988_v28, 16 }
 0x224   : > { %v1771_v59 = vsel %vm1769_vm13, %v1757_v62, %v1770_v30  ;;  %v7212_v2 = vmul.u32 %v8994_v17, %v6944_v42  ;;  %v2663_v62 = vsel %vm2662_vm8, %v7114_v39, %v2661_v40  ;;  %v5730_v1 = vpop.eup %5729  ;;  %vm2652_vm15 = vcmp.eq.f32.partialorder %v7047_v63, 0.0  ;;  %vm8998_vm8 = vmmov %vm8996_vm1 }
 0x225   : > { %v1775_v15 = vsel %vm1768_vm12, %v1771_v59, %v1774_v20  ;;  %v2666_v26 = vsel %vm2664_vm5, %v2665_v12, %v2663_v62  ;;  %v2670_v42 = vmul.f32 0.5, %v2669_v32  ;;  %v1374_v10 = vshll.u32 %v1370_v9, 16 }
 0x226   : > { %v1776_v44 = vsel %vm1766_vm9, nan, %v1775_v15  ;;  %v1396_v7 = vshll.u32 %v7212_v2, 16  ;;  %v2654_v18 = vsel %vm2652_vm15, %v2653_v22, %v2651_v58  ;;  %v1377_v39 = vsel %vm7167_vm10, 1, %v8942_v0 }
 0x227   : > { %v2242_v31 = vadd.f32 1.0, %v1776_v44  ;;  %vm1398_vm0 = vc.u32 %v1390_v46, %v1394_v37  ;;  %v1400_v30 = vadd.s32 %v1394_v37, %v1390_v46  ;;  %v2720_v29 = vpack.c.bf16 %v2666_v26, %v2654_v18 }
 0x228   : > { %v2680_v14 = vmul.f32 %v5730_v1, %v7182_v27  ;;  %v1379_v59 = vadd.s32 %v1377_v39, %v6984_v52  ;;  %v2671_v15 = vsub.f32 1.5, %v2670_v42  ;;  %vm1380_vm4 = vc.u32 %v7002_v16, %v1374_v10 }
 0x229   : > { %5463 = vmatmul.msk.bf16.gmra.mxu3 %vm8996_vm1, %v5794_v8  ;;  %v2249_v56 = vmul.f32 0.5, %v2242_v31  ;;  %v1399_v63 = vsel %vm1398_vm0, 1, %v8942_v0  ;;  %vm1402_vm3 = vc.u32 %v1400_v30, %v1396_v7  ;;  %v1805_v40 = vor.u32 %v1804_v21, %v7088_v49 }
 0x22a   : > { %v2681_v12 = vmul.f32 %v5730_v1, %v2680_v14  ;;  %v1373_v5 = vshrl.u32 %v6947_v43, 16  ;;  %v1381_v45 = vsel %vm1380_vm4, 1, %v8942_v0  ;;  %vm1811_vm10 = vcmp.lt.s32.totalorder %v7058_v23, 3 }
 0x22b   : > { %v2270_v20 = vmul.f32 %v2263_v3, %v2249_v56  ;;  %5470 = vmatmul.msk.bf16.gmra.mxu2 %vm2729_vm6, %v2720_v29  ;;  %v1383_v3 = vadd.s32 %v1381_v45, %v1379_v59  ;;  %v1395_v52 = vshrl.u32 %v6988_v28, 16  ;;  %v1401_v16 = vadd.s32 %v1399_v63, %v6995_v38 }
 0x22c   : > { %v1822_v44 = vsel %vm1812_vm14, %v1808_v55, 1326507024  ;;  %v2682_v58 = vmul.f32 0.5, %v2681_v12  ;;  %v1375_v49 = vshrl.u32 %v1370_v9, 16  ;;  %v1403_v21 = vsel %vm1402_vm3, 1, %v8942_v0 }
 0x22d   : > { %2343 = vperm.xlu1 %5628, %v2270_v20   ;;  %v2672_v43 = vmul.f32 %v7187_v60, %v2671_v15  ;;  %v1384_v51 = vadd.s32 %v1383_v3, %v1373_v5  ;;  %v1397_v46 = vshrl.u32 %v7212_v2, 16  ;;  %v1405_v17 = vadd.s32 %v1403_v21, %v1401_v16 }
 0x22e   : > { %3039 = vadd.xlane.f32.xlu2 %v7028_v34  ;;  %v1785_v31 = vor.u32 8388608, %v7055_v35  ;;  %v7253_v28 = vor.u32 %v7153_v11, %v7066_v61  ;;  %v2683_v38 = vsub.f32 1.5, %v2682_v58  ;;  %v7255_v55 = vadd.s32 %v1400_v30, %v1396_v7  ;;  %v8997_v30 = vld [vmem:[#allocation9_spill] sm:$0xff] }
 0x22f   : > { %vm1810_vm11 = vcmp.lt.s32.totalorder %v7058_v23, 2  ;;  %v7258_v62 = vadd.s32 %v1384_v51, %v1375_v49  ;;  %v1406_v60 = vadd.s32 %v1405_v17, %v1395_v52  ;;  %v1818_v34 = vsel %vm1812_vm14, %v1805_v40, 920167782 }
 0x230   : > { %v1821_v35 = vsel %vm1809_vm2, %v7179_v33, %v7185_v57  ;;  %v1823_v61 = vsel %vm1811_vm10, %v1805_v40, %v1822_v44  ;;  %v2684_v11 = vmul.f32 %v5730_v1, %v2683_v38  ;;  %v1408_v2 = vmul.u32 %v6886_v41, %v6961_v13 }
 0x231   : > { %v2673_v32 = vmul.f32 %v2672_v43, %v7145_v25  ;;  %v3035_v48 = vsel %vm2729_vm6, %v8959_v53, 0.0  ;;  %v1407_v9 = vadd.s32 %v1406_v60, %v1397_v46  ;;  %v1817_v22 = vsel %vm1809_vm2, %v7253_v28, %v7179_v33 }
 0x232   : > { %v7277_v26 = vshll.u32 %v1785_v31, 8  ;;  %v2685_v37 = vmul.f32 %v2684_v11, %v7182_v27  ;;  %vm1410_vm12 = vc.u32 %v7258_v62, %v7255_v55  ;;  %v1819_v41 = vsel %vm1811_vm10, %v7185_v57, %v1818_v34 }
 0x233   : > { %v1824_v53 = vsel %vm1810_vm11, %v1821_v35, %v1823_v61  ;;  %vm2686_vm13 = vcmp.eq.f32.partialorder %v7182_v27, inf  ;;  %v1411_v13 = vadd.s32 1, %v1407_v9  ;;  %vm2674_vm9 = vcmp.eq.f32.partialorder %v7145_v25, inf }
 0x234   : > { %v2687_v1 = vsel %vm2686_vm13, %v7182_v27, %v2685_v37  ;;  %v2689_v7 = vand.u32 2147483648, %v7182_v27  ;;  %v2675_v8 = vsel %vm2674_vm9, %v7145_v25, %v2673_v32  ;;  %vm2688_vm7 = vcmp.eq.f32.partialorder %v7182_v27, 0.0 }
 0x235   : > { %v8853_v56 = vmov 1   ;;  %v1412_v42 = vsel %vm1410_vm12, %v1411_v13, %v1407_v9  ;;  %v2677_v10 = vand.u32 2147483648, %v7145_v25  ;;  %v1820_v20 = vsel %vm1810_vm11, %v1817_v22, %v1819_v41  ;;  %v2560_v41 = vpop.permute.xlu2 %2559 }
 0x236   : > { %5630 = vset.pattern.permute.xlu1 %v8853_v56  ;;  %3036 = vadd.xlane.f32.xlu2 %v3035_v48  ;;  %v2690_v18 = vsel %vm2688_vm7, %v2689_v7, %v2687_v1  ;;  %v1413_v39 = vadd.s32 %v1412_v42, %v1408_v2  ;;  %v1826_v29 = vand.u32 65535, %v7277_v26  ;;  %v1829_v14 = vshrl.u32 %v1824_v53, 16  ;;  %v2592_v42 = vpop.permute.xlu1 %2591 }
 0x237   : > { %vm2676_vm5 = vcmp.eq.f32.partialorder %v7145_v25, 0.0  ;;  %v1851_v63 = vshrl.u32 %v1820_v20, 16  ;;  %v1828_v12 = vand.u32 65535, %v1824_v53  ;;  %v1827_v3 = vshrl.u32 %v7277_v26, 16 }
 0x238   : > { %v2678_v27 = vsel %vm2676_vm5, %v2677_v10, %v2675_v8  ;;  %v1414_v59 = vadd.s32 536870912, %v1413_v39  ;;  %v1831_v5 = vmul.u32 %v1829_v14, %v1826_v29  ;;  %v1850_v52 = vand.u32 65535, %v1820_v20 }
 0x239   : > { %5464 = vmatmul.msk.bf16.gmra.mxu3 %vm8998_vm8, %v8997_v30  ;;  %v2721_v15 = vpack.c.bf16 %v2690_v18, %v2678_v27  ;;  %v1853_v16 = vmul.u32 %v1851_v63, %v1826_v29  ;;  %v1830_v58 = vmul.u32 %v1828_v12, %v1826_v29  ;;  %v1793_v21 = vshrl.u32 %v8932_v24, %v7061_v19  ;;  %v8999_v30 = vld [vmem:[#allocation23_spill] sm:$0xff] }
 0x23a   : > { %v7301_v40 = vshrl.u32 %v1414_v59, 30  ;;  %v1834_v49 = vshll.u32 %v1831_v5, 16  ;;  %v1814_v43 = vsel %vm1812_vm14, %v7185_v57, 2102212464  ;;  %v1833_v51 = vmul.u32 %v1829_v14, %v1827_v3 }
 0x23b   : > { %5471 = vmatmul.msk.bf16.gmra.mxu2 %vm2729_vm6, %v2721_v15  ;;  %v1855_v46 = vmul.u32 %v1851_v63, %v1827_v3  ;;  %v1852_v31 = vmul.u32 %v1850_v52, %v1826_v29  ;;  %v1854_v38 = vmul.u32 %v1850_v52, %v1827_v3  ;;  %v1856_v60 = vshll.u32 %v1853_v16, 16 }
 0x23c   : > { %v1416_v45 = vshll.u32 %v7301_v40, 30  ;;  %vm1838_vm15 = vc.u32 %v1830_v58, %v1834_v49  ;;  %v1840_v34 = vadd.s32 %v1834_v49, %v1830_v58  ;;  %v1832_v61 = vmul.u32 %v1828_v12, %v1827_v3 }
 0x23d   : > { %v1858_v11 = vshll.u32 %v1854_v38, 16  ;;  %vm1860_vm0 = vc.u32 %v1852_v31, %v1856_v60  ;;  %v1862_v2 = vadd.s32 %v1856_v60, %v1852_v31  ;;  %v1813_v19 = vsel %vm1809_vm2, %v1793_v21, %v7253_v28  ;;  %v9001_v60 = vld [vmem:[#allocation26_spill] sm:$0xff] }
 0x23e   : > { %v1417_v44 = vsub.s32 %v1413_v39, %v1416_v45  ;;  %v1836_v48 = vshll.u32 %v1832_v61, 16  ;;  %v1861_v57 = vsel %vm1860_vm0, 1, %v8942_v0  ;;  %v1815_v9 = vsel %vm1811_vm10, %v7179_v33, %v1814_v43 }
 0x23f   : > { %v1839_v22 = vsel %vm1838_vm15, 1, %v8942_v0  ;;  %v1863_v37 = vadd.s32 %v1861_v57, %v1855_v46  ;;  %vm1864_vm14 = vc.u32 %v1862_v2, %v1858_v11  ;;  %v1409_v53 = vadd.s32 %v7255_v55, %v7258_v62  ;;  %v9000_v46 = vld [vmem:[#allocation14_spill] sm:$0xff] }
 0x240   : > { %vm1418_vm1 = vcmp.lt.s32.totalorder %v1417_v44, 0  ;;  %v1419_v25 = vsub.s32 0, %v1417_v44  ;;  %v1841_v13 = vadd.s32 %v1839_v22, %v1833_v51  ;;  %vm1842_vm3 = vc.u32 %v1840_v34, %v1836_v48  ;;  %v7359_v48 = vld [vmem:[%s9007_s27] ss:$0 sm:$0xff]  ;;  %s5859_s27 = smov 32  }
 0x241   : > { %v1843_v1 = vsel %vm1842_vm3, 1, %v8942_v0  ;;  %v1857_v7 = vshrl.u32 %v1853_v16, 16  ;;  %v1865_v8 = vsel %vm1864_vm14, 1, %v8942_v0  ;;  %v1835_v39 = vshrl.u32 %v1831_v5, 16 }
 0x242   : > { %v1420_v17 = vsel %vm1418_vm1, %v1419_v25, %v1417_v44  ;;  %v2577_v20 = vadd.f32 %v2560_v41, %v8999_v30  ;;  %v1845_v29 = vadd.s32 %v1843_v1, %v1841_v13  ;;  %v1859_v14 = vshrl.u32 %v1854_v38, 16  ;;  %v1089_v41 = vpop.permute.xlu1 %1088 }
 0x243   : > { %v1421_v35 = vclz %v1420_v17  ;;  %v1867_v27 = vadd.s32 %v1865_v8, %v1863_v37  ;;  %v1837_v59 = vshrl.u32 %v1832_v61, 16  ;;  %v1816_v15 = vsel %vm1810_vm11, %v1813_v19, %v1815_v9 }
 0x244   : > { %v2609_v63 = vadd.f32 %v2592_v42, %v2577_v20  ;;  %v1846_v12 = vadd.s32 %v1845_v29, %v1835_v39  ;;  %v7326_v16 = vadd.s32 %v1862_v2, %v1858_v11  ;;  %v1870_v58 = vmul.u32 %v7277_v26, %v1816_v15  ;;  %v7348_v11 = vld [vmem:[%s9005_s29 + $0x20] sm:$0xff]  ;;  %v2562_v42 = vpop.permute.xlu0 %2561 }
 0x245   : > { %v5426_v32 = vadd.s32 4294967294, %v1421_v35  ;;  %v1868_v45 = vadd.s32 %v1867_v27, %v1857_v7  ;;  %v3032_v17 = vsel %vm2729_vm6, %v9000_v46, 0.0  ;;  %vm1317_vm10 = vcmp.lt.s32.totalorder %v9001_v60, 0 }
 0x246   : > { %v7331_v21 = vadd.f32 1e-12, %v2609_v63  ;;  %v9002_v26 = vand.u32 2147483647, %v9001_v60  ;;  %v8854_v2 = vmov 2   ;;  %v1120_v1 = vsub.f32 %v1089_v41, %v7359_v48 }
 0x247   : > { %vm5427_vm4 = vcmp.lt.s32.totalorder %v5426_v32, 0  ;;  %v1869_v5 = vadd.s32 %v1868_v45, %v1859_v14  ;;  %5633 = vset.pattern.permute.xlu0 %v8854_v2  ;;  %v2594_v14 = vpop.permute.xlu2 %2593  ;;  %v1439_v27 = vsub.s32 4, %v7301_v40  ;;  %vm1458_vm5 = vweird.f32 %v9001_v60 }
 0x248   : > { %v1424_v28 = vsel %vm5427_vm4, 0, %v5426_v32  ;;  %5731 = vrsqrt.f32 %v7331_v21  ;;  %vm7341_vm11 = vcmp.le.f32.partialorder %v9002_v26, 0.7853982  ;;  %3415 = vperm.xlu0 %5633, %v7348_v11   ;;  %v1127_v29 = vmul.f32 %v1120_v1, %v1120_v1 }
 0x249   : > { %v1425_v10 = vsub.s32 32, %v1424_v28  ;;  %v1426_v33 = vshll.u32 %v1417_v44, %v1424_v28  ;;  %v1429_v18 = vsub.s32 4294967266, %v1424_v28  ;;  %v7328_v44 = vadd.s32 %v1846_v12, %v1837_v59 }
 0x24a   : > { %v1873_v23 = vadd.s32 1, %v1869_v5  ;;  %v1440_v12 = vsel %vm1317_vm10, %v1439_v27, %v7301_v40  ;;  %v1099_v40 = vpop.permute.xlu1 %1098  ;;  %vm2698_vm14 = vcmp.eq.f32.partialorder %v7331_v21, inf  ;;  %vm9013_vm4 = vcmask 130048  }
 0x24b   : > { %v1427_v55 = vshrl.u32 %v1409_v53, %v1425_v10  ;;  %v1430_v62 = vadd.s32 127, %v1429_v18  ;;  %vm1872_vm2 = vc.u32 %v7328_v44, %v7326_v16  ;;  %v9008_v18 = vld [vmem:[#allocation29_spill] sm:$0xff]  ;;  %v1871_v26 = vadd.s32 %v7326_v16, %v7328_v44 }
 0x24c   : > { %v1874_v51 = vsel %vm1872_vm2, %v1873_v23, %v1869_v5  ;;  %v2578_v39 = vadd.f32 %v2562_v42, %v9008_v18  ;;  %vm2700_vm3 = vcmp.eq.f32.partialorder %v7331_v21, 0.0 }
 0x24d   : > { %v1428_v3 = vor.u32 %v1427_v55, %v1426_v33  ;;  %v1431_v52 = vshll.u32 %v1430_v62, 23  ;;  %v1875_v38 = vadd.s32 %v1874_v51, %v1870_v58 }
 0x24e   : > { %v7365_v37 = vpop.eup %5731  ;;  %v2610_v62 = vadd.f32 %v2594_v14, %v2578_v39 }
 0x24f   : > { %v1432_v49 = vor.u32 4788187, %v1431_v52  ;;  %v1435_v25 = vcvt.s32.f32 %v1428_v3  ;;  %v1876_v61 = vadd.s32 536870912, %v1875_v38  ;;  %v2692_v10 = vmul.f32 %v7365_v37, %v7331_v21 }
 0x250   : > { %5635 = vset.pattern.permute.xlu0 %v8853_v56  ;;  %v7382_v3 = vadd.f32 1e-12, %v2610_v62  ;;  %v1442_v52 = vsel %vm7341_vm11, 0, %v1440_v12  ;;  %v2274_v12 = vld [vmem:[%s6044_s28] sm:$0xff] }
 0x251   : > { %v1433_v43 = vand.u32 2147483647, %v1432_v49  ;;  %v7354_v32 = vshrl.u32 %v1876_v61, 30  ;;  %v2693_v45 = vmul.f32 %v7365_v37, %v2692_v10  ;;  %v1134_v49 = vmul.f32 -4.5, %v1127_v29 }
 0x252   : > { %5733 = vrsqrt.f32 %v7382_v3  ;;  %v1122_v61 = vsub.f32 %v1099_v40, %v7359_v48  ;;  %vm2710_vm2 = vcmp.eq.f32.partialorder %v7382_v3, inf }
 0x253   : > { %v1436_v31 = vmul.f32 %v1435_v25, %v1433_v43  ;;  %v1878_v22 = vshll.u32 %v7354_v32, 30  ;;  %v1459_v25 = vand.u32 3, %v1442_v52  ;;  %v2694_v46 = vmul.f32 0.5, %v2693_v45  ;;  %v2275_v45 = vld [vmem:[%s6044_s28 + $0x8] sm:$0xff]  ;;  %v7412_v52 = vld [vmem:[%s9006_s30 + $0x10] sm:$0xff]  ;;  %s9187_s28 = sld [smem:[#allocation80_spill]] }
 0x254   : > { %3295 = vperm.xlu0 %5635, %v7412_v52  }
 0x255   : > { %v1437_v35 = vxor.u32 2147483648, %v1436_v31  ;;  %v7367_v28 = vsub.s32 %v1875_v38, %v1878_v22  ;;  %vm1464_vm13 = vcmp.eq.s32.totalorder %v1459_v25, 2  ;;  %vm1461_vm7 = vcmp.eq.s32.totalorder %v1459_v25, 0 }
 0x256   : > { %vm1460_vm8 = vcmp.lt.s32.totalorder %v1459_v25, 2 }
 0x257   : > { %3033 = vadd.xlane.f32.xlu1 %v3032_v17  ;;  %v1438_v19 = vsel %vm1317_vm10, %v1437_v35, %v1436_v31  ;;  %vm1880_vm12 = vcmp.lt.s32.totalorder %v7367_v28, 0  ;;  %v1881_v33 = vsub.s32 0, %v7367_v28  ;;  %v1084_v17 = vpop.permute.xlu0 %1083  ;;  %v1142_v35 = vmul.f32 1.442695, %v1134_v49 }
 0x258   : > { %v1441_v57 = vsel %vm7341_vm11, %v9001_v60, %v1438_v19  ;;  %v1119_v19 = vsub.f32 %v1084_v17, %v7359_v48  ;;  %v5734_v10 = vpop.eup %5733  ;;  %v2280_v49 = vpack.c.bf16 %v2275_v45, %v2274_v12  ;;  %vm2712_vm10 = vcmp.eq.f32.partialorder %v7382_v3, 0.0 }
 0x259   : > { %v1443_v9 = vmul.f32 %v1441_v57, %v1441_v57  ;;  %v1882_v55 = vsel %vm1880_vm12, %v1881_v33, %v7367_v28  ;;  %v5795_v33 = vld [vmem:[%s8910_s14 + $0x8] sm:$0xff]  ;;  %5735 = vpow2.f32 %v1142_v35  ;;  %vm9014_vm12 = vmmov %vm9013_vm4  ;;  %s9188_s26 = scalar_lea.vmem %s9187_s28, %s6034_s6  ;;  %s9277_s6 = sld [smem:[#allocation6_spill]] }
 0x25a   : > { %v1883_v63 = vclz %v1882_v55  ;;  %vm2254_vm1 = vcmp.lt.f32.partialorder %v5795_v33, 5.0  ;;  %2305 = vmatpush.bf16.msra.mxu0 %v2280_v49 }
 0x25b   : > { %v1444_v53 = vmul.f32 -0.001358992, %v1443_v9  ;;  %v1451_v13 = vmul.f32 -0.00019511016, %v1443_v9  ;;  %v2261_v62 = vsel %vm2254_vm1, 1.0, %v5856_v50  ;;  %vm9017_vm1 = vmmov %vm9013_vm4 }
 0x25c   : > { %v5435_v23 = vadd.s32 4294967294, %v1883_v63 }
 0x25d   : > { %v1445_v7 = vadd.f32 0.041655596, %v1444_v53  ;;  %v1452_v8 = vadd.f32 0.008332121, %v1451_v13  ;;  %v7394_v53 = vld [vmem:[%s9006_s30 + $0x30] sm:$0xff]  ;;  %v1126_v13 = vmul.f32 %v1119_v19, %v1119_v19 }
 0x25e   : > { %vm5436_vm9 = vcmp.lt.s32.totalorder %v5435_v23, 0 }
 0x25f   : > { %v1446_v30 = vmul.f32 %v1445_v7, %v1443_v9  ;;  %v1453_v20 = vmul.f32 %v1452_v8, %v1443_v9  ;;  %v1886_v34 = vsel %vm5436_vm9, 0, %v5435_v23  ;;  %v2695_v8 = vsub.f32 1.5, %v2694_v46  ;;  %p5571_p5 = scmp.eq.s32.totalorder %s9277_s6, 1 }
 0x260   : > { %v1887_v41 = vsub.s32 32, %v1886_v34  ;;  %v1888_v16 = vshll.u32 %v7367_v28, %v1886_v34  ;;  %v1891_v44 = vsub.s32 4294967266, %v1886_v34  ;;  %v1133_v18 = vmul.f32 -4.5, %v1126_v13 }
 0x261   : > { %v1447_v59 = vadd.f32 -0.4999988, %v1446_v30  ;;  %v1454_v15 = vadd.f32 -0.16666654, %v1453_v20  ;;  %v1129_v20 = vmul.f32 %v1122_v61, %v1122_v61  ;;  %v7421_v61 = vld [vmem:[%s9006_s30 + $0x8] sm:$0xff] }
 0x262   : > { %v1889_v42 = vshrl.u32 %v1871_v26, %v1887_v41  ;;  %v1892_v30 = vadd.s32 127, %v1891_v44  ;;  %v1140_v29 = vmul.f32 1.442695, %v1133_v18  ;;  %v2701_v44 = vand.u32 2147483648, %v7331_v21  ;;  %3291 = vperm.xlu0 %5635, %v7421_v61  }
 0x263   : > { %v1448_v5 = vmul.f32 %v1447_v59, %v1443_v9  ;;  %v1455_v58 = vmul.f32 %v1454_v15, %v1443_v9  ;;  %v2696_v59 = vmul.f32 %v7365_v37, %v2695_v8  ;;  %v2704_v15 = vmul.f32 %v5734_v10, %v7382_v3 }
 0x264   : > { %v1890_v28 = vor.u32 %v1889_v42, %v1888_v16  ;;  %v1893_v27 = vshll.u32 %v1892_v30, 23  ;;  %5737 = vpow2.f32 %v1140_v29  ;;  %v1136_v23 = vmul.f32 -4.5, %v1129_v20  ;;  %v1109_v29 = vpop.permute.xlu0 %1108 }
 0x265   : > { %v1449_v43 = vadd.f32 1.0, %v1448_v5  ;;  %v1456_v51 = vadd.f32 1.0, %v1455_v58  ;;  %v2705_v25 = vmul.f32 %v5734_v10, %v2704_v15  ;;  %v2697_v17 = vmul.f32 %v2696_v59, %v7331_v21 }
 0x266   : > { %v1894_v5 = vor.u32 4788187, %v1893_v27  ;;  %v1897_v58 = vcvt.s32.f32 %v1890_v28  ;;  %v1146_v35 = vmul.f32 1.442695, %v1136_v23  ;;  %v2713_v8 = vand.u32 2147483648, %v7382_v3 }
 0x267   : > { %v1457_v31 = vmul.f32 %v1456_v51, %v1441_v57  ;;  %v1465_v38 = vxor.u32 2147483648, %v1449_v43  ;;  %v1094_v57 = vpop.permute.xlu2 %1093  ;;  %v5736_v51 = vpop.eup %5735  ;;  %v2706_v40 = vmul.f32 0.5, %v2705_v25  ;;  %v2699_v13 = vsel %vm2698_vm14, %v7331_v21, %v2697_v17 }
 0x268   : > { %v1121_v1 = vsub.f32 %v1094_v57, %v7359_v48  ;;  %v1895_v37 = vand.u32 2147483647, %v1894_v5  ;;  %5739 = vpow2.f32 %v1146_v35  ;;  %v2702_v21 = vsel %vm2700_vm3, %v2701_v44, %v2699_v13 }
 0x269   : > { %v1462_v9 = vxor.u32 2147483648, %v1457_v31  ;;  %v1466_v22 = vsel %vm1464_vm13, %v1465_v38, %v1457_v31  ;;  %v9009_v38 = vld [vmem:[#allocation25_spill] sm:$0xff]  ;;  %v2707_v26 = vsub.f32 1.5, %v2706_v40  ;;  %v1901_v30 = vsub.s32 4, %v7354_v32 }
 0x26a   : > { %v1128_v55 = vmul.f32 %v1121_v1, %v1121_v1  ;;  %v1898_v31 = vmul.f32 %v1897_v58, %v1895_v37  ;;  %vm1779_vm15 = vcmp.lt.s32.totalorder %v9009_v38, 0  ;;  %v5738_v34 = vpop.eup %5737  ;;  %v9010_v19 = vand.u32 2147483647, %v9009_v38  ;;  %5640 = vset.pattern.permute.xlu0 %v8942_v0 }
 0x26b   : > { %v1463_v7 = vsel %vm1461_vm7, %v1449_v43, %v1462_v9  ;;  %v2276_v57 = vpack.c.bf16 %v5736_v51, %v5738_v34  ;;  %v1124_v27 = vsub.f32 %v1109_v29, %v7359_v48  ;;  %vm1920_vm7 = vweird.f32 %v9009_v38 }
 0x26c   : > { %v1467_v39 = vsel %vm1460_vm8, %v1463_v7, %v1466_v22  ;;  %v1135_v46 = vmul.f32 -4.5, %v1128_v55  ;;  %vm7425_vm0 = vcmp.le.f32.partialorder %v9010_v19, 0.7853982  ;;  %v1899_v22 = vxor.u32 2147483648, %v1898_v31 }
 0x26d   : > { %v1468_v60 = vsel %vm1458_vm5, nan, %v1467_v39  ;;  %5443 = vmatmul.msk.bf16.vlgmr.msra.gmra.mxu0 %vm9013_vm4, %v2276_v57  ;;  %v1131_v58 = vmul.f32 %v1124_v27, %v1124_v27  ;;  %v5796_v57 = vld [vmem:[%s8910_s14 + $0x20] sm:$0xff]  ;;  %vm9015_vm5 = vmmov %vm9013_vm4 }
 0x26e   : > { %v2240_v14 = vadd.f32 1.0, %v1468_v60  ;;  %v1144_v41 = vmul.f32 1.442695, %v1135_v46  ;;  %v1900_v16 = vsel %vm1779_vm15, %v1899_v22, %v1898_v31  ;;  %v5740_v59 = vpop.eup %5739  ;;  %vm2257_vm8 = vcmp.lt.f32.partialorder %v5796_v57, 5.0 }
 0x26f   : > { %v1903_v7 = vsel %vm7425_vm0, %v9009_v38, %v1900_v16  ;;  %v1104_v18 = vpop.permute.xlu2 %1103  ;;  %v1138_v40 = vmul.f32 -4.5, %v1131_v58  ;;  %v2264_v38 = vsel %vm2257_vm8, 1.0, %v5856_v50  ;;  %vm9030_vm8 = vmmov %vm9017_vm1 }
 0x270   : > { %3311 = vperm.xlu1 %5630, %v7394_v53   ;;  %v2247_v63 = vmul.f32 0.5, %v2240_v14  ;;  %v1905_v42 = vmul.f32 %v1903_v7, %v1903_v7  ;;  %5741 = vpow2.f32 %v1144_v41  ;;  %v1123_v20 = vsub.f32 %v1104_v18, %v7359_v48 }
 0x271   : > { %v1150_v19 = vmul.f32 1.442695, %v1138_v40 }
 0x272   : > { %v2268_v43 = vmul.f32 %v2261_v62, %v2247_v63  ;;  %v1906_v60 = vmul.f32 -0.001358992, %v1905_v42  ;;  %v1913_v28 = vmul.f32 -0.00019511016, %v1905_v42  ;;  %v1130_v5 = vmul.f32 %v1123_v20, %v1123_v20  ;;  %v2782_v20 = vld [vmem:[%s6075_s21 + $0x18] sm:$0xff] }
 0x274   : > { %2333 = vperm.xlu2 %5629, %v2268_v43   ;;  %v1907_v55 = vadd.f32 0.041655596, %v1906_v60  ;;  %v1914_v62 = vadd.f32 0.008332121, %v1913_v28  ;;  %v1137_v51 = vmul.f32 -4.5, %v1130_v5  ;;  %v2781_v28 = vld [vmem:[%s6075_s21 + $0x10] sm:$0xff] }
 0x275   : > { %v2788_v29 = vpack.c.bf16 %v2782_v20, %v2781_v28  ;;  %v7490_v5 = vld [vmem:[%s9018_s5] ss:$0 sm:$0xff] }
 0x276   : > { %v1908_v63 = vmul.f32 %v1907_v55, %v1905_v42  ;;  %v1915_v12 = vmul.f32 %v1914_v62, %v1905_v42  ;;  %v5742_v45 = vpop.eup %5741  ;;  %v1148_v35 = vmul.f32 1.442695, %v1137_v51  ;;  %v7533_v28 = vld [vmem:[%s8910_s14] sm:$0xff] }
 0x277   : > { %v2277_v46 = vpack.c.bf16 %v5740_v59, %v5742_v45  ;;  %2811 = vmatpush.bf16.msrb.mxu0 %v2788_v29  ;;  %v7536_v20 = vmul.f32 0.62831855, %v7533_v28 }
 0x278   : > { %3303 = vperm.xlu1 %5630, %v7348_v11   ;;  %v2708_v11 = vmul.f32 %v5734_v10, %v2707_v26  ;;  %v7446_v10 = vld [vmem:[%s9006_s30 + $0x28] sm:$0xff]  ;;  %v1909_v49 = vadd.f32 -0.4999988, %v1908_v63  ;;  %v1916_v25 = vadd.f32 -0.16666654, %v1915_v12  ;;  %5743 = vpow2.f32 %v1148_v35 }
 0x279   : > { %5745 = vpow2.f32 %v1150_v19  ;;  %v1164_v29 = vand.u32 2139095040, %v7536_v20 }
 0x27a   : > { %v2709_v1 = vmul.f32 %v2708_v11, %v7382_v3  ;;  %v1910_v43 = vmul.f32 %v1909_v49, %v1905_v42  ;;  %v1917_v37 = vmul.f32 %v1916_v25, %v1905_v42  ;;  %v1114_v11 = vpop.permute.xlu1 %1113 }
 0x27b   : > { %v1125_v16 = vsub.f32 %v1114_v11, %v7359_v48 }
 0x27c   : > { %v2711_v33 = vsel %vm2710_vm2, %v7382_v3, %v2709_v1  ;;  %5631 = vset.pattern.permute.xlu2 %v8854_v2  ;;  %v1902_v3 = vsel %vm1779_vm15, %v1901_v30, %v7354_v32  ;;  %v3163_v32 = vld [vmem:[%s9006_s30 + $0x18] sm:$0xff]  ;;  %v1911_v17 = vadd.f32 1.0, %v1910_v43  ;;  %v1918_v31 = vadd.f32 1.0, %v1917_v37  ;;  %v2780_v43 = vld [vmem:[%s6075_s21 + $0x8] sm:$0xff] }
 0x27d   : > { %v2714_v39 = vsel %vm2712_vm10, %v2713_v8, %v2711_v33  ;;  %v1904_v15 = vsel %vm7425_vm0, 0, %v1902_v3  ;;  %5444 = vmatmul.msk.bf16.gmra.mxu0 %vm9014_vm12, %v2277_v46  ;;  %v1132_v8 = vmul.f32 %v1125_v16, %v1125_v16 }
 0x27e   : > { %v2722_v14 = vpack.c.bf16 %v2714_v39, %v2702_v21  ;;  %v1921_v23 = vand.u32 3, %v1904_v15  ;;  %v1919_v26 = vmul.f32 %v1918_v31, %v1903_v7  ;;  %v1927_v34 = vxor.u32 2147483648, %v1911_v17  ;;  %v5744_v42 = vpop.eup %5743  ;;  %v7475_v21 = vpop.permute.xlu0 %3117 }
 0x27f   : > { %v5746_v18 = vpop.eup %5745  ;;  %v1139_v39 = vmul.f32 -4.5, %v1132_v8 }
 0x280   : > { %5634 = vset.pattern.permute.xlu1 %v8854_v2  ;;  %5472 = vmatmul.msk.bf16.gmra.mxu2 %vm2729_vm6, %v2722_v14  ;;  %vm1926_vm11 = vcmp.eq.s32.totalorder %v1921_v23, 2  ;;  %vm1923_vm13 = vcmp.eq.s32.totalorder %v1921_v23, 0  ;;  %vm1922_vm9 = vcmp.lt.s32.totalorder %v1921_v23, 2  ;;  %v1924_v9 = vxor.u32 2147483648, %v1919_v26  ;;  %v9016_v14 = vld [vmem:[#allocation12_spill] sm:$0xff] }
 0x281   : > { %3419 = vperm.xlu1 %5634, %v7446_v10   ;;  %v1928_v22 = vsel %vm1926_vm11, %v1927_v34, %v1919_v26  ;;  %v2278_v48 = vpack.c.bf16 %v5746_v18, %v5744_v42  ;;  %v1152_v60 = vmul.f32 1.442695, %v1139_v39  ;;  %v3029_v27 = vsel %vm2729_vm6, %v9016_v14, 0.0  ;;  %v3070_v42 = vpop.permute.xlu2 %3069 }
 0x282   : > { %v1925_v41 = vsel %vm1923_vm13, %v1911_v17, %v1924_v9  ;;  %v3066_v30 = vpop.permute.xlu1 %3065 }
 0x283   : > { %v1929_v13 = vsel %vm1922_vm9, %v1925_v41, %v1928_v22  ;;  %5747 = vpow2.f32 %v1152_v60  ;;  %vm9029_vm9 = vmmov %vm9017_vm1 }
 0x284   : > { %v1930_v44 = vsel %vm1920_vm7, nan, %v1929_v13 }
 0x285   : > { %v2243_v1 = vadd.f32 1.0, %v1930_v44  ;;  %v7513_v44 = vld [vmem:[%s9006_s30] sm:$0xff] }
 0x286   : > { %v7482_v3 = vpop.permute.xlu0 %3067 }
 0x287   : > { %v2250_v7 = vmul.f32 0.5, %v2243_v1  ;;  %v3096_v18 = vsel %vm2729_vm6, %v7482_v3, 0.0  ;;  %v1165_v3 = vshrl.u32 %v1164_v29, 23 }
 0x289   : > { %5636 = vset.pattern.permute.xlu1 %v8853_v56  ;;  %v2271_v33 = vmul.f32 %v2264_v38, %v2250_v7  ;;  %v5748_v59 = vpop.eup %5747 }
 0x28a   : > { %3299 = vperm.xlu1 %5636, %v3163_v32   ;;  %v3116_v55 = vpop.permute.xlu1 %3115  ;;  %v2279_v63 = vpack.c.bf16 %v5748_v59, %v5748_v59 }
 0x28b   : > { %2348 = vperm.xlu0 %5640, %v2271_v33  }
 0x28d   : > { %5445 = vmatmul.msk.bf16.gmra.mxu0 %vm9015_vm5, %v2278_v48  ;;  %v3099_v48 = vsel %vm2729_vm6, %v3070_v42, 0.0 }
 0x28e   : > { %v3062_v15 = vpop.permute.xlu0 %3061 }
 0x28f   : > { %v3087_v11 = vsel %vm2729_vm6, %v3062_v15, 0.0 }
 0x292   : > { %5638 = vset.pattern.permute.xlu1 %v8854_v2  ;;  %v3110_v45 = vpop.permute.xlu1 %3109 }
 0x293   : > { %3411 = vperm.xlu1 %5638, %v3163_v32   ;;  %v2779_v32 = vld [vmem:[%s6075_s21] sm:$0xff]  ;;  %s9089_s21 = sld [smem:[#allocation69_spill]] }
 0x294   : > { %v2787_v51 = vpack.c.bf16 %v2780_v43, %v2779_v32 }
 0x296   : > { %v3112_v49 = vpop.permute.xlu0 %3111  ;;  %2812 = vmatpush.bf16.msrb.mxu0 %v2787_v51 }
 0x297   : > { %v3138_v1 = vsel %vm2729_vm6, %v3112_v49, 0.0 }
 0x29a   : > { %v3060_v40 = vpop.permute.xlu1 %3059 }
 0x29b   : > { %v3084_v31 = vsel %vm2729_vm6, %v3060_v40, 0.0 }
 0x29d   : > { %3030 = vadd.xlane.f32.xlu2 %v3029_v27  ;;  %5446 = vmatmul.msk.bf16.gmra.mxu0 %vm9017_vm1, %v2279_v63 }
 0x29e   : > { %v2751_v62 = vpop.f32.mrf.mxu2  ;;  %v3106_v34 = vpop.permute.xlu0 %3105 }
 0x29f   : > { %v2752_v25 = vadd.f32 %v7490_v5, %v2751_v62  ;;  %v3129_v35 = vsel %vm2729_vm6, %v3106_v34, 0.0  ;;  %v5422_v62 = vadd.s32 4294967169, %v1165_v3 }
 0x2a1   : > { %v2771_v46 = vmax.f32 %v2752_v25, 0.0  ;;  %v1171_v63 = vadd.s32 1, %v5422_v62 }
 0x2a2   : > { %v7543_v59 = vpop.permute.xlu1 %2358 }
 0x2a3   : > { %vm1172_vm15 = vcmp.gt.s32.totalorder %v1171_v63, 0 }
 0x2a4   : > { %v1173_v25 = vsel %vm1172_vm15, %v1171_v63, 0  ;;  %vm1163_vm15 = vcmp.lt.s32.totalorder %v7536_v20, 0 }
 0x2a5   : > { %v1175_v51 = vand.u32 31, %v1173_v25 }
 0x2a6   : > { %v2753_v12 = vpop.f32.mrf.mxu2  ;;  %v7528_v60 = vpop.xlane.xlu0 %3045 }
 0x2a7   : > { %v2754_v58 = vadd.f32 %v7490_v5, %v2753_v12 }
 0x2a9   : > { %v2772_v37 = vmax.f32 %v2754_v58, 0.0 }
 0x2ab   : > { %v2783_v17 = vpack.c.bf16 %v2772_v37, %v2771_v46 }
 0x2ad   : > { %5473 = vmatmul.msk.bf16.vlgmr.msrb.gmra.mxu0 %vm2729_vm6, %v2783_v17  ;;  %v7559_v17 = vsub.s32 32, %v1175_v51 }
 0x2ae   : > { %v2756_v23 = vpop.f32.mrf.mxu2  ;;  %v7539_v27 = vpop.xlane.xlu0 %3042 }
 0x2af   : > { %v2757_v9 = vadd.f32 %v7490_v5, %v2756_v23  ;;  %v7552_v23 = vpop.permute.xlu1 %2353 }
 0x2b0   : > { %9019 = vst [vmem:[#allocation16_spill] sm:$0xff] %v7552_v23 }
 0x2b1   : > { %v2773_v57 = vmax.f32 %v2757_v9, 0.0  ;;  %v1161_v9 = vand.u32 2147483647, %v7536_v20 }
 0x2b5   : > { %3423 = vperm.xlu2 %5631, %v7394_v53   ;;  %3130 = vadd.xlane.f32.xlu0 %v3129_v35  ;;  %v3135_v53 = vsel %vm2729_vm6, %v3110_v45, 0.0  ;;  %v1190_v35 = vshll.u32 %v8958_v36, %v1175_v51 }
 0x2b6   : > { %v2758_v26 = vpop.f32.mrf.mxu2  ;;  %v7545_v12 = vpop.xlane.xlu0 %3027 }
 0x2b7   : > { %v2759_v19 = vadd.f32 %v7490_v5, %v2758_v26  ;;  %v7566_v26 = vld [vmem:[%s9022_s23] ss:$0 sm:$0xff] }
 0x2b9   : > { %v2774_v41 = vmax.f32 %v2759_v19, 0.0  ;;  %v1191_v19 = vshrl.u32 %v8960_v4, %v7559_v17  ;;  %v1182_v4 = vshrl.u32 %v8966_v54, %v7559_v17 }
 0x2bb   : > { %v2784_v13 = vpack.c.bf16 %v2774_v41, %v2773_v57  ;;  %v2339_v41 = vpop.permute.xlu1 %2338  ;;  %v1192_v42 = vor.u32 %v1191_v19, %v1190_v35 }
 0x2bd   : > { %3085 = vadd.xlane.f32.xlu1 %v3084_v31  ;;  %5632 = vset.pattern.permute.xlu2 %v8853_v56 }
 0x2be   : > { %3307 = vperm.xlu2 %5632, %v7446_v10   ;;  %v2761_v22 = vpop.f32.mrf.mxu2  ;;  %3088 = vadd.xlane.f32.xlu0 %v3087_v11  ;;  %v3093_v10 = vsel %vm2729_vm6, %v3066_v30, 0.0  ;;  %v7526_v30 = vpop.permute.xlu2 %3113 }
 0x2bf   : > { %5474 = vmatmul.msk.bf16.gmra.mxu0 %vm2729_vm6, %v2784_v13  ;;  %v2762_v7 = vadd.f32 %v7490_v5, %v2761_v22  ;;  %v7554_v43 = vpop.permute.xlu0 %3415  ;;  %v7573_v22 = vshrl.u32 %v1173_v25, 5  ;;  %v1181_v13 = vshll.u32 %v8965_v6, %v1175_v51 }
 0x2c0   : > { %9020 = vst [vmem:[#allocation22_spill] sm:$0xff] %v7554_v43 }
 0x2c1   : > { %v2775_v33 = vmax.f32 %v2762_v7, 0.0  ;;  %v1188_v7 = vshrl.u32 %v8958_v36, %v7559_v17  ;;  %vm1196_vm0 = vcmp.lt.s32.totalorder %v7573_v22, 4  ;;  %v7599_v36 = vor.u32 %v1182_v4, %v1181_v13 }
 0x2c2   : > { %vm1193_vm14 = vcmp.lt.s32.totalorder %v7573_v22, 1  ;;  %vm1195_vm4 = vcmp.lt.s32.totalorder %v7573_v22, 3  ;;  %vm1194_vm3 = vcmp.lt.s32.totalorder %v7573_v22, 2 }
 0x2c5   : > { %3136 = vadd.xlane.f32.xlu1 %v3135_v53 }
 0x2c6   : > { %5637 = vset.pattern.permute.xlu2 %v8854_v2  ;;  %v2763_v16 = vpop.f32.mrf.mxu2  ;;  %3139 = vadd.xlane.f32.xlu0 %v3138_v1  ;;  %v3064_v14 = vpop.permute.xlu2 %3063 }
 0x2c7   : > { %3407 = vperm.xlu2 %5637, %v7412_v52   ;;  %v2764_v38 = vadd.f32 %v7490_v5, %v2763_v16  ;;  %v3144_v52 = vsel %vm2729_vm6, %v3116_v55, 0.0  ;;  %v7541_v55 = vpop.f32.mrf.mxu3  ;;  %v7575_v57 = vpop.permute.xlu0 %3295  ;;  %v3090_v11 = vsel %vm2729_vm6, %v3064_v14, 0.0 }
 0x2c8   : > { %9023 = vst [vmem:[#allocation10_spill] sm:$0xff] %v7575_v57 }
 0x2c9   : > { %v2776_v8 = vmax.f32 %v2764_v38, 0.0  ;;  %v1185_v38 = vshrl.u32 %v8967_v47, %v7559_v17 }
 0x2cb   : > { %v2785_v39 = vpack.c.bf16 %v2776_v8, %v2775_v33 }
 0x2cd   : > { %3094 = vadd.xlane.f32.xlu1 %v3093_v10  ;;  %v1184_v10 = vshll.u32 %v8966_v54, %v1175_v51  ;;  %v1178_v54 = vshll.u32 %v8932_v24, %v1175_v51 }
 0x2ce   : > { %3097 = vadd.xlane.f32.xlu0 %v3096_v18  ;;  %v3058_v15 = vpop.permute.xlu2 %3057 }
 0x2cf   : > { %5639 = vset.pattern.permute.xlu2 %v8853_v56  ;;  %5475 = vmatmul.msk.bf16.gmra.mxu0 %vm2729_vm6, %v2785_v39  ;;  %v3081_v58 = vsel %vm2729_vm6, %v3058_v15, 0.0  ;;  %v7550_v49 = vpop.f32.mrf.mxu3  ;;  %v1168_v39 = vand.u32 8388607, %v1161_v9  ;;  %v1186_v3 = vor.u32 %v1185_v38, %v1184_v10  ;;  %v1206_v15 = vsel %vm1196_vm0, %v1192_v42, 1326507024 }
 0x2d0   : > { %3287 = vperm.xlu2 %5639, %v7513_v44  }
 0x2d5   : > { %3145 = vadd.xlane.f32.xlu1 %v3144_v52  ;;  %v1187_v52 = vshll.u32 %v8967_v47, %v1175_v51  ;;  %v1205_v51 = vsel %vm1193_vm14, %v7599_v36, %v1186_v3 }
 0x2d6   : > { %3100 = vadd.xlane.f32.xlu0 %v3099_v48  ;;  %v3108_v32 = vpop.permute.xlu2 %3107  ;;  %v1179_v48 = vshrl.u32 %v8965_v6, %v7559_v17  ;;  %v3141_v6 = vsel %vm2729_vm6, %v7526_v30, 0.0 }
 0x2d7   : > { %v3132_v46 = vsel %vm2729_vm6, %v3108_v32, 0.0  ;;  %v2479_v31 = vpop.f32.mrf.mxu3 }
 0x2d8   : > { %5641 = vset.pattern.permute.xlu2 %v8854_v2  ;;  %v1180_v25 = vor.u32 %v1179_v48, %v1178_v54 }
 0x2da   : > { %v1201_v30 = vsel %vm1193_vm14, %v1180_v25, %v7599_v36 }
 0x2df   : > { %v7597_v14 = vpop.f32.mrf.mxu3 }
 0x2e7   : > { %v2484_v19 = vpop.f32.mrf.mxu3 }
 0x2ea   : > { %v7547_v45 = vpop.f32.mrf.mxu0 }
 0x2ef   : > { %v7637_v42 = vpop.f32.mrf.mxu3 }
 0x2f0   : > { %9025 = vst [vmem:[#allocation24_spill] sm:$0xff] %v7637_v42 }
 0x2f2   : > { %v7556_v37 = vpop.f32.mrf.mxu0 }
 0x2f9   : > { %3082 = vadd.xlane.f32.xlu2 %v3081_v58  ;;  %v1169_v58 = vor.u32 8388608, %v1168_v39 }
 0x2fa   : > { %v2312_v34 = vpop.f32.mrf.mxu0 }
 0x2fb   : > { %v2313_v53 = vadd.f32 %v7566_v26, %v2312_v34 }
 0x2fd   : > { %v2363_v1 = vmul.f32 %v2339_v41, %v2313_v53 }
 0x2ff   : > { %v7589_v18 = vmul.f32 %v2479_v31, %v2363_v1  ;;  %v7620_v31 = vshll.u32 %v1169_v58, 8 }
 0x301   : > { %3133 = vadd.xlane.f32.xlu2 %v3132_v46  ;;  %v1210_v13 = vand.u32 65535, %v7620_v31  ;;  %v1211_v39 = vshrl.u32 %v7620_v31, 16 }
 0x302   : > { %v7601_v62 = vpop.f32.mrf.mxu0 }
 0x303   : > { %v2766_v40 = vpop.f32.mrf.mxu2 }
 0x304   : > { %v2767_v16 = vadd.f32 %v7490_v5, %v2766_v40  ;;  %v7618_v40 = vpop.permute.xlu0 %3291 }
 0x305   : > { %9024 = vst [vmem:[#allocation19_spill] sm:$0xff] %v7618_v40 }
 0x306   : > { %v2777_v47 = vmax.f32 %v2767_v16, 0.0  ;;  %v3147_v16 = vsel %vm2729_vm6, %v7475_v21, 0.0  ;;  %v1177_v21 = vshrl.u32 %v8932_v24, %v7559_v17 }
 0x309   : > { %3091 = vadd.xlane.f32.xlu2 %v3090_v11 }
 0x30a   : > { %v2317_v53 = vpop.f32.mrf.mxu0 }
 0x30b   : > { %v2768_v8 = vpop.f32.mrf.mxu2  ;;  %v2318_v41 = vadd.f32 %v7566_v26, %v2317_v53 }
 0x30c   : > { %v2769_v33 = vadd.f32 %v7490_v5, %v2768_v8  ;;  %v1189_v5 = vor.u32 %v1188_v7, %v1187_v52  ;;  %v2349_v1 = vpop.permute.xlu0 %2348 }
 0x30d   : > { %v2365_v38 = vmul.f32 %v2349_v1, %v2318_v41 }
 0x30e   : > { %v2778_v29 = vmax.f32 %v2769_v33, 0.0  ;;  %v1202_v32 = vsel %vm1196_vm0, %v1189_v5, 920167782  ;;  %v1207_v46 = vsel %vm1195_vm4, %v1189_v5, %v1206_v15 }
 0x30f   : > { %v1203_v34 = vsel %vm1195_vm4, %v1186_v3, %v1202_v32  ;;  %v1208_v35 = vsel %vm1194_vm3, %v1205_v51, %v1207_v46  ;;  %v7635_v8 = vmul.f32 %v2484_v19, %v2365_v38  ;;  %v2489_v46 = vpop.f32.mrf.mxu3 }
 0x310   : > { %v2786_v63 = vpack.c.bf16 %v2778_v29, %v2777_v47  ;;  %v1204_v11 = vsel %vm1194_vm3, %v1201_v30, %v1203_v34  ;;  %v1213_v10 = vshrl.u32 %v1208_v35, 16  ;;  %v1212_v52 = vand.u32 65535, %v1208_v35 }
 0x311   : > { %3142 = vadd.xlane.f32.xlu2 %v3141_v6  ;;  %v1235_v4 = vshrl.u32 %v1204_v11, 16  ;;  %v1234_v54 = vand.u32 65535, %v1204_v11  ;;  %v1198_v35 = vsel %vm1196_vm0, %v1186_v3, 2102212464  ;;  %vm9031_vm0 = vmmov %vm9017_vm1 }
 0x312   : > { %5476 = vmatmul.msk.bf16.gmra.mxu0 %vm2729_vm6, %v2786_v63  ;;  %v1215_v7 = vmul.u32 %v1213_v10, %v1210_v13  ;;  %v7639_v33 = vpop.f32.mrf.mxu0  ;;  %v1214_v47 = vmul.u32 %v1212_v52, %v1210_v13  ;;  %v1217_v6 = vmul.u32 %v1213_v10, %v1211_v39  ;;  %v1216_v51 = vmul.u32 %v1212_v52, %v1211_v39 }
 0x313   : > { %v1237_v48 = vmul.u32 %v1235_v4, %v1210_v13  ;;  %v1239_v5 = vmul.u32 %v1235_v4, %v1211_v39  ;;  %v1236_v15 = vmul.u32 %v1234_v54, %v1210_v13  ;;  %v1238_v63 = vmul.u32 %v1234_v54, %v1211_v39 }
 0x314   : > { %v1218_v29 = vshll.u32 %v1215_v7, 16  ;;  %v1220_v53 = vshll.u32 %v1216_v51, 16  ;;  %v1197_v13 = vsel %vm1193_vm14, %v1177_v21, %v1180_v25  ;;  %v1199_v3 = vsel %vm1195_vm4, %v7599_v36, %v1198_v35  ;;  %vm9034_vm4 = vmmov %vm9031_vm0 }
 0x315   : > { %v1240_v58 = vshll.u32 %v1237_v48, 16  ;;  %v1242_v30 = vshll.u32 %v1238_v63, 16  ;;  %v1241_v38 = vshrl.u32 %v1237_v48, 16  ;;  %v1219_v52 = vshrl.u32 %v1215_v7, 16 }
 0x316   : > { %vm1222_vm2 = vc.u32 %v1214_v47, %v1218_v29  ;;  %v1224_v32 = vadd.s32 %v1218_v29, %v1214_v47  ;;  %v1243_v25 = vshrl.u32 %v1238_v63, 16  ;;  %v1200_v29 = vsel %vm1194_vm3, %v1197_v13, %v1199_v3  ;;  %v7667_v63 = vld [vmem:[%s9027_s2] ss:$0 sm:$0xff] }
 0x317   : > { %vm1244_vm10 = vc.u32 %v1236_v15, %v1240_v58  ;;  %v1246_v34 = vadd.s32 %v1240_v58, %v1236_v15  ;;  %v1223_v17 = vsel %vm1222_vm2, 1, %v8942_v0  ;;  %v1221_v21 = vshrl.u32 %v1216_v51, 16  ;;  %v2491_v58 = vpop.f32.mrf.mxu3  ;;  %9028 = vst [vmem:[#allocation11_spill] sm:$0xff] %v7667_v63 }
 0x318   : > { %v1245_v41 = vsel %vm1244_vm10, 1, %v8942_v0  ;;  %v1225_v10 = vadd.s32 %v1223_v17, %v1217_v6  ;;  %vm1226_vm12 = vc.u32 %v1224_v32, %v1220_v53  ;;  %v1254_v48 = vmul.u32 %v7620_v31, %v1200_v29 }
 0x319   : > { %3148 = vadd.xlane.f32.xlu2 %v3147_v16  ;;  %v1247_v11 = vadd.s32 %v1245_v41, %v1239_v5  ;;  %vm1248_vm11 = vc.u32 %v1246_v34, %v1242_v30  ;;  %v1227_v4 = vsel %vm1226_vm12, 1, %v8942_v0  ;;  %vm7698_vm14 = vcmp.le.f32.partialorder %v1161_v9, 0.7853982 }
 0x31a   : > { %v2322_v19 = vpop.f32.mrf.mxu0  ;;  %v1249_v16 = vsel %vm1248_vm11, 1, %v8942_v0  ;;  %v1229_v39 = vadd.s32 %v1227_v4, %v1225_v10  ;;  %v7677_v10 = vpop.xlane.xlu2 %3039  ;;  %vm1304_vm11 = vweird.f32 %v7536_v20  ;;  %vm2253_vm12 = vcmp.lt.f32.partialorder %v7533_v28, 5.0 }
 0x31b   : > { %v2323_v24 = vadd.f32 %v7566_v26, %v2322_v19  ;;  %v1251_v54 = vadd.s32 %v1249_v16, %v1247_v11 }
 0x31c   : > { %v1230_v5 = vadd.s32 %v1229_v39, %v1219_v52 }
 0x31d   : > { %v2367_v1 = vmul.f32 %v7543_v59, %v2323_v24  ;;  %v1252_v15 = vadd.s32 %v1251_v54, %v1241_v38  ;;  %v1250_v59 = vadd.s32 %v1246_v34, %v1242_v30 }
 0x31e   : > { %v1231_v6 = vadd.s32 %v1230_v5, %v1221_v21 }
 0x31f   : > { %v7657_v47 = vmul.f32 %v2489_v46, %v2367_v1  ;;  %v1253_v32 = vadd.s32 %v1252_v15, %v1243_v25 }
 0x320   : > { %vm1256_vm13 = vc.u32 %v1231_v6, %v1250_v59  ;;  %v1255_v39 = vadd.s32 %v1250_v59, %v1231_v6 }
 0x321   : > { %9026 = vst [vmem:[#allocation13_spill] sm:$0xff] %v7657_v47  ;;  %v1257_v7 = vadd.s32 1, %v1253_v32 }
 0x322   : > { %v2324_v36 = vpop.f32.mrf.mxu0  ;;  %v7686_v58 = vpop.xlane.xlu2 %3036 }
 0x323   : > { %v1258_v35 = vsel %vm1256_vm13, %v1257_v7, %v1253_v32  ;;  %vm9043_vm13 = vmmov %vm9031_vm0 }
 0x324   : > { %v1259_v22 = vadd.s32 %v1258_v35, %v1254_v48  ;;  %v7688_v48 = vpop.permute.xlu1 %2343 }
 0x326   : > { %v1260_v51 = vadd.s32 536870912, %v1259_v22 }
 0x328   : > { %v1261_v53 = vshrl.u32 %v1260_v51, 30 }
 0x32a   : > { %v2814_v46 = vpop.f32.mrf.mxu0  ;;  %v1262_v31 = vshll.u32 %v1261_v53, 30 }
 0x32b   : > { %v7670_v19 = vadd.f32 %v7667_v63, %v2814_v46 }
 0x32c   : > { %v1263_v34 = vsub.s32 %v1259_v22, %v1262_v31 }
 0x32d   : > { %v2834_v30 = vsel %vm9029_vm9, %v7670_v19, -inf  ;;  %vm9045_vm9 = vmmov %vm9031_vm0 }
 0x32e   : > { %2835 = vmax.xlane.f32.xlu0 %v2834_v30  ;;  %vm1264_vm7 = vcmp.lt.s32.totalorder %v1263_v34, 0  ;;  %v1265_v41 = vsub.s32 0, %v1263_v34 }
 0x330   : > { %v1266_v11 = vsel %vm1264_vm7, %v1265_v41, %v1263_v34  ;;  %v7706_v41 = vpop.permute.xlu2 %2333  ;;  %vm9046_vm7 = vmmov %vm9031_vm0 }
 0x331   : > { %v1267_v13 = vclz %v1266_v11 }
 0x332   : > { %v2816_v24 = vpop.f32.mrf.mxu0 }
 0x333   : > { %v7675_v17 = vadd.f32 %v7667_v63, %v2816_v24  ;;  %v5423_v3 = vadd.s32 4294967294, %v1267_v13  ;;  %v1285_v24 = vsub.s32 4, %v1261_v53 }
 0x335   : > { %v2837_v16 = vsel %vm9030_vm8, %v7675_v17, -inf  ;;  %vm5424_vm5 = vcmp.lt.s32.totalorder %v5423_v3, 0  ;;  %vm9047_vm8 = vmmov %vm9031_vm0 }
 0x336   : > { %2838 = vmax.xlane.f32.xlu1 %v2837_v16  ;;  %v1270_v1 = vsel %vm5424_vm5, 0, %v5423_v3  ;;  %vm9048_vm5 = vmmov %vm9031_vm0 }
 0x337   : > { %v1275_v38 = vsub.s32 4294967266, %v1270_v1  ;;  %v1271_v54 = vsub.s32 32, %v1270_v1  ;;  %v1272_v21 = vshll.u32 %v1263_v34, %v1270_v1  ;;  %v7704_v34 = vpop.xlane.xlu1 %3033 }
 0x339   : > { %v1276_v25 = vadd.s32 127, %v1275_v38  ;;  %v1273_v5 = vshrl.u32 %v1255_v39, %v1271_v54  ;;  %v1286_v38 = vsel %vm1163_vm15, %v1285_v24, %v1261_v53 }
 0x33b   : > { %v1277_v15 = vshll.u32 %v1276_v25, 23  ;;  %v1274_v36 = vor.u32 %v1273_v5, %v1272_v21  ;;  %v1288_v25 = vsel %vm7698_vm14, 0, %v1286_v38 }
 0x33c   : > { %v2819_v4 = vpop.f32.mrf.mxu0 }
 0x33d   : > { %v7682_v52 = vadd.f32 %v7667_v63, %v2819_v4  ;;  %v1278_v32 = vor.u32 4788187, %v1277_v15  ;;  %v1281_v7 = vcvt.s32.f32 %v1274_v36  ;;  %v7723_v15 = vpop.xlane.xlu2 %3030 }
 0x33f   : > { %v2840_v29 = vsel %vm9017_vm1, %v7682_v52, -inf  ;;  %v1279_v22 = vand.u32 2147483647, %v1278_v32  ;;  %v7721_v5 = vpop.permute.xlu1 %3311  ;;  %vm9049_vm1 = vmmov %vm9031_vm0 }
 0x340   : > { %2841 = vmax.xlane.f32.xlu2 %v2840_v29  ;;  %9035 = vst [vmem:[#allocation27_spill] sm:$0xff] %v7721_v5 }
 0x341   : > { %v1282_v59 = vmul.f32 %v1281_v7, %v1279_v22  ;;  %v1305_v7 = vand.u32 3, %v1288_v25 }
 0x343   : > { %v1283_v46 = vxor.u32 2147483648, %v1282_v59  ;;  %vm1310_vm3 = vcmp.eq.s32.totalorder %v1305_v7, 2  ;;  %vm1307_vm2 = vcmp.eq.s32.totalorder %v1305_v7, 0  ;;  %vm1306_vm10 = vcmp.lt.s32.totalorder %v1305_v7, 2  ;;  %v7752_v7 = vpop.xlane.xlu0 %3130 }
 0x344   : > { %v2821_v35 = vpop.f32.mrf.mxu0 }
 0x345   : > { %v7691_v6 = vadd.f32 %v7667_v63, %v2821_v35  ;;  %v1284_v31 = vsel %vm1163_vm15, %v1283_v46, %v1282_v59  ;;  %v7728_v24 = vpop.permute.xlu2 %3423  ;;  %vm9050_vm15 = vmmov %vm9031_vm0 }
 0x346   : > { %v1287_v11 = vsel %vm7698_vm14, %v7536_v20, %v1284_v31  ;;  %9037 = vst [vmem:[#allocation17_spill] sm:$0xff] %v7728_v24  ;;  %vm9052_vm14 = vmmov %vm9031_vm0 }
 0x347   : > { %v2843_v51 = vsel %vm9031_vm0, %v7691_v6, -inf  ;;  %v1289_v16 = vmul.f32 %v1287_v11, %v1287_v11  ;;  %v7726_v31 = vpop.permute.xlu1 %3303 }
 0x348   : > { %2844 = vmax.xlane.f32.xlu2 %v2843_v51  ;;  %9036 = vst [vmem:[#allocation15_spill] sm:$0xff] %v7726_v31 }
 0x349   : > { %v1290_v9 = vmul.f32 -0.001358992, %v1289_v16  ;;  %v1297_v1 = vmul.f32 -0.00019511016, %v1289_v16 }
 0x34b   : > { %v1291_v39 = vadd.f32 0.041655596, %v1290_v9  ;;  %v1298_v54 = vadd.f32 0.008332121, %v1297_v1 }
 0x34c   : > { %v2824_v13 = vpop.f32.mrf.mxu0 }
 0x34d   : > { %v7712_v3 = vadd.f32 %v7667_v63, %v2824_v13  ;;  %v1292_v29 = vmul.f32 %v1291_v39, %v1289_v16  ;;  %v1299_v21 = vmul.f32 %v1298_v54, %v1289_v16  ;;  %v7735_v54 = vpop.permute.xlu2 %3307 }
 0x34e   : > { %9039 = vst [vmem:[#allocation21_spill] sm:$0xff] %v7735_v54 }
 0x34f   : > { %v2846_v4 = vsel %vm9034_vm4, %v7712_v3, -inf  ;;  %3399 = vperm.xlu1 %5638, %v7513_v44   ;;  %v1293_v36 = vadd.f32 -0.4999988, %v1292_v29  ;;  %v1300_v32 = vadd.f32 -0.16666654, %v1299_v21  ;;  %v7733_v39 = vpop.permute.xlu1 %3419 }
 0x350   : > { %2847 = vmax.xlane.f32.xlu0 %v2846_v4  ;;  %v2260_v4 = vsel %vm2253_vm12, 1.0, %v5856_v50  ;;  %9038 = vst [vmem:[#allocation18_spill] sm:$0xff] %v7733_v39 }
 0x351   : > { %v1294_v35 = vmul.f32 %v1293_v36, %v1289_v16  ;;  %v1301_v22 = vmul.f32 %v1300_v32, %v1289_v16 }
 0x353   : > { %v1295_v53 = vadd.f32 1.0, %v1294_v35  ;;  %v1302_v59 = vadd.f32 1.0, %v1301_v22 }
 0x354   : > { %v2826_v20 = vpop.f32.mrf.mxu0 }
 0x355   : > { %v1303_v44 = vmul.f32 %v1302_v59, %v1287_v11  ;;  %v1311_v51 = vxor.u32 2147483648, %v1295_v53  ;;  %v7739_v29 = vpop.permute.xlu2 %3407  ;;  %v7742_v21 = vadd.f32 %v7667_v63, %v2826_v20 }
 0x356   : > { %9041 = vst [vmem:[#allocation9_spill] sm:$0xff] %v7739_v29 }
 0x357   : > { %5642 = vset.pattern.permute.xlu1 %v8942_v0  ;;  %v1308_v46 = vxor.u32 2147483648, %v1303_v44  ;;  %v1312_v30 = vsel %vm1310_vm3, %v1311_v51, %v1303_v44  ;;  %v7737_v25 = vpop.permute.xlu1 %3299  ;;  %v2849_v50 = vsel %vm9043_vm13, %v7742_v21, -inf  ;;  %v7760_v51 = vpop.xlane.xlu0 %3088 }
 0x358   : > { %9040 = vst [vmem:[#allocation20_spill] sm:$0xff] %v7737_v25 }
 0x359   : > { %v1309_v13 = vsel %vm1307_vm2, %v1295_v53, %v1308_v46 }
 0x35a   : > { %v1313_v16 = vsel %vm1306_vm10, %v1309_v13, %v1312_v30 }
 0x35b   : > { %v1314_v9 = vsel %vm1304_vm11, nan, %v1313_v16 }
 0x35c   : > { %v2239_v1 = vadd.f32 1.0, %v1314_v9 }
 0x35d   : > { %v7744_v28 = vpop.permute.xlu2 %3287 }
 0x35e   : > { %v2246_v11 = vmul.f32 0.5, %v2239_v1  ;;  %9042 = vst [vmem:[#allocation23_spill] sm:$0xff] %v7744_v28 }
 0x35f   : > { %v7748_v36 = vpop.permute.xlu1 %3411  ;;  %v7766_v13 = vpop.xlane.xlu0 %3139 }
 0x360   : > { %v2267_v38 = vmul.f32 %v2260_v4, %v2246_v11  ;;  %9044 = vst [vmem:[#allocation14_spill] sm:$0xff] %v7748_v36 }
 0x364   : > { %2328 = vperm.xlu0 %5640, %v2267_v38  }
 0x367   : > { %v7754_v22 = vpop.xlane.xlu1 %3085  ;;  %v7773_v1 = vpop.xlane.xlu0 %3097 }
 0x36c   : > { %v7750_v32 = vpop.xlane.xlu2 %3082 }
 0x36f   : > { %v7762_v46 = vpop.xlane.xlu1 %3136  ;;  %v7780_v20 = vpop.xlane.xlu0 %3100 }
 0x374   : > { %v7758_v44 = vpop.xlane.xlu2 %3133 }
 0x377   : > { %v7768_v16 = vpop.xlane.xlu1 %3094 }
 0x379   : > { %2850 = vmax.xlane.f32.xlu1 %v2849_v50 }
 0x37c   : > { %v7764_v30 = vpop.xlane.xlu2 %3091 }
 0x37f   : > { %v7775_v4 = vpop.xlane.xlu1 %3145 }
 0x384   : > { %v7771_v9 = vpop.xlane.xlu2 %3142 }
 0x38c   : > { %v7778_v11 = vpop.xlane.xlu2 %3148 }
 0x38f   : > { %v2829_v35 = vpop.f32.mrf.mxu0 }
 0x390   : > { %v2830_v53 = vadd.f32 %v7667_v63, %v2829_v35 }
 0x392   : > { %v2852_v59 = vsel %vm9045_vm9, %v2830_v53, -inf }
 0x393   : > { %2853 = vmax.xlane.f32.xlu2 %v2852_v59 }
 0x3a1   : > { %v2836_v56 = vpop.xlane.xlu0 %2835 }
 0x3a2   : > { %v2858_v40 = vsub.f32 %v7670_v19, %v2836_v56 }
 0x3a4   : > { %v2866_v24 = vmul.f32 1.442695, %v2858_v40 }
 0x3a9   : > { %v2839_v38 = vpop.xlane.xlu1 %2838 }
 0x3aa   : > { %v2859_v50 = vsub.f32 %v7675_v17, %v2839_v38 }
 0x3ab   : > { %3403 = vperm.xlu2 %5641, %v7421_v61  }
 0x3ac   : > { %v2868_v35 = vmul.f32 1.442695, %v2859_v50 }
 0x3ae   : > { %5749 = vpow2.f32 %v2868_v35 }
 0x3b3   : > { %5643 = vset.pattern.permute.xlu2 %v8942_v0  ;;  %v2842_v59 = vpop.xlane.xlu2 %2841 }
 0x3b4   : > { %v2860_v61 = vsub.f32 %v7682_v52, %v2842_v59  ;;  %v7784_v2 = vpop.eup %5749 }
 0x3b5   : > { %v2885_v0 = vsel %vm9046_vm7, %v7784_v2, 0.0 }
 0x3b6   : > { %v2870_v63 = vmul.f32 1.442695, %v2860_v61  ;;  %2886 = vadd.xlane.f32.xlu1 %v2885_v0 }
 0x3b8   : > { %5751 = vpow2.f32 %v2870_v63 }
 0x3b9   : > { %5753 = vpow2.f32 %v2866_v24 }
 0x3bb   : > { %v2845_v43 = vpop.xlane.xlu2 %2844 }
 0x3bc   : > { %v2861_v17 = vsub.f32 %v7691_v6, %v2845_v43 }
 0x3be   : > { %v7790_v38 = vpop.eup %5751  ;;  %v2872_v50 = vmul.f32 1.442695, %v2861_v17 }
 0x3bf   : > { %v2888_v52 = vsel %vm9047_vm8, %v7790_v38, 0.0  ;;  %v7795_v19 = vpop.eup %5753 }
 0x3c0   : > { %5755 = vpow2.f32 %v2872_v50  ;;  %2889 = vadd.xlane.f32.xlu1 %v2888_v52  ;;  %v2882_v6 = vsel %vm9049_vm1, %v7795_v19, 0.0 }
 0x3c3   : > { %v2848_v35 = vpop.xlane.xlu0 %2847 }
 0x3c4   : > { %v2862_v56 = vsub.f32 %v7712_v3, %v2848_v35  ;;  %v7807_v3 = vpop.permute.xlu1 %3399 }
 0x3c5   : > { %9051 = vst [vmem:[#allocation26_spill] sm:$0xff] %v7807_v3 }
 0x3c6   : > { %v7797_v63 = vpop.eup %5755  ;;  %v2874_v40 = vmul.f32 1.442695, %v2862_v56 }
 0x3c7   : > { %v2891_v43 = vsel %vm9048_vm5, %v7797_v63, 0.0 }
 0x3c8   : > { %5757 = vpow2.f32 %v2874_v40  ;;  %2892 = vadd.xlane.f32.xlu0 %v2891_v43 }
 0x3ce   : > { %v7803_v24 = vpop.eup %5757 }
 0x3cf   : > { %v2894_v59 = vsel %vm9050_vm15, %v7803_v24, 0.0 }
 0x3d0   : > { %2895 = vadd.xlane.f32.xlu0 %v2894_v59 }
 0x3d4   : > { %2883 = vadd.xlane.f32.xlu2 %v2882_v6 }
 0x3ec   : > { %v2851_v61 = vpop.xlane.xlu1 %2850 }
 0x3ed   : > { %v2863_v0 = vsub.f32 %v7742_v21, %v2851_v61  ;;  %v7818_v61 = vpop.permute.xlu0 %2328 }
 0x3ef   : > { %v2876_v17 = vmul.f32 1.442695, %v2863_v0 }
 0x3f1   : > { %5759 = vpow2.f32 %v2876_v17 }
 0x3f7   : > { %v7810_v50 = vpop.eup %5759 }
 0x3f8   : > { %v2897_v52 = vsel %vm9031_vm0, %v7810_v50, 0.0 }
 0x3f9   : > { %2898 = vadd.xlane.f32.xlu2 %v2897_v52 }
 0x406   : > { %v2854_v35 = vpop.xlane.xlu2 %2853 }
 0x407   : > { %v2864_v56 = vsub.f32 %v2830_v53, %v2854_v35 }
 0x409   : > { %v2878_v40 = vmul.f32 1.442695, %v2864_v56 }
 0x40b   : > { %5761 = vpow2.f32 %v2878_v40 }
 0x40e   : > { %v7820_v3 = vpop.permute.xlu2 %3403 }
 0x40f   : > { %9053 = vst [vmem:[#allocation29_spill] sm:$0xff] %v7820_v3 }
 0x411   : > { %v7814_v43 = vpop.eup %5761 }
 0x412   : > { %v2900_v6 = vsel %vm9052_vm14, %v7814_v43, 0.0 }
 0x413   : > { %2901 = vadd.xlane.f32.xlu1 %v2900_v6 }
 0x429   : > { %v2887_v59 = vpop.xlane.xlu1 %2886 }
 0x42a   : > { %5763 = vrcp.f32 %v2887_v59  ;;  %v2932_v35 = vand.u32 2147483648, %v2887_v59  ;;  %vm2926_vm3 = vweird.f32 %v2887_v59  ;;  %v2930_v56 = vand.u32 2147483647, %v2887_v59 }
 0x42c   : > { %v2933_v54 = vor.u32 1.1754944e-38, %v2932_v35  ;;  %vm2931_vm10 = vcmp.eq.f32.partialorder %v2930_v56, 8.507059e+37 }
 0x430   : > { %v5764_v21 = vpop.eup %5763 }
 0x431   : > { %v2922_v0 = vmul.f32 %v5764_v21, %v2887_v59  ;;  %vm2927_vm4 = vweird.f32 %v5764_v21 }
 0x432   : > { %vm2928_vm2 = vmor %vm2926_vm3, %vm2927_vm4 }
 0x433   : > { %v2890_v17 = vpop.xlane.xlu1 %2889  ;;  %v2923_v52 = vsub.f32 1.0, %v2922_v0 }
 0x434   : > { %5765 = vrcp.f32 %v2890_v17  ;;  %vm2941_vm12 = vweird.f32 %v2890_v17 }
 0x435   : > { %v2924_v53 = vmul.f32 %v5764_v21, %v2923_v52 }
 0x437   : > { %v2925_v40 = vadd.f32 %v5764_v21, %v2924_v53 }
 0x439   : > { %v2929_v29 = vsel %vm2928_vm2, %v5764_v21, %v2925_v40  ;;  %v2947_v40 = vand.u32 2147483648, %v2890_v17 }
 0x43a   : > { %v5766_v36 = vpop.eup %5765  ;;  %v2934_v0 = vsel %vm2931_vm10, %v2933_v54, %v2929_v29 }
 0x43b   : > { %v2937_v6 = vmul.f32 %v5766_v36, %v2890_v17  ;;  %v7822_v39 = vpop.xlane.xlu0 %2892  ;;  %v7826_v3 = vmul.f32 %v7784_v2, %v2934_v0  ;;  %vm2942_vm11 = vweird.f32 %v5766_v36 }
 0x43c   : > { %5767 = vrcp.f32 %v7822_v39  ;;  %vm7832_vm13 = vmor %vm2941_vm12, %vm2942_vm11  ;;  %vm2956_vm0 = vweird.f32 %v7822_v39 }
 0x43d   : > { %v2938_v5 = vsub.f32 1.0, %v2937_v6  ;;  %v3322_v59 = vmul.f32 %v7754_v22, %v7826_v3 }
 0x43f   : > { %v2939_v52 = vmul.f32 %v5766_v36, %v2938_v5  ;;  %3337 = vrot.lane.b32.xlu2 %v3322_v59, %s5859_s27  ;;  %v2945_v5 = vand.u32 2147483647, %v2890_v17  ;;  %v3210_v17 = vmul.f32 %v7723_v15, %v7826_v3 }
 0x441   : > { %v2940_v25 = vadd.f32 %v5766_v36, %v2939_v52  ;;  %v2948_v52 = vor.u32 1.1754944e-38, %v2947_v40  ;;  %vm2946_vm7 = vcmp.eq.f32.partialorder %v2945_v5, 8.507059e+37 }
 0x442   : > { %v5768_v53 = vpop.eup %5767 }
 0x443   : > { %v2952_v21 = vmul.f32 %v5768_v53, %v7822_v39  ;;  %v2896_v35 = vpop.xlane.xlu0 %2895  ;;  %v2944_v0 = vsel %vm7832_vm13, %v5766_v36, %v2940_v25  ;;  %vm2957_vm5 = vweird.f32 %v5768_v53 }
 0x444   : > { %v2949_v47 = vsel %vm2946_vm7, %v2948_v52, %v2944_v0  ;;  %vm7844_vm14 = vmor %vm2956_vm0, %vm2957_vm5  ;;  %v2977_v5 = vand.u32 2147483648, %v2896_v35  ;;  %v2975_v52 = vand.u32 2147483647, %v2896_v35  ;;  %vm2971_vm2 = vweird.f32 %v2896_v35 }
 0x445   : > { %v2953_v2 = vsub.f32 1.0, %v2952_v21  ;;  %v2950_v40 = vmul.f32 %v7790_v38, %v2949_v47  ;;  %vm9079_vm0 = vcmask 130048  }
 0x446   : > { %v2978_v38 = vor.u32 1.1754944e-38, %v2977_v5  ;;  %vm2976_vm11 = vcmp.eq.f32.partialorder %v2975_v52, 8.507059e+37 }
 0x447   : > { %v2884_v57 = vpop.xlane.xlu2 %2883  ;;  %v2954_v6 = vmul.f32 %v5768_v53, %v2953_v2  ;;  %v2962_v2 = vand.u32 2147483648, %v7822_v39  ;;  %3225 = vrot.lane.b32.xlu2 %v3210_v17, %s5859_s27  ;;  %v3434_v17 = vmul.f32 %v7758_v44, %v7826_v3 }
 0x448   : > { %5769 = vrcp.f32 %v2884_v57  ;;  %v2917_v22 = vand.u32 2147483648, %v2884_v57  ;;  %v2915_v59 = vand.u32 2147483647, %v2884_v57  ;;  %vm2911_vm8 = vweird.f32 %v2884_v57 }
 0x449   : > { %5771 = vrcp.f32 %v2896_v35  ;;  %v2955_v23 = vadd.f32 %v5768_v53, %v2954_v6  ;;  %v2963_v6 = vor.u32 1.1754944e-38, %v2962_v2 }
 0x44a   : > { %vm2916_vm15 = vcmp.eq.f32.partialorder %v2915_v59, 8.507059e+37  ;;  %v3211_v59 = vmul.f32 %v7704_v34, %v2950_v40 }
 0x44e   : > { %v5770_v31 = vpop.eup %5769 }
 0x44f   : > { %v2907_v56 = vmul.f32 %v5770_v31, %v2884_v57  ;;  %vm2912_vm9 = vweird.f32 %v5770_v31  ;;  %v5772_v21 = vpop.eup %5771  ;;  %v2960_v57 = vand.u32 2147483647, %v7822_v39  ;;  %3227 = vrot.lane.b32.xlu2 %v3211_v59, %s5859_s27 }
 0x450   : > { %vm2913_vm1 = vmor %vm2911_vm8, %vm2912_vm9  ;;  %v2967_v54 = vmul.f32 %v5772_v21, %v2896_v35  ;;  %vm2972_vm4 = vweird.f32 %v5772_v21 }
 0x451   : > { %v2908_v29 = vsub.f32 1.0, %v2907_v56  ;;  %v2918_v56 = vor.u32 1.1754944e-38, %v2917_v22  ;;  %v2959_v22 = vsel %vm7844_vm14, %v5768_v53, %v2955_v23  ;;  %vm2961_vm3 = vcmp.eq.f32.partialorder %v2960_v57, 8.507059e+37  ;;  %vm2973_vm10 = vmor %vm2971_vm2, %vm2972_vm4 }
 0x452   : > { %v2964_v47 = vsel %vm2961_vm3, %v2963_v6, %v2959_v22  ;;  %vm9080_vm14 = vmmov %vm9079_vm0  ;;  %vm3580_vm4 = vcmask 392192  }
 0x453   : > { %v2909_v28 = vmul.f32 %v5770_v31, %v2908_v29  ;;  %vm9081_vm3 = vmmov %vm9079_vm0 }
 0x454   : > { %vm9082_vm2 = vmmov %vm9079_vm0 }
 0x455   : > { %v2910_v42 = vadd.f32 %v5770_v31, %v2909_v28  ;;  %v2968_v28 = vsub.f32 1.0, %v2967_v54 }
 0x457   : > { %v2914_v25 = vsel %vm2913_vm1, %v5770_v31, %v2910_v42  ;;  %v2969_v0 = vmul.f32 %v5772_v21, %v2968_v28 }
 0x458   : > { %v2919_v36 = vsel %vm2916_vm15, %v2918_v56, %v2914_v25 }
 0x459   : > { %v2920_v29 = vmul.f32 %v7795_v19, %v2919_v36  ;;  %v2970_v39 = vadd.f32 %v5772_v21, %v2969_v0  ;;  %v2965_v19 = vmul.f32 %v7797_v63, %v2964_v47 }
 0x45b   : > { %v3433_v42 = vmul.f32 %v7752_v7, %v2920_v29  ;;  %v3321_v31 = vmul.f32 %v7750_v32, %v2920_v29  ;;  %v2974_v23 = vsel %vm2973_vm10, %v5772_v21, %v2970_v39  ;;  %v3209_v34 = vmul.f32 %v7545_v12, %v2920_v29 }
 0x45c   : > { %v2979_v7 = vsel %vm2976_vm11, %v2978_v38, %v2974_v23  ;;  %v3212_v35 = vmul.f32 %v7686_v58, %v2965_v19  ;;  %v3324_v21 = vmul.f32 %v7764_v30, %v2965_v19  ;;  %v3436_v15 = vmul.f32 %v7766_v13, %v2965_v19  ;;  %vm9084_vm11 = vmmov %vm9079_vm0 }
 0x45d   : > { %3447 = vrot.lane.b32.xlu1 %v3433_v42, %s5859_s27  ;;  %3335 = vrot.lane.b32.xlu0 %v3321_v31, %s5859_s27  ;;  %v2980_v32 = vmul.f32 %v7803_v24, %v2979_v7  ;;  %v3435_v24 = vmul.f32 %v7762_v46, %v2950_v40  ;;  %vm9083_vm10 = vcmask 1043456  }
 0x45f   : > { %v3213_v53 = vmul.f32 %v7677_v10, %v2980_v32  ;;  %v3325_v63 = vmul.f32 %v7768_v16, %v2980_v32  ;;  %v3323_v10 = vmul.f32 %v7760_v51, %v2950_v40  ;;  %v3437_v12 = vmul.f32 %v7771_v9, %v2980_v32 }
 0x461   : > { %3231 = vrot.lane.b32.xlu2 %v3213_v53, %s5859_s27 }
 0x465   : > { %3223 = vrot.lane.b32.xlu1 %v3209_v34, %s5859_s27  ;;  %3229 = vrot.lane.b32.xlu0 %v3212_v35, %s5859_s27 }
 0x46c   : > { %v2899_v58 = vpop.xlane.xlu2 %2898 }
 0x46d   : > { %3449 = vrot.lane.b32.xlu1 %v3434_v17, %s5859_s27  ;;  %3343 = vrot.lane.b32.xlu0 %v3325_v63, %s5859_s27  ;;  %5773 = vrcp.f32 %v2899_v58  ;;  %v2992_v56 = vand.u32 2147483648, %v2899_v58  ;;  %v2990_v51 = vand.u32 2147483647, %v2899_v58  ;;  %vm2986_vm13 = vweird.f32 %v2899_v58 }
 0x46e   : > { %v2315_v63 = vadd.f32 %v7566_v26, %v7601_v62 }
 0x46f   : > { %v2993_v57 = vor.u32 1.1754944e-38, %v2992_v56  ;;  %vm2991_vm7 = vcmp.eq.f32.partialorder %v2990_v51, 8.507059e+37  ;;  %v2320_v56 = vadd.f32 %v7566_v26, %v7639_v33  ;;  %v9058_v51 = vld [vmem:[#allocation13_spill] sm:$0xff] }
 0x473   : > { %v5774_v44 = vpop.eup %5773 }
 0x474   : > { %v2982_v16 = vmul.f32 %v5774_v44, %v2899_v58  ;;  %vm2987_vm12 = vweird.f32 %v5774_v44 }
 0x475   : > { %3339 = vrot.lane.b32.xlu1 %v3323_v10, %s5859_s27  ;;  %3455 = vrot.lane.b32.xlu0 %v3437_v12, %s5859_s27  ;;  %vm2988_vm9 = vmor %vm2986_vm13, %vm2987_vm12 }
 0x476   : > { %v2983_v3 = vsub.f32 1.0, %v2982_v16  ;;  %vm9085_vm12 = vmmov %vm9079_vm0 }
 0x477   : > { %vm9086_vm13 = vmmov %vm9079_vm0 }
 0x478   : > { %v2984_v2 = vmul.f32 %v5774_v44, %v2983_v3 }
 0x47a   : > { %v2985_v54 = vadd.f32 %v5774_v44, %v2984_v2 }
 0x47c   : > { %v2989_v46 = vsel %vm2988_vm9, %v5774_v44, %v2985_v54  ;;  %v9059_v54 = vld [vmem:[#allocation16_spill] sm:$0xff]  ;;  %vm9087_vm9 = vmmov %vm9079_vm0 }
 0x47d   : > { %3451 = vrot.lane.b32.xlu1 %v3435_v24, %s5859_s27  ;;  %v2994_v25 = vsel %vm2991_vm7, %v2993_v57, %v2989_v46  ;;  %v2364_v24 = vmul.f32 %v7688_v48, %v2315_v63  ;;  %v2366_v57 = vmul.f32 %v9059_v54, %v2320_v56  ;;  %v9060_v46 = vld [vmem:[#allocation24_spill] sm:$0xff]  ;;  %vm9088_vm7 = vmmov %vm9079_vm0 }
 0x47e   : > { %v2995_v28 = vmul.f32 %v7810_v50, %v2994_v25 }
 0x47f   : > { %v7929_v16 = vmul.f32 %v7597_v14, %v2364_v24  ;;  %v7941_v25 = vmul.f32 %v9060_v46, %v2366_v57  ;;  %v9067_v46 = vld [vmem:[#allocation10_spill] sm:$0xff] }
 0x480   : > { %v3214_v36 = vmul.f32 %v7539_v27, %v2995_v28  ;;  %v3326_v40 = vmul.f32 %v7773_v1, %v2995_v28  ;;  %v3438_v13 = vmul.f32 %v7775_v4, %v2995_v28  ;;  %v2310_v4 = vadd.f32 %v7566_v26, %v7556_v37 }
 0x482   : > { %3233 = vrot.lane.b32.xlu0 %v3214_v36, %s5859_s27  ;;  %3345 = vrot.lane.b32.xlu2 %v3326_v40, %s5859_s27  ;;  %v2362_v47 = vmul.f32 %v7706_v41, %v2310_v4  ;;  %v5798_v40 = vld [vmem:[%s9006_s30 + $0x20] sm:$0xff] }
 0x483   : > { %v5804_v4 = vld [vmem:[%s9006_s30] sm:$0xff] }
 0x484   : > { %v7899_v38 = vmul.f32 %v7550_v49, %v2362_v47 }
 0x485   : > { %3341 = vrot.lane.b32.xlu1 %v3324_v21, %s5859_s27 }
 0x486   : > { %v2902_v9 = vpop.xlane.xlu1 %2901 }
 0x487   : > { %5775 = vrcp.f32 %v2902_v9  ;;  %v3007_v22 = vand.u32 2147483648, %v2902_v9  ;;  %v3005_v0 = vand.u32 2147483647, %v2902_v9  ;;  %vm3001_vm5 = vweird.f32 %v2902_v9 }
 0x489   : > { %v3008_v52 = vor.u32 1.1754944e-38, %v3007_v22  ;;  %vm3006_vm15 = vcmp.eq.f32.partialorder %v3005_v0, 8.507059e+37  ;;  %v5799_v22 = vld [vmem:[%s9006_s30 + $0x18] sm:$0xff] }
 0x48d   : > { %v5776_v30 = vpop.eup %5775  ;;  %3453 = vrot.lane.b32.xlu1 %v3436_v15, %s5859_s27 }
 0x48e   : > { %v2997_v5 = vmul.f32 %v5776_v30, %v2902_v9  ;;  %vm3002_vm8 = vweird.f32 %v5776_v30 }
 0x48f   : > { %vm3003_vm1 = vmor %vm3001_vm5, %vm3002_vm8  ;;  %vm3593_vm8 = vcmask 457728  }
 0x490   : > { %v2998_v29 = vsub.f32 1.0, %v2997_v5 }
 0x492   : > { %v2999_v6 = vmul.f32 %v5776_v30, %v2998_v29 }
 0x494   : > { %v3000_v50 = vadd.f32 %v5776_v30, %v2999_v6  ;;  %v5800_v6 = vld [vmem:[%s9006_s30 + $0x30] sm:$0xff] }
 0x495   : > { %3457 = vrot.lane.b32.xlu1 %v3438_v13, %s5859_s27 }
 0x496   : > { %v3004_v27 = vsel %vm3003_vm1, %v5776_v30, %v3000_v50 }
 0x497   : > { %v3009_v1 = vsel %vm3006_vm15, %v3008_v52, %v3004_v27  ;;  %v5801_v52 = vld [vmem:[%s9006_s30 + $0x8] sm:$0xff] }
 0x498   : > { %v3010_v42 = vmul.f32 %v7814_v43, %v3009_v1  ;;  %v5802_v27 = vld [vmem:[%s9006_s30 + $0x28] sm:$0xff] }
 0x499   : > { %v3338_v43 = vpop.permute.xlu2 %3337 }
 0x49a   : > { %v3215_v31 = vmul.f32 %v7528_v60, %v3010_v42  ;;  %v3327_v39 = vmul.f32 %v7780_v20, %v3010_v42  ;;  %v3439_v59 = vmul.f32 %v7778_v11, %v3010_v42  ;;  %v3357_v60 = vmul.f32 %v3338_v43, %v7899_v38 }
 0x49b   : > { %v2308_v11 = vadd.f32 %v7566_v26, %v7547_v45  ;;  %v9062_v43 = vmov 1  }
 0x49c   : > { %3235 = vrot.lane.b32.xlu0 %v3215_v31, %s5859_s27  ;;  %3347 = vrot.lane.b32.xlu2 %v3327_v39, %s5859_s27  ;;  %v5803_v31 = vld [vmem:[%s9006_s30 + $0x10] sm:$0xff]  ;;  %v9061_v39 = vmov 2  }
 0x49d   : > { %3459 = vrot.lane.b32.xlu1 %v3439_v59, %s5859_s27  ;;  %v2361_v20 = vmul.f32 %v7818_v61, %v2308_v11 }
 0x49f   : > { %v7907_v23 = vmul.f32 %v7541_v55, %v2361_v20 }
 0x4a1   : > { %v7915_v32 = vpop.permute.xlu2 %3225 }
 0x4a5   : > { %3372 = vrot.lane.b32.xlu1 %v3357_v60, %s5846_s10 }
 0x4a9   : > { %v7917_v53 = vpop.permute.xlu2 %3227 }
 0x4aa   : > { %v3246_v59 = vmul.f32 %v7917_v53, %v7589_v18  ;;  %v9064_v53 = vld [vmem:[#allocation20_spill] sm:$0xff] }
 0x4bb   : > { %v3232_v35 = vpop.permute.xlu2 %3231 }
 0x4bc   : > { %v3248_v30 = vmul.f32 %v3232_v35, %v7635_v8 }
 0x4cf   : > { %v3448_v19 = vpop.permute.xlu1 %3447  ;;  %v3336_v37 = vpop.permute.xlu0 %3335 }
 0x4d0   : > { %v3468_v41 = vmul.f32 %v3448_v19, %v7907_v23  ;;  %v3356_v49 = vmul.f32 %v3336_v37, %v7907_v23 }
 0x4d2   : > { %3482 = vrot.lane.b32.xlu2 %v3468_v41, %s5846_s10  ;;  %3370 = vrot.lane.b32.xlu0 %v3356_v49, %s5846_s10  ;;  %v9063_v49 = vld [vmem:[#allocation23_spill] sm:$0xff] }
 0x4d7   : > { %v7913_v7 = vpop.permute.xlu1 %3223  ;;  %v3230_v61 = vpop.permute.xlu0 %3229 }
 0x4d8   : > { %v3247_v13 = vmul.f32 %v3230_v61, %v7929_v16  ;;  %v3317_v61 = vmul.f32 %v9064_v53, %v7929_v16 }
 0x4dc   : > { %v3346_v44 = vpop.permute.xlu2 %3345 }
 0x4dd   : > { %v3361_v36 = vmul.f32 %v3346_v44, %v7941_v25  ;;  %v9066_v44 = vld [vmem:[#allocation27_spill] sm:$0xff] }
 0x4df   : > { %v3450_v45 = vpop.permute.xlu1 %3449  ;;  %v3344_v17 = vpop.permute.xlu0 %3343 }
 0x4e0   : > { %v3360_v12 = vmul.f32 %v3344_v17, %v7635_v8  ;;  %v3469_v33 = vmul.f32 %v3450_v45, %v7899_v38  ;;  %v3314_v45 = vmul.f32 %v9063_v49, %v7907_v23 }
 0x4e7   : > { %v3340_v55 = vpop.permute.xlu1 %3339  ;;  %v3456_v14 = vpop.permute.xlu0 %3455 }
 0x4e8   : > { %v3358_v34 = vmul.f32 %v3340_v55, %v7589_v18  ;;  %v3472_v28 = vmul.f32 %v3456_v14, %v7635_v8  ;;  %v3245_v14 = vmul.f32 %v7915_v32, %v7899_v38 }
 0x4ea   : > { %3374 = vrot.lane.b32.xlu2 %v3358_v34, %s5846_s10 }
 0x4ef   : > { %v3452_v10 = vpop.permute.xlu1 %3451 }
 0x4f0   : > { %v3470_v58 = vmul.f32 %v3452_v10, %v7589_v18  ;;  %v9065_v10 = vld [vmem:[#allocation15_spill] sm:$0xff] }
 0x4f2   : > { %3486 = vrot.lane.b32.xlu0 %v3470_v58, %s5846_s10  ;;  %3378 = vrot.lane.b32.xlu2 %v3360_v12, %s5846_s10  ;;  %v3318_v12 = vmul.f32 %v9065_v10, %v7635_v8 }
 0x4f4   : > { %v3234_v5 = vpop.permute.xlu0 %3233 }
 0x4f5   : > { %v3249_v29 = vmul.f32 %v3234_v5, %v7941_v25  ;;  %v9069_v5 = vld [vmem:[#allocation29_spill] sm:$0xff] }
 0x4f6   : > { %v3348_v62 = vpop.permute.xlu2 %3347 }
 0x4f7   : > { %v3342_v3 = vpop.permute.xlu1 %3341  ;;  %v3362_v48 = vmul.f32 %v3348_v62, %v9058_v51 }
 0x4f8   : > { %v3359_v21 = vmul.f32 %v3342_v3, %v7929_v16  ;;  %v3320_v3 = vmul.f32 %v9066_v44, %v9058_v51 }
 0x4fa   : > { %3376 = vrot.lane.b32.xlu0 %v3359_v21, %s5846_s10 }
 0x4ff   : > { %v3454_v2 = vpop.permute.xlu1 %3453 }
 0x500   : > { %v3471_v9 = vmul.f32 %v3454_v2, %v7929_v16 }
 0x502   : > { %3488 = vrot.lane.b32.xlu1 %v3471_v9, %s5846_s10  ;;  %3382 = vrot.lane.b32.xlu0 %v3362_v48, %s5846_s10 }
 0x507   : > { %v3458_v15 = vpop.permute.xlu1 %3457 }
 0x508   : > { %v3473_v26 = vmul.f32 %v3458_v15, %v7941_v25  ;;  %v3316_v15 = vmul.f32 %v9067_v46, %v7589_v18 }
 0x50a   : > { %3490 = vrot.lane.b32.xlu1 %v3472_v28, %s5846_s10  ;;  %3492 = vrot.lane.b32.xlu2 %v3473_v26, %s5846_s10  ;;  %v9068_v28 = vld [vmem:[#allocation21_spill] sm:$0xff] }
 0x50b   : > { %3484 = vrot.lane.b32.xlu0 %v3469_v33, %s5846_s10  ;;  %v3319_v26 = vmul.f32 %v9068_v28, %v7941_v25 }
 0x50e   : > { %v3236_v1 = vpop.permute.xlu0 %3235 }
 0x50f   : > { %v3460_v0 = vpop.permute.xlu1 %3459  ;;  %v3250_v42 = vmul.f32 %v3236_v1, %v9058_v51 }
 0x510   : > { %v3474_v50 = vmul.f32 %v3460_v0, %v9058_v51  ;;  %v9070_v0 = vld [vmem:[#allocation9_spill] sm:$0xff] }
 0x511   : > { %v3428_v32 = vmul.f32 %v9070_v0, %v7589_v18 }
 0x512   : > { %3266 = vrot.lane.b32.xlu2 %v3248_v30, %s5846_s10  ;;  %3380 = vrot.lane.b32.xlu1 %v3361_v36, %s5846_s10 }
 0x513   : > { %3189 = vperm.xlu0 %5640, %v5798_v40  }
 0x517   : > { %v3373_v41 = vpop.permute.xlu1 %3372 }
 0x51a   : > { %3184 = vperm.xlu2 %5643, %v5799_v22   ;;  %3199 = vperm.xlu1 %5642, %v5800_v6  }
 0x51b   : > { %3268 = vrot.lane.b32.xlu0 %v3249_v29, %s5846_s10  ;;  %v3427_v29 = vmul.f32 %v9069_v5, %v7899_v38 }
 0x522   : > { %3264 = vrot.lane.b32.xlu2 %v3247_v13, %s5846_s10  ;;  %3494 = vrot.lane.b32.xlu1 %v3474_v50, %s5846_s10  ;;  %v9071_v13 = vld [vmem:[#allocation18_spill] sm:$0xff] }
 0x523   : > { %v3431_v50 = vmul.f32 %v9071_v13, %v7941_v25 }
 0x52a   : > { %3174 = vperm.xlu2 %5643, %v5801_v52   ;;  %3194 = vperm.xlu1 %5642, %v5802_v27  }
 0x52c   : > { %v3483_v47 = vpop.permute.xlu2 %3482 }
 0x532   : > { %3179 = vperm.xlu1 %5642, %v5803_v31   ;;  %3270 = vrot.lane.b32.xlu2 %v3250_v42, %s5846_s10  ;;  %v9072_v31 = vld [vmem:[#allocation14_spill] sm:$0xff] }
 0x533   : > { %5675 = vset.pattern.permute.xlu2 %v9061_v39  ;;  %v3429_v39 = vmul.f32 %v9072_v31, %v7929_v16 }
 0x53a   : > { %3262 = vrot.lane.b32.xlu1 %v3246_v59, %s5846_s10  ;;  %v9073_v59 = vld [vmem:[#allocation28_spill] sm:$0xff] }
 0x542   : > { %3169 = vperm.xlu1 %5642, %v5804_v4   ;;  %v9074_v4 = vld [vmem:[#allocation26_spill] sm:$0xff] }
 0x544   : > { %v3375_v60 = vpop.permute.xlu2 %3374  ;;  %v3371_v11 = vpop.permute.xlu0 %3370 }
 0x545   : > { %v3391_v35 = vadd.f32 %v3371_v11, %v3314_v45  ;;  %v3393_v30 = vadd.f32 %v3375_v60, %v3316_v15  ;;  %v9075_v11 = vld [vmem:[#allocation22_spill] sm:$0xff]  ;;  %v3047_v15 = vsel %vm2729_vm6, %v9073_v59, 0.0 }
 0x54a   : > { %5674 = vset.pattern.permute.xlu1 %v9062_v43  ;;  %v3426_v43 = vmul.f32 %v9074_v4, %v7907_v23 }
 0x54c   : > { %v3379_v20 = vpop.permute.xlu2 %3378  ;;  %v3503_v45 = vadd.f32 %v3483_v47, %v3426_v43  ;;  %v2831_v47 = vpop.f32.mrf.mxu0 }
 0x54d   : > { %v3395_v62 = vadd.f32 %v3379_v20, %v3318_v12  ;;  %v3430_v20 = vmul.f32 %v9075_v11, %v7635_v8 }
 0x564   : > { %v3487_v19 = vpop.permute.xlu0 %3486  ;;  %v3493_v37 = vpop.permute.xlu2 %3492 }
 0x565   : > { %v3505_v52 = vadd.f32 %v3487_v19, %v3428_v32  ;;  %v3508_v27 = vadd.f32 %v3493_v37, %v3431_v50  ;;  %v9076_v19 = vld [vmem:[#allocation17_spill] sm:$0xff] }
 0x566   : > { %v3432_v37 = vmul.f32 %v9076_v19, %v9058_v51 }
 0x567   : > { %v5654_v42 = vpack.i.bf16 %v3505_v52, %v3508_v27 }
 0x56c   : > { %v3377_v55 = vpop.permute.xlu0 %3376  ;;  %v7991_v34 = vpop.permute.xlu2 %3266 }
 0x56d   : > { %v3394_v17 = vadd.f32 %v3377_v55, %v3317_v61 }
 0x56f   : > { %v5644_v63 = vpack.i.bf16 %v3391_v35, %v3394_v17  ;;  %v3244_v17 = vmul.f32 %v7913_v7, %v7907_v23 }
 0x571   : > { %5645 = vrot.lane.b32.xlu0 %v5644_v63, %s5860_s24  ;;  %v9077_v63 = vld [vmem:[#allocation19_spill] sm:$0xff] }
 0x572   : > { %v3315_v10 = vmul.f32 %v9077_v63, %v7899_v38 }
 0x574   : > { %v3489_v58 = vpop.permute.xlu1 %3488  ;;  %v3185_v24 = vpop.permute.xlu2 %3184  ;;  %v3392_v12 = vadd.f32 %v3373_v41, %v3315_v10 }
 0x575   : > { %v3383_v21 = vpop.permute.xlu0 %3382  ;;  %v3205_v48 = vmul.f32 %v3185_v24, %v7929_v16  ;;  %v3506_v60 = vadd.f32 %v3489_v58, %v3429_v39  ;;  %v9078_v58 = vld [vmem:[#allocation11_spill] sm:$0xff] }
 0x576   : > { %v3397_v56 = vadd.f32 %v3383_v21, %v3320_v3  ;;  %v8039_v24 = vadd.f32 %v9078_v58, %v2831_v47 }
 0x577   : > { %v5669_v55 = vpack.i.bf16 %v3503_v45, %v3506_v60 }
 0x578   : > { %v5659_v2 = vpack.i.bf16 %v3395_v62, %v3397_v56  ;;  %v2855_v3 = vsel %vm9079_vm0, %v8039_v24, -inf }
 0x57a   : > { %5660 = vrot.lane.b32.xlu2 %v5659_v2, %s5860_s24 }
 0x57c   : > { %v3491_v9 = vpop.permute.xlu1 %3490  ;;  %v3265_v54 = vpop.permute.xlu2 %3264 }
 0x57d   : > { %v8000_v57 = vadd.f32 %v3265_v54, %v3205_v48  ;;  %v3485_v36 = vpop.permute.xlu0 %3484  ;;  %v3507_v53 = vadd.f32 %v3491_v9, %v3430_v20 }
 0x57e   : > { %v3504_v6 = vadd.f32 %v3485_v36, %v3427_v29 }
 0x582   : > { %3260 = vrot.lane.b32.xlu2 %v3245_v14, %s5846_s10 }
 0x584   : > { %v3381_v33 = vpop.permute.xlu1 %3380  ;;  %v3175_v44 = vpop.permute.xlu2 %3174 }
 0x585   : > { %v3396_v40 = vadd.f32 %v3381_v33, %v3319_v26  ;;  %v3190_v56 = vpop.permute.xlu0 %3189 }
 0x587   : > { %v5649_v22 = vpack.i.bf16 %v3393_v30, %v3396_v40  ;;  %v3206_v40 = vmul.f32 %v3190_v56, %v7635_v8 }
 0x589   : > { %5650 = vrot.lane.b32.xlu0 %v5649_v22, %s5860_s24 }
 0x58a   : > { %3547 = vrot.lane.b32.xlu2 %v3504_v6, %s5859_s27  ;;  %v3283_v6 = vadd.f32 %v7991_v34, %v3206_v40 }
 0x58c   : > { %v3200_v1 = vpop.permute.xlu1 %3199  ;;  %v3271_v7 = vpop.permute.xlu2 %3270  ;;  %v3570_v34 = vsel %vm9081_vm3, %v7635_v8, %v3283_v6  ;;  %v3569_v8 = vsel %vm9084_vm11, %v7929_v16, %v8000_v57  ;;  %vm9095_vm3 = vmmov %vm9082_vm2 }
 0x58d   : > { %v3269_v48 = vpop.permute.xlu0 %3268  ;;  %v3208_v30 = vmul.f32 %v3200_v1, %v9058_v51  ;;  %vm9097_vm11 = vmmov %vm9082_vm2 }
 0x58f   : > { %v3285_v5 = vadd.f32 %v3271_v7, %v3208_v30  ;;  %v3588_v30 = vld [vmem:[%s9089_s21] sm:$0xf] }
 0x591   : > { %5655 = vrot.lane.b32.xlu0 %v5654_v42, %s5859_s27  ;;  %v3572_v32 = vsel %vm9080_vm14, %v9058_v51, %v3285_v5  ;;  %vm9094_vm14 = vmmov %vm9082_vm2 }
 0x592   : > { %3119 = vrot.lane.b32.xlu2 %v9073_v59, %s5854_s17 }
 0x594   : > { %v3495_v49 = vpop.permute.xlu1 %3494 }
 0x595   : > { %v3509_v61 = vadd.f32 %v3495_v49, %v3432_v37 }
 0x597   : > { %v5664_v35 = vpack.i.bf16 %v3507_v53, %v3509_v61 }
 0x599   : > { %5665 = vrot.lane.b32.xlu1 %v5664_v35, %s5859_s27  ;;  %5670 = vrot.lane.b32.xlu0 %v5669_v55, %s5859_s27 }
 0x59c   : > { %v3195_v41 = vpop.permute.xlu1 %3194 }
 0x59d   : > { %v3207_v29 = vmul.f32 %v3195_v41, %v7941_v25 }
 0x59f   : > { %v3284_v13 = vadd.f32 %v3269_v48, %v3207_v29 }
 0x5a1   : > { %3258 = vrot.lane.b32.xlu1 %v3244_v17, %s5846_s10  ;;  %v3571_v51 = vsel %vm9082_vm2, %v7941_v25, %v3284_v13 }
 0x5a4   : > { %v3180_v14 = vpop.permute.xlu1 %3179 }
 0x5a9   : > { %3519 = vrot.lane.b32.xlu1 %v3392_v12, %s5860_s24  ;;  %v3203_v12 = vmul.f32 %v3175_v44, %v7899_v38 }
 0x5ac   : > { %v3263_v28 = vpop.permute.xlu1 %3262 }
 0x5b1   : > { %3071 = vrot.lane.b32.xlu1 %v9073_v59, %s5847_s16  ;;  %v3204_v59 = vmul.f32 %v3180_v14, %v7589_v18 }
 0x5b3   : > { %v3281_v20 = vadd.f32 %v3263_v28, %v3204_v59 }
 0x5b4   : > { %v3170_v33 = vpop.permute.xlu1 %3169 }
 0x5b5   : > { %v3202_v45 = vmul.f32 %v3170_v33, %v7907_v23  ;;  %v3568_v47 = vsel %vm9085_vm12, %v7589_v18, %v3281_v20  ;;  %vm9098_vm12 = vmmov %vm9082_vm2 }
 0x5c3   : > { %2856 = vmax.xlane.f32.xlu0 %v2855_v3 }
 0x5d4   : > { %v5661_v21 = vpop.permute.xlu2 %5660 }
 0x5d5   : > { %v5662_v22 = vunpack.i.l.bf16 %v5661_v21  ;;  %v5663_v50 = vunpack.i.h.bf16 %v5661_v21 }
 0x5d7   : > { %v3579_v42 = vsel %vm2729_vm6, %v3572_v32, %v5662_v22  ;;  %v3577_v11 = vsel %vm2729_vm6, %v3570_v34, %v5663_v50 }
 0x5dc   : > { %v3261_v62 = vpop.permute.xlu2 %3260 }
 0x5dd   : > { %v3280_v7 = vadd.f32 %v3261_v62, %v3203_v12  ;;  %v3724_v12 = vld [vmem:[%s6099_s1 + $0x40] sm:$0xff] }
 0x5df   : > { %v3567_v18 = vsel %vm9087_vm9, %v7899_v38, %v3280_v7  ;;  %v3788_v7 = vpack.c.bf16 %v3724_v12, %v3724_v12 }
 0x5e3   : > { %v5646_v46 = vpop.permute.xlu0 %5645 }
 0x5e4   : > { %v8043_v2 = vpop.permute.xlu2 %3547  ;;  %v5647_v60 = vunpack.i.l.bf16 %v5646_v46  ;;  %v5648_v21 = vunpack.i.h.bf16 %v5646_v46 }
 0x5e6   : > { %v3576_v10 = vsel %vm2729_vm6, %v3569_v8, %v5647_v60 }
 0x5ec   : > { %v3120_v9 = vpop.permute.xlu2 %3119 }
 0x5ed   : > { %v3150_v54 = vsel %vm2729_vm6, %v3120_v9, 0.0 }
 0x5ee   : > { %3151 = vadd.xlane.f32.xlu0 %v3150_v54 }
 0x5f6   : > { %3048 = vadd.xlane.f32.xlu0 %v3047_v15 }
 0x5fb   : > { %v5651_v26 = vpop.permute.xlu0 %5650 }
 0x5fc   : > { %v5652_v1 = vunpack.i.l.bf16 %v5651_v26  ;;  %v5653_v53 = vunpack.i.h.bf16 %v5651_v26 }
 0x5fe   : > { %v3578_v61 = vsel %vm2729_vm6, %v3571_v51, %v5652_v1  ;;  %v3575_v3 = vsel %vm2729_vm6, %v3568_v47, %v5653_v53  ;;  %v3725_v47 = vld [vmem:[%s6099_s1 + $0x48] sm:$0xff] }
 0x603   : > { %v5656_v36 = vpop.permute.xlu0 %5655 }
 0x604   : > { %v5657_v4 = vunpack.i.l.bf16 %v5656_v36  ;;  %v5658_v55 = vunpack.i.h.bf16 %v5656_v36 }
 0x606   : > { %v3586_v35 = vsel %vm3580_vm4, %v3578_v61, %v5657_v4  ;;  %v3583_v57 = vsel %vm3580_vm4, %v3575_v3, %v5658_v55 }
 0x60b   : > { %v5666_v0 = vpop.permute.xlu1 %5665  ;;  %v5671_v31 = vpop.permute.xlu0 %5670 }
 0x60c   : > { %v5667_v52 = vunpack.i.l.bf16 %v5666_v0  ;;  %v5668_v27 = vunpack.i.h.bf16 %v5666_v0  ;;  %v5672_v19 = vunpack.i.l.bf16 %v5671_v31  ;;  %v5673_v44 = vunpack.i.h.bf16 %v5671_v31 }
 0x60e   : > { %v3587_v39 = vsel %vm3580_vm4, %v3579_v42, %v5667_v52  ;;  %v3585_v49 = vsel %vm3580_vm4, %v3577_v11, %v5668_v27  ;;  %v3584_v58 = vsel %vm3580_vm4, %v3576_v10, %v5672_v19 }
 0x60f   : > { %v3592_v43 = vpack.c.bf16 %v3587_v39, %v3587_v39  ;;  %v3591_v63 = vpack.c.bf16 %v3586_v35, %v3585_v49  ;;  %v3590_v56 = vpack.c.bf16 %v3584_v58, %v3583_v57  ;;  %v3716_v58 = vld [vmem:[%s6099_s1] sm:$0xff]  ;;  %v3717_v57 = vld [vmem:[%s6099_s1 + $0x8] sm:$0xff] }
 0x611   : > { %v3598_v37 = vsel %vm9083_vm10, %v3592_v43, 0  ;;  %vm9096_vm10 = vmmov %vm9082_vm2 }
 0x612   : > { %3604 = vmatpush.bf16.msrb.mxu3 %v3598_v37 }
 0x613   : > { %v3259_v25 = vpop.permute.xlu1 %3258 }
 0x614   : > { %v3279_v17 = vadd.f32 %v3259_v25, %v3202_v45 }
 0x616   : > { %3605 = vmatpush.bf16.msrb.mxu3 %v3591_v63  ;;  %v3566_v16 = vsel %vm9086_vm13, %v7907_v23, %v3279_v17 }
 0x617   : > { %v3573_v41 = vsel %vm2729_vm6, %v3566_v16, %v5648_v21  ;;  %v3789_v16 = vpack.c.bf16 %v3725_v47, %v3725_v47  ;;  %v3780_v21 = vpack.c.bf16 %v3716_v58, %v3716_v58 }
 0x618   : > { %v3581_v54 = vsel %vm3580_vm4, %v3573_v41, %v5673_v44  ;;  %v3845_v41 = vld [vmem:[%s9093_s22 + $0x8] sm:$0xff]  ;;  %v3781_v44 = vpack.c.bf16 %v3717_v57, %v3717_v57 }
 0x61a   : > { %3606 = vmatpush.bf16.msrb.mxu3 %v3590_v56  ;;  %v3844_v56 = vld [vmem:[%s9093_s22] sm:$0xff] }
 0x61b   : > { %v3520_v48 = vpop.permute.xlu1 %3519 }
 0x61c   : > { %v3574_v9 = vsel %vm2729_vm6, %v3567_v18, %v3520_v48  ;;  %v3846_v48 = vpack.c.bf16 %v3845_v41, %v3844_v56  ;;  %v4013_v18 = vunpack.c.l.b16 %v3788_v7 }
 0x61d   : > { %v3582_v62 = vsel %vm3580_vm4, %v3574_v9, %v8043_v2  ;;  %v4014_v9 = vunpack.c.l.b16 %v3789_v16 }
 0x61e   : > { %v3589_v23 = vpack.c.bf16 %v3582_v62, %v3581_v54  ;;  %v3855_v54 = vunpack.c.l.b16 %v3780_v21  ;;  %v3856_v62 = vunpack.c.l.b16 %v3781_v44 }
 0x620   : > { %3607 = vmatpush.bf16.msrb.mxu3 %v3589_v23  ;;  %v4015_v23 = vpack.c.b16 %v4014_v9, %v4013_v18 }
 0x622   : > { %4024 = vmatpush.bf16.msra.mxu0 %v4015_v23 }
 0x623   : > { %v3072_v14 = vpop.permute.xlu1 %3071  ;;  %5477 = vmatmul.msk.bf16.vlgmr.msrb.gmra.mxu3 %vm3593_vm8, %v3588_v30  ;;  %vm9100_vm8 = vmmov %vm9082_vm2 }
 0x624   : > { %v3102_v46 = vsel %vm2729_vm6, %v3072_v14, 0.0  ;;  %3898 = vmatpush.bf16.msra.mxu3 %v3846_v48  ;;  %v3857_v14 = vpack.c.b16 %v3856_v62, %v3855_v54 }
 0x625   : > { %3103 = vadd.xlane.f32.xlu2 %v3102_v46 }
 0x626   : > { %3872 = vmatpush.bf16.msra.mxu2 %v3857_v14 }
 0x636   : > { %v2857_v15 = vpop.xlane.xlu0 %2856 }
 0x637   : > { %v2865_v28 = vsub.f32 %v8039_v24, %v2857_v15 }
 0x639   : > { %v2880_v26 = vmul.f32 1.442695, %v2865_v28 }
 0x63b   : > { %5777 = vpow2.f32 %v2880_v26  ;;  %v3732_v26 = vld [vmem:[%s6099_s1 + $0x80] sm:$0xff] }
 0x641   : > { %v5778_v33 = vpop.eup %5777 }
 0x642   : > { %v2903_v38 = vsel %vm9088_vm7, %v5778_v33, 0.0  ;;  %vm9099_vm7 = vmmov %vm9082_vm2 }
 0x643   : > { %2904 = vadd.xlane.f32.xlu1 %v2903_v38  ;;  %v3796_v38 = vpack.c.bf16 %v3732_v26, %v3732_v26 }
 0x661   : > { %v3152_v5 = vpop.xlane.xlu0 %3151 }
 0x669   : > { %v3049_v27 = vpop.xlane.xlu0 %3048 }
 0x698   : > { %v3104_v42 = vpop.xlane.xlu2 %3103 }
 0x6a6   : > { %v8094_v59 = vpop.f32.mrf.mxu3 }
 0x6ae   : > { %v3611_v4 = vpop.f32.mrf.mxu3 }
 0x6b6   : > { %v2905_v2 = vpop.xlane.xlu1 %2904 }
 0x6b7   : > { %5779 = vrcp.f32 %v2905_v2  ;;  %v3022_v22 = vand.u32 2147483648, %v2905_v2  ;;  %v3020_v6 = vand.u32 2147483647, %v2905_v2  ;;  %vm3016_vm1 = vweird.f32 %v2905_v2 }
 0x6b9   : > { %v3023_v32 = vor.u32 1.1754944e-38, %v3022_v22  ;;  %vm3021_vm0 = vcmp.eq.f32.partialorder %v3020_v6, 8.507059e+37  ;;  %v3722_v22 = vld [vmem:[%s6099_s1 + $0x30] sm:$0xff] }
 0x6bd   : > { %v5780_v36 = vpop.eup %5779 }
 0x6be   : > { %v3012_v40 = vmul.f32 %v5780_v36, %v2905_v2  ;;  %vm3017_vm5 = vweird.f32 %v5780_v36  ;;  %v4149_v2 = vunpack.c.l.b16 %v3796_v38  ;;  %v3749_v38 = vld [vmem:[%s6099_s1 + $0x108] sm:$0xff] }
 0x6bf   : > { %vm3018_vm15 = vmor %vm3016_vm1, %vm3017_vm5 }
 0x6c0   : > { %v3013_v29 = vsub.f32 1.0, %v3012_v40  ;;  %vm9101_vm5 = vmmov %vm9082_vm2 }
 0x6c1   : > { %vm9102_vm1 = vmmov %vm9082_vm2 }
 0x6c2   : > { %v3014_v24 = vmul.f32 %v5780_v36, %v3013_v29  ;;  %v3721_v29 = vld [vmem:[%s6099_s1 + $0x28] sm:$0xff] }
 0x6c3   : > { %v3785_v6 = vpack.c.bf16 %v3721_v29, %v3721_v29  ;;  %v3736_v29 = vld [vmem:[%s6099_s1 + $0xa0] sm:$0xff] }
 0x6c4   : > { %v3015_v0 = vadd.f32 %v5780_v36, %v3014_v24 }
 0x6c6   : > { %v3019_v13 = vsel %vm3018_vm15, %v5780_v36, %v3015_v0  ;;  %v3723_v0 = vld [vmem:[%s6099_s1 + $0x38] sm:$0xff]  ;;  %vm9103_vm15 = vmmov %vm9102_vm1 }
 0x6c7   : > { %v3024_v50 = vsel %vm3021_vm0, %v3023_v32, %v3019_v13  ;;  %v3786_v32 = vpack.c.bf16 %v3722_v22, %v3722_v22  ;;  %v3787_v13 = vpack.c.bf16 %v3723_v0, %v3723_v0  ;;  %vm9104_vm0 = vmmov %vm9102_vm1  ;;  %v3737_v22 = vld [vmem:[%s6099_s1 + $0xa8] sm:$0xff] }
 0x6c8   : > { %v3025_v52 = vmul.f32 %v5778_v33, %v3024_v50  ;;  %v3733_v33 = vld [vmem:[%s6099_s1 + $0x88] sm:$0xff]  ;;  %v3801_v0 = vpack.c.bf16 %v3737_v22, %v3737_v22  ;;  %v3755_v22 = vld [vmem:[%s6099_s1 + $0x138] sm:$0xff] }
 0x6c9   : > { %v3797_v30 = vpack.c.bf16 %v3733_v33, %v3733_v33  ;;  %v3748_v33 = vld [vmem:[%s6099_s1 + $0x100] sm:$0xff] }
 0x6ca   : > { %v3626_v1 = vmul.f32 %v3152_v5, %v3025_v52  ;;  %v3614_v31 = vmul.f32 %v3049_v27, %v3025_v52  ;;  %v3620_v39 = vmul.f32 %v3104_v42, %v3025_v52  ;;  %v3720_v5 = vld [vmem:[%s6099_s1 + $0x20] sm:$0xff]  ;;  %v3946_v52 = vunpack.c.l.b16 %v3785_v6 }
 0x6cb   : > { %v4150_v36 = vunpack.c.l.b16 %v3797_v30  ;;  %v3784_v24 = vpack.c.bf16 %v3720_v5, %v3720_v5  ;;  %v3979_v27 = vunpack.c.l.b16 %v3786_v32  ;;  %v3980_v42 = vunpack.c.l.b16 %v3787_v13  ;;  %v3739_v32 = vld [vmem:[%s6099_s1 + $0xb8] sm:$0xff] }
 0x6cc   : > { %3628 = vrot.lane.b32.xlu2 %v3626_v1, %s5861_s0  ;;  %3616 = vrot.lane.b32.xlu0 %v3614_v31, %s5860_s24  ;;  %v3812_v30 = vpack.c.bf16 %v3748_v33, %v3748_v33  ;;  %v3800_v6 = vpack.c.bf16 %v3736_v29, %v3736_v29 }
 0x6cd   : > { %3622 = vrot.lane.b32.xlu1 %v3620_v39, %s5859_s27  ;;  %v4151_v40 = vpack.c.b16 %v4150_v36, %v4149_v2  ;;  %v3945_v50 = vunpack.c.l.b16 %v3784_v24  ;;  %v3981_v31 = vpack.c.b16 %v3980_v42, %v3979_v27  ;;  %v3813_v2 = vpack.c.bf16 %v3749_v38, %v3749_v38  ;;  %v3738_v24 = vld [vmem:[%s6099_s1 + $0xb0] sm:$0xff] }
 0x6ce   : > { %v4421_v36 = vunpack.c.l.b16 %v3812_v30  ;;  %v3802_v13 = vpack.c.bf16 %v3738_v24, %v3738_v24  ;;  %v4218_v27 = vunpack.c.l.b16 %v3801_v0 }
 0x6cf   : > { %4160 = vmatpush.bf16.msrb.mxu0 %v4151_v40  ;;  %v3947_v1 = vpack.c.b16 %v3946_v52, %v3945_v50  ;;  %3990 = vmatpush.bf16.msrb.mxu3 %v3981_v31  ;;  %v4422_v40 = vunpack.c.l.b16 %v3813_v2  ;;  %v3803_v50 = vpack.c.bf16 %v3739_v32, %v3739_v32  ;;  %v4217_v52 = vunpack.c.l.b16 %v3800_v6  ;;  %v3752_v2 = vld [vmem:[%s6099_s1 + $0x120] sm:$0xff] }
 0x6d0   : > { %v4251_v42 = vunpack.c.l.b16 %v3802_v13  ;;  %v3819_v6 = vpack.c.bf16 %v3755_v22, %v3755_v22 }
 0x6d1   : > { %3956 = vmatpush.bf16.msrb.mxu2 %v3947_v1  ;;  %v4423_v5 = vpack.c.b16 %v4422_v40, %v4421_v36  ;;  %v4252_v1 = vunpack.c.l.b16 %v3803_v50  ;;  %v4219_v31 = vpack.c.b16 %v4218_v27, %v4217_v52  ;;  %v3753_v36 = vld [vmem:[%s6099_s1 + $0x128] sm:$0xff]  ;;  %v3754_v40 = vld [vmem:[%s6099_s1 + $0x130] sm:$0xff] }
 0x6d2   : > { %v3817_v29 = vpack.c.bf16 %v3753_v36, %v3753_v36  ;;  %v3818_v24 = vpack.c.bf16 %v3754_v40, %v3754_v40  ;;  %v4524_v50 = vunpack.c.l.b16 %v3819_v6  ;;  %v3734_v40 = vld [vmem:[%s6099_s1 + $0x90] sm:$0xff] }
 0x6d4   : > { %v4490_v32 = vunpack.c.l.b16 %v3817_v29  ;;  %v4523_v13 = vunpack.c.l.b16 %v3818_v24  ;;  %v3798_v29 = vpack.c.bf16 %v3734_v40, %v3734_v40 }
 0x6d6   : > { %v4183_v6 = vunpack.c.l.b16 %v3798_v29 }
 0x726   : > { %v3629_v43 = vpop.permute.xlu2 %3628 }
 0x727   : > { %v8097_v34 = vadd.f32 %v3629_v43, %v8094_v59  ;;  %v3740_v43 = vld [vmem:[%s6099_s1 + $0xc0] sm:$0xff] }
 0x729   : > { %9090 = vst [vmem:[#allocation25_spill] sm:$0xff] %v8097_v34  ;;  %3692 = vrot.lane.b32.xlu2 %v8097_v34, %s5847_s16  ;;  %v3639_v3 = vmul.f32 %v8097_v34, %v8097_v34 }
 0x73e   : > { %v3617_v11 = vpop.permute.xlu0 %3616 }
 0x73f   : > { %v3623_v60 = vpop.permute.xlu1 %3622  ;;  %v8107_v20 = vadd.f32 %v3617_v11, %v8094_v59 }
 0x740   : > { %v8102_v51 = vadd.f32 %v3623_v60, %v8094_v59  ;;  %v3741_v60 = vld [vmem:[%s6099_s1 + $0xc8] sm:$0xff] }
 0x741   : > { %9092 = vst [vmem:[#allocation13_spill] sm:$0xff] %v8107_v20  ;;  %v3632_v11 = vmul.f32 %v8107_v20, %v8107_v20 }
 0x742   : > { %9091 = vst [vmem:[#allocation12_spill] sm:$0xff] %v8102_v51  ;;  %3687 = vrot.lane.b32.xlu1 %v8102_v51, %s5846_s10  ;;  %v3633_v25 = vmul.f32 %v8102_v51, %v8102_v51 }
 0x783   : > { %v3693_v49 = vpop.permute.xlu2 %3692 }
 0x784   : > { %v4966_v46 = vpack.c.bf16 %v3693_v49, %v3693_v49 }
 0x7b4   : > { %v3688_v19 = vpop.permute.xlu1 %3687 }
 0x7b5   : > { %v3690_v37 = vadd.f32 %v3688_v19, %v8107_v20  ;;  %v4965_v35 = vpack.c.bf16 %v3688_v19, %v8107_v20  ;;  %v3804_v19 = vpack.c.bf16 %v3740_v43, %v3740_v43  ;;  %v3756_v43 = vld [vmem:[%s6099_s1 + $0x140] sm:$0xff] }
 0x7b7   : > { %v3695_v45 = vadd.f32 %v3693_v49, %v3690_v37  ;;  %v3805_v37 = vpack.c.bf16 %v3741_v60, %v3741_v60  ;;  %v3757_v60 = vld [vmem:[%s6099_s1 + $0x148] sm:$0xff] }
 0x7b9   : > { %3702 = vrot.lane.b32.xlu1 %v3695_v45, %s5859_s27  ;;  %3698 = vrot.lane.b32.xlu0 %v3695_v45, %s5860_s24  ;;  %v3696_v17 = vmul.f32 %v3695_v45, %v8107_v20  ;;  %v4285_v45 = vunpack.c.l.b16 %v3804_v19  ;;  %v3821_v19 = vpack.c.bf16 %v3757_v60, %v3757_v60  ;;  %v3726_v60 = vld [vmem:[%s6099_s1 + $0x50] sm:$0xff] }
 0x82b   : > { %v3703_v53 = vpop.permute.xlu1 %3702  ;;  %v3699_v61 = vpop.permute.xlu0 %3698 }
 0x82c   : > { %v3705_v8 = vmul.f32 %v3703_v53, %v8097_v34  ;;  %v3701_v55 = vmul.f32 %v3699_v61, %v8102_v51  ;;  %v4286_v53 = vunpack.c.l.b16 %v3805_v37 }
 0x82e   : > { %3711 = vrot.lane.b32.xlu0 %v3705_v8, %s5847_s16  ;;  %3707 = vrot.lane.b32.xlu2 %v3701_v55, %s5846_s10  ;;  %v4287_v55 = vpack.c.b16 %v4286_v53, %v4285_v45  ;;  %v3658_v53 = vld [vmem:[%s9105_s20] sm:$0xff] }
 0x836   : > { %3635 = vrot.lane.b32.xlu0 %v3633_v25, %s5846_s10 }
 0x83e   : > { %4970 = vrot.lane.b32.xlu0 %v4965_v35, %s5846_s10 }
 0x888   : > { %v3708_v63 = vpop.permute.xlu2 %3707 }
 0x889   : > { %v3714_v10 = vpack.c.bf16 %v3708_v63, %v3696_v17  ;;  %v3728_v17 = vld [vmem:[%s6099_s1 + $0x60] sm:$0xff]  ;;  %v3729_v63 = vld [vmem:[%s6099_s1 + $0x68] sm:$0xff] }
 0x88a   : > { %v3792_v47 = vpack.c.bf16 %v3728_v17, %v3728_v17  ;;  %v3793_v58 = vpack.c.bf16 %v3729_v63, %v3729_v63  ;;  %v3746_v17 = vld [vmem:[%s6099_s1 + $0xf0] sm:$0xff] }
 0x88b   : > { %3849 = vrot.lane.b32.xlu1 %v3714_v10, %s5846_s10  ;;  %v3730_v10 = vld [vmem:[%s6099_s1 + $0x70] sm:$0xff] }
 0x88c   : > { %v3794_v7 = vpack.c.bf16 %v3730_v10, %v3730_v10  ;;  %v4081_v21 = vunpack.c.l.b16 %v3792_v47  ;;  %v4082_v56 = vunpack.c.l.b16 %v3793_v58  ;;  %v3810_v47 = vpack.c.bf16 %v3746_v17, %v3746_v17 }
 0x88e   : > { %v4115_v41 = vunpack.c.l.b16 %v3794_v7  ;;  %v4083_v18 = vpack.c.b16 %v4082_v56, %v4081_v21 }
 0x893   : > { %3641 = vrot.lane.b32.xlu1 %v3639_v3, %s5847_s16  ;;  %v3731_v3 = vld [vmem:[%s6099_s1 + $0x78] sm:$0xff] }
 0x894   : > { %v3795_v57 = vpack.c.bf16 %v3731_v3, %v3731_v3 }
 0x896   : > { %v4116_v48 = vunpack.c.l.b16 %v3795_v57 }
 0x898   : > { %v4117_v54 = vpack.c.b16 %v4116_v48, %v4115_v41  ;;  %v3718_v41 = vld [vmem:[%s6099_s1 + $0x10] sm:$0xff] }
 0x899   : > { %v3782_v48 = vpack.c.bf16 %v3718_v41, %v3718_v41  ;;  %v3762_v41 = vld [vmem:[%s6099_s1 + $0x170] sm:$0xff] }
 0x89b   : > { %4972 = vrot.lane.b32.xlu1 %v4966_v46, %s5846_s10 }
 0x8a0   : > { %v3712_v15 = vpop.permute.xlu0 %3711 }
 0x8a1   : > { %v3715_v28 = vpack.c.bf16 %v3712_v15, %v3712_v15 }
 0x8a3   : > { %3851 = vrot.lane.b32.xlu2 %v3715_v28, %s5846_s10 }
 0x8a8   : > { %v3636_v4 = vpop.permute.xlu0 %3635 }
 0x8a9   : > { %v3638_v49 = vadd.f32 %v3636_v4, %v3632_v11  ;;  %v4253_v4 = vpack.c.b16 %v4252_v1, %v4251_v42  ;;  %v3820_v11 = vpack.c.bf16 %v3756_v43, %v3756_v43  ;;  %v4525_v1 = vpack.c.b16 %v4524_v50, %v4523_v13  ;;  %v4964_v13 = vld [vmem:[%s6104_s3 + $0x8] sm:$0xff] }
 0x8ab   : > { %v4557_v37 = vunpack.c.l.b16 %v3820_v11  ;;  %v3727_v11 = vld [vmem:[%s6099_s1 + $0x58] sm:$0xff] }
 0x8fd   : > { %v8140_v39 = vpop.permute.xlu1 %3849  ;;  %v8152_v35 = vpop.permute.xlu2 %3851 }
 0x8fe   : > { %5479 = vmatmul.msk.bf16.vlgmr.msra.gmra.mxu2 %vm9094_vm14, %v8140_v39  ;;  %5481 = vmatmul.msk.bf16.vlgmr.msra.gmra.mxu3 %vm9095_vm3, %v8140_v39  ;;  %vm9106_vm14 = vmmov %vm9104_vm0 }
 0x8ff   : > { %5489 = vmatmul.msk.bf16.vlgmr.msra.gmra.mxu0 %vm9082_vm2, %v8140_v39  ;;  %4092 = vmatpush.bf16.msra.mxu2 %v4083_v18  ;;  %vm9107_vm3 = vmmov %vm9104_vm0 }
 0x900   : > { %4296 = vmatpush.bf16.msra.mxu0 %v4287_v55  ;;  %4126 = vmatpush.bf16.msra.mxu3 %v4117_v54  ;;  %vm9108_vm2 = vmmov %vm9104_vm0  ;;  %v3744_v55 = vld [vmem:[%s6099_s1 + $0xe0] sm:$0xff] }
 0x901   : > { %v3808_v63 = vpack.c.bf16 %v3744_v55, %v3744_v55 }
 0x903   : > { %v4353_v3 = vunpack.c.l.b16 %v3808_v63 }
 0x905   : > { %v3642_v61 = vpop.permute.xlu1 %3641 }
 0x906   : > { %v3644_v8 = vadd.f32 %v3642_v61, %v3638_v49  ;;  %v4558_v49 = vunpack.c.l.b16 %v3821_v19  ;;  %v3659_v61 = vld [vmem:[%s9105_s20 + $0x8] sm:$0xff]  ;;  %v3790_v19 = vpack.c.bf16 %v3726_v60, %v3726_v60 }
 0x908   : > { %v3645_v25 = vadd.f32 1e-12, %v3644_v8  ;;  %v4559_v45 = vpack.c.b16 %v4558_v49, %v4557_v37  ;;  %v3661_v8 = vpack.c.bf16 %v3659_v61, %v3658_v53  ;;  %v3791_v37 = vpack.c.bf16 %v3727_v11, %v3727_v11  ;;  %v3772_v61 = vld [vmem:[%s6099_s1 + $0x1c0] sm:$0xff] }
 0x909   : > { %v3836_v55 = vpack.c.bf16 %v3772_v61, %v3772_v61  ;;  %v3769_v61 = vld [vmem:[%s6099_s1 + $0x1a8] sm:$0xff] }
 0x90a   : > { %5781 = vrsqrt.f32 %v3645_v25  ;;  %vm3653_vm13 = vcmp.eq.f32.partialorder %v3645_v25, inf  ;;  %v3656_v46 = vand.u32 2147483648, %v3645_v25  ;;  %vm3655_vm9 = vcmp.eq.f32.partialorder %v3645_v25, 0.0  ;;  %3679 = vmatpush.bf16.msra.mxu1 %v3661_v8  ;;  %v3773_v8 = vld [vmem:[%s6099_s1 + $0x1c8] sm:$0xff] }
 0x90b   : > { %v4048_v53 = vunpack.c.l.b16 %v3791_v37  ;;  %v4829_v63 = vunpack.c.l.b16 %v3836_v55 }
 0x90e   : > { %5480 = vmatmul.msk.bf16.gmra.mxu2 %vm9096_vm10, %v8152_v35  ;;  %5482 = vmatmul.msk.bf16.gmra.mxu3 %vm9097_vm11, %v8152_v35  ;;  %vm9109_vm10 = vmmov %vm9104_vm0 }
 0x90f   : > { %5490 = vmatmul.msk.bf16.gmra.mxu0 %vm9098_vm12, %v8152_v35  ;;  %vm9110_vm11 = vmmov %vm9104_vm0 }
 0x910   : > { %v5782_v12 = vpop.eup %5781  ;;  %vm9111_vm12 = vmmov %vm9104_vm0 }
 0x911   : > { %v3647_v16 = vmul.f32 %v5782_v12, %v3645_v25 }
 0x913   : > { %v3648_v44 = vmul.f32 %v5782_v12, %v3647_v16  ;;  %v4387_v16 = vunpack.c.l.b16 %v3810_v47 }
 0x915   : > { %v3649_v9 = vmul.f32 0.5, %v3648_v44  ;;  %v3719_v44 = vld [vmem:[%s6099_s1 + $0x18] sm:$0xff] }
 0x916   : > { %v3783_v18 = vpack.c.bf16 %v3719_v44, %v3719_v44 }
 0x917   : > { %v3650_v62 = vsub.f32 1.5, %v3649_v9  ;;  %v3911_v9 = vunpack.c.l.b16 %v3782_v48 }
 0x918   : > { %v3912_v54 = vunpack.c.l.b16 %v3783_v18  ;;  %v3763_v18 = vld [vmem:[%s6099_s1 + $0x178] sm:$0xff] }
 0x919   : > { %v3651_v23 = vmul.f32 %v5782_v12, %v3650_v62  ;;  %v3747_v12 = vld [vmem:[%s6099_s1 + $0xf8] sm:$0xff]  ;;  %v3764_v62 = vld [vmem:[%s6099_s1 + $0x180] sm:$0xff] }
 0x91a   : > { %v3811_v58 = vpack.c.bf16 %v3747_v12, %v3747_v12 }
 0x91b   : > { %v3652_v14 = vmul.f32 %v3651_v23, %v3645_v25  ;;  %v3765_v23 = vld [vmem:[%s6099_s1 + $0x188] sm:$0xff] }
 0x91c   : > { %v4388_v57 = vunpack.c.l.b16 %v3811_v58 }
 0x91d   : > { %v3654_v15 = vsel %vm3653_vm13, %v3645_v25, %v3652_v14  ;;  %v3745_v25 = vld [vmem:[%s6099_s1 + $0xe8] sm:$0xff]  ;;  %vm9112_vm13 = vmmov %vm9104_vm0  ;;  %v3828_v14 = vpack.c.bf16 %v3764_v62, %v3764_v62 }
 0x91e   : > { %5485 = vmatmul.msk.bf16.vlgmr.msrb.gmra.mxu2 %vm9099_vm7, %v8140_v39  ;;  %5487 = vmatmul.msk.bf16.vlgmr.msrb.gmra.mxu3 %vm9100_vm8, %v8140_v39  ;;  %v3657_v28 = vsel %vm3655_vm9, %v3656_v46, %v3654_v15  ;;  %v3809_v10 = vpack.c.bf16 %v3745_v25, %v3745_v25  ;;  %vm9113_vm9 = vmmov %vm9104_vm0  ;;  %v4389_v56 = vpack.c.b16 %v4388_v57, %v4387_v16 }
 0x91f   : > { %5497 = vmatmul.msk.bf16.vlgmr.msrb.gmra.mxu0 %vm9101_vm5, %v8140_v39  ;;  %v3660_v26 = vpack.c.bf16 %v3657_v28, %v3657_v28  ;;  %4228 = vmatpush.bf16.msrb.mxu2 %v4219_v31  ;;  %vm9114_vm7 = vmmov %vm9104_vm0  ;;  %v3829_v46 = vpack.c.bf16 %v3765_v23, %v3765_v23  ;;  %v3913_v15 = vpack.c.b16 %v3912_v54, %v3911_v9  ;;  %v4693_v28 = vunpack.c.l.b16 %v3828_v14 }
 0x920   : > { %4432 = vmatpush.bf16.msrb.mxu0 %v4423_v5  ;;  %4262 = vmatpush.bf16.msrb.mxu3 %v4253_v4  ;;  %v4354_v7 = vunpack.c.l.b16 %v3809_v10  ;;  %vm9115_vm8 = vmmov %vm9104_vm0  ;;  %v3816_v5 = vpack.c.bf16 %v3752_v2, %v3752_v2  ;;  %v3837_v25 = vpack.c.bf16 %v3773_v8, %v3773_v8  ;;  %v3826_v9 = vpack.c.bf16 %v3762_v41, %v3762_v41  ;;  %v3770_v8 = vld [vmem:[%s6099_s1 + $0x1b0] sm:$0xff] }
 0x921   : > { %3667 = vrot.lane.b32.xlu2 %v3660_v26, %s5846_s10  ;;  %vm9116_vm5 = vmmov %vm9104_vm0  ;;  %v4694_v26 = vunpack.c.l.b16 %v3829_v46  ;;  %3922 = vmatpush.bf16.msrb.mxu1 %v3913_v15  ;;  %v3827_v54 = vpack.c.bf16 %v3763_v18, %v3763_v18 }
 0x922   : > { %v4355_v21 = vpack.c.b16 %v4354_v7, %v4353_v3  ;;  %v4489_v0 = vunpack.c.l.b16 %v3816_v5  ;;  %v4830_v10 = vunpack.c.l.b16 %v3837_v25  ;;  %v4659_v14 = vunpack.c.l.b16 %v3826_v9  ;;  %v3735_v5 = vld [vmem:[%s6099_s1 + $0x98] sm:$0xff] }
 0x923   : > { %v4695_v33 = vpack.c.b16 %v4694_v26, %v4693_v28  ;;  %v4660_v46 = vunpack.c.l.b16 %v3827_v54  ;;  %v3799_v22 = vpack.c.bf16 %v3735_v5, %v3735_v5  ;;  %v3833_v25 = vpack.c.bf16 %v3769_v61, %v3769_v61  ;;  %v3742_v54 = vld [vmem:[%s6099_s1 + $0xd0] sm:$0xff]  ;;  %v4971_v61 = vpop.permute.xlu0 %4970 }
 0x924   : > { %v4491_v42 = vpack.c.b16 %v4490_v32, %v4489_v0  ;;  %v4831_v58 = vpack.c.b16 %v4830_v10, %v4829_v63  ;;  %v4963_v32 = vld [vmem:[%s6104_s3] sm:$0xff]  ;;  %v3834_v63 = vpack.c.bf16 %v3770_v8, %v3770_v8 }
 0x925   : > { %v4184_v0 = vunpack.c.l.b16 %v3799_v22  ;;  %v4967_v50 = vpack.c.bf16 %v4964_v13, %v4963_v32  ;;  %v3776_v13 = vld [vmem:[%s6099_s1 + $0x1e0] sm:$0xff] }
 0x92e   : > { %5486 = vmatmul.msk.bf16.gmra.mxu2 %vm9102_vm1, %v8152_v35  ;;  %5488 = vmatmul.msk.bf16.gmra.mxu3 %vm9103_vm15, %v8152_v35  ;;  %vm9117_vm1 = vmmov %vm9104_vm0 }
 0x92f   : > { %5498 = vmatmul.msk.bf16.gmra.mxu0 %vm9104_vm0, %v8152_v35  ;;  %vm9118_vm15 = vmmov %vm9104_vm0 }
 0x93e   : > { %5493 = vmatmul.msk.bf16.vlgmr.msra.gmra.mxu2 %vm9106_vm14, %v8140_v39  ;;  %5495 = vmatmul.msk.bf16.vlgmr.msra.gmra.mxu3 %vm9107_vm3, %v8140_v39  ;;  %vm9119_vm14 = vmmov %vm9104_vm0 }
 0x93f   : > { %5505 = vmatmul.msk.bf16.vlgmr.msra.gmra.mxu0 %vm9108_vm2, %v8140_v39  ;;  %4364 = vmatpush.bf16.msra.mxu2 %v4355_v21  ;;  %vm9120_vm3 = vmmov %vm9104_vm0  ;;  %v3760_v21 = vld [vmem:[%s6099_s1 + $0x160] sm:$0xff] }
 0x940   : > { %4568 = vmatpush.bf16.msra.mxu0 %v4559_v45  ;;  %4398 = vmatpush.bf16.msra.mxu3 %v4389_v56  ;;  %vm9121_vm2 = vmmov %vm9104_vm0  ;;  %v4047_v45 = vunpack.c.l.b16 %v3790_v19  ;;  %v3761_v56 = vld [vmem:[%s6099_s1 + $0x168] sm:$0xff]  ;;  %v3824_v44 = vpack.c.bf16 %v3760_v21, %v3760_v21 }
 0x941   : > { %v3825_v48 = vpack.c.bf16 %v3761_v56, %v3761_v56 }
 0x942   : > { %v4049_v17 = vpack.c.b16 %v4048_v53, %v4047_v45  ;;  %v4625_v62 = vunpack.c.l.b16 %v3824_v44  ;;  %v3768_v53 = vld [vmem:[%s6099_s1 + $0x1a0] sm:$0xff] }
 0x943   : > { %v4626_v23 = vunpack.c.l.b16 %v3825_v48  ;;  %v3832_v55 = vpack.c.bf16 %v3768_v53, %v3768_v53 }
 0x945   : > { %v4627_v26 = vpack.c.b16 %v4626_v23, %v4625_v62  ;;  %v3743_v62 = vld [vmem:[%s6099_s1 + $0xd8] sm:$0xff]  ;;  %v3806_v23 = vpack.c.bf16 %v3742_v54, %v3742_v54  ;;  %v3750_v54 = vld [vmem:[%s6099_s1 + $0x110] sm:$0xff] }
 0x94e   : > { %5494 = vmatmul.msk.bf16.gmra.mxu2 %vm9109_vm10, %v8152_v35  ;;  %5496 = vmatmul.msk.bf16.gmra.mxu3 %vm9110_vm11, %v8152_v35  ;;  %vm9122_vm10 = vmmov %vm9104_vm0 }
 0x94f   : > { %5506 = vmatmul.msk.bf16.gmra.mxu0 %vm9111_vm12, %v8152_v35  ;;  %vm9123_vm11 = vmmov %vm9104_vm0 }
 0x950   : > { %vm9124_vm12 = vmmov %vm9104_vm0 }
 0x95e   : > { %5501 = vmatmul.msk.bf16.vlgmr.msrb.gmra.mxu2 %vm9112_vm13, %v8140_v39  ;;  %5503 = vmatmul.msk.bf16.vlgmr.msrb.gmra.mxu3 %vm9113_vm9, %v8140_v39  ;;  %vm9125_vm13 = vmmov %vm9104_vm0 }
 0x95f   : > { %5513 = vmatmul.msk.bf16.vlgmr.msrb.gmra.mxu0 %vm9114_vm7, %v8140_v39  ;;  %4500 = vmatpush.bf16.msrb.mxu2 %v4491_v42  ;;  %vm9126_vm9 = vmmov %vm9104_vm0  ;;  %v4185_v42 = vpack.c.b16 %v4184_v0, %v4183_v6 }
 0x960   : > { %4704 = vmatpush.bf16.msrb.mxu0 %v4695_v33  ;;  %4534 = vmatpush.bf16.msrb.mxu3 %v4525_v1  ;;  %vm9127_vm7 = vmmov %vm9104_vm0  ;;  %v4661_v33 = vpack.c.b16 %v4660_v46, %v4659_v14  ;;  %v3807_v14 = vpack.c.bf16 %v3743_v62, %v3743_v62  ;;  %v3751_v62 = vld [vmem:[%s6099_s1 + $0x118] sm:$0xff] }
 0x96e   : > { %5502 = vmatmul.msk.bf16.gmra.mxu2 %vm9115_vm8, %v8152_v35  ;;  %5504 = vmatmul.msk.bf16.gmra.mxu3 %vm9116_vm5, %v8152_v35  ;;  %vm9128_vm8 = vmmov %vm9104_vm0 }
 0x96f   : > { %5514 = vmatmul.msk.bf16.gmra.mxu0 %vm9117_vm1, %v8152_v35  ;;  %vm9129_vm5 = vmmov %vm9104_vm0 }
 0x970   : > { %vm9130_vm1 = vmmov %vm9104_vm0 }
 0x97b   : > { %v3668_v38 = vpop.permute.xlu2 %3667 }
 0x97c   : > { %v8219_v30 = vpop.f32.mrf.mxu0  ;;  %5478 = vmatmul.msk.bf16.vlgmr.msra.gmra.mxu1 %vm9118_vm15, %v3668_v38  ;;  %vm9131_vm15 = vmmov %vm9104_vm0 }
 0x97d   : > { %4058 = vmatpush.bf16.msra.mxu1 %v4049_v17  ;;  %v3771_v17 = vld [vmem:[%s6099_s1 + $0x1b8] sm:$0xff] }
 0x97e   : > { %5509 = vmatmul.msk.bf16.vlgmr.msra.gmra.mxu2 %vm9104_vm0, %v8140_v39  ;;  %5511 = vmatmul.msk.bf16.vlgmr.msra.gmra.mxu3 %vm9119_vm14, %v8140_v39  ;;  %vm9132_vm14 = vmmov %vm9104_vm0  ;;  %v3835_v10 = vpack.c.bf16 %v3771_v17, %v3771_v17 }
 0x97f   : > { %5521 = vmatmul.msk.bf16.vlgmr.msra.gmra.mxu0 %vm9120_vm3, %v8140_v39  ;;  %4636 = vmatpush.bf16.msra.mxu2 %v4627_v26  ;;  %vm9133_vm3 = vmmov %vm9104_vm0  ;;  %v4319_v26 = vunpack.c.l.b16 %v3806_v23  ;;  %v3814_v23 = vpack.c.bf16 %v3750_v54, %v3750_v54 }
 0x980   : > { %4840 = vmatpush.bf16.msra.mxu0 %v4831_v58  ;;  %4670 = vmatpush.bf16.msra.mxu3 %v4661_v33  ;;  %v4761_v58 = vunpack.c.l.b16 %v3832_v55  ;;  %v4320_v33 = vunpack.c.l.b16 %v3807_v14  ;;  %v3815_v14 = vpack.c.bf16 %v3751_v62, %v3751_v62 }
 0x981   : > { %v8232_v52 = vpop.f32.mrf.mxu2  ;;  %v8234_v27 = vpop.f32.mrf.mxu3 }
 0x982   : > { %v4321_v40 = vpack.c.b16 %v4320_v33, %v4319_v26  ;;  %v4455_v33 = vunpack.c.l.b16 %v3814_v23 }
 0x984   : > { %v8236_v31 = vpop.f32.mrf.mxu0 }
 0x989   : > { %v8238_v4 = vpop.f32.mrf.mxu2  ;;  %v8240_v43 = vpop.f32.mrf.mxu3 }
 0x98c   : > { %v8244_v49 = vpop.f32.mrf.mxu0  ;;  %5483 = vmatmul.msk.bf16.vlgmr.msrb.gmra.mxu1 %vm9121_vm2, %v8140_v39  ;;  %vm9134_vm2 = vmmov %vm9104_vm0 }
 0x98d   : > { %4194 = vmatpush.bf16.msrb.mxu1 %v4185_v42  ;;  %v3778_v42 = vld [vmem:[%s6099_s1 + $0x1f0] sm:$0xff] }
 0x98e   : > { %5510 = vmatmul.msk.bf16.gmra.mxu2 %vm9122_vm10, %v8152_v35  ;;  %5512 = vmatmul.msk.bf16.gmra.mxu3 %vm9123_vm11, %v8152_v35  ;;  %vm9135_vm10 = vmmov %vm9104_vm0  ;;  %v3842_v53 = vpack.c.bf16 %v3778_v42, %v3778_v42 }
 0x98f   : > { %5522 = vmatmul.msk.bf16.gmra.mxu0 %vm9124_vm12, %v8152_v35  ;;  %vm9136_vm11 = vmmov %vm9104_vm0 }
 0x990   : > { %vm9137_vm12 = vmmov %vm9104_vm0  ;;  %v4931_v17 = vunpack.c.l.b16 %v3842_v53 }
 0x991   : > { %v8256_v12 = vpop.f32.mrf.mxu2  ;;  %v8258_v47 = vpop.f32.mrf.mxu3 }
 0x994   : > { %v4033_v3 = vpop.f32.mrf.mxu0 }
 0x995   : > { %v4762_v3 = vunpack.c.l.b16 %v3833_v25 }
 0x997   : > { %v4763_v41 = vpack.c.b16 %v4762_v3, %v4761_v58 }
 0x999   : > { %v3881_v7 = vpop.f32.mrf.mxu2  ;;  %v3907_v16 = vpop.f32.mrf.mxu3 }
 0x99a   : > { %v4795_v7 = vunpack.c.l.b16 %v3834_v63  ;;  %v4796_v16 = vunpack.c.l.b16 %v3835_v10 }
 0x99c   : > { %v8260_v57 = vpop.f32.mrf.mxu0  ;;  %5484 = vmatmul.msk.bf16.gmra.mxu1 %vm9125_vm13, %v8152_v35  ;;  %v4797_v44 = vpack.c.b16 %v4796_v16, %v4795_v7  ;;  %vm9138_vm13 = vmmov %vm9104_vm0 }
 0x99e   : > { %5517 = vmatmul.msk.bf16.vlgmr.msrb.gmra.mxu2 %vm9126_vm9, %v8140_v39  ;;  %5519 = vmatmul.msk.bf16.vlgmr.msrb.gmra.mxu3 %vm9127_vm7, %v8140_v39  ;;  %vm9139_vm9 = vmmov %vm9104_vm0 }
 0x99f   : > { %5529 = vmatmul.msk.bf16.vlgmr.msrb.gmra.mxu0 %vm9128_vm8, %v8140_v39  ;;  %4772 = vmatpush.bf16.msrb.mxu2 %v4763_v41  ;;  %vm9141_vm7 = vmmov %vm9104_vm0 }
 0x9a0   : > { %4987 = vmatpush.bf16.msrb.mxu0 %v4967_v50  ;;  %4806 = vmatpush.bf16.msrb.mxu3 %v4797_v44  ;;  %v3777_v50 = vld [vmem:[%s6099_s1 + $0x1e8] sm:$0xff]  ;;  %vm9142_vm8 = vmmov %vm9104_vm0 }
 0x9a1   : > { %v8274_v15 = vpop.f32.mrf.mxu2  ;;  %v8276_v28 = vpop.f32.mrf.mxu3 }
 0x9a4   : > { %v8278_v38 = vpop.f32.mrf.mxu0 }
 0x9a9   : > { %v8280_v2 = vpop.f32.mrf.mxu2  ;;  %v8282_v36 = vpop.f32.mrf.mxu3 }
 0x9ac   : > { %v8286_v24 = vpop.f32.mrf.mxu0  ;;  %5491 = vmatmul.msk.bf16.vlgmr.msra.gmra.mxu1 %vm9129_vm5, %v8140_v39  ;;  %vm9143_vm5 = vmmov %vm9104_vm0 }
 0x9ad   : > { %4330 = vmatpush.bf16.msra.mxu1 %v4321_v40  ;;  %v4456_v40 = vunpack.c.l.b16 %v3815_v14 }
 0x9ae   : > { %5518 = vmatmul.msk.bf16.gmra.mxu2 %vm9130_vm1, %v8152_v35  ;;  %5520 = vmatmul.msk.bf16.gmra.mxu3 %vm9131_vm15, %v8152_v35  ;;  %vm9144_vm1 = vmmov %vm9104_vm0 }
 0x9af   : > { %5530 = vmatmul.msk.bf16.gmra.mxu0 %vm9104_vm0, %v8152_v35  ;;  %vm9147_vm15 = vmmov %vm9104_vm0 }
 0x9b1   : > { %v8298_v1 = vpop.f32.mrf.mxu2  ;;  %v8300_v60 = vpop.f32.mrf.mxu3 }
 0x9b4   : > { %v4169_v11 = vpop.f32.mrf.mxu0 }
 0x9b5   : > { %v3840_v11 = vpack.c.bf16 %v3776_v13, %v3776_v13 }
 0x9b7   : > { %v4897_v55 = vunpack.c.l.b16 %v3840_v11 }
 0x9b9   : > { %v3965_v19 = vpop.f32.mrf.mxu2  ;;  %v3999_v37 = vpop.f32.mrf.mxu3 }
 0x9ba   : > { %v3841_v19 = vpack.c.bf16 %v3777_v50, %v3777_v50  ;;  %v3779_v37 = vld [vmem:[%s6099_s1 + $0x1f8] sm:$0xff] }
 0x9bb   : > { %v3843_v8 = vpack.c.bf16 %v3779_v37, %v3779_v37 }
 0x9bc   : > { %v8302_v45 = vpop.f32.mrf.mxu0  ;;  %5492 = vmatmul.msk.bf16.gmra.mxu1 %vm9132_vm14, %v8152_v35  ;;  %v4898_v25 = vunpack.c.l.b16 %v3841_v19  ;;  %vm9148_vm14 = vmmov %vm9104_vm0 }
 0x9bd   : > { %v4932_v63 = vunpack.c.l.b16 %v3843_v8 }
 0x9be   : > { %5525 = vmatmul.msk.bf16.vlgmr.msra.gmra.mxu2 %vm9133_vm3, %v8140_v39  ;;  %5527 = vmatmul.msk.bf16.vlgmr.msra.gmra.mxu3 %vm9134_vm2, %v8140_v39  ;;  %v4899_v3 = vpack.c.b16 %v4898_v25, %v4897_v55  ;;  %vm9149_vm3 = vmmov %vm9104_vm0 }
 0x9bf   : > { %5537 = vmatmul.msk.bf16.vlgmr.msra.gmra.mxu0 %vm9135_vm10, %v8140_v39  ;;  %v4933_v7 = vpack.c.b16 %v4932_v63, %v4931_v17  ;;  %vm9151_vm2 = vmmov %vm9104_vm0 }
 0x9c0   : > { %4908 = vmatpush.bf16.msra.mxu2 %v4899_v3  ;;  %vm9152_vm10 = vmmov %vm9104_vm0  ;;  %v3758_v3 = vld [vmem:[%s6099_s1 + $0x150] sm:$0xff] }
 0x9c1   : > { %v8316_v21 = vpop.f32.mrf.mxu2  ;;  %v8318_v56 = vpop.f32.mrf.mxu3  ;;  %4942 = vmatpush.bf16.msra.mxu3 %v4933_v7  ;;  %v3759_v7 = vld [vmem:[%s6099_s1 + $0x158] sm:$0xff]  ;;  %v3822_v54 = vpack.c.bf16 %v3758_v3, %v3758_v3 }
 0x9c2   : > { %v3823_v62 = vpack.c.bf16 %v3759_v7, %v3759_v7 }
 0x9c3   : > { %v4591_v14 = vunpack.c.l.b16 %v3822_v54 }
 0x9c4   : > { %v8320_v48 = vpop.f32.mrf.mxu0 }
 0x9c9   : > { %v8322_v18 = vpop.f32.mrf.mxu2  ;;  %v8324_v9 = vpop.f32.mrf.mxu3 }
 0x9cc   : > { %v8328_v46 = vpop.f32.mrf.mxu0  ;;  %5499 = vmatmul.msk.bf16.vlgmr.msrb.gmra.mxu1 %vm9136_vm11, %v8140_v39  ;;  %vm9153_vm11 = vmmov %vm9104_vm0 }
 0x9ce   : > { %5526 = vmatmul.msk.bf16.gmra.mxu2 %vm9137_vm12, %v8152_v35  ;;  %5528 = vmatmul.msk.bf16.gmra.mxu3 %vm9138_vm13, %v8152_v35  ;;  %vm9160_vm12 = vmmov %vm9104_vm0 }
 0x9cf   : > { %5538 = vmatmul.msk.bf16.gmra.mxu0 %vm9139_vm9, %v8152_v35  ;;  %vm9161_vm13 = vmmov %vm9104_vm0 }
 0x9d0   : > { %vm9162_vm9 = vmmov %vm9104_vm0 }
 0x9d1   : > { %v8338_v5 = vpop.f32.mrf.mxu2  ;;  %v8340_v29 = vpop.f32.mrf.mxu3 }
 0x9d4   : > { %v4305_v22 = vpop.f32.mrf.mxu0 }
 0x9d5   : > { %v4973_v22 = vpop.permute.xlu1 %4972 }
 0x9d9   : > { %v4101_v6 = vpop.f32.mrf.mxu2  ;;  %v4135_v0 = vpop.f32.mrf.mxu3 }
 0x9da   : > { %v4457_v6 = vpack.c.b16 %v4456_v40, %v4455_v33  ;;  %v4592_v33 = vunpack.c.l.b16 %v3823_v62 }
 0x9dc   : > { %v8342_v32 = vpop.f32.mrf.mxu0  ;;  %5500 = vmatmul.msk.bf16.gmra.mxu1 %vm9141_vm7, %v8152_v35  ;;  %v4593_v40 = vpack.c.b16 %v4592_v33, %v4591_v14  ;;  %vm9166_vm7 = vmmov %vm9104_vm0 }
 0x9dd   : > { %9140 = vst [vmem:[#allocation16_spill] sm:$0xff] %v8342_v32  ;;  %4466 = vmatpush.bf16.msrb.mxu1 %v4457_v6 }
 0x9de   : > { %5533 = vmatmul.msk.bf16.vlgmr.msrb.gmra.mxu2 %vm9142_vm8, %v8140_v39  ;;  %5535 = vmatmul.msk.bf16.vlgmr.msrb.gmra.mxu3 %vm9143_vm5, %v8140_v39  ;;  %vm9173_vm8 = vmmov %vm9104_vm0 }
 0x9df   : > { %5545 = vmatmul.msk.bf16.vlgmr.msrb.gmra.mxu0 %vm9144_vm1, %v4971_v61  ;;  %vm9177_vm5 = vmmov %vm9104_vm0 }
 0x9e0   : > { %vm9184_vm1 = vmmov %vm9104_vm0 }
 0x9e1   : > { %v8355_v10 = vpop.f32.mrf.mxu2  ;;  %v8357_v58 = vpop.f32.mrf.mxu3 }
 0x9e4   : > { %v8359_v16 = vpop.f32.mrf.mxu0 }
 0x9e5   : > { %9145 = vst [vmem:[#allocation24_spill] sm:$0xff] %v8359_v16 }
 0x9e9   : > { %v8361_v41 = vpop.f32.mrf.mxu2  ;;  %v8363_v44 = vpop.f32.mrf.mxu3 }
 0x9ec   : > { %v8367_v26 = vpop.f32.mrf.mxu0  ;;  %5507 = vmatmul.msk.bf16.vlgmr.msra.gmra.mxu1 %vm9147_vm15, %v8140_v39  ;;  %vm9189_vm15 = vmmov %vm9104_vm0 }
 0x9ed   : > { %9146 = vst [vmem:[#allocation23_spill] sm:$0xff] %v8367_v26  ;;  %4602 = vmatpush.bf16.msra.mxu1 %v4593_v40 }
 0x9ee   : > { %5534 = vmatmul.msk.bf16.gmra.mxu2 %vm9104_vm0, %v8152_v35  ;;  %5536 = vmatmul.msk.bf16.gmra.mxu3 %vm9148_vm14, %v8152_v35  ;;  %vm9198_vm14 = vmmov %vm9104_vm0 }
 0x9ef   : > { %5546 = vmatmul.msk.bf16.gmra.mxu0 %vm9149_vm3, %v4973_v22 }
 0x9f1   : > { %v8376_v0 = vpop.f32.mrf.mxu2  ;;  %v8378_v13 = vpop.f32.mrf.mxu3 }
 0x9f4   : > { %v4441_v50 = vpop.f32.mrf.mxu0 }
 0x9f9   : > { %v8380_v42 = vpop.f32.mrf.mxu1  ;;  %v4237_v11 = vpop.f32.mrf.mxu2 }
 0x9fa   : > { %v4271_v19 = vpop.f32.mrf.mxu3 }
 0x9fc   : > { %v8382_v37 = vpop.f32.mrf.mxu0  ;;  %5508 = vmatmul.msk.bf16.gmra.mxu1 %vm9151_vm2, %v8152_v35 }
 0x9fd   : > { %9150 = vst [vmem:[#allocation20_spill] sm:$0xff] %v8382_v37 }
 0x9fe   : > { %5541 = vmatmul.msk.bf16.vlgmr.msra.gmra.mxu2 %vm9152_vm10, %v8140_v39  ;;  %5543 = vmatmul.msk.bf16.vlgmr.msra.gmra.mxu3 %vm9153_vm11, %v8140_v39  ;;  %vm9215_vm10 = vmmov %vm9104_vm0 }
 0x9ff   : > { %vm9237_vm11 = vmmov %vm9104_vm0 }
 0xa01   : > { %v3683_v53 = vpop.f32.mrf.mxu1  ;;  %v8390_v61 = vpop.f32.mrf.mxu2 }
 0xa02   : > { %9154 = vst [vmem:[#allocation15_spill] sm:$0xff] %v8390_v61  ;;  %v8392_v8 = vpop.f32.mrf.mxu3 }
 0xa03   : > { %9155 = vst [vmem:[#allocation27_spill] sm:$0xff] %v8392_v8 }
 0xa04   : > { %v8394_v55 = vpop.f32.mrf.mxu0 }
 0xa05   : > { %9156 = vst [vmem:[#allocation10_spill] sm:$0xff] %v8394_v55 }
 0xa09   : > { %v8396_v25 = vpop.f32.mrf.mxu1  ;;  %v8398_v17 = vpop.f32.mrf.mxu2 }
 0xa0a   : > { %9157 = vst [vmem:[#allocation21_spill] sm:$0xff] %v8398_v17  ;;  %v8400_v63 = vpop.f32.mrf.mxu3 }
 0xa0b   : > { %9158 = vst [vmem:[#allocation29_spill] sm:$0xff] %v8400_v63 }
 0xa0c   : > { %v8404_v23 = vpop.f32.mrf.mxu0  ;;  %5515 = vmatmul.msk.bf16.vlgmr.msrb.gmra.mxu1 %vm9160_vm12, %v8140_v39  ;;  %vm9275_vm12 = vmmov %vm9104_vm0 }
 0xa0d   : > { %9159 = vst [vmem:[#allocation9_spill] sm:$0xff] %v8404_v23 }
 0xa0e   : > { %5542 = vmatmul.msk.bf16.gmra.mxu2 %vm9161_vm13, %v8152_v35  ;;  %5544 = vmatmul.msk.bf16.gmra.mxu3 %vm9162_vm9, %v8152_v35  ;;  %vm5146_vm13 = vcmask 523264   ;;  %vm5148_vm9 = vcmask 654336  }
 0xa11   : > { %v8412_v22 = vpop.f32.mrf.mxu1  ;;  %v8414_v6 = vpop.f32.mrf.mxu2 }
 0xa12   : > { %9163 = vst [vmem:[#allocation18_spill] sm:$0xff] %v8414_v6  ;;  %v8416_v50 = vpop.f32.mrf.mxu3 }
 0xa13   : > { %9164 = vst [vmem:[#allocation14_spill] sm:$0xff] %v8416_v50 }
 0xa14   : > { %v4577_v11 = vpop.f32.mrf.mxu0 }
 0xa19   : > { %v8418_v19 = vpop.f32.mrf.mxu1  ;;  %v4373_v53 = vpop.f32.mrf.mxu2 }
 0xa1a   : > { %v4407_v3 = vpop.f32.mrf.mxu3  ;;  %v3766_v53 = vld [vmem:[%s6099_s1 + $0x190] sm:$0xff] }
 0xa1b   : > { %v3767_v3 = vld [vmem:[%s6099_s1 + $0x198] sm:$0xff]  ;;  %v3830_v20 = vpack.c.bf16 %v3766_v53, %v3766_v53 }
 0xa1c   : > { %v8420_v7 = vpop.f32.mrf.mxu0  ;;  %5516 = vmatmul.msk.bf16.gmra.mxu1 %vm9166_vm7, %v8152_v35  ;;  %v3831_v51 = vpack.c.bf16 %v3767_v3, %v3767_v3  ;;  %vm5150_vm7 = vcmask 785408  }
 0xa1d   : > { %9165 = vst [vmem:[#allocation28_spill] sm:$0xff] %v8420_v7 }
 0xa1e   : > { %v4728_v23 = vunpack.c.l.b16 %v3831_v51 }
 0xa21   : > { %v3931_v54 = vpop.f32.mrf.mxu1  ;;  %v8424_v62 = vpop.f32.mrf.mxu2 }
 0xa22   : > { %9167 = vst [vmem:[#allocation26_spill] sm:$0xff] %v8424_v62  ;;  %v8426_v14 = vpop.f32.mrf.mxu3  ;;  %v4727_v54 = vunpack.c.l.b16 %v3830_v20 }
 0xa23   : > { %9168 = vst [vmem:[#allocation22_spill] sm:$0xff] %v8426_v14 }
 0xa24   : > { %v8428_v33 = vpop.f32.mrf.mxu0  ;;  %v4729_v55 = vpack.c.b16 %v4728_v23, %v4727_v54 }
 0xa25   : > { %9169 = vst [vmem:[#allocation17_spill] sm:$0xff] %v8428_v33 }
 0xa26   : > { %4738 = vmatpush.bf16.msrb.mxu1 %v4729_v55 }
 0xa29   : > { %v8430_v40 = vpop.f32.mrf.mxu1  ;;  %v8432_v34 = vpop.f32.mrf.mxu2 }
 0xa2a   : > { %9170 = vst [vmem:[#allocation19_spill] sm:$0xff] %v8432_v34  ;;  %v8434_v11 = vpop.f32.mrf.mxu3 }
 0xa2b   : > { %9171 = vst [vmem:[#allocation11_spill] sm:$0xff] %v8434_v11 }
 0xa2c   : > { %v8438_v7 = vpop.f32.mrf.mxu0  ;;  %5523 = vmatmul.msk.bf16.vlgmr.msra.gmra.mxu1 %vm9173_vm8, %v8140_v39  ;;  %vm5152_vm8 = vcmask 916480  }
 0xa2d   : > { %9172 = vst [vmem:[#allocation30_spill] sm:$0xff] %v8438_v7 }
 0xa31   : > { %v8442_v37 = vpop.f32.mrf.mxu1  ;;  %v8444_v33 = vpop.f32.mrf.mxu2 }
 0xa32   : > { %9174 = vst [vmem:[#allocation31_spill] sm:$0xff] %v8444_v33  ;;  %v8446_v11 = vpop.f32.mrf.mxu3 }
 0xa33   : > { %9175 = vst [vmem:[#allocation32_spill] sm:$0xff] %v8446_v11 }
 0xa34   : > { %v4713_v14 = vpop.f32.mrf.mxu0 }
 0xa39   : > { %v8448_v53 = vpop.f32.mrf.mxu1  ;;  %v4509_v3 = vpop.f32.mrf.mxu2 }
 0xa3a   : > { %v4543_v7 = vpop.f32.mrf.mxu3  ;;  %v3774_v3 = vld [vmem:[%s6099_s1 + $0x1d0] sm:$0xff] }
 0xa3b   : > { %v3775_v7 = vld [vmem:[%s6099_s1 + $0x1d8] sm:$0xff] }
 0xa3c   : > { %v8450_v34 = vpop.f32.mrf.mxu0  ;;  %5524 = vmatmul.msk.bf16.gmra.mxu1 %vm9177_vm5, %v8152_v35  ;;  %v3839_v33 = vpack.c.bf16 %v3775_v7, %v3775_v7 }
 0xa3d   : > { %9176 = vst [vmem:[#allocation33_spill] sm:$0xff] %v8450_v34  ;;  %v3838_v34 = vpack.c.bf16 %v3774_v3, %v3774_v3 }
 0xa41   : > { %v4067_v51 = vpop.f32.mrf.mxu1  ;;  %v8454_v20 = vpop.f32.mrf.mxu2 }
 0xa42   : > { %9178 = vst [vmem:[#allocation34_spill] sm:$0xff] %v8454_v20  ;;  %v8456_v23 = vpop.f32.mrf.mxu3  ;;  %v4863_v51 = vunpack.c.l.b16 %v3838_v34 }
 0xa43   : > { %9179 = vst [vmem:[#allocation35_spill] sm:$0xff] %v8456_v23  ;;  %v4864_v23 = vunpack.c.l.b16 %v3839_v33 }
 0xa44   : > { %v8458_v54 = vpop.f32.mrf.mxu0 }
 0xa45   : > { %9180 = vst [vmem:[#allocation36_spill] sm:$0xff] %v8458_v54  ;;  %v4865_v20 = vpack.c.b16 %v4864_v23, %v4863_v51 }
 0xa47   : > { %4874 = vmatpush.bf16.msra.mxu1 %v4865_v20 }
 0xa49   : > { %v8460_v55 = vpop.f32.mrf.mxu1  ;;  %v8462_v11 = vpop.f32.mrf.mxu2 }
 0xa4a   : > { %9181 = vst [vmem:[#allocation37_spill] sm:$0xff] %v8462_v11  ;;  %v8464_v14 = vpop.f32.mrf.mxu3 }
 0xa4b   : > { %9182 = vst [vmem:[#allocation38_spill] sm:$0xff] %v8464_v14 }
 0xa4c   : > { %v8468_v62 = vpop.f32.mrf.mxu0  ;;  %5531 = vmatmul.msk.bf16.vlgmr.msrb.gmra.mxu1 %vm9184_vm1, %v8140_v39 }
 0xa4d   : > { %9183 = vst [vmem:[#allocation39_spill] sm:$0xff] %v8468_v62  ;;  %v5712_v62 = vld [vmem:[%s9188_s26] ss:$0 sm:$0xff] }
 0xa4e   : > { %v3682_v33 = vadd.f32 %v5712_v62, %v8380_v42 }
 0xa50   : > { %v8496_v51 = vmax.f32 %v3682_v33, 0.0 }
 0xa51   : > { %v8472_v54 = vpop.f32.mrf.mxu1  ;;  %v8474_v26 = vpop.f32.mrf.mxu2 }
 0xa52   : > { %9185 = vst [vmem:[#allocation40_spill] sm:$0xff] %v8474_v26  ;;  %v8476_v11 = vpop.f32.mrf.mxu3  ;;  %v5862_v26 = vmov 3  }
 0xa53   : > { %9186 = vst [vmem:[#allocation41_spill] sm:$0xff] %v8476_v11 }
 0xa54   : > { %v4849_v14 = vpop.f32.mrf.mxu0 }
 0xa59   : > { %v8478_v16 = vpop.f32.mrf.mxu1  ;;  %v4645_v3 = vpop.f32.mrf.mxu2 }
 0xa5a   : > { %v4679_v7 = vpop.f32.mrf.mxu3 }
 0xa5c   : > { %v8485_v34 = vpop.f32.mrf.mxu0  ;;  %5532 = vmatmul.msk.bf16.gmra.mxu1 %vm9189_vm15, %v8152_v35 }
 0xa5d   : > { %5079 = vrot.lane.b32.xlu0 %v8485_v34, %s5846_s10  ;;  %v4998_v33 = vmul.f32 %v8485_v34, %v8485_v34 }
 0xa61   : > { %v4203_v20 = vpop.f32.mrf.mxu1  ;;  %v8492_v23 = vpop.f32.mrf.mxu2 }
 0xa62   : > { %9190 = vst [vmem:[#allocation42_spill] sm:$0xff] %v8492_v23  ;;  %v8494_v14 = vpop.f32.mrf.mxu3 }
 0xa63   : > { %9191 = vst [vmem:[#allocation43_spill] sm:$0xff] %v8494_v14 }
 0xa64   : > { %v8498_v3 = vpop.f32.mrf.mxu0 }
 0xa65   : > { %5084 = vrot.lane.b32.xlu1 %v8498_v3, %s5846_s10  ;;  %3885 = vperm.xlu0 %5640, %v8496_v51   ;;  %v4999_v7 = vmul.f32 %v8498_v3, %v8498_v3 }
 0xa67   : > { %v5000_v14 = vadd.f32 %v4999_v7, %v4998_v33  ;;  %v5863_v7 = vmov 4   ;;  %v5864_v33 = vmov 8  }
 0xa69   : > { %v8505_v11 = vpop.f32.mrf.mxu1  ;;  %v8507_v42 = vpop.f32.mrf.mxu2 }
 0xa6a   : > { %9192 = vst [vmem:[#allocation44_spill] sm:$0xff] %v8507_v42  ;;  %v8509_v62 = vpop.f32.mrf.mxu3 }
 0xa6b   : > { %9193 = vst [vmem:[#allocation45_spill] sm:$0xff] %v8509_v62 }
 0xa6c   : > { %v8513_v20 = vpop.f32.mrf.mxu0  ;;  %5539 = vmatmul.msk.bf16.vlgmr.msra.gmra.mxu1 %vm9104_vm0, %v8140_v39 }
 0xa6d   : > { %v5001_v23 = vmul.f32 %v8513_v20, %v8513_v20  ;;  %3934 = vperm.xlu1 %5674, %v8496_v51   ;;  %5676 = vset.pattern.permute.xlu0 %v5862_v26 }
 0xa6e   : > { %4002 = vperm.xlu0 %5676, %v8496_v51  }
 0xa6f   : > { %v5002_v42 = vadd.f32 %v5001_v23, %v5000_v14 }
 0xa71   : > { %v5003_v62 = vadd.f32 1e-08, %v5002_v42  ;;  %v8521_v32 = vpop.f32.mrf.mxu1  ;;  %v8523_v50 = vpop.f32.mrf.mxu2 }
 0xa72   : > { %9194 = vst [vmem:[#allocation46_spill] sm:$0xff] %v8521_v32  ;;  %v8525_v63 = vpop.f32.mrf.mxu3 }
 0xa73   : > { %9195 = vst [vmem:[#allocation47_spill] sm:$0xff] %v8523_v50  ;;  %5783 = vrsqrt.f32 %v5003_v62  ;;  %v5865_v50 = vmov 6   ;;  %vm5011_vm3 = vcmp.eq.f32.partialorder %v5003_v62, inf  ;;  %vm5013_vm2 = vcmp.eq.f32.partialorder %v5003_v62, 0.0 }
 0xa74   : > { %9196 = vst [vmem:[#allocation48_spill] sm:$0xff] %v8525_v63  ;;  %v4996_v39 = vpop.f32.mrf.mxu0 }
 0xa75   : > { %5677 = vset.pattern.permute.xlu1 %v5863_v7  ;;  %v5866_v7 = vmov 12  }
 0xa76   : > { %4036 = vperm.xlu1 %5677, %v8496_v51   ;;  %5681 = vset.pattern.permute.xlu0 %v5864_v33 }
 0xa77   : > { %4172 = vperm.xlu0 %5681, %v8496_v51  }
 0xa79   : > { %v5784_v26 = vpop.eup %5783  ;;  %v8529_v8 = vpop.f32.mrf.mxu1 }
 0xa7a   : > { %9197 = vst [vmem:[#allocation49_spill] sm:$0xff] %v8529_v8  ;;  %v4781_v23 = vpop.f32.mrf.mxu2  ;;  %v4815_v14 = vpop.f32.mrf.mxu3  ;;  %v5005_v42 = vmul.f32 %v5784_v26, %v5003_v62 }
 0xa7c   : > { %5540 = vmatmul.msk.bf16.gmra.mxu1 %vm9198_vm14, %v8152_v35  ;;  %v5006_v63 = vmul.f32 %v5784_v26, %v5005_v42  ;;  %v5014_v35 = vand.u32 2147483648, %v5003_v62 }
 0xa7e   : > { %5679 = vset.pattern.permute.xlu1 %v5865_v50  ;;  %v5007_v39 = vmul.f32 0.5, %v5006_v63  ;;  %v5867_v50 = vmov 9  }
 0xa7f   : > { %4104 = vperm.xlu1 %5679, %v8496_v51   ;;  %5685 = vset.pattern.permute.xlu0 %v5866_v7  ;;  %v5868_v7 = vmov 17  }
 0xa80   : > { %4308 = vperm.xlu0 %5685, %v8496_v51   ;;  %v5008_v33 = vsub.f32 1.5, %v5007_v39 }
 0xa81   : > { %v4339_v6 = vpop.f32.mrf.mxu1 }
 0xa82   : > { %v8535_v17 = vpop.f32.mrf.mxu2  ;;  %v8537_v23 = vpop.f32.mrf.mxu3  ;;  %v5009_v14 = vmul.f32 %v5784_v26, %v5008_v33 }
 0xa83   : > { %9199 = vst [vmem:[#allocation50_spill] sm:$0xff] %v8535_v17  ;;  %v5022_v17 = vld [vmem:[%s6109_s4 + $0x8] sm:$0xff] }
 0xa84   : > { %9200 = vst [vmem:[#allocation51_spill] sm:$0xff] %v8537_v23  ;;  %v5010_v61 = vmul.f32 %v5009_v14, %v5003_v62  ;;  %v5870_v14 = vmov 22   ;;  %v5877_v23 = vmov 10  }
 0xa86   : > { %v5012_v42 = vsel %vm5011_vm3, %v5003_v62, %v5010_v61  ;;  %v5869_v61 = vmov 11  }
 0xa87   : > { %5682 = vset.pattern.permute.xlu1 %v5867_v50  ;;  %v5015_v63 = vsel %vm5013_vm2, %v5014_v35, %v5012_v42  ;;  %v5871_v42 = vmov 13  }
 0xa88   : > { %5017 = vrot.lane.b32.xlu2 %v5015_v63, %s5860_s24  ;;  %4206 = vperm.xlu1 %5682, %v8496_v51  }
 0xa89   : > { %5690 = vset.pattern.permute.xlu0 %v5868_v7  ;;  %v8541_v6 = vpop.f32.mrf.mxu1 }
 0xa8a   : > { %9201 = vst [vmem:[#allocation52_spill] sm:$0xff] %v8541_v6  ;;  %v8543_v39 = vpop.f32.mrf.mxu2  ;;  %4478 = vperm.xlu0 %5690, %v8496_v51   ;;  %v8546_v26 = vpop.f32.mrf.mxu3 }
 0xa8b   : > { %9202 = vst [vmem:[#allocation53_spill] sm:$0xff] %v8543_v39  ;;  %v5880_v39 = vmov 23  }
 0xa8c   : > { %9203 = vst [vmem:[#allocation54_spill] sm:$0xff] %v8546_v26  ;;  %v5874_v26 = vmov 15  }
 0xa90   : > { %5090 = vrot.lane.b32.xlu2 %v8513_v20, %s5846_s10  ;;  %5684 = vset.pattern.permute.xlu1 %v5869_v61  ;;  %v5872_v61 = vmov 27  }
 0xa91   : > { %4274 = vperm.xlu1 %5684, %v8496_v51   ;;  %v8551_v62 = vpop.f32.mrf.mxu1 }
 0xa92   : > { %9204 = vst [vmem:[#allocation55_spill] sm:$0xff] %v8551_v62  ;;  %v8553_v33 = vpop.f32.mrf.mxu2  ;;  %5695 = vset.pattern.permute.xlu0 %v5870_v14  ;;  %v8555_v35 = vpop.f32.mrf.mxu3  ;;  %v5873_v14 = vmov 5  }
 0xa93   : > { %9205 = vst [vmem:[#allocation56_spill] sm:$0xff] %v8553_v33  ;;  %4648 = vperm.xlu0 %5695, %v8496_v51   ;;  %v5024_v33 = vld [vmem:[%s6109_s4 + $0x18] sm:$0xff] }
 0xa94   : > { %9206 = vst [vmem:[#allocation57_spill] sm:$0xff] %v8555_v35 }
 0xa98   : > { %3968 = vperm.xlu2 %5675, %v8496_v51  }
 0xa99   : > { %5686 = vset.pattern.permute.xlu1 %v5871_v42  ;;  %v8559_v50 = vpop.f32.mrf.mxu1  ;;  %v5875_v42 = vmov 7  }
 0xa9a   : > { %9207 = vst [vmem:[#allocation58_spill] sm:$0xff] %v8559_v50  ;;  %v4917_v63 = vpop.f32.mrf.mxu2  ;;  %4342 = vperm.xlu1 %5686, %v8496_v51   ;;  %v4951_v7 = vpop.f32.mrf.mxu3 }
 0xa9b   : > { %5700 = vset.pattern.permute.xlu0 %v5872_v61  ;;  %v5876_v7 = vmov 18  }
 0xa9c   : > { %4818 = vperm.xlu0 %5700, %v8496_v51  }
 0xaa0   : > { %5678 = vset.pattern.permute.xlu2 %v5873_v14  ;;  %v5023_v14 = vld [vmem:[%s6109_s4 + $0x10] sm:$0xff] }
 0xaa1   : > { %4070 = vperm.xlu2 %5678, %v8496_v51   ;;  %v4475_v35 = vpop.f32.mrf.mxu1 }
 0xaa2   : > { %5688 = vset.pattern.permute.xlu1 %v5874_v26  ;;  %v5027_v35 = vpack.c.bf16 %v5024_v33, %v5023_v14  ;;  %v5878_v26 = vmov 20   ;;  %v5881_v33 = vmov 16   ;;  %v5021_v14 = vld [vmem:[%s6109_s4] sm:$0xff] }
 0xaa3   : > { %4410 = vperm.xlu1 %5688, %v8496_v51  }
 0xaa4   : > { %5041 = vmatpush.bf16.msrb.mxu1 %v5027_v35  ;;  %v5026_v35 = vpack.c.bf16 %v5022_v17, %v5021_v14  ;;  %v5886_v14 = vmov 21  }
 0xaa8   : > { %5042 = vmatpush.bf16.msrb.mxu1 %v5026_v35 }
 0xaa9   : > { %5680 = vset.pattern.permute.xlu2 %v5875_v42  ;;  %v8565_v63 = vpop.f32.mrf.mxu1 }
 0xaaa   : > { %9208 = vst [vmem:[#allocation59_spill] sm:$0xff] %v8565_v63  ;;  %4138 = vperm.xlu2 %5680, %v8496_v51  }
 0xaab   : > { %5691 = vset.pattern.permute.xlu1 %v5876_v7  ;;  %v5879_v7 = vmov 14  }
 0xaac   : > { %4512 = vperm.xlu1 %5691, %v8496_v51  }
 0xab1   : > { %v8569_v61 = vpop.f32.mrf.mxu1 }
 0xab2   : > { %9209 = vst [vmem:[#allocation60_spill] sm:$0xff] %v8569_v61  ;;  %5683 = vset.pattern.permute.xlu2 %v5877_v23  ;;  %v5885_v61 = vmov 30  }
 0xab3   : > { %4240 = vperm.xlu2 %5683, %v8496_v51  }
 0xab4   : > { %5693 = vset.pattern.permute.xlu1 %v5878_v26  ;;  %v5882_v26 = vmov 25  }
 0xab5   : > { %4580 = vperm.xlu1 %5693, %v8496_v51  }
 0xab9   : > { %v8575_v42 = vpop.f32.mrf.mxu1 }
 0xaba   : > { %9210 = vst [vmem:[#allocation61_spill] sm:$0xff] %v8575_v42  ;;  %v5883_v42 = vmov 19  }
 0xabb   : > { %5687 = vset.pattern.permute.xlu2 %v5879_v7 }
 0xabc   : > { %4376 = vperm.xlu2 %5687, %v8496_v51  }
 0xabd   : > { %5696 = vset.pattern.permute.xlu1 %v5880_v39  ;;  %v5884_v39 = vmov 28  }
 0xabe   : > { %4682 = vperm.xlu1 %5696, %v8496_v51  }
 0xac1   : > { %v4611_v23 = vpop.f32.mrf.mxu1 }
 0xac4   : > { %5689 = vset.pattern.permute.xlu2 %v5881_v33 }
 0xac5   : > { %4444 = vperm.xlu2 %5689, %v8496_v51  }
 0xac6   : > { %5698 = vset.pattern.permute.xlu1 %v5882_v26 }
 0xac7   : > { %4750 = vperm.xlu1 %5698, %v8496_v51  }
 0xac9   : > { %v8583_v7 = vpop.f32.mrf.mxu1 }
 0xaca   : > { %9211 = vst [vmem:[#allocation62_spill] sm:$0xff] %v8583_v7 }
 0xacd   : > { %5692 = vset.pattern.permute.xlu2 %v5883_v42  ;;  %v5805_v42 = vld [vmem:[#allocation2] sm:$0xff] }
 0xace   : > { %4546 = vperm.xlu2 %5692, %v8496_v51   ;;  %v8593_v7 = vadd.f32 %v5805_v42, %v8094_v59 }
 0xacf   : > { %5701 = vset.pattern.permute.xlu1 %v5884_v39  ;;  %v5080_v35 = vpop.permute.xlu0 %5079 }
 0xad0   : > { %4852 = vperm.xlu1 %5701, %v8496_v51   ;;  %9214 = vst [vmem:[#allocation65_spill] sm:$0xff] %v8593_v7 }
 0xad1   : > { %v8587_v23 = vpop.f32.mrf.mxu1 }
 0xad2   : > { %9212 = vst [vmem:[#allocation63_spill] sm:$0xff] %v8587_v23 }
 0xad6   : > { %5694 = vset.pattern.permute.xlu2 %v5886_v14  ;;  %v5082_v14 = vmul.f32 %v5080_v35, %v8485_v34 }
 0xad7   : > { %v5085_v33 = vpop.permute.xlu1 %5084  ;;  %v3886_v62 = vpop.permute.xlu0 %3885 }
 0xad8   : > { %5703 = vset.pattern.permute.xlu1 %v5885_v61  ;;  %v5087_v61 = vmul.f32 %v5085_v33, %v8498_v3  ;;  %v3888_v42 = vmul.f32 %v3886_v62, %v8232_v52 }
 0xad9   : > { %4920 = vperm.xlu1 %5703, %v8496_v51   ;;  %v8590_v17 = vpop.f32.mrf.mxu1 }
 0xada   : > { %9213 = vst [vmem:[#allocation64_spill] sm:$0xff] %v8590_v17  ;;  %v5088_v32 = vadd.f32 %v5087_v61, %v5082_v14 }
 0xadf   : > { %v3935_v26 = vpop.permute.xlu1 %3934 }
 0xae0   : > { %v3938_v33 = vmul.f32 %v3935_v26, %v8412_v22  ;;  %v3939_v35 = vmul.f32 %v3935_v26, %v8418_v19 }
 0xae1   : > { %v4747_v39 = vpop.f32.mrf.mxu1 }
 0xae2   : > { %v5018_v63 = vpop.permute.xlu2 %5017 }
 0xae3   : > { %v5020_v23 = vsel %vm9215_vm10, %v8593_v7, %v5018_v63  ;;  %v3889_v63 = vmul.f32 %v3886_v62, %v8238_v4  ;;  %v3901_v7 = vadd.f32 %v8234_v27, %v3888_v42  ;;  %v4003_v4 = vpop.permute.xlu0 %4002 }
 0xae4   : > { %v5025_v50 = vpack.c.bf16 %v5020_v23, %v5020_v23  ;;  %v3890_v23 = vmul.f32 %v3886_v62, %v8256_v12  ;;  %v4005_v27 = vmul.f32 %v4003_v4, %v8276_v28  ;;  %v4006_v42 = vmul.f32 %v4003_v4, %v8282_v36 }
 0xae5   : > { %v3903_v52 = vadd.f32 %v8240_v43, %v3889_v63  ;;  %v4007_v43 = vmul.f32 %v4003_v4, %v8300_v60  ;;  %v5887_v60 = vmov 31  }
 0xae6   : > { %5547 = vmatmul.msk.bf16.vlgmr.msrb.gmra.mxu1 %vm2729_vm6, %v5025_v50  ;;  %v3937_v50 = vmul.f32 %v3935_v26, %v8396_v25  ;;  %5705 = vset.pattern.permute.xlu0 %v5887_v60 }
 0xae7   : > { %v3941_v62 = vadd.f32 %v3938_v33, %v3903_v52 }
 0xae8   : > { %v4037_v17 = vpop.permute.xlu1 %4036  ;;  %v3940_v12 = vadd.f32 %v3937_v50, %v3901_v7 }
 0xae9   : > { %v8600_v6 = vpop.f32.mrf.mxu1  ;;  %v4041_v28 = vmul.f32 %v4037_v17, %v8244_v49 }
 0xaea   : > { %v5091_v8 = vpop.permute.xlu2 %5090 }
 0xaeb   : > { %v5093_v59 = vmul.f32 %v5091_v8, %v8513_v20 }
 0xaed   : > { %v5094_v39 = vadd.f32 %v5093_v59, %v5088_v32  ;;  %v3906_v32 = vadd.f32 %v8258_v47, %v3890_v23  ;;  %v4039_v23 = vmul.f32 %v4037_v17, %v8219_v30 }
 0xaef   : > { %5097 = vrot.lane.b32.xlu2 %v5094_v39, %s5859_s27  ;;  %v3942_v59 = vadd.f32 %v3939_v35, %v3906_v32 }
 0xaf1   : > { %v4105_v61 = vpop.permute.xlu1 %4104  ;;  %v8611_v14 = vpop.f32.mrf.mxu1 }
 0xaf2   : > { %v3969_v8 = vpop.permute.xlu2 %3968 }
 0xaf3   : > { %v3971_v25 = vmul.f32 %v3969_v8, %v8274_v15  ;;  %v3972_v22 = vmul.f32 %v3969_v8, %v8280_v2  ;;  %v3973_v19 = vmul.f32 %v3969_v8, %v8298_v1  ;;  %v4040_v2 = vmul.f32 %v4037_v17, %v8236_v31 }
 0xaf4   : > { %v4107_v17 = vmul.f32 %v4105_v61, %v8316_v21 }
 0xaf5   : > { %v3974_v26 = vadd.f32 %v3971_v25, %v3940_v12  ;;  %v3975_v39 = vadd.f32 %v3972_v22, %v3941_v62  ;;  %v3976_v47 = vadd.f32 %v3973_v19, %v3942_v59  ;;  %v5888_v25 = vmov 24   ;;  %v4173_v59 = vpop.permute.xlu0 %4172 }
 0xaf6   : > { %v4108_v62 = vmul.f32 %v4105_v61, %v8322_v18  ;;  %v4109_v22 = vmul.f32 %v4105_v61, %v8338_v5  ;;  %v4176_v21 = vmul.f32 %v4173_v59, %v8278_v38  ;;  %v4177_v5 = vmul.f32 %v4173_v59, %v8286_v24 }
 0xaf7   : > { %v4008_v63 = vadd.f32 %v4005_v27, %v3974_v26  ;;  %4614 = vperm.xlu2 %5694, %v8496_v51   ;;  %v4009_v7 = vadd.f32 %v4006_v42, %v3975_v39  ;;  %v4010_v15 = vadd.f32 %v4007_v43, %v3976_v47  ;;  %v4175_v39 = vmul.f32 %v4173_v59, %v8260_v57 }
 0xaf8   : > { %v5889_v61 = vmov 26  }
 0xaf9   : > { %v8624_v50 = vpop.f32.mrf.mxu1  ;;  %v4042_v36 = vadd.f32 %v4039_v23, %v4008_v63  ;;  %v4043_v35 = vadd.f32 %v4040_v2, %v4009_v7  ;;  %v4044_v52 = vadd.f32 %v4041_v28, %v4010_v15 }
 0xafa   : > { %v4207_v1 = vpop.permute.xlu1 %4206 }
 0xafb   : > { %v4071_v33 = vpop.permute.xlu2 %4070  ;;  %v4211_v57 = vmul.f32 %v4207_v1, %v8478_v16 }
 0xafc   : > { %v4073_v32 = vmul.f32 %v4071_v33, %v8430_v40  ;;  %v4074_v4 = vmul.f32 %v4071_v33, %v8442_v37  ;;  %v4075_v30 = vmul.f32 %v4071_v33, %v8448_v53 }
 0xafd   : > { %v4309_v28 = vpop.permute.xlu0 %4308 }
 0xafe   : > { %v4076_v8 = vadd.f32 %v4073_v32, %v4042_v36  ;;  %v4077_v31 = vadd.f32 %v4074_v4, %v4043_v35  ;;  %v4078_v12 = vadd.f32 %v4075_v30, %v4044_v52  ;;  %v4311_v30 = vmul.f32 %v4309_v28, %v8302_v45 }
 0xaff   : > { %5697 = vset.pattern.permute.xlu2 %v5888_v25 }
 0xb00   : > { %4716 = vperm.xlu2 %5697, %v8496_v51   ;;  %v4110_v19 = vadd.f32 %v4107_v17, %v4076_v8  ;;  %v4111_v37 = vadd.f32 %v4108_v62, %v4077_v31  ;;  %v4112_v53 = vadd.f32 %v4109_v22, %v4078_v12  ;;  %v4312_v8 = vmul.f32 %v4309_v28, %v8320_v48  ;;  %v9217_v62 = vld [vmem:[#allocation49_spill] sm:$0xff] }
 0xb01   : > { %v4883_v49 = vpop.f32.mrf.mxu1  ;;  %v5890_v31 = vmov 29  }
 0xb02   : > { %v9216_v49 = vld [vmem:[#allocation46_spill] sm:$0xff] }
 0xb03   : > { %v4275_v27 = vpop.permute.xlu1 %4274 }
 0xb04   : > { %v4139_v40 = vpop.permute.xlu2 %4138  ;;  %v4277_v52 = vmul.f32 %v4275_v27, %v8357_v58  ;;  %v4278_v32 = vmul.f32 %v4275_v27, %v8363_v44 }
 0xb05   : > { %v4141_v26 = vmul.f32 %v4139_v40, %v8318_v56  ;;  %v4142_v42 = vmul.f32 %v4139_v40, %v8324_v9  ;;  %v4143_v43 = vmul.f32 %v4139_v40, %v8340_v29  ;;  %v4209_v9 = vmul.f32 %v4207_v1, %v8460_v55 }
 0xb06   : > { %v4210_v29 = vmul.f32 %v4207_v1, %v8472_v54  ;;  %v4279_v54 = vmul.f32 %v4275_v27, %v8378_v13 }
 0xb07   : > { %v4144_v47 = vadd.f32 %v4141_v26, %v4110_v19  ;;  %v4145_v18 = vadd.f32 %v4142_v42, %v4111_v37  ;;  %v4146_v63 = vadd.f32 %v4143_v43, %v4112_v53  ;;  %v9218_v19 = vld [vmem:[#allocation15_spill] sm:$0xff]  ;;  %v9219_v37 = vld [vmem:[#allocation21_spill] sm:$0xff]  ;;  %v9220_v53 = vld [vmem:[#allocation18_spill] sm:$0xff] }
 0xb08   : > { %5699 = vset.pattern.permute.xlu2 %v5889_v61  ;;  %v9223_v61 = vld [vmem:[#allocation14_spill] sm:$0xff] }
 0xb09   : > { %v4178_v7 = vadd.f32 %v4175_v39, %v4144_v47  ;;  %v4179_v15 = vadd.f32 %v4176_v21, %v4145_v18  ;;  %4784 = vperm.xlu2 %5699, %v8496_v51   ;;  %v4180_v56 = vadd.f32 %v4177_v5, %v4146_v63  ;;  %v9221_v21 = vld [vmem:[#allocation27_spill] sm:$0xff]  ;;  %v9222_v18 = vld [vmem:[#allocation29_spill] sm:$0xff]  ;;  %v4479_v5 = vpop.permute.xlu0 %4478 }
 0xb0b   : > { %v4212_v38 = vadd.f32 %v4209_v9, %v4178_v7  ;;  %v4213_v2 = vadd.f32 %v4210_v29, %v4179_v15  ;;  %v4214_v33 = vadd.f32 %v4211_v57, %v4180_v56  ;;  %v9224_v57 = vld [vmem:[#allocation16_spill] sm:$0xff] }
 0xb0c   : > { %v4343_v55 = vpop.permute.xlu1 %4342 }
 0xb0d   : > { %v4241_v23 = vpop.permute.xlu2 %4240  ;;  %v4345_v58 = vmul.f32 %v4343_v55, %v8505_v11  ;;  %v4346_v17 = vmul.f32 %v4343_v55, %v9216_v49  ;;  %v4347_v45 = vmul.f32 %v4343_v55, %v9217_v62  ;;  %v9229_v55 = vld [vmem:[#allocation58_spill] sm:$0xff]  ;;  %v9234_v62 = vld [vmem:[#allocation11_spill] sm:$0xff] }
 0xb0e   : > { %v4243_v24 = vmul.f32 %v4241_v23, %v8355_v10  ;;  %v4244_v36 = vmul.f32 %v4241_v23, %v8361_v41  ;;  %v4245_v35 = vmul.f32 %v4241_v23, %v8376_v0  ;;  %v4313_v10 = vmul.f32 %v4309_v28, %v8328_v46  ;;  %v9226_v28 = vld [vmem:[#allocation23_spill] sm:$0xff]  ;;  %v9233_v49 = vld [vmem:[#allocation22_spill] sm:$0xff] }
 0xb10   : > { %v4246_v4 = vadd.f32 %v4243_v24, %v4212_v38  ;;  %v4247_v16 = vadd.f32 %v4244_v36, %v4213_v2  ;;  %v4248_v1 = vadd.f32 %v4245_v35, %v4214_v33  ;;  %v9225_v38 = vld [vmem:[#allocation24_spill] sm:$0xff] }
 0xb11   : > { %5702 = vset.pattern.permute.xlu2 %v5890_v31 }
 0xb12   : > { %v4280_v41 = vadd.f32 %v4277_v52, %v4246_v4  ;;  %v4281_v0 = vadd.f32 %v4278_v32, %v4247_v16  ;;  %v4282_v12 = vadd.f32 %v4279_v54, %v4248_v1  ;;  %4886 = vperm.xlu2 %5702, %v8496_v51   ;;  %v4483_v54 = vmul.f32 %v4479_v5, %v9229_v55 }
 0xb14   : > { %v4314_v44 = vadd.f32 %v4311_v30, %v4280_v41  ;;  %v4315_v13 = vadd.f32 %v4312_v8, %v4281_v0  ;;  %v4316_v25 = vadd.f32 %v4313_v10, %v4282_v12  ;;  %v9230_v8 = vld [vmem:[#allocation26_spill] sm:$0xff]  ;;  %v9231_v10 = vld [vmem:[#allocation19_spill] sm:$0xff] }
 0xb15   : > { %v4411_v42 = vpop.permute.xlu1 %4410  ;;  %v9232_v0 = vld [vmem:[#allocation31_spill] sm:$0xff] }
 0xb16   : > { %v4377_v59 = vpop.permute.xlu2 %4376  ;;  %v4348_v48 = vadd.f32 %v4345_v58, %v4314_v44  ;;  %v4349_v22 = vadd.f32 %v4346_v17, %v4315_v13  ;;  %v4350_v40 = vadd.f32 %v4347_v45, %v4316_v25  ;;  %v4413_v47 = vmul.f32 %v4411_v42, %v9221_v21 }
 0xb17   : > { %v4379_v46 = vmul.f32 %v4377_v59, %v9218_v19  ;;  %v4380_v27 = vmul.f32 %v4377_v59, %v9219_v37  ;;  %v4381_v26 = vmul.f32 %v4377_v59, %v9220_v53  ;;  %v4414_v63 = vmul.f32 %v4411_v42, %v9222_v18  ;;  %v9235_v59 = vld [vmem:[#allocation32_spill] sm:$0xff]  ;;  %v5055_v37 = vld [vmem:[%s6118_s12 + $0x8] sm:$0xff] }
 0xb18   : > { %v4415_v7 = vmul.f32 %v4411_v42, %v9223_v61  ;;  %v5713_v53 = vld [vmem:[%s1054_s25] ss:$0 sm:$0xff]  ;;  %s5891_s25 = smov [#allocation2]  }
 0xb19   : > { %v4382_v43 = vadd.f32 %v4379_v46, %v4348_v48  ;;  %v4383_v11 = vadd.f32 %v4380_v27, %v4349_v22  ;;  %v4384_v39 = vadd.f32 %v4381_v26, %v4350_v40  ;;  %v5054_v46 = vld [vmem:[%s6118_s12] sm:$0xff] }
 0xb1a   : > { %5704 = vset.pattern.permute.xlu2 %v5887_v60  ;;  %v9227_v60 = vld [vmem:[#allocation52_spill] sm:$0xff]  ;;  %v5057_v27 = vpack.c.bf16 %v5055_v37, %v5054_v46 }
 0xb1b   : > { %4954 = vperm.xlu2 %5704, %v8496_v51   ;;  %v4416_v56 = vadd.f32 %v4413_v47, %v4382_v43  ;;  %v4417_v9 = vadd.f32 %v4414_v63, %v4383_v11  ;;  %v4418_v29 = vadd.f32 %v4415_v7, %v4384_v39  ;;  %v4481_v24 = vmul.f32 %v4479_v5, %v9227_v60  ;;  %v9228_v51 = vld [vmem:[#allocation55_spill] sm:$0xff]  ;;  %v5714_v61 = vld [vmem:[%s1062_s7] ss:$0 sm:$0xff]  ;;  %s5161_s7 = sshll.u32 %s5891_s25, 4  ;;  %s5162_s7 = int_to_ptr.vmem [resolvable:$true] %s5161_s7 }
 0xb1c   : > { %v4482_v36 = vmul.f32 %v4479_v5, %v9228_v51  ;;  %5072 = vmatpush.bf16.msra.mxu1 %v5057_v27  ;;  %v9239_v60 = vld [vmem:[#allocation20_spill] sm:$0xff]  ;;  %v9240_v51 = vld [vmem:[#allocation59_spill] sm:$0xff]  ;;  %v9251_v27 = vld [vmem:[#allocation41_spill] sm:$0xff] }
 0xb1e   : > { %v4513_v4 = vpop.permute.xlu1 %4512 }
 0xb1f   : > { %v4445_v15 = vpop.permute.xlu2 %4444  ;;  %v4515_v31 = vmul.f32 %v4513_v4, %v9230_v8  ;;  %v4516_v41 = vmul.f32 %v4513_v4, %v9231_v10  ;;  %v4517_v12 = vmul.f32 %v4513_v4, %v9232_v0  ;;  %v9245_v0 = vld [vmem:[#allocation34_spill] sm:$0xff] }
 0xb20   : > { %v4447_v23 = vmul.f32 %v4445_v15, %v9224_v57  ;;  %v4448_v2 = vmul.f32 %v4445_v15, %v9225_v38  ;;  %v4449_v33 = vmul.f32 %v4445_v15, %v9226_v28 }
 0xb22   : > { %v4450_v35 = vadd.f32 %v4447_v23, %v4416_v56  ;;  %v4451_v52 = vadd.f32 %v4448_v2, %v4417_v9  ;;  %v4452_v32 = vadd.f32 %v4449_v33, %v4418_v29 }
 0xb24   : > { %v4484_v16 = vadd.f32 %v4481_v24, %v4450_v35  ;;  %v4485_v1 = vadd.f32 %v4482_v36, %v4451_v52  ;;  %v4486_v30 = vadd.f32 %v4483_v54, %v4452_v32  ;;  %v9241_v36 = vld [vmem:[#allocation10_spill] sm:$0xff]  ;;  %v9243_v32 = vld [vmem:[#allocation60_spill] sm:$0xff]  ;;  %v9244_v54 = vld [vmem:[#allocation61_spill] sm:$0xff] }
 0xb26   : > { %v4518_v44 = vadd.f32 %v4515_v31, %v4484_v16  ;;  %v4519_v13 = vadd.f32 %v4516_v41, %v4485_v1  ;;  %v4520_v25 = vadd.f32 %v4517_v12, %v4486_v30  ;;  %v4649_v1 = vpop.permute.xlu0 %4648 }
 0xb27   : > { %v4581_v38 = vpop.permute.xlu1 %4580  ;;  %v4651_v12 = vmul.f32 %v4649_v1, %v9245_v0  ;;  %v9263_v0 = vld [vmem:[#allocation33_spill] sm:$0xff] }
 0xb28   : > { %v4547_v58 = vpop.permute.xlu2 %4546  ;;  %v4583_v24 = vmul.f32 %v4581_v38, %v9239_v60  ;;  %v4584_v35 = vmul.f32 %v4581_v38, %v9241_v36 }
 0xb29   : > { %v4549_v17 = vmul.f32 %v4547_v58, %v9233_v49  ;;  %v4550_v45 = vmul.f32 %v4547_v58, %v9234_v62  ;;  %v4551_v48 = vmul.f32 %v4547_v58, %v9235_v59  ;;  %v9246_v58 = vld [vmem:[#allocation37_spill] sm:$0xff] }
 0xb2b   : > { %v4552_v22 = vadd.f32 %v4549_v17, %v4518_v44  ;;  %v4553_v40 = vadd.f32 %v4550_v45, %v4519_v13  ;;  %v4554_v19 = vadd.f32 %v4551_v48, %v4520_v25  ;;  %v4652_v44 = vmul.f32 %v4649_v1, %v9246_v58  ;;  %v9247_v13 = vld [vmem:[#allocation40_spill] sm:$0xff]  ;;  %v9248_v48 = vld [vmem:[#allocation35_spill] sm:$0xff] }
 0xb2c   : > { %v4653_v25 = vmul.f32 %v4649_v1, %v9247_v13 }
 0xb2d   : > { %v4586_v16 = vadd.f32 %v4583_v24, %v4552_v22  ;;  %v4587_v30 = vadd.f32 %v4584_v35, %v4553_v40  ;;  %v9249_v22 = vld [vmem:[#allocation28_spill] sm:$0xff]  ;;  %v9250_v40 = vld [vmem:[#allocation38_spill] sm:$0xff]  ;;  %v9259_v24 = vld [vmem:[#allocation47_spill] sm:$0xff] }
 0xb30   : > { %v4683_v28 = vpop.permute.xlu1 %4682 }
 0xb31   : > { %v4685_v46 = vmul.f32 %v4683_v28, %v9248_v48 }
 0xb39   : > { %v4751_v49 = vpop.permute.xlu1 %4750 }
 0xb49   : > { %v5098_v56 = vpop.permute.xlu2 %5097 }
 0xb51   : > { %v4615_v2 = vpop.permute.xlu2 %4614 }
 0xb52   : > { %v4618_v55 = vmul.f32 %v4615_v2, %v9243_v32  ;;  %v4619_v4 = vmul.f32 %v4615_v2, %v9244_v54  ;;  %v9260_v54 = vld [vmem:[#allocation43_spill] sm:$0xff] }
 0xb54   : > { %v4621_v10 = vadd.f32 %v4618_v55, %v4587_v30  ;;  %v9262_v30 = vld [vmem:[#allocation48_spill] sm:$0xff] }
 0xb56   : > { %v4655_v62 = vadd.f32 %v4652_v44, %v4621_v10  ;;  %v9264_v44 = vld [vmem:[#allocation36_spill] sm:$0xff] }
 0xb5a   : > { %v4717_v33 = vpop.permute.xlu2 %4716 }
 0xb5b   : > { %v4719_v37 = vmul.f32 %v4717_v33, %v9249_v22 }
 0xb63   : > { %v5044_v26 = vpop.f32.mrf.mxu1  ;;  %v4785_v59 = vpop.permute.xlu2 %4784 }
 0xb64   : > { %v5045_v42 = vadd.f32 %v5713_v53, %v5044_v26  ;;  %v4687_v53 = vmul.f32 %v4683_v28, %v9251_v27  ;;  %v9252_v26 = vld [vmem:[#allocation17_spill] sm:$0xff]  ;;  %v9266_v27 = vld [vmem:[#allocation50_spill] sm:$0xff] }
 0xb66   : > { %v5048_v43 = vsub.f32 0.0, %v5045_v42 }
 0xb68   : > { %v5049_v11 = vmul.f32 1.442695, %v5048_v43  ;;  %v9253_v43 = vld [vmem:[#allocation30_spill] sm:$0xff] }
 0xb6a   : > { %5785 = vpow2.f32 %v5049_v11  ;;  %v4721_v11 = vmul.f32 %v4717_v33, %v9253_v43 }
 0xb6b   : > { %v5046_v39 = vpop.f32.mrf.mxu1 }
 0xb70   : > { %v5786_v21 = vpop.eup %5785 }
 0xb71   : > { %v5051_v47 = vadd.f32 1.0, %v5786_v21 }
 0xb73   : > { %5787 = vrcp.f32 %v5051_v47 }
 0xb79   : > { %v5788_v18 = vpop.eup %5787 }
 0xb7a   : > { %v5053_v63 = vmul.f32 %v5788_v18, %v5045_v42  ;;  %v4720_v42 = vmul.f32 %v4717_v33, %v9252_v26  ;;  %v9267_v26 = vld [vmem:[#allocation53_spill] sm:$0xff] }
 0xb7c   : > { %v5056_v5 = vpack.c.bf16 %v5053_v63, %v5053_v63 }
 0xb7e   : > { %5548 = vmatmul.msk.bf16.vlgmr.msra.gmra.mxu1 %vm9237_vm11, %v5056_v5 }
 0xbfb   : > { %v5074_v7 = vpop.f32.mrf.mxu1 }
 0xbfc   : > { %v8691_v15 = vadd.f32 %v5714_v61, %v5074_v7  ;;  %v9254_v61 = vld [vmem:[#allocation62_spill] sm:$0xff] }
 0xbfd   : > { %v4753_v7 = vmul.f32 %v4751_v49, %v9254_v61 }
 0xbfe   : > { %v5116_v9 = vmul.f32 %v8691_v15, %v8513_v20  ;;  %v5109_v29 = vmul.f32 %v8691_v15, %v8498_v3  ;;  %v5100_v57 = vmul.f32 %v5098_v56, %v8691_v15  ;;  %v4617_v20 = vmul.f32 %v4615_v2, %v9240_v51  ;;  %v9242_v3 = vld [vmem:[#allocation9_spill] sm:$0xff]  ;;  %v9255_v56 = vld [vmem:[#allocation42_spill] sm:$0xff]  ;;  %v4853_v2 = vpop.permute.xlu1 %4852 }
 0xbff   : > { %v4585_v52 = vmul.f32 %v4581_v38, %v9242_v3  ;;  %v4789_v51 = vmul.f32 %v4785_v59, %v9259_v24  ;;  %v4887_v3 = vpop.permute.xlu2 %4886  ;;  %v4856_v13 = vmul.f32 %v4853_v2, %v9264_v44  ;;  %v9274_v24 = vld [vmem:[#allocation13_spill] sm:$0xff] }
 0xc00   : > { %5118 = vrot.lane.b32.xlu2 %v5116_v9, %s5859_s27  ;;  %5111 = vrot.lane.b32.xlu1 %v5109_v29, %s5860_s24  ;;  %v4620_v31 = vadd.f32 %v4617_v20, %v4586_v16  ;;  %v4787_v9 = vmul.f32 %v4785_v59, %v9255_v56  ;;  %v9256_v29 = vld [vmem:[#allocation63_spill] sm:$0xff]  ;;  %v4819_v20 = vpop.permute.xlu0 %4818  ;;  %v9261_v16 = vld [vmem:[#allocation45_spill] sm:$0xff]  ;;  %v4889_v58 = vmul.f32 %v4887_v3, %v8600_v6 }
 0xc01   : > { %5102 = vrot.lane.b32.xlu0 %v5100_v57, %s5847_s16  ;;  %v4588_v8 = vadd.f32 %v4585_v52, %v4554_v19  ;;  %v4686_v19 = vmul.f32 %v4683_v28, %v9250_v40  ;;  %v4754_v57 = vmul.f32 %v4751_v49, %v9256_v29  ;;  %v9258_v28 = vld [vmem:[#allocation44_spill] sm:$0xff]  ;;  %v4822_v1 = vmul.f32 %v4819_v20, %v9261_v16  ;;  %v9272_v56 = vld [vmem:[#allocation65_spill] sm:$0xff] }
 0xc02   : > { %v4654_v17 = vadd.f32 %v4651_v12, %v4620_v31  ;;  %v4788_v60 = vmul.f32 %v4785_v59, %v9258_v28  ;;  %v4855_v12 = vmul.f32 %v4853_v2, %v9263_v0 }
 0xc03   : > { %v5076_v23 = vpop.f32.mrf.mxu1  ;;  %v4622_v41 = vadd.f32 %v4619_v4, %v4588_v8  ;;  %v4689_v21 = vadd.f32 %v4686_v19, %v4655_v62  ;;  %v4821_v4 = vmul.f32 %v4819_v20, %v9260_v54  ;;  %v4823_v8 = vmul.f32 %v4819_v20, %v9262_v30 }
 0xc04   : > { %v4688_v39 = vadd.f32 %v4685_v46, %v4654_v17  ;;  %v9257_v23 = vld [vmem:[#allocation64_spill] sm:$0xff]  ;;  %v4890_v62 = vmul.f32 %v4887_v3, %v8611_v14  ;;  %v9271_v14 = vld [vmem:[#allocation57_spill] sm:$0xff] }
 0xc05   : > { %v4656_v45 = vadd.f32 %v4653_v25, %v4622_v41  ;;  %v4723_v63 = vadd.f32 %v4720_v42, %v4689_v21  ;;  %v4755_v38 = vmul.f32 %v4751_v49, %v9257_v23  ;;  %v9265_v25 = vld [vmem:[#allocation39_spill] sm:$0xff]  ;;  %v9270_v21 = vld [vmem:[#allocation54_spill] sm:$0xff] }
 0xc06   : > { %v4722_v18 = vadd.f32 %v4719_v37, %v4688_v39  ;;  %v4857_v49 = vmul.f32 %v4853_v2, %v9265_v25  ;;  %v4921_v17 = vpop.permute.xlu1 %4920  ;;  %v9268_v42 = vld [vmem:[#allocation51_spill] sm:$0xff] }
 0xc07   : > { %v4690_v47 = vadd.f32 %v4687_v53, %v4656_v45  ;;  %v4757_v36 = vadd.f32 %v4754_v57, %v4723_v63  ;;  %v4891_v45 = vmul.f32 %v4887_v3, %v8624_v50  ;;  %v4955_v22 = vpop.permute.xlu2 %4954  ;;  %v4923_v53 = vmul.f32 %v4921_v17, %v9266_v27  ;;  %v9273_v57 = vld [vmem:[#allocation12_spill] sm:$0xff] }
 0xc08   : > { %v4756_v33 = vadd.f32 %v4753_v7, %v4722_v18  ;;  %v4924_v6 = vmul.f32 %v4921_v17, %v9267_v26  ;;  %v4957_v43 = vmul.f32 %v4955_v22, %v9268_v42  ;;  %v4959_v18 = vmul.f32 %v4955_v22, %v9271_v14 }
 0xc09   : > { %v4724_v5 = vadd.f32 %v4721_v11, %v4690_v47  ;;  %v4791_v32 = vadd.f32 %v4788_v60, %v4757_v36  ;;  %v9269_v11 = vld [vmem:[#allocation56_spill] sm:$0xff]  ;;  %v4958_v47 = vmul.f32 %v4955_v22, %v9270_v21  ;;  %v5106_v50 = vmul.f32 %v8691_v15, %v8485_v34 }
 0xc0a   : > { %v4790_v52 = vadd.f32 %v4787_v9, %v4756_v33  ;;  %v4925_v39 = vmul.f32 %v4921_v17, %v9269_v11  ;;  %v5095_v9 = vadd.f32 %v8691_v15, %v9272_v56 }
 0xc0b   : > { %v4758_v35 = vadd.f32 %v4755_v38, %v4724_v5  ;;  %v4825_v10 = vadd.f32 %v4822_v1, %v4791_v32 }
 0xc0c   : > { %v4824_v31 = vadd.f32 %v4821_v4, %v4790_v52 }
 0xc0d   : > { %v4792_v55 = vadd.f32 %v4789_v51, %v4758_v35  ;;  %v4859_v48 = vadd.f32 %v4856_v13, %v4825_v10  ;;  %v5107_v51 = vadd.f32 %v5106_v50, %v9274_v24  ;;  %v9276_v35 = vld [vmem:[#allocation25_spill] sm:$0xff] }
 0xc0e   : > { %v4858_v59 = vadd.f32 %v4855_v12, %v4824_v31 }
 0xc0f   : > { %v4826_v41 = vadd.f32 %v4823_v8, %v4792_v55  ;;  %v4893_v40 = vadd.f32 %v4890_v62, %v4859_v48 }
 0xc10   : > { %v4892_v37 = vadd.f32 %v4889_v58, %v4858_v59 }
 0xc11   : > { %v4860_v46 = vadd.f32 %v4857_v49, %v4826_v41  ;;  %v4927_v5 = vadd.f32 %v4924_v6, %v4893_v40 }
 0xc12   : > { %v4926_v63 = vadd.f32 %v4923_v53, %v4892_v37 }
 0xc13   : > { %v4894_v19 = vadd.f32 %v4891_v45, %v4860_v46  ;;  %v4961_v2 = vadd.f32 %v4958_v47, %v4927_v5 }
 0xc14   : > { %v4960_v29 = vadd.f32 %v4957_v43, %v4926_v63 }
 0xc15   : > { %v4928_v61 = vadd.f32 %v4925_v39, %v4894_v19 }
 0xc17   : > { %v4962_v28 = vadd.f32 %v4959_v18, %v4928_v61 }
 0xc5a   : > { %v5119_v15 = vpop.permute.xlu2 %5118 }
 0xc5b   : > { %v5121_v3 = vadd.f32 %v5119_v15, %v9276_v35 }
 0xc72   : > { %v5112_v7 = vpop.permute.xlu1 %5111 }
 0xc73   : > { %v5114_v23 = vadd.f32 %v5112_v7, %v9273_v57  ;;  %v5103_v38 = vpop.permute.xlu0 %5102 }
 0xc74   : > { %v5105_v60 = vadd.f32 %v5103_v38, %v5095_v9 }
 0xc75   : > { %5128 = vrot.lane.b32.xlu1 %v5114_v23, %s5860_s24 }
 0xc76   : > { %v5115_v33 = vmul.f32 %v5105_v60, %v4961_v2  ;;  %v5108_v34 = vmul.f32 %v5105_v60, %v4960_v29  ;;  %v5122_v20 = vmul.f32 %v5105_v60, %v4962_v28  ;;  %v5143_v36 = vsel %vm9275_vm12, %v5105_v60, %v5107_v51 }
 0xc78   : > { %5132 = vrot.lane.b32.xlu2 %v5115_v33, %s5854_s17  ;;  %5124 = vrot.lane.b32.xlu0 %v5108_v34, %s5859_s27 }
 0xc7d   : > { %5140 = vrot.lane.b32.xlu1 %v5122_v20, %s5847_s16  ;;  %s9278_s16 = sld [smem:[#allocation88_spill]] }
 0xc80   : > { %5136 = vrot.lane.b32.xlu0 %v5121_v3, %s5859_s27 }
 0xc83   : > { %s5163_s2 = sshll.u32 %s9278_s16, 4  ;;  %s5164_s2 = int_to_ptr.hbm [resolvable:$true] %s5163_s2 }
 0xcd2   : > { %v5133_v4 = vpop.permute.xlu2 %5132 }
 0xce7   : > { %v5129_v52 = vpop.permute.xlu1 %5128 }
 0xcea   : > { %v5125_v32 = vpop.permute.xlu0 %5124 }
 0xceb   : > { %v5144_v55 = vsel %vm2729_vm6, %v5143_v36, %v5125_v32 }
 0xcec   : > { %v5145_v54 = vsel %vm3580_vm4, %v5144_v55, %v5129_v52 }
 0xced   : > { %v5147_v16 = vsel %vm5146_vm13, %v5145_v54, %v5133_v4 }
 0xcef   : > { %v5141_v30 = vpop.permute.xlu1 %5140 }
 0xcf2   : > { %v5137_v1 = vpop.permute.xlu0 %5136 }
 0xcf3   : > { %v5149_v8 = vsel %vm5148_vm9, %v5147_v16, %v5137_v1 }
 0xcf4   : > { %v5151_v31 = vsel %vm5150_vm7, %v5149_v8, %v5141_v30 }
 0xcf5   : > { %v5153_v10 = vsel %vm5152_vm8, %v5151_v31, 0.0 }
 0xcf6   : > { %5154 = vst [vmem:[#allocation2] sm:$0xff] %v5153_v10 }
 0xcf7   : > { %5568 = dma.vmem_to_hbm [thread:$0]  (%p5571_p5), %s5162_s7, 128, %s5164_s2, [#allocation3]  }
 0xcf8   : > { %5839 = dma.done.wait (%p5571_p5), [#allocation3], 128  }
 0xcf9   : > { %5841 = vsyncadd (%p5571_p5), [#allocation3], 4294967168 }
 0xcfa PF: > { %s9279_s27 = sld [smem:[#allocation5_spill]] }
 0xd00   : > { %s36_s29 = sadd.s32 1, %s9279_s27  }
 0xd01   : > { %p33_p6 = scmp.ge.s32.totalorder %s36_s29, 4  }
 0xd03   :  { %35 = sbr.rel (!%p33_p6) target bundleno = 25 (0x19), region = 205 }
 0xd08   :  { %5177 = vsyncpa [#allocation3], 1 }
 0xd09   :  { %5179 = vsyncpa [#allocation3 + $0x1], 1 }

</bundles_post_ra>
